<compile_context>
chip_gen: v7x
topology: tpu7x:2x2x1
jax: 0.10.0
libtpu: 0.0.40
codegen_flags: <defaults>
</compile_context>

<pallas_src>
import functools
import math

import jax
import jax.numpy as jnp
from jax.experimental import pallas as pl
from jax.experimental.pallas import tpu as pltpu


def _round_up(x, m):
    return (x + m - 1) // m * m


# ----------------------------------------------------------------------------
# Fused Pallas kernel: n_layers x (Conv1d 'same' + folded BatchNorm [+ tanh])
# ----------------------------------------------------------------------------
def _make_fused_postnet_kernel(*, n_layers, K, conv_pad, tile_t, halo, t_true,
                               win_rows):
    L0 = tile_t + 2 * halo                 # layer-0 valid rows per time tile
    rows_cmp_max = _round_up(max(L0 - 2 * conv_pad, 8), 8)

    def kernel(*refs):
        x_hbm = refs[0]                                   # (B, T_in_pad, Cin_p) HBM
        w_refs = refs[1:1 + n_layers]                     # (K, Cin_l, Cout_l) VMEM
        s_refs = refs[1 + n_layers:1 + 2 * n_layers]      # (1, Cout_l)        VMEM
        o_ref = refs[1 + 2 * n_layers]                    # (1, tile_t, Cout_p)
        xbuf, abuf, bbuf, sem = refs[2 + 2 * n_layers:]

        b = pl.program_id(0)
        j = pl.program_id(1)
        n_t = pl.num_programs(1)
        slot = j % 2

        def dma(jj, s_):
            start = pl.multiple_of(jj * tile_t, 8)
            return pltpu.make_async_copy(
                x_hbm.at[b, pl.ds(start, win_rows), :],
                xbuf.at[s_, pl.ds(0, win_rows), :],
                sem.at[s_])

        # Prime the double-buffer at the first time tile of this batch row.
        @pl.when(j == 0)
        def _():
            dma(j, slot).start()

        # Wait for the window prefetched by the previous step (or primed just
        # above), then immediately start the NEXT tile's copy so its HBM
        # latency hides under the layer loop below.
        dma(j, slot).wait()

        @pl.when(j + 1 < n_t)
        def _():
            dma(j + 1, 1 - slot).start()

        # Hoisted once per tile; only consumed inside the boundary-mask branch.
        ridx = jax.lax.broadcasted_iota(jnp.int32, (rows_cmp_max, 1), 0)
        g0 = j * tile_t - halo             # global time pos of layer-0 row 0

        src = xbuf.at[slot]
        bufs = (abuf, bbuf)
        rows_valid = L0
        for layer in range(n_layers):
            is_last = layer == n_layers - 1
            rows_out = rows_valid - 2 * conv_pad
            # Keep stores full-sublane: compute a few extra (garbage) rows on
            # intermediate layers; they never feed a valid row downstream.
            rows_cmp = rows_out if is_last else _round_up(rows_out, 8)
            w = w_refs[layer]
            cin_l = w.shape[1]
            cout_l = w.shape[2]

            # Conv1d as K accumulating MXU matmuls (no im2col staging buffer).
            acc = jnp.dot(src[0:rows_cmp, 0:cin_l], w[0],
                          preferred_element_type=jnp.float32)
            for k in range(1, K):
                acc = acc + jnp.dot(src[k:k + rows_cmp, 0:cin_l], w[k],
                                    preferred_element_type=jnp.float32)
            y = acc + s_refs[layer][0]      # BN shift (scale folded into w)

            if is_last:
                # TODO(synk): training-mode dropout (p_postnet_dropout) is not
                # applied; matches eval()/inference semantics (identity).
                o_ref[0] = y.astype(o_ref.dtype)
            else:
                dst = bufs[layer % 2]
                dst[0:rows_cmp, 0:cout_l] = jnp.tanh(y).astype(dst.dtype)

                # Zero frames outside the true sequence so the next layer's
                # implicit 'same' zero-padding is reproduced exactly.  Only
                # boundary tiles can trigger this; interior tiles skip it.
                g0_l = g0 + (layer + 1) * conv_pad

                @pl.when((g0_l < 0) | (g0_l + rows_out > t_true))
                def _(dst=dst, rows_cmp=rows_cmp, cout_l=cout_l, g0_l=g0_l):
                    gidx = ridx[0:rows_cmp] + g0_l
                    keep = (gidx >= 0) & (gidx < t_true)
                    dst[0:rows_cmp, 0:cout_l] = jnp.where(
                        keep, dst[0:rows_cmp, 0:cout_l], 0).astype(dst.dtype)

                src = dst
                rows_valid = rows_out

    return kernel


# ----------------------------------------------------------------------------
# Host-side wrapper
# ----------------------------------------------------------------------------
def postnet_forward(x_ncw, weights, shifts, *, kernel_size=5, time_tile=1024,
                    act_dtype=jnp.float32, weights_resident=True):
    """Fused Postnet forward (inference mode).

    x_ncw   : (B, C, T) array, PyTorch NCW layout (Postnet: out channels == C).
    weights : list of n_layers arrays, layer l: (K, Cin_l_pad, Cout_l_pad) with
              the BN scale folded in and channel dims padded to 128.
    shifts  : list of n_layers arrays (1, Cout_l_pad), float32.
    """
    B, c_true, T = x_ncw.shape
    n_layers = len(weights)
    K = kernel_size
    conv_pad = (K - 1) // 2
    halo = conv_pad * n_layers

    cin_p = weights[0].shape[1]
    cout_p = weights[-1].shape[2]
    cmid_p = max(w.shape[2] for w in weights[:-1]) if n_layers > 1 else cout_p

    # Time tiling (multiple of 8 sublanes); halo'd DMA window rounded to 8 rows.
    tile_t = max(8, min(_round_up(time_tile, 8), _round_up(T, 8)))
    t_pad = _round_up(T, tile_t)
    n_t = t_pad // tile_t
    L0 = tile_t + 2 * halo
    win_rows = _round_up(L0, 8)
    buf_rows = win_rows + 8                      # slack for rounded-up slices
    in_rows = (n_t - 1) * tile_t + win_rows      # padded input time length

    # NCW -> NWC; pad time (left halo + right slack) and channels (-> 128).
    # Single pass over the SMALL input only; the big intermediate activations
    # never touch HBM.
    x = jnp.transpose(x_ncw, (0, 2, 1)).astype(act_dtype)
    x = jnp.pad(x, ((0, 0), (halo, in_rows - halo - T), (0, cin_p - c_true)))

    kernel = _make_fused_postnet_kernel(
        n_layers=n_layers, K=K, conv_pad=conv_pad, tile_t=tile_t, halo=halo,
        t_true=T, win_rows=win_rows)

    if weights_resident:
        # Whole-array, single-buffered VMEM residency (grid-invariant operands).
        w_specs = [pl.BlockSpec(memory_space=pltpu.MemorySpace.VMEM)
                   for _ in weights]
        s_specs = [pl.BlockSpec(memory_space=pltpu.MemorySpace.VMEM)
                   for _ in shifts]
    else:
        # Fallback: full-shape blocks with a constant index_map.
        w_specs = [pl.BlockSpec(w.shape, lambda b, j, n=w.ndim: (0,) * n)
                   for w in weights]
        s_specs = [pl.BlockSpec(s.shape, lambda b, j, n=s.ndim: (0,) * n)
                   for s in shifts]

    in_specs = [pl.BlockSpec(memory_space=pl.ANY)] + w_specs + s_specs
    out_specs = pl.BlockSpec((1, tile_t, cout_p), lambda b, j: (b, j, 0))

    scratch_shapes = [
        pltpu.VMEM((2, buf_rows, cin_p), act_dtype),  # double-buffered window
        pltpu.VMEM((buf_rows, cmid_p), act_dtype),    # ping
        pltpu.VMEM((buf_rows, cmid_p), act_dtype),    # pong
        pltpu.SemaphoreType.DMA((2,)),
    ]

    # VMEM budget: actual footprint + headroom (don't blindly request 64 MiB,
    # which is ALL of v7x's physical VMEM per TensorCore).
    act_bytes = jnp.dtype(act_dtype).itemsize
    w_mult = 1 if weights_resident else 2
    weight_bytes = w_mult * (sum(w.size * w.dtype.itemsize for w in weights)
                             + sum(s.size * s.dtype.itemsize for s in shifts))
    scratch_bytes = (2 * buf_rows * cin_p + 2 * buf_rows * cmid_p) * act_bytes
    out_bytes = 2 * tile_t * cout_p * act_bytes
    needed = weight_bytes + scratch_bytes + out_bytes
    vmem_limit = int(min(100 << 20, max(32 << 20, 2 * needed + (4 << 20))))

    nb = lambda a: a.size * a.dtype.itemsize
    cost = pl.CostEstimate(
        flops=2 * B * t_pad * sum(w.shape[0] * w.shape[1] * w.shape[2]
                                  for w in weights),
        transcendentals=B * t_pad * cmid_p * max(n_layers - 1, 0),
        bytes_accessed=nb(x) + sum(nb(w) for w in weights)
        + sum(nb(s) for s in shifts) + B * t_pad * cout_p * act_bytes,
    )

    y = pl.pallas_call(
        kernel,
        out_shape=jax.ShapeDtypeStruct((B, t_pad, cout_p), act_dtype),
        grid=(B, n_t),
        in_specs=in_specs,
        out_specs=out_specs,
        scratch_shapes=scratch_shapes,
        compiler_params=pltpu.CompilerParams(
            # time axis must stay sequential for the cross-step DMA prefetch;
            # megacore parallelism comes from the batch axis.
            dimension_semantics=("parallel", "arbitrary"),
            vmem_limit_bytes=vmem_limit),
        cost_estimate=cost,
    )(x, *weights, *shifts)

    # Drop time/channel padding, back to NCW (Postnet: out channels == in).
    return jnp.transpose(y[:, :T, :c_true], (0, 2, 1))


# ----------------------------------------------------------------------------
# Parameter construction (mirrors the PyTorch __init__; BN at init is identity)
# ----------------------------------------------------------------------------
def _xavier_uniform(key, shape_oik, gain):
    cout, cin, k = shape_oik
    fan_in, fan_out = cin * k, cout * k
    bound = gain * math.sqrt(6.0 / (fan_in + fan_out))
    return jax.random.uniform(key, shape_oik, jnp.float32, -bound, bound)


def init_postnet_params(key, dim_data, embed_dim, kernel_size, n_convs,
                        eps=1e-5):
    """Returns per-layer (w_kio, shift): conv weight in (K, Cin, Cout) layout
    with the folded BatchNorm scale, and the folded shift (bias + BN)."""
    tanh_gain = 5.0 / 3.0
    chans = ([(dim_data, embed_dim)] +
             [(embed_dim, embed_dim)] * (n_convs - 2) +
             [(embed_dim, dim_data)])
    gains = [tanh_gain] * (n_convs - 1) + [1.0]
    layers = []
    for (cin, cout), gain in zip(chans, gains):
        key, kw, kb = jax.random.split(key, 3)
        w = _xavier_uniform(kw, (cout, cin, kernel_size), gain)     # (O, I, K)
        b_bound = 1.0 / math.sqrt(cin * kernel_size)
        bias = jax.random.uniform(kb, (cout,), jnp.float32, -b_bound, b_bound)
        gamma = jnp.ones((cout,), jnp.float32)
        beta = jnp.zeros((cout,), jnp.float32)
        mean = jnp.zeros((cout,), jnp.float32)
        var = jnp.ones((cout,), jnp.float32)
        scale = gamma / jnp.sqrt(var + eps)
        shift = beta + (bias - mean) * scale
        w_kio = jnp.transpose(w, (2, 1, 0)) * scale[None, None, :]  # fold BN
        layers.append((w_kio, shift))
    return layers


def pack_postnet_params(layers, *, lane=128, dtype=jnp.float32):
    """Pad channel dims to multiples of `lane`; weights stay (K, Cin_p, Cout_p)
    so the kernel can run K accumulating matmuls (no im2col flattening)."""
    weights, shifts = [], []
    for w_kio, shift in layers:
        K, cin, cout = w_kio.shape
        cin_p, cout_p = _round_up(cin, lane), _round_up(cout, lane)
        w_p = jnp.zeros((K, cin_p, cout_p), jnp.float32)
        w_p = w_p.at[:, :cin, :cout].set(w_kio)
        s_p = jnp.zeros((1, cout_p), jnp.float32).at[0, :cout].set(shift)
        weights.append(w_p.astype(dtype))
        shifts.append(s_p)                       # shifts stay f32 (epilogue)
    return weights, shifts


# ----------------------------------------------------------------------------
# Pure-JAX reference (per-layer 'same' conv + folded BN [+ tanh]) for checking
# ----------------------------------------------------------------------------
def postnet_reference(x_ncw, layers):
    x = jnp.transpose(x_ncw, (0, 2, 1))
    n = len(layers)
    for i, (w_kio, shift) in enumerate(layers):
        K = w_kio.shape[0]
        p = (K - 1) // 2
        T = x.shape[1]
        xp = jnp.pad(x, ((0, 0), (p, p), (0, 0)))
        y = sum(jnp.einsum('btc,cd->btd', xp[:, k:k + T, :], w_kio[k],
                           precision=jax.lax.Precision.HIGHEST)
                for k in range(K)) + shift
        x = jnp.tanh(y) if i < n - 1 else y
    return jnp.transpose(x, (0, 2, 1))


if __name__ == "__main__":
    # Small synthetic hps: dim_data=8, postnet_embedding_dim=32,
    # postnet_kernel_size=5, postnet_n_convolutions=5 (eval mode dropout).
    # T=40 with time_tile=16 exercises DMA prefetch across multiple time
    # tiles, the interior-tile mask skip, and the ragged right edge.
    B, DIM_DATA, T = 2, 8, 40
    EMBED, KSIZE, NCONV = 32, 5, 5

    key = jax.random.PRNGKey(0)
    key, kx = jax.random.split(key)
    x = jax.random.normal(kx, (B, DIM_DATA, T), jnp.float32)   # NCW like PyTorch

    layers = init_postnet_params(key, DIM_DATA, EMBED, KSIZE, NCONV)
    ref = postnet_reference(x, layers)

    def run(act_dtype):
        weights, shifts = pack_postnet_params(layers, dtype=act_dtype)
        err = None
        for resident in (True, False):   # fall back to blocked weight specs
            try:
                fwd = jax.jit(functools.partial(
                    postnet_forward, kernel_size=KSIZE, time_tile=16,
                    act_dtype=act_dtype, weights_resident=resident))
                out = fwd(x, weights, shifts)
                jax.block_until_ready(out)
                return out
            except Exception as e:   # noqa: BLE001
                err = e
        raise err

    # f32 storage path (matches the PyTorch module's numerics; loose tolerance
    # accommodates the MXU's reduced-precision f32 multi-pass matmul).
    out_f32 = run(jnp.float32)
    assert out_f32.shape == (B, DIM_DATA, T), out_f32.shape
    assert bool(jnp.all(jnp.isfinite(out_f32)))
    err32 = float(jnp.max(jnp.abs(out_f32 - ref)))
    assert err32 < 0.15, f"f32 max |kernel - reference| = {err32}"

    # bf16 storage / f32 accumulation path (recommended on v6e/v7x): halves
    # VMEM + HBM traffic; expected extra deviation from inter-layer rounding.
    out_bf16 = run(jnp.bfloat16).astype(jnp.float32)
    assert out_bf16.shape == (B, DIM_DATA, T), out_bf16.shape
    assert bool(jnp.all(jnp.isfinite(out_bf16)))
    err16 = float(jnp.max(jnp.abs(out_bf16 - ref)))
    assert err16 < 0.5, f"bf16 max |kernel - reference| = {err16}"

    print("KERNEL_OK")
</pallas_src>

<mosaic_0001>
module attributes {stable_mosaic.version = 11 : i64} {
  func.func @kernel(%arg0: i32, %arg1: i32, %arg2: memref<2x72x128xf32, #tpu.memory_space<any>>, %arg3: memref<5x128x128xf32, #tpu.memory_space<vmem>>, %arg4: memref<5x128x128xf32, #tpu.memory_space<vmem>>, %arg5: memref<5x128x128xf32, #tpu.memory_space<vmem>>, %arg6: memref<5x128x128xf32, #tpu.memory_space<vmem>>, %arg7: memref<5x128x128xf32, #tpu.memory_space<vmem>>, %arg8: memref<1x128xf32, #tpu.memory_space<vmem>>, %arg9: memref<1x128xf32, #tpu.memory_space<vmem>>, %arg10: memref<1x128xf32, #tpu.memory_space<vmem>>, %arg11: memref<1x128xf32, #tpu.memory_space<vmem>>, %arg12: memref<1x128xf32, #tpu.memory_space<vmem>>, %arg13: memref<1x16x128xf32, #tpu.memory_space<vmem>>, %arg14: memref<2x48x128xf32, #tpu.memory_space<vmem>>, %arg15: memref<48x128xf32, #tpu.memory_space<vmem>>, %arg16: memref<48x128xf32, #tpu.memory_space<vmem>>, %arg17: memref<2x!tpu.dma_semaphore, #tpu.memory_space<semaphore_mem>>) attributes {dimension_semantics = [#tpu.dimension_semantics<parallel>, #tpu.dimension_semantics<arbitrary>], iteration_bounds = array<i64: 2, 3>, scalar_prefetch = 0 : i64, scratch_operands = 4 : i64, tpu.core_type = #tpu.core_type<tc>, window_params = [{}, {pipeline_mode = #tpu.pipeline_mode<synchronous>, transform_indices = @transform_1, window_bounds = array<i64: 5, 128, 128>}, {pipeline_mode = #tpu.pipeline_mode<synchronous>, transform_indices = @transform_2, window_bounds = array<i64: 5, 128, 128>}, {pipeline_mode = #tpu.pipeline_mode<synchronous>, transform_indices = @transform_3, window_bounds = array<i64: 5, 128, 128>}, {pipeline_mode = #tpu.pipeline_mode<synchronous>, transform_indices = @transform_4, window_bounds = array<i64: 5, 128, 128>}, {pipeline_mode = #tpu.pipeline_mode<synchronous>, transform_indices = @transform_5, window_bounds = array<i64: 5, 128, 128>}, {pipeline_mode = #tpu.pipeline_mode<synchronous>, transform_indices = @transform_6, window_bounds = array<i64: 1, 128>}, {pipeline_mode = #tpu.pipeline_mode<synchronous>, transform_indices = @transform_7, window_bounds = array<i64: 1, 128>}, {pipeline_mode = #tpu.pipeline_mode<synchronous>, transform_indices = @transform_8, window_bounds = array<i64: 1, 128>}, {pipeline_mode = #tpu.pipeline_mode<synchronous>, transform_indices = @transform_9, window_bounds = array<i64: 1, 128>}, {pipeline_mode = #tpu.pipeline_mode<synchronous>, transform_indices = @transform_10, window_bounds = array<i64: 1, 128>}, {transform_indices = @transform_11, window_bounds = array<i64: 1, 16, 128>}]} {
    %c2_i32 = arith.constant 2 : i32
    %c0_i32 = arith.constant 0 : i32
    %0 = arith.cmpi eq, %c2_i32, %c0_i32 : i32
    %c1_i32 = arith.constant 1 : i32
    %1 = arith.select %0, %c1_i32, %c2_i32 : i32
    %2 = arith.remsi %arg1, %1 : i32
    %c0_i32_0 = arith.constant 0 : i32
    %3 = arith.cmpi ne, %2, %c0_i32_0 : i32
    %c0_i32_1 = arith.constant 0 : i32
    %4 = arith.cmpi slt, %2, %c0_i32_1 : i32
    %c0_i32_2 = arith.constant 0 : i32
    %5 = arith.cmpi slt, %1, %c0_i32_2 : i32
    %6 = arith.xori %4, %5 : i1
    %7 = arith.andi %6, %3 : i1
    %8 = arith.addi %2, %1 : i32
    %9 = arith.select %7, %8, %2 : i32
    %c0_i32_3 = arith.constant 0 : i32
    %10 = arith.cmpi eq, %arg1, %c0_i32_3 : i32
    %11 = arith.extui %10 : i1 to i32
    %c0_i32_4 = arith.constant 0 : i32
    %12 = arith.cmpi ne, %11, %c0_i32_4 : i32
    scf.if %12 {
      %c16_i32_198 = arith.constant 16 : i32
      %222 = arith.muli %arg1, %c16_i32_198 : i32
      %223 = tpu.assume_multiple %222, 8 : i32
      %c0_i32_199 = arith.constant 0 : i32
      %224 = tpu.memref_slice %arg2[%arg0, %223, %c0_i32_199] : memref<2x72x128xf32, #tpu.memory_space<any>> -> memref<1x40x128xf32, #tpu.memory_space<any>>
      %225 = tpu.memref_squeeze %224 : memref<1x40x128xf32, #tpu.memory_space<any>> -> memref<40x128xf32, #tpu.memory_space<any>>
      %c0_i32_200 = arith.constant 0 : i32
      %c0_i32_201 = arith.constant 0 : i32
      %226 = tpu.memref_slice %arg14[%9, %c0_i32_200, %c0_i32_201] : memref<2x48x128xf32, #tpu.memory_space<vmem>> -> memref<1x40x128xf32, #tpu.memory_space<vmem>>
      %227 = tpu.memref_squeeze %226 : memref<1x40x128xf32, #tpu.memory_space<vmem>> -> memref<40x128xf32, #tpu.memory_space<vmem>>
      %228 = tpu.memref_slice %arg17[%9] : memref<2x!tpu.dma_semaphore, #tpu.memory_space<semaphore_mem>> -> memref<1x!tpu.dma_semaphore, #tpu.memory_space<semaphore_mem>>
      %229 = tpu.memref_squeeze %228 : memref<1x!tpu.dma_semaphore, #tpu.memory_space<semaphore_mem>> -> memref<!tpu.dma_semaphore, #tpu.memory_space<semaphore_mem>>
      tpu.enqueue_dma source(%225 : memref<40x128xf32, #tpu.memory_space<any>>) target(%227 : memref<40x128xf32, #tpu.memory_space<vmem>>) target_semaphore(%229 : memref<!tpu.dma_semaphore, #tpu.memory_space<semaphore_mem>>)
    } else {
    }
    %c16_i32 = arith.constant 16 : i32
    %13 = arith.muli %arg1, %c16_i32 : i32
    %14 = tpu.assume_multiple %13, 8 : i32
    %c0_i32_5 = arith.constant 0 : i32
    %15 = tpu.memref_slice %arg2[%arg0, %14, %c0_i32_5] : memref<2x72x128xf32, #tpu.memory_space<any>> -> memref<1x40x128xf32, #tpu.memory_space<any>>
    %16 = tpu.memref_squeeze %15 : memref<1x40x128xf32, #tpu.memory_space<any>> -> memref<40x128xf32, #tpu.memory_space<any>>
    %c0_i32_6 = arith.constant 0 : i32
    %c0_i32_7 = arith.constant 0 : i32
    %17 = tpu.memref_slice %arg14[%9, %c0_i32_6, %c0_i32_7] : memref<2x48x128xf32, #tpu.memory_space<vmem>> -> memref<1x40x128xf32, #tpu.memory_space<vmem>>
    %18 = tpu.memref_squeeze %17 : memref<1x40x128xf32, #tpu.memory_space<vmem>> -> memref<40x128xf32, #tpu.memory_space<vmem>>
    %19 = tpu.memref_slice %arg17[%9] : memref<2x!tpu.dma_semaphore, #tpu.memory_space<semaphore_mem>> -> memref<1x!tpu.dma_semaphore, #tpu.memory_space<semaphore_mem>>
    %20 = tpu.memref_squeeze %19 : memref<1x!tpu.dma_semaphore, #tpu.memory_space<semaphore_mem>> -> memref<!tpu.dma_semaphore, #tpu.memory_space<semaphore_mem>>
    tpu.wait_dma2 semaphore(%20 : memref<!tpu.dma_semaphore, #tpu.memory_space<semaphore_mem>>) src(%16 : memref<40x128xf32, #tpu.memory_space<any>>) dst(%18 : memref<40x128xf32, #tpu.memory_space<vmem>>)
    %c1_i32_8 = arith.constant 1 : i32
    %21 = arith.addi %arg1, %c1_i32_8 : i32
    %c3_i32 = arith.constant 3 : i32
    %22 = arith.cmpi slt, %21, %c3_i32 : i32
    %23 = arith.extui %22 : i1 to i32
    %c0_i32_9 = arith.constant 0 : i32
    %24 = arith.cmpi ne, %23, %c0_i32_9 : i32
    scf.if %24 {
      %c1_i32_198 = arith.constant 1 : i32
      %222 = arith.addi %arg1, %c1_i32_198 : i32
      %c1_i32_199 = arith.constant 1 : i32
      %223 = arith.subi %c1_i32_199, %9 : i32
      %c16_i32_200 = arith.constant 16 : i32
      %224 = arith.muli %222, %c16_i32_200 : i32
      %225 = tpu.assume_multiple %224, 8 : i32
      %c0_i32_201 = arith.constant 0 : i32
      %226 = tpu.memref_slice %arg2[%arg0, %225, %c0_i32_201] : memref<2x72x128xf32, #tpu.memory_space<any>> -> memref<1x40x128xf32, #tpu.memory_space<any>>
      %227 = tpu.memref_squeeze %226 : memref<1x40x128xf32, #tpu.memory_space<any>> -> memref<40x128xf32, #tpu.memory_space<any>>
      %c0_i32_202 = arith.constant 0 : i32
      %c0_i32_203 = arith.constant 0 : i32
      %228 = tpu.memref_slice %arg14[%223, %c0_i32_202, %c0_i32_203] : memref<2x48x128xf32, #tpu.memory_space<vmem>> -> memref<1x40x128xf32, #tpu.memory_space<vmem>>
      %229 = tpu.memref_squeeze %228 : memref<1x40x128xf32, #tpu.memory_space<vmem>> -> memref<40x128xf32, #tpu.memory_space<vmem>>
      %230 = tpu.memref_slice %arg17[%223] : memref<2x!tpu.dma_semaphore, #tpu.memory_space<semaphore_mem>> -> memref<1x!tpu.dma_semaphore, #tpu.memory_space<semaphore_mem>>
      %231 = tpu.memref_squeeze %230 : memref<1x!tpu.dma_semaphore, #tpu.memory_space<semaphore_mem>> -> memref<!tpu.dma_semaphore, #tpu.memory_space<semaphore_mem>>
      tpu.enqueue_dma source(%227 : memref<40x128xf32, #tpu.memory_space<any>>) target(%229 : memref<40x128xf32, #tpu.memory_space<vmem>>) target_semaphore(%231 : memref<!tpu.dma_semaphore, #tpu.memory_space<semaphore_mem>>)
    } else {
    }
    %25 = tpu.iota {dimensions = array<i32: 0>} : vector<32x1xi32>
    %c16_i32_10 = arith.constant 16 : i32
    %26 = arith.muli %arg1, %c16_i32_10 : i32
    %c10_i32 = arith.constant 10 : i32
    %27 = arith.subi %26, %c10_i32 : i32
    %c0_i32_11 = arith.constant 0 : i32
    %c0_i32_12 = arith.constant 0 : i32
    %28 = tpu.memref_slice %arg14[%9, %c0_i32_11, %c0_i32_12] : memref<2x48x128xf32, #tpu.memory_space<vmem>> -> memref<1x48x128xf32, #tpu.memory_space<vmem>>
    %29 = tpu.memref_squeeze %28 : memref<1x48x128xf32, #tpu.memory_space<vmem>> -> memref<48x128xf32, #tpu.memory_space<vmem>>
    %c0 = arith.constant 0 : index
    %c0_13 = arith.constant 0 : index
    %30 = vector.load %29[%c0, %c0_13] : memref<48x128xf32, #tpu.memory_space<vmem>>, vector<32x128xf32>
    %c0_14 = arith.constant 0 : index
    %c0_15 = arith.constant 0 : index
    %c0_16 = arith.constant 0 : index
    %31 = vector.load %arg3[%c0_14, %c0_15, %c0_16] : memref<5x128x128xf32, #tpu.memory_space<vmem>>, vector<1x128x128xf32>
    %32 = vector.shape_cast %31 : vector<1x128x128xf32> to vector<128x128xf32>
    %cst = arith.constant dense<0.000000e+00> : vector<32x128xf32>
    %33 = tpu.matmul %30, %32, %cst {dimension_numbers = #tpu.dot_dimension_numbers<[1], [0], [0], [1], [0, 0, 1, 1], [], []>} : vector<32x128xf32>, vector<128x128xf32>, vector<32x128xf32> -> vector<32x128xf32>
    %c0_i32_17 = arith.constant 0 : i32
    %c0_i32_18 = arith.constant 0 : i32
    %34 = tpu.memref_slice %arg14[%9, %c0_i32_17, %c0_i32_18] : memref<2x48x128xf32, #tpu.memory_space<vmem>> -> memref<1x48x128xf32, #tpu.memory_space<vmem>>
    %35 = tpu.memref_squeeze %34 : memref<1x48x128xf32, #tpu.memory_space<vmem>> -> memref<48x128xf32, #tpu.memory_space<vmem>>
    %c1 = arith.constant 1 : index
    %c0_19 = arith.constant 0 : index
    %36 = vector.load %35[%c1, %c0_19] : memref<48x128xf32, #tpu.memory_space<vmem>>, vector<32x128xf32>
    %c1_20 = arith.constant 1 : index
    %c0_21 = arith.constant 0 : index
    %c0_22 = arith.constant 0 : index
    %37 = vector.load %arg3[%c1_20, %c0_21, %c0_22] : memref<5x128x128xf32, #tpu.memory_space<vmem>>, vector<1x128x128xf32>
    %38 = vector.shape_cast %37 : vector<1x128x128xf32> to vector<128x128xf32>
    %cst_23 = arith.constant dense<0.000000e+00> : vector<32x128xf32>
    %39 = tpu.matmul %36, %38, %cst_23 {dimension_numbers = #tpu.dot_dimension_numbers<[1], [0], [0], [1], [0, 0, 1, 1], [], []>} : vector<32x128xf32>, vector<128x128xf32>, vector<32x128xf32> -> vector<32x128xf32>
    %40 = arith.addf %33, %39 : vector<32x128xf32>
    %c0_i32_24 = arith.constant 0 : i32
    %c0_i32_25 = arith.constant 0 : i32
    %41 = tpu.memref_slice %arg14[%9, %c0_i32_24, %c0_i32_25] : memref<2x48x128xf32, #tpu.memory_space<vmem>> -> memref<1x48x128xf32, #tpu.memory_space<vmem>>
    %42 = tpu.memref_squeeze %41 : memref<1x48x128xf32, #tpu.memory_space<vmem>> -> memref<48x128xf32, #tpu.memory_space<vmem>>
    %c2 = arith.constant 2 : index
    %c0_26 = arith.constant 0 : index
    %43 = vector.load %42[%c2, %c0_26] : memref<48x128xf32, #tpu.memory_space<vmem>>, vector<32x128xf32>
    %c2_27 = arith.constant 2 : index
    %c0_28 = arith.constant 0 : index
    %c0_29 = arith.constant 0 : index
    %44 = vector.load %arg3[%c2_27, %c0_28, %c0_29] : memref<5x128x128xf32, #tpu.memory_space<vmem>>, vector<1x128x128xf32>
    %45 = vector.shape_cast %44 : vector<1x128x128xf32> to vector<128x128xf32>
    %cst_30 = arith.constant dense<0.000000e+00> : vector<32x128xf32>
    %46 = tpu.matmul %43, %45, %cst_30 {dimension_numbers = #tpu.dot_dimension_numbers<[1], [0], [0], [1], [0, 0, 1, 1], [], []>} : vector<32x128xf32>, vector<128x128xf32>, vector<32x128xf32> -> vector<32x128xf32>
    %47 = arith.addf %40, %46 : vector<32x128xf32>
    %c0_i32_31 = arith.constant 0 : i32
    %c0_i32_32 = arith.constant 0 : i32
    %48 = tpu.memref_slice %arg14[%9, %c0_i32_31, %c0_i32_32] : memref<2x48x128xf32, #tpu.memory_space<vmem>> -> memref<1x48x128xf32, #tpu.memory_space<vmem>>
    %49 = tpu.memref_squeeze %48 : memref<1x48x128xf32, #tpu.memory_space<vmem>> -> memref<48x128xf32, #tpu.memory_space<vmem>>
    %c3 = arith.constant 3 : index
    %c0_33 = arith.constant 0 : index
    %50 = vector.load %49[%c3, %c0_33] : memref<48x128xf32, #tpu.memory_space<vmem>>, vector<32x128xf32>
    %c3_34 = arith.constant 3 : index
    %c0_35 = arith.constant 0 : index
    %c0_36 = arith.constant 0 : index
    %51 = vector.load %arg3[%c3_34, %c0_35, %c0_36] : memref<5x128x128xf32, #tpu.memory_space<vmem>>, vector<1x128x128xf32>
    %52 = vector.shape_cast %51 : vector<1x128x128xf32> to vector<128x128xf32>
    %cst_37 = arith.constant dense<0.000000e+00> : vector<32x128xf32>
    %53 = tpu.matmul %50, %52, %cst_37 {dimension_numbers = #tpu.dot_dimension_numbers<[1], [0], [0], [1], [0, 0, 1, 1], [], []>} : vector<32x128xf32>, vector<128x128xf32>, vector<32x128xf32> -> vector<32x128xf32>
    %54 = arith.addf %47, %53 : vector<32x128xf32>
    %c0_i32_38 = arith.constant 0 : i32
    %c0_i32_39 = arith.constant 0 : i32
    %55 = tpu.memref_slice %arg14[%9, %c0_i32_38, %c0_i32_39] : memref<2x48x128xf32, #tpu.memory_space<vmem>> -> memref<1x48x128xf32, #tpu.memory_space<vmem>>
    %56 = tpu.memref_squeeze %55 : memref<1x48x128xf32, #tpu.memory_space<vmem>> -> memref<48x128xf32, #tpu.memory_space<vmem>>
    %c4 = arith.constant 4 : index
    %c0_40 = arith.constant 0 : index
    %57 = vector.load %56[%c4, %c0_40] : memref<48x128xf32, #tpu.memory_space<vmem>>, vector<32x128xf32>
    %c4_41 = arith.constant 4 : index
    %c0_42 = arith.constant 0 : index
    %c0_43 = arith.constant 0 : index
    %58 = vector.load %arg3[%c4_41, %c0_42, %c0_43] : memref<5x128x128xf32, #tpu.memory_space<vmem>>, vector<1x128x128xf32>
    %59 = vector.shape_cast %58 : vector<1x128x128xf32> to vector<128x128xf32>
    %cst_44 = arith.constant dense<0.000000e+00> : vector<32x128xf32>
    %60 = tpu.matmul %57, %59, %cst_44 {dimension_numbers = #tpu.dot_dimension_numbers<[1], [0], [0], [1], [0, 0, 1, 1], [], []>} : vector<32x128xf32>, vector<128x128xf32>, vector<32x128xf32> -> vector<32x128xf32>
    %61 = arith.addf %54, %60 : vector<32x128xf32>
    %c0_45 = arith.constant 0 : index
    %c0_46 = arith.constant 0 : index
    %62 = vector.load %arg8[%c0_45, %c0_46] : memref<1x128xf32, #tpu.memory_space<vmem>>, vector<1x128xf32>
    %63 = vector.shape_cast %62 : vector<1x128xf32> to vector<128xf32>
    %64 = vector.shape_cast %63 : vector<128xf32> to vector<1x128xf32>
    %65 = vector.broadcast %64 : vector<1x128xf32> to vector<32x128xf32>
    %66 = arith.addf %61, %65 : vector<32x128xf32>
    %67 = math.tanh %66 : vector<32x128xf32>
    %c0_47 = arith.constant 0 : index
    %c0_48 = arith.constant 0 : index
    %68 = vector.load %arg15[%c0_47, %c0_48] : memref<48x128xf32, #tpu.memory_space<vmem>>, vector<32x128xf32>
    tpu.vector_store %arg15[%c0_47, %c0_48], %67 {strides = array<i32>} : memref<48x128xf32, #tpu.memory_space<vmem>>, vector<32x128xf32>,
    %c2_i32_49 = arith.constant 2 : i32
    %69 = arith.addi %27, %c2_i32_49 : i32
    %c0_i32_50 = arith.constant 0 : i32
    %70 = arith.cmpi slt, %69, %c0_i32_50 : i32
    %c32_i32 = arith.constant 32 : i32
    %71 = arith.addi %69, %c32_i32 : i32
    %c40_i32 = arith.constant 40 : i32
    %72 = arith.cmpi sgt, %71, %c40_i32 : i32
    %73 = arith.ori %70, %72 : i1
    %74 = arith.extui %73 : i1 to i32
    %c0_i32_51 = arith.constant 0 : i32
    %75 = arith.cmpi ne, %74, %c0_i32_51 : i32
    scf.if %75 {
      %222 = vector.broadcast %69 : i32 to vector<32x1xi32>
      %223 = arith.addi %25, %222 : vector<32x1xi32>
      %c0_i32_198 = arith.constant 0 : i32
      %224 = vector.broadcast %c0_i32_198 : i32 to vector<32x1xi32>
      %225 = arith.cmpi sge, %223, %224 : vector<32x1xi32>
      %c40_i32_199 = arith.constant 40 : i32
      %226 = vector.broadcast %c40_i32_199 : i32 to vector<32x1xi32>
      %227 = arith.cmpi slt, %223, %226 : vector<32x1xi32>
      %228 = arith.andi %225, %227 : vector<32x1xi1>
      %c0_200 = arith.constant 0 : index
      %c0_201 = arith.constant 0 : index
      %229 = vector.load %arg15[%c0_200, %c0_201] : memref<48x128xf32, #tpu.memory_space<vmem>>, vector<32x128xf32>
      %c0_i32_202 = arith.constant 0 : i32
      %230 = arith.sitofp %c0_i32_202 : i32 to f32
      %231 = vector.shape_cast %228 : vector<32x1xi1> to vector<32x1xi1>
      %232 = vector.broadcast %231 : vector<32x1xi1> to vector<32x128xi1>
      %233 = vector.broadcast %230 : f32 to vector<32x128xf32>
      %234 = arith.select %232, %229, %233 : vector<32x128xi1>, vector<32x128xf32>
      %c0_203 = arith.constant 0 : index
      %c0_204 = arith.constant 0 : index
      %235 = vector.load %arg15[%c0_203, %c0_204] : memref<48x128xf32, #tpu.memory_space<vmem>>, vector<32x128xf32>
      tpu.vector_store %arg15[%c0_203, %c0_204], %234 {strides = array<i32>} : memref<48x128xf32, #tpu.memory_space<vmem>>, vector<32x128xf32>,
    } else {
    }
    %c0_52 = arith.constant 0 : index
    %c0_53 = arith.constant 0 : index
    %76 = vector.load %arg15[%c0_52, %c0_53] : memref<48x128xf32, #tpu.memory_space<vmem>>, vector<32x128xf32>
    %c0_54 = arith.constant 0 : index
    %c0_55 = arith.constant 0 : index
    %c0_56 = arith.constant 0 : index
    %77 = vector.load %arg4[%c0_54, %c0_55, %c0_56] : memref<5x128x128xf32, #tpu.memory_space<vmem>>, vector<1x128x128xf32>
    %78 = vector.shape_cast %77 : vector<1x128x128xf32> to vector<128x128xf32>
    %cst_57 = arith.constant dense<0.000000e+00> : vector<32x128xf32>
    %79 = tpu.matmul %76, %78, %cst_57 {dimension_numbers = #tpu.dot_dimension_numbers<[1], [0], [0], [1], [0, 0, 1, 1], [], []>} : vector<32x128xf32>, vector<128x128xf32>, vector<32x128xf32> -> vector<32x128xf32>
    %c1_58 = arith.constant 1 : index
    %c0_59 = arith.constant 0 : index
    %80 = vector.load %arg15[%c1_58, %c0_59] : memref<48x128xf32, #tpu.memory_space<vmem>>, vector<32x128xf32>
    %c1_60 = arith.constant 1 : index
    %c0_61 = arith.constant 0 : index
    %c0_62 = arith.constant 0 : index
    %81 = vector.load %arg4[%c1_60, %c0_61, %c0_62] : memref<5x128x128xf32, #tpu.memory_space<vmem>>, vector<1x128x128xf32>
    %82 = vector.shape_cast %81 : vector<1x128x128xf32> to vector<128x128xf32>
    %cst_63 = arith.constant dense<0.000000e+00> : vector<32x128xf32>
    %83 = tpu.matmul %80, %82, %cst_63 {dimension_numbers = #tpu.dot_dimension_numbers<[1], [0], [0], [1], [0, 0, 1, 1], [], []>} : vector<32x128xf32>, vector<128x128xf32>, vector<32x128xf32> -> vector<32x128xf32>
    %84 = arith.addf %79, %83 : vector<32x128xf32>
    %c2_64 = arith.constant 2 : index
    %c0_65 = arith.constant 0 : index
    %85 = vector.load %arg15[%c2_64, %c0_65] : memref<48x128xf32, #tpu.memory_space<vmem>>, vector<32x128xf32>
    %c2_66 = arith.constant 2 : index
    %c0_67 = arith.constant 0 : index
    %c0_68 = arith.constant 0 : index
    %86 = vector.load %arg4[%c2_66, %c0_67, %c0_68] : memref<5x128x128xf32, #tpu.memory_space<vmem>>, vector<1x128x128xf32>
    %87 = vector.shape_cast %86 : vector<1x128x128xf32> to vector<128x128xf32>
    %cst_69 = arith.constant dense<0.000000e+00> : vector<32x128xf32>
    %88 = tpu.matmul %85, %87, %cst_69 {dimension_numbers = #tpu.dot_dimension_numbers<[1], [0], [0], [1], [0, 0, 1, 1], [], []>} : vector<32x128xf32>, vector<128x128xf32>, vector<32x128xf32> -> vector<32x128xf32>
    %89 = arith.addf %84, %88 : vector<32x128xf32>
    %c3_70 = arith.constant 3 : index
    %c0_71 = arith.constant 0 : index
    %90 = vector.load %arg15[%c3_70, %c0_71] : memref<48x128xf32, #tpu.memory_space<vmem>>, vector<32x128xf32>
    %c3_72 = arith.constant 3 : index
    %c0_73 = arith.constant 0 : index
    %c0_74 = arith.constant 0 : index
    %91 = vector.load %arg4[%c3_72, %c0_73, %c0_74] : memref<5x128x128xf32, #tpu.memory_space<vmem>>, vector<1x128x128xf32>
    %92 = vector.shape_cast %91 : vector<1x128x128xf32> to vector<128x128xf32>
    %cst_75 = arith.constant dense<0.000000e+00> : vector<32x128xf32>
    %93 = tpu.matmul %90, %92, %cst_75 {dimension_numbers = #tpu.dot_dimension_numbers<[1], [0], [0], [1], [0, 0, 1, 1], [], []>} : vector<32x128xf32>, vector<128x128xf32>, vector<32x128xf32> -> vector<32x128xf32>
    %94 = arith.addf %89, %93 : vector<32x128xf32>
    %c4_76 = arith.constant 4 : index
    %c0_77 = arith.constant 0 : index
    %95 = vector.load %arg15[%c4_76, %c0_77] : memref<48x128xf32, #tpu.memory_space<vmem>>, vector<32x128xf32>
    %c4_78 = arith.constant 4 : index
    %c0_79 = arith.constant 0 : index
    %c0_80 = arith.constant 0 : index
    %96 = vector.load %arg4[%c4_78, %c0_79, %c0_80] : memref<5x128x128xf32, #tpu.memory_space<vmem>>, vector<1x128x128xf32>
    %97 = vector.shape_cast %96 : vector<1x128x128xf32> to vector<128x128xf32>
    %cst_81 = arith.constant dense<0.000000e+00> : vector<32x128xf32>
    %98 = tpu.matmul %95, %97, %cst_81 {dimension_numbers = #tpu.dot_dimension_numbers<[1], [0], [0], [1], [0, 0, 1, 1], [], []>} : vector<32x128xf32>, vector<128x128xf32>, vector<32x128xf32> -> vector<32x128xf32>
    %99 = arith.addf %94, %98 : vector<32x128xf32>
    %c0_82 = arith.constant 0 : index
    %c0_83 = arith.constant 0 : index
    %100 = vector.load %arg9[%c0_82, %c0_83] : memref<1x128xf32, #tpu.memory_space<vmem>>, vector<1x128xf32>
    %101 = vector.shape_cast %100 : vector<1x128xf32> to vector<128xf32>
    %102 = vector.shape_cast %101 : vector<128xf32> to vector<1x128xf32>
    %103 = vector.broadcast %102 : vector<1x128xf32> to vector<32x128xf32>
    %104 = arith.addf %99, %103 : vector<32x128xf32>
    %105 = math.tanh %104 : vector<32x128xf32>
    %c0_84 = arith.constant 0 : index
    %c0_85 = arith.constant 0 : index
    %106 = vector.load %arg16[%c0_84, %c0_85] : memref<48x128xf32, #tpu.memory_space<vmem>>, vector<32x128xf32>
    tpu.vector_store %arg16[%c0_84, %c0_85], %105 {strides = array<i32>} : memref<48x128xf32, #tpu.memory_space<vmem>>, vector<32x128xf32>,
    %c4_i32 = arith.constant 4 : i32
    %107 = arith.addi %27, %c4_i32 : i32
    %c0_i32_86 = arith.constant 0 : i32
    %108 = arith.cmpi slt, %107, %c0_i32_86 : i32
    %c28_i32 = arith.constant 28 : i32
    %109 = arith.addi %107, %c28_i32 : i32
    %c40_i32_87 = arith.constant 40 : i32
    %110 = arith.cmpi sgt, %109, %c40_i32_87 : i32
    %111 = arith.ori %108, %110 : i1
    %112 = arith.extui %111 : i1 to i32
    %c0_i32_88 = arith.constant 0 : i32
    %113 = arith.cmpi ne, %112, %c0_i32_88 : i32
    scf.if %113 {
      %222 = vector.broadcast %107 : i32 to vector<32x1xi32>
      %223 = arith.addi %25, %222 : vector<32x1xi32>
      %c0_i32_198 = arith.constant 0 : i32
      %224 = vector.broadcast %c0_i32_198 : i32 to vector<32x1xi32>
      %225 = arith.cmpi sge, %223, %224 : vector<32x1xi32>
      %c40_i32_199 = arith.constant 40 : i32
      %226 = vector.broadcast %c40_i32_199 : i32 to vector<32x1xi32>
      %227 = arith.cmpi slt, %223, %226 : vector<32x1xi32>
      %228 = arith.andi %225, %227 : vector<32x1xi1>
      %c0_200 = arith.constant 0 : index
      %c0_201 = arith.constant 0 : index
      %229 = vector.load %arg16[%c0_200, %c0_201] : memref<48x128xf32, #tpu.memory_space<vmem>>, vector<32x128xf32>
      %c0_i32_202 = arith.constant 0 : i32
      %230 = arith.sitofp %c0_i32_202 : i32 to f32
      %231 = vector.shape_cast %228 : vector<32x1xi1> to vector<32x1xi1>
      %232 = vector.broadcast %231 : vector<32x1xi1> to vector<32x128xi1>
      %233 = vector.broadcast %230 : f32 to vector<32x128xf32>
      %234 = arith.select %232, %229, %233 : vector<32x128xi1>, vector<32x128xf32>
      %c0_203 = arith.constant 0 : index
      %c0_204 = arith.constant 0 : index
      %235 = vector.load %arg16[%c0_203, %c0_204] : memref<48x128xf32, #tpu.memory_space<vmem>>, vector<32x128xf32>
      tpu.vector_store %arg16[%c0_203, %c0_204], %234 {strides = array<i32>} : memref<48x128xf32, #tpu.memory_space<vmem>>, vector<32x128xf32>,
    } else {
    }
    %c0_89 = arith.constant 0 : index
    %c0_90 = arith.constant 0 : index
    %114 = vector.load %arg16[%c0_89, %c0_90] : memref<48x128xf32, #tpu.memory_space<vmem>>, vector<24x128xf32>
    %c0_91 = arith.constant 0 : index
    %c0_92 = arith.constant 0 : index
    %c0_93 = arith.constant 0 : index
    %115 = vector.load %arg5[%c0_91, %c0_92, %c0_93] : memref<5x128x128xf32, #tpu.memory_space<vmem>>, vector<1x128x128xf32>
    %116 = vector.shape_cast %115 : vector<1x128x128xf32> to vector<128x128xf32>
    %cst_94 = arith.constant dense<0.000000e+00> : vector<24x128xf32>
    %117 = tpu.matmul %114, %116, %cst_94 {dimension_numbers = #tpu.dot_dimension_numbers<[1], [0], [0], [1], [0, 0, 1, 1], [], []>} : vector<24x128xf32>, vector<128x128xf32>, vector<24x128xf32> -> vector<24x128xf32>
    %c1_95 = arith.constant 1 : index
    %c0_96 = arith.constant 0 : index
    %118 = vector.load %arg16[%c1_95, %c0_96] : memref<48x128xf32, #tpu.memory_space<vmem>>, vector<24x128xf32>
    %c1_97 = arith.constant 1 : index
    %c0_98 = arith.constant 0 : index
    %c0_99 = arith.constant 0 : index
    %119 = vector.load %arg5[%c1_97, %c0_98, %c0_99] : memref<5x128x128xf32, #tpu.memory_space<vmem>>, vector<1x128x128xf32>
    %120 = vector.shape_cast %119 : vector<1x128x128xf32> to vector<128x128xf32>
    %cst_100 = arith.constant dense<0.000000e+00> : vector<24x128xf32>
    %121 = tpu.matmul %118, %120, %cst_100 {dimension_numbers = #tpu.dot_dimension_numbers<[1], [0], [0], [1], [0, 0, 1, 1], [], []>} : vector<24x128xf32>, vector<128x128xf32>, vector<24x128xf32> -> vector<24x128xf32>
    %122 = arith.addf %117, %121 : vector<24x128xf32>
    %c2_101 = arith.constant 2 : index
    %c0_102 = arith.constant 0 : index
    %123 = vector.load %arg16[%c2_101, %c0_102] : memref<48x128xf32, #tpu.memory_space<vmem>>, vector<24x128xf32>
    %c2_103 = arith.constant 2 : index
    %c0_104 = arith.constant 0 : index
    %c0_105 = arith.constant 0 : index
    %124 = vector.load %arg5[%c2_103, %c0_104, %c0_105] : memref<5x128x128xf32, #tpu.memory_space<vmem>>, vector<1x128x128xf32>
    %125 = vector.shape_cast %124 : vector<1x128x128xf32> to vector<128x128xf32>
    %cst_106 = arith.constant dense<0.000000e+00> : vector<24x128xf32>
    %126 = tpu.matmul %123, %125, %cst_106 {dimension_numbers = #tpu.dot_dimension_numbers<[1], [0], [0], [1], [0, 0, 1, 1], [], []>} : vector<24x128xf32>, vector<128x128xf32>, vector<24x128xf32> -> vector<24x128xf32>
    %127 = arith.addf %122, %126 : vector<24x128xf32>
    %c3_107 = arith.constant 3 : index
    %c0_108 = arith.constant 0 : index
    %128 = vector.load %arg16[%c3_107, %c0_108] : memref<48x128xf32, #tpu.memory_space<vmem>>, vector<24x128xf32>
    %c3_109 = arith.constant 3 : index
    %c0_110 = arith.constant 0 : index
    %c0_111 = arith.constant 0 : index
    %129 = vector.load %arg5[%c3_109, %c0_110, %c0_111] : memref<5x128x128xf32, #tpu.memory_space<vmem>>, vector<1x128x128xf32>
    %130 = vector.shape_cast %129 : vector<1x128x128xf32> to vector<128x128xf32>
    %cst_112 = arith.constant dense<0.000000e+00> : vector<24x128xf32>
    %131 = tpu.matmul %128, %130, %cst_112 {dimension_numbers = #tpu.dot_dimension_numbers<[1], [0], [0], [1], [0, 0, 1, 1], [], []>} : vector<24x128xf32>, vector<128x128xf32>, vector<24x128xf32> -> vector<24x128xf32>
    %132 = arith.addf %127, %131 : vector<24x128xf32>
    %c4_113 = arith.constant 4 : index
    %c0_114 = arith.constant 0 : index
    %133 = vector.load %arg16[%c4_113, %c0_114] : memref<48x128xf32, #tpu.memory_space<vmem>>, vector<24x128xf32>
    %c4_115 = arith.constant 4 : index
    %c0_116 = arith.constant 0 : index
    %c0_117 = arith.constant 0 : index
    %134 = vector.load %arg5[%c4_115, %c0_116, %c0_117] : memref<5x128x128xf32, #tpu.memory_space<vmem>>, vector<1x128x128xf32>
    %135 = vector.shape_cast %134 : vector<1x128x128xf32> to vector<128x128xf32>
    %cst_118 = arith.constant dense<0.000000e+00> : vector<24x128xf32>
    %136 = tpu.matmul %133, %135, %cst_118 {dimension_numbers = #tpu.dot_dimension_numbers<[1], [0], [0], [1], [0, 0, 1, 1], [], []>} : vector<24x128xf32>, vector<128x128xf32>, vector<24x128xf32> -> vector<24x128xf32>
    %137 = arith.addf %132, %136 : vector<24x128xf32>
    %c0_119 = arith.constant 0 : index
    %c0_120 = arith.constant 0 : index
    %138 = vector.load %arg10[%c0_119, %c0_120] : memref<1x128xf32, #tpu.memory_space<vmem>>, vector<1x128xf32>
    %139 = vector.shape_cast %138 : vector<1x128xf32> to vector<128xf32>
    %140 = vector.shape_cast %139 : vector<128xf32> to vector<1x128xf32>
    %141 = vector.broadcast %140 : vector<1x128xf32> to vector<24x128xf32>
    %142 = arith.addf %137, %141 : vector<24x128xf32>
    %143 = math.tanh %142 : vector<24x128xf32>
    %c0_121 = arith.constant 0 : index
    %c0_122 = arith.constant 0 : index
    %144 = vector.load %arg15[%c0_121, %c0_122] : memref<48x128xf32, #tpu.memory_space<vmem>>, vector<24x128xf32>
    tpu.vector_store %arg15[%c0_121, %c0_122], %143 {strides = array<i32>} : memref<48x128xf32, #tpu.memory_space<vmem>>, vector<24x128xf32>,
    %c6_i32 = arith.constant 6 : i32
    %145 = arith.addi %27, %c6_i32 : i32
    %c0_i32_123 = arith.constant 0 : i32
    %146 = arith.cmpi slt, %145, %c0_i32_123 : i32
    %c24_i32 = arith.constant 24 : i32
    %147 = arith.addi %145, %c24_i32 : i32
    %c40_i32_124 = arith.constant 40 : i32
    %148 = arith.cmpi sgt, %147, %c40_i32_124 : i32
    %149 = arith.ori %146, %148 : i1
    %150 = arith.extui %149 : i1 to i32
    %c0_i32_125 = arith.constant 0 : i32
    %151 = arith.cmpi ne, %150, %c0_i32_125 : i32
    scf.if %151 {
      %222 = vector.extract_strided_slice %25 {offsets = [0, 0], sizes = [24, 1], strides = [1, 1]} : vector<32x1xi32> to vector<24x1xi32>
      %223 = vector.broadcast %145 : i32 to vector<24x1xi32>
      %224 = arith.addi %222, %223 : vector<24x1xi32>
      %c0_i32_198 = arith.constant 0 : i32
      %225 = vector.broadcast %c0_i32_198 : i32 to vector<24x1xi32>
      %226 = arith.cmpi sge, %224, %225 : vector<24x1xi32>
      %c40_i32_199 = arith.constant 40 : i32
      %227 = vector.broadcast %c40_i32_199 : i32 to vector<24x1xi32>
      %228 = arith.cmpi slt, %224, %227 : vector<24x1xi32>
      %229 = arith.andi %226, %228 : vector<24x1xi1>
      %c0_200 = arith.constant 0 : index
      %c0_201 = arith.constant 0 : index
      %230 = vector.load %arg15[%c0_200, %c0_201] : memref<48x128xf32, #tpu.memory_space<vmem>>, vector<24x128xf32>
      %c0_i32_202 = arith.constant 0 : i32
      %231 = arith.sitofp %c0_i32_202 : i32 to f32
      %232 = vector.shape_cast %229 : vector<24x1xi1> to vector<24x1xi1>
      %233 = vector.broadcast %232 : vector<24x1xi1> to vector<24x128xi1>
      %234 = vector.broadcast %231 : f32 to vector<24x128xf32>
      %235 = arith.select %233, %230, %234 : vector<24x128xi1>, vector<24x128xf32>
      %c0_203 = arith.constant 0 : index
      %c0_204 = arith.constant 0 : index
      %236 = vector.load %arg15[%c0_203, %c0_204] : memref<48x128xf32, #tpu.memory_space<vmem>>, vector<24x128xf32>
      tpu.vector_store %arg15[%c0_203, %c0_204], %235 {strides = array<i32>} : memref<48x128xf32, #tpu.memory_space<vmem>>, vector<24x128xf32>,
    } else {
    }
    %c0_126 = arith.constant 0 : index
    %c0_127 = arith.constant 0 : index
    %152 = vector.load %arg15[%c0_126, %c0_127] : memref<48x128xf32, #tpu.memory_space<vmem>>, vector<24x128xf32>
    %c0_128 = arith.constant 0 : index
    %c0_129 = arith.constant 0 : index
    %c0_130 = arith.constant 0 : index
    %153 = vector.load %arg6[%c0_128, %c0_129, %c0_130] : memref<5x128x128xf32, #tpu.memory_space<vmem>>, vector<1x128x128xf32>
    %154 = vector.shape_cast %153 : vector<1x128x128xf32> to vector<128x128xf32>
    %cst_131 = arith.constant dense<0.000000e+00> : vector<24x128xf32>
    %155 = tpu.matmul %152, %154, %cst_131 {dimension_numbers = #tpu.dot_dimension_numbers<[1], [0], [0], [1], [0, 0, 1, 1], [], []>} : vector<24x128xf32>, vector<128x128xf32>, vector<24x128xf32> -> vector<24x128xf32>
    %c1_132 = arith.constant 1 : index
    %c0_133 = arith.constant 0 : index
    %156 = vector.load %arg15[%c1_132, %c0_133] : memref<48x128xf32, #tpu.memory_space<vmem>>, vector<24x128xf32>
    %c1_134 = arith.constant 1 : index
    %c0_135 = arith.constant 0 : index
    %c0_136 = arith.constant 0 : index
    %157 = vector.load %arg6[%c1_134, %c0_135, %c0_136] : memref<5x128x128xf32, #tpu.memory_space<vmem>>, vector<1x128x128xf32>
    %158 = vector.shape_cast %157 : vector<1x128x128xf32> to vector<128x128xf32>
    %cst_137 = arith.constant dense<0.000000e+00> : vector<24x128xf32>
    %159 = tpu.matmul %156, %158, %cst_137 {dimension_numbers = #tpu.dot_dimension_numbers<[1], [0], [0], [1], [0, 0, 1, 1], [], []>} : vector<24x128xf32>, vector<128x128xf32>, vector<24x128xf32> -> vector<24x128xf32>
    %160 = arith.addf %155, %159 : vector<24x128xf32>
    %c2_138 = arith.constant 2 : index
    %c0_139 = arith.constant 0 : index
    %161 = vector.load %arg15[%c2_138, %c0_139] : memref<48x128xf32, #tpu.memory_space<vmem>>, vector<24x128xf32>
    %c2_140 = arith.constant 2 : index
    %c0_141 = arith.constant 0 : index
    %c0_142 = arith.constant 0 : index
    %162 = vector.load %arg6[%c2_140, %c0_141, %c0_142] : memref<5x128x128xf32, #tpu.memory_space<vmem>>, vector<1x128x128xf32>
    %163 = vector.shape_cast %162 : vector<1x128x128xf32> to vector<128x128xf32>
    %cst_143 = arith.constant dense<0.000000e+00> : vector<24x128xf32>
    %164 = tpu.matmul %161, %163, %cst_143 {dimension_numbers = #tpu.dot_dimension_numbers<[1], [0], [0], [1], [0, 0, 1, 1], [], []>} : vector<24x128xf32>, vector<128x128xf32>, vector<24x128xf32> -> vector<24x128xf32>
    %165 = arith.addf %160, %164 : vector<24x128xf32>
    %c3_144 = arith.constant 3 : index
    %c0_145 = arith.constant 0 : index
    %166 = vector.load %arg15[%c3_144, %c0_145] : memref<48x128xf32, #tpu.memory_space<vmem>>, vector<24x128xf32>
    %c3_146 = arith.constant 3 : index
    %c0_147 = arith.constant 0 : index
    %c0_148 = arith.constant 0 : index
    %167 = vector.load %arg6[%c3_146, %c0_147, %c0_148] : memref<5x128x128xf32, #tpu.memory_space<vmem>>, vector<1x128x128xf32>
    %168 = vector.shape_cast %167 : vector<1x128x128xf32> to vector<128x128xf32>
    %cst_149 = arith.constant dense<0.000000e+00> : vector<24x128xf32>
    %169 = tpu.matmul %166, %168, %cst_149 {dimension_numbers = #tpu.dot_dimension_numbers<[1], [0], [0], [1], [0, 0, 1, 1], [], []>} : vector<24x128xf32>, vector<128x128xf32>, vector<24x128xf32> -> vector<24x128xf32>
    %170 = arith.addf %165, %169 : vector<24x128xf32>
    %c4_150 = arith.constant 4 : index
    %c0_151 = arith.constant 0 : index
    %171 = vector.load %arg15[%c4_150, %c0_151] : memref<48x128xf32, #tpu.memory_space<vmem>>, vector<24x128xf32>
    %c4_152 = arith.constant 4 : index
    %c0_153 = arith.constant 0 : index
    %c0_154 = arith.constant 0 : index
    %172 = vector.load %arg6[%c4_152, %c0_153, %c0_154] : memref<5x128x128xf32, #tpu.memory_space<vmem>>, vector<1x128x128xf32>
    %173 = vector.shape_cast %172 : vector<1x128x128xf32> to vector<128x128xf32>
    %cst_155 = arith.constant dense<0.000000e+00> : vector<24x128xf32>
    %174 = tpu.matmul %171, %173, %cst_155 {dimension_numbers = #tpu.dot_dimension_numbers<[1], [0], [0], [1], [0, 0, 1, 1], [], []>} : vector<24x128xf32>, vector<128x128xf32>, vector<24x128xf32> -> vector<24x128xf32>
    %175 = arith.addf %170, %174 : vector<24x128xf32>
    %c0_156 = arith.constant 0 : index
    %c0_157 = arith.constant 0 : index
    %176 = vector.load %arg11[%c0_156, %c0_157] : memref<1x128xf32, #tpu.memory_space<vmem>>, vector<1x128xf32>
    %177 = vector.shape_cast %176 : vector<1x128xf32> to vector<128xf32>
    %178 = vector.shape_cast %177 : vector<128xf32> to vector<1x128xf32>
    %179 = vector.broadcast %178 : vector<1x128xf32> to vector<24x128xf32>
    %180 = arith.addf %175, %179 : vector<24x128xf32>
    %181 = math.tanh %180 : vector<24x128xf32>
    %c0_158 = arith.constant 0 : index
    %c0_159 = arith.constant 0 : index
    %182 = vector.load %arg16[%c0_158, %c0_159] : memref<48x128xf32, #tpu.memory_space<vmem>>, vector<24x128xf32>
    tpu.vector_store %arg16[%c0_158, %c0_159], %181 {strides = array<i32>} : memref<48x128xf32, #tpu.memory_space<vmem>>, vector<24x128xf32>,
    %c8_i32 = arith.constant 8 : i32
    %183 = arith.addi %27, %c8_i32 : i32
    %c0_i32_160 = arith.constant 0 : i32
    %184 = arith.cmpi slt, %183, %c0_i32_160 : i32
    %c20_i32 = arith.constant 20 : i32
    %185 = arith.addi %183, %c20_i32 : i32
    %c40_i32_161 = arith.constant 40 : i32
    %186 = arith.cmpi sgt, %185, %c40_i32_161 : i32
    %187 = arith.ori %184, %186 : i1
    %188 = arith.extui %187 : i1 to i32
    %c0_i32_162 = arith.constant 0 : i32
    %189 = arith.cmpi ne, %188, %c0_i32_162 : i32
    scf.if %189 {
      %222 = vector.extract_strided_slice %25 {offsets = [0, 0], sizes = [24, 1], strides = [1, 1]} : vector<32x1xi32> to vector<24x1xi32>
      %223 = vector.broadcast %183 : i32 to vector<24x1xi32>
      %224 = arith.addi %222, %223 : vector<24x1xi32>
      %c0_i32_198 = arith.constant 0 : i32
      %225 = vector.broadcast %c0_i32_198 : i32 to vector<24x1xi32>
      %226 = arith.cmpi sge, %224, %225 : vector<24x1xi32>
      %c40_i32_199 = arith.constant 40 : i32
      %227 = vector.broadcast %c40_i32_199 : i32 to vector<24x1xi32>
      %228 = arith.cmpi slt, %224, %227 : vector<24x1xi32>
      %229 = arith.andi %226, %228 : vector<24x1xi1>
      %c0_200 = arith.constant 0 : index
      %c0_201 = arith.constant 0 : index
      %230 = vector.load %arg16[%c0_200, %c0_201] : memref<48x128xf32, #tpu.memory_space<vmem>>, vector<24x128xf32>
      %c0_i32_202 = arith.constant 0 : i32
      %231 = arith.sitofp %c0_i32_202 : i32 to f32
      %232 = vector.shape_cast %229 : vector<24x1xi1> to vector<24x1xi1>
      %233 = vector.broadcast %232 : vector<24x1xi1> to vector<24x128xi1>
      %234 = vector.broadcast %231 : f32 to vector<24x128xf32>
      %235 = arith.select %233, %230, %234 : vector<24x128xi1>, vector<24x128xf32>
      %c0_203 = arith.constant 0 : index
      %c0_204 = arith.constant 0 : index
      %236 = vector.load %arg16[%c0_203, %c0_204] : memref<48x128xf32, #tpu.memory_space<vmem>>, vector<24x128xf32>
      tpu.vector_store %arg16[%c0_203, %c0_204], %235 {strides = array<i32>} : memref<48x128xf32, #tpu.memory_space<vmem>>, vector<24x128xf32>,
    } else {
    }
    %c0_163 = arith.constant 0 : index
    %c0_164 = arith.constant 0 : index
    %190 = vector.load %arg16[%c0_163, %c0_164] : memref<48x128xf32, #tpu.memory_space<vmem>>, vector<16x128xf32>
    %c0_165 = arith.constant 0 : index
    %c0_166 = arith.constant 0 : index
    %c0_167 = arith.constant 0 : index
    %191 = vector.load %arg7[%c0_165, %c0_166, %c0_167] : memref<5x128x128xf32, #tpu.memory_space<vmem>>, vector<1x128x128xf32>
    %192 = vector.shape_cast %191 : vector<1x128x128xf32> to vector<128x128xf32>
    %cst_168 = arith.constant dense<0.000000e+00> : vector<16x128xf32>
    %193 = tpu.matmul %190, %192, %cst_168 {dimension_numbers = #tpu.dot_dimension_numbers<[1], [0], [0], [1], [0, 0, 1, 1], [], []>} : vector<16x128xf32>, vector<128x128xf32>, vector<16x128xf32> -> vector<16x128xf32>
    %c1_169 = arith.constant 1 : index
    %c0_170 = arith.constant 0 : index
    %194 = vector.load %arg16[%c1_169, %c0_170] : memref<48x128xf32, #tpu.memory_space<vmem>>, vector<16x128xf32>
    %c1_171 = arith.constant 1 : index
    %c0_172 = arith.constant 0 : index
    %c0_173 = arith.constant 0 : index
    %195 = vector.load %arg7[%c1_171, %c0_172, %c0_173] : memref<5x128x128xf32, #tpu.memory_space<vmem>>, vector<1x128x128xf32>
    %196 = vector.shape_cast %195 : vector<1x128x128xf32> to vector<128x128xf32>
    %cst_174 = arith.constant dense<0.000000e+00> : vector<16x128xf32>
    %197 = tpu.matmul %194, %196, %cst_174 {dimension_numbers = #tpu.dot_dimension_numbers<[1], [0], [0], [1], [0, 0, 1, 1], [], []>} : vector<16x128xf32>, vector<128x128xf32>, vector<16x128xf32> -> vector<16x128xf32>
    %198 = arith.addf %193, %197 : vector<16x128xf32>
    %c2_175 = arith.constant 2 : index
    %c0_176 = arith.constant 0 : index
    %199 = vector.load %arg16[%c2_175, %c0_176] : memref<48x128xf32, #tpu.memory_space<vmem>>, vector<16x128xf32>
    %c2_177 = arith.constant 2 : index
    %c0_178 = arith.constant 0 : index
    %c0_179 = arith.constant 0 : index
    %200 = vector.load %arg7[%c2_177, %c0_178, %c0_179] : memref<5x128x128xf32, #tpu.memory_space<vmem>>, vector<1x128x128xf32>
    %201 = vector.shape_cast %200 : vector<1x128x128xf32> to vector<128x128xf32>
    %cst_180 = arith.constant dense<0.000000e+00> : vector<16x128xf32>
    %202 = tpu.matmul %199, %201, %cst_180 {dimension_numbers = #tpu.dot_dimension_numbers<[1], [0], [0], [1], [0, 0, 1, 1], [], []>} : vector<16x128xf32>, vector<128x128xf32>, vector<16x128xf32> -> vector<16x128xf32>
    %203 = arith.addf %198, %202 : vector<16x128xf32>
    %c3_181 = arith.constant 3 : index
    %c0_182 = arith.constant 0 : index
    %204 = vector.load %arg16[%c3_181, %c0_182] : memref<48x128xf32, #tpu.memory_space<vmem>>, vector<16x128xf32>
    %c3_183 = arith.constant 3 : index
    %c0_184 = arith.constant 0 : index
    %c0_185 = arith.constant 0 : index
    %205 = vector.load %arg7[%c3_183, %c0_184, %c0_185] : memref<5x128x128xf32, #tpu.memory_space<vmem>>, vector<1x128x128xf32>
    %206 = vector.shape_cast %205 : vector<1x128x128xf32> to vector<128x128xf32>
    %cst_186 = arith.constant dense<0.000000e+00> : vector<16x128xf32>
    %207 = tpu.matmul %204, %206, %cst_186 {dimension_numbers = #tpu.dot_dimension_numbers<[1], [0], [0], [1], [0, 0, 1, 1], [], []>} : vector<16x128xf32>, vector<128x128xf32>, vector<16x128xf32> -> vector<16x128xf32>
    %208 = arith.addf %203, %207 : vector<16x128xf32>
    %c4_187 = arith.constant 4 : index
    %c0_188 = arith.constant 0 : index
    %209 = vector.load %arg16[%c4_187, %c0_188] : memref<48x128xf32, #tpu.memory_space<vmem>>, vector<16x128xf32>
    %c4_189 = arith.constant 4 : index
    %c0_190 = arith.constant 0 : index
    %c0_191 = arith.constant 0 : index
    %210 = vector.load %arg7[%c4_189, %c0_190, %c0_191] : memref<5x128x128xf32, #tpu.memory_space<vmem>>, vector<1x128x128xf32>
    %211 = vector.shape_cast %210 : vector<1x128x128xf32> to vector<128x128xf32>
    %cst_192 = arith.constant dense<0.000000e+00> : vector<16x128xf32>
    %212 = tpu.matmul %209, %211, %cst_192 {dimension_numbers = #tpu.dot_dimension_numbers<[1], [0], [0], [1], [0, 0, 1, 1], [], []>} : vector<16x128xf32>, vector<128x128xf32>, vector<16x128xf32> -> vector<16x128xf32>
    %213 = arith.addf %208, %212 : vector<16x128xf32>
    %c0_193 = arith.constant 0 : index
    %c0_194 = arith.constant 0 : index
    %214 = vector.load %arg12[%c0_193, %c0_194] : memref<1x128xf32, #tpu.memory_space<vmem>>, vector<1x128xf32>
    %215 = vector.shape_cast %214 : vector<1x128xf32> to vector<128xf32>
    %216 = vector.shape_cast %215 : vector<128xf32> to vector<1x128xf32>
    %217 = vector.broadcast %216 : vector<1x128xf32> to vector<16x128xf32>
    %218 = arith.addf %213, %217 : vector<16x128xf32>
    %c0_195 = arith.constant 0 : index
    %c0_196 = arith.constant 0 : index
    %c0_197 = arith.constant 0 : index
    %219 = vector.load %arg13[%c0_195, %c0_196, %c0_197] : memref<1x16x128xf32, #tpu.memory_space<vmem>>, vector<1x16x128xf32>
    %220 = vector.shape_cast %219 : vector<1x16x128xf32> to vector<16x128xf32>
    %221 = vector.shape_cast %218 : vector<16x128xf32> to vector<1x16x128xf32>
    tpu.vector_store %arg13[%c0_195, %c0_196, %c0_197], %221 {strides = array<i32>} : memref<1x16x128xf32, #tpu.memory_space<vmem>>, vector<1x16x128xf32>,
    return
  }
  func.func @transform_1(%arg0: i32, %arg1: i32) -> (i32, i32, i32) {
    %c0_i32 = arith.constant 0 : i32
    %c0_i32_0 = arith.constant 0 : i32
    %c0_i32_1 = arith.constant 0 : i32
    %c0_i32_2 = arith.constant 0 : i32
    return %c0_i32, %c0_i32_0, %c0_i32_1 : i32, i32, i32
  }
  func.func @transform_2(%arg0: i32, %arg1: i32) -> (i32, i32, i32) {
    %c0_i32 = arith.constant 0 : i32
    %c0_i32_0 = arith.constant 0 : i32
    %c0_i32_1 = arith.constant 0 : i32
    %c0_i32_2 = arith.constant 0 : i32
    return %c0_i32, %c0_i32_0, %c0_i32_1 : i32, i32, i32
  }
  func.func @transform_3(%arg0: i32, %arg1: i32) -> (i32, i32, i32) {
    %c0_i32 = arith.constant 0 : i32
    %c0_i32_0 = arith.constant 0 : i32
    %c0_i32_1 = arith.constant 0 : i32
    %c0_i32_2 = arith.constant 0 : i32
    return %c0_i32, %c0_i32_0, %c0_i32_1 : i32, i32, i32
  }
  func.func @transform_4(%arg0: i32, %arg1: i32) -> (i32, i32, i32) {
    %c0_i32 = arith.constant 0 : i32
    %c0_i32_0 = arith.constant 0 : i32
    %c0_i32_1 = arith.constant 0 : i32
    %c0_i32_2 = arith.constant 0 : i32
    return %c0_i32, %c0_i32_0, %c0_i32_1 : i32, i32, i32
  }
  func.func @transform_5(%arg0: i32, %arg1: i32) -> (i32, i32, i32) {
    %c0_i32 = arith.constant 0 : i32
    %c0_i32_0 = arith.constant 0 : i32
    %c0_i32_1 = arith.constant 0 : i32
    %c0_i32_2 = arith.constant 0 : i32
    return %c0_i32, %c0_i32_0, %c0_i32_1 : i32, i32, i32
  }
  func.func @transform_6(%arg0: i32, %arg1: i32) -> (i32, i32) {
    %c0_i32 = arith.constant 0 : i32
    %c0_i32_0 = arith.constant 0 : i32
    %c0_i32_1 = arith.constant 0 : i32
    return %c0_i32, %c0_i32_0 : i32, i32
  }
  func.func @transform_7(%arg0: i32, %arg1: i32) -> (i32, i32) {
    %c0_i32 = arith.constant 0 : i32
    %c0_i32_0 = arith.constant 0 : i32
    %c0_i32_1 = arith.constant 0 : i32
    return %c0_i32, %c0_i32_0 : i32, i32
  }
  func.func @transform_8(%arg0: i32, %arg1: i32) -> (i32, i32) {
    %c0_i32 = arith.constant 0 : i32
    %c0_i32_0 = arith.constant 0 : i32
    %c0_i32_1 = arith.constant 0 : i32
    return %c0_i32, %c0_i32_0 : i32, i32
  }
  func.func @transform_9(%arg0: i32, %arg1: i32) -> (i32, i32) {
    %c0_i32 = arith.constant 0 : i32
    %c0_i32_0 = arith.constant 0 : i32
    %c0_i32_1 = arith.constant 0 : i32
    return %c0_i32, %c0_i32_0 : i32, i32
  }
  func.func @transform_10(%arg0: i32, %arg1: i32) -> (i32, i32) {
    %c0_i32 = arith.constant 0 : i32
    %c0_i32_0 = arith.constant 0 : i32
    %c0_i32_1 = arith.constant 0 : i32
    return %c0_i32, %c0_i32_0 : i32, i32
  }
  func.func @transform_11(%arg0: i32, %arg1: i32) -> (i32, i32, i32) {
    %c0_i32 = arith.constant 0 : i32
    %c0_i32_0 = arith.constant 0 : i32
    return %arg0, %arg1, %c0_i32 : i32, i32, i32
  }
}

module attributes {stable_mosaic.version = 11 : i64} {
  func.func @kernel(%arg0: i32, %arg1: i32, %arg2: memref<2x72x128xf32, #tpu.memory_space<any>>, %arg3: memref<5x128x128xf32, #tpu.memory_space<vmem>>, %arg4: memref<5x128x128xf32, #tpu.memory_space<vmem>>, %arg5: memref<5x128x128xf32, #tpu.memory_space<vmem>>, %arg6: memref<5x128x128xf32, #tpu.memory_space<vmem>>, %arg7: memref<5x128x128xf32, #tpu.memory_space<vmem>>, %arg8: memref<1x128xf32, #tpu.memory_space<vmem>>, %arg9: memref<1x128xf32, #tpu.memory_space<vmem>>, %arg10: memref<1x128xf32, #tpu.memory_space<vmem>>, %arg11: memref<1x128xf32, #tpu.memory_space<vmem>>, %arg12: memref<1x128xf32, #tpu.memory_space<vmem>>, %arg13: memref<1x16x128xf32, #tpu.memory_space<vmem>>, %arg14: memref<2x48x128xf32, #tpu.memory_space<vmem>>, %arg15: memref<48x128xf32, #tpu.memory_space<vmem>>, %arg16: memref<48x128xf32, #tpu.memory_space<vmem>>, %arg17: memref<2x!tpu.dma_semaphore, #tpu.memory_space<semaphore_mem>>) attributes {dimension_semantics = [#tpu.dimension_semantics<parallel>, #tpu.dimension_semantics<arbitrary>], iteration_bounds = array<i64: 2, 3>, scalar_prefetch = 0 : i64, scratch_operands = 4 : i64, tpu.core_type = #tpu.core_type<tc>, window_params = [{}, {pipeline_mode = #tpu.pipeline_mode<synchronous>, transform_indices = @transform_1, window_bounds = array<i64: 5, 128, 128>}, {pipeline_mode = #tpu.pipeline_mode<synchronous>, transform_indices = @transform_2, window_bounds = array<i64: 5, 128, 128>}, {pipeline_mode = #tpu.pipeline_mode<synchronous>, transform_indices = @transform_3, window_bounds = array<i64: 5, 128, 128>}, {pipeline_mode = #tpu.pipeline_mode<synchronous>, transform_indices = @transform_4, window_bounds = array<i64: 5, 128, 128>}, {pipeline_mode = #tpu.pipeline_mode<synchronous>, transform_indices = @transform_5, window_bounds = array<i64: 5, 128, 128>}, {pipeline_mode = #tpu.pipeline_mode<synchronous>, transform_indices = @transform_6, window_bounds = array<i64: 1, 128>}, {pipeline_mode = #tpu.pipeline_mode<synchronous>, transform_indices = @transform_7, window_bounds = array<i64: 1, 128>}, {pipeline_mode = #tpu.pipeline_mode<synchronous>, transform_indices = @transform_8, window_bounds = array<i64: 1, 128>}, {pipeline_mode = #tpu.pipeline_mode<synchronous>, transform_indices = @transform_9, window_bounds = array<i64: 1, 128>}, {pipeline_mode = #tpu.pipeline_mode<synchronous>, transform_indices = @transform_10, window_bounds = array<i64: 1, 128>}, {transform_indices = @transform_11, window_bounds = array<i64: 1, 16, 128>}]} {
    %c2_i32 = arith.constant 2 : i32
    %c0_i32 = arith.constant 0 : i32
    %0 = arith.cmpi eq, %c2_i32, %c0_i32 : i32
    %c1_i32 = arith.constant 1 : i32
    %1 = arith.select %0, %c1_i32, %c2_i32 : i32
    %2 = arith.remsi %arg1, %1 : i32
    %c0_i32_0 = arith.constant 0 : i32
    %3 = arith.cmpi ne, %2, %c0_i32_0 : i32
    %c0_i32_1 = arith.constant 0 : i32
    %4 = arith.cmpi slt, %2, %c0_i32_1 : i32
    %c0_i32_2 = arith.constant 0 : i32
    %5 = arith.cmpi slt, %1, %c0_i32_2 : i32
    %6 = arith.xori %4, %5 : i1
    %7 = arith.andi %6, %3 : i1
    %8 = arith.addi %2, %1 : i32
    %9 = arith.select %7, %8, %2 : i32
    %c0_i32_3 = arith.constant 0 : i32
    %10 = arith.cmpi eq, %arg1, %c0_i32_3 : i32
    %11 = arith.extui %10 : i1 to i32
    %c0_i32_4 = arith.constant 0 : i32
    %12 = arith.cmpi ne, %11, %c0_i32_4 : i32
    scf.if %12 {
      %c16_i32_198 = arith.constant 16 : i32
      %222 = arith.muli %arg1, %c16_i32_198 : i32
      %223 = tpu.assume_multiple %222, 8 : i32
      %c0_i32_199 = arith.constant 0 : i32
      %224 = tpu.memref_slice %arg2[%arg0, %223, %c0_i32_199] : memref<2x72x128xf32, #tpu.memory_space<any>> -> memref<1x40x128xf32, #tpu.memory_space<any>>
      %225 = tpu.memref_squeeze %224 : memref<1x40x128xf32, #tpu.memory_space<any>> -> memref<40x128xf32, #tpu.memory_space<any>>
      %c0_i32_200 = arith.constant 0 : i32
      %c0_i32_201 = arith.constant 0 : i32
      %226 = tpu.memref_slice %arg14[%9, %c0_i32_200, %c0_i32_201] : memref<2x48x128xf32, #tpu.memory_space<vmem>> -> memref<1x40x128xf32, #tpu.memory_space<vmem>>
      %227 = tpu.memref_squeeze %226 : memref<1x40x128xf32, #tpu.memory_space<vmem>> -> memref<40x128xf32, #tpu.memory_space<vmem>>
      %228 = tpu.memref_slice %arg17[%9] : memref<2x!tpu.dma_semaphore, #tpu.memory_space<semaphore_mem>> -> memref<1x!tpu.dma_semaphore, #tpu.memory_space<semaphore_mem>>
      %229 = tpu.memref_squeeze %228 : memref<1x!tpu.dma_semaphore, #tpu.memory_space<semaphore_mem>> -> memref<!tpu.dma_semaphore, #tpu.memory_space<semaphore_mem>>
      tpu.enqueue_dma source(%225 : memref<40x128xf32, #tpu.memory_space<any>>) target(%227 : memref<40x128xf32, #tpu.memory_space<vmem>>) target_semaphore(%229 : memref<!tpu.dma_semaphore, #tpu.memory_space<semaphore_mem>>)
    } else {
    }
    %c16_i32 = arith.constant 16 : i32
    %13 = arith.muli %arg1, %c16_i32 : i32
    %14 = tpu.assume_multiple %13, 8 : i32
    %c0_i32_5 = arith.constant 0 : i32
    %15 = tpu.memref_slice %arg2[%arg0, %14, %c0_i32_5] : memref<2x72x128xf32, #tpu.memory_space<any>> -> memref<1x40x128xf32, #tpu.memory_space<any>>
    %16 = tpu.memref_squeeze %15 : memref<1x40x128xf32, #tpu.memory_space<any>> -> memref<40x128xf32, #tpu.memory_space<any>>
    %c0_i32_6 = arith.constant 0 : i32
    %c0_i32_7 = arith.constant 0 : i32
    %17 = tpu.memref_slice %arg14[%9, %c0_i32_6, %c0_i32_7] : memref<2x48x128xf32, #tpu.memory_space<vmem>> -> memref<1x40x128xf32, #tpu.memory_space<vmem>>
    %18 = tpu.memref_squeeze %17 : memref<1x40x128xf32, #tpu.memory_space<vmem>> -> memref<40x128xf32, #tpu.memory_space<vmem>>
    %19 = tpu.memref_slice %arg17[%9] : memref<2x!tpu.dma_semaphore, #tpu.memory_space<semaphore_mem>> -> memref<1x!tpu.dma_semaphore, #tpu.memory_space<semaphore_mem>>
    %20 = tpu.memref_squeeze %19 : memref<1x!tpu.dma_semaphore, #tpu.memory_space<semaphore_mem>> -> memref<!tpu.dma_semaphore, #tpu.memory_space<semaphore_mem>>
    tpu.wait_dma2 semaphore(%20 : memref<!tpu.dma_semaphore, #tpu.memory_space<semaphore_mem>>) src(%16 : memref<40x128xf32, #tpu.memory_space<any>>) dst(%18 : memref<40x128xf32, #tpu.memory_space<vmem>>)
    %c1_i32_8 = arith.constant 1 : i32
    %21 = arith.addi %arg1, %c1_i32_8 : i32
    %c3_i32 = arith.constant 3 : i32
    %22 = arith.cmpi slt, %21, %c3_i32 : i32
    %23 = arith.extui %22 : i1 to i32
    %c0_i32_9 = arith.constant 0 : i32
    %24 = arith.cmpi ne, %23, %c0_i32_9 : i32
    scf.if %24 {
      %c1_i32_198 = arith.constant 1 : i32
      %222 = arith.addi %arg1, %c1_i32_198 : i32
      %c1_i32_199 = arith.constant 1 : i32
      %223 = arith.subi %c1_i32_199, %9 : i32
      %c16_i32_200 = arith.constant 16 : i32
      %224 = arith.muli %222, %c16_i32_200 : i32
      %225 = tpu.assume_multiple %224, 8 : i32
      %c0_i32_201 = arith.constant 0 : i32
      %226 = tpu.memref_slice %arg2[%arg0, %225, %c0_i32_201] : memref<2x72x128xf32, #tpu.memory_space<any>> -> memref<1x40x128xf32, #tpu.memory_space<any>>
      %227 = tpu.memref_squeeze %226 : memref<1x40x128xf32, #tpu.memory_space<any>> -> memref<40x128xf32, #tpu.memory_space<any>>
      %c0_i32_202 = arith.constant 0 : i32
      %c0_i32_203 = arith.constant 0 : i32
      %228 = tpu.memref_slice %arg14[%223, %c0_i32_202, %c0_i32_203] : memref<2x48x128xf32, #tpu.memory_space<vmem>> -> memref<1x40x128xf32, #tpu.memory_space<vmem>>
      %229 = tpu.memref_squeeze %228 : memref<1x40x128xf32, #tpu.memory_space<vmem>> -> memref<40x128xf32, #tpu.memory_space<vmem>>
      %230 = tpu.memref_slice %arg17[%223] : memref<2x!tpu.dma_semaphore, #tpu.memory_space<semaphore_mem>> -> memref<1x!tpu.dma_semaphore, #tpu.memory_space<semaphore_mem>>
      %231 = tpu.memref_squeeze %230 : memref<1x!tpu.dma_semaphore, #tpu.memory_space<semaphore_mem>> -> memref<!tpu.dma_semaphore, #tpu.memory_space<semaphore_mem>>
      tpu.enqueue_dma source(%227 : memref<40x128xf32, #tpu.memory_space<any>>) target(%229 : memref<40x128xf32, #tpu.memory_space<vmem>>) target_semaphore(%231 : memref<!tpu.dma_semaphore, #tpu.memory_space<semaphore_mem>>)
    } else {
    }
    %25 = tpu.iota {dimensions = array<i32: 0>} : vector<32x1xi32>
    %c16_i32_10 = arith.constant 16 : i32
    %26 = arith.muli %arg1, %c16_i32_10 : i32
    %c10_i32 = arith.constant 10 : i32
    %27 = arith.subi %26, %c10_i32 : i32
    %c0_i32_11 = arith.constant 0 : i32
    %c0_i32_12 = arith.constant 0 : i32
    %28 = tpu.memref_slice %arg14[%9, %c0_i32_11, %c0_i32_12] : memref<2x48x128xf32, #tpu.memory_space<vmem>> -> memref<1x48x128xf32, #tpu.memory_space<vmem>>
    %29 = tpu.memref_squeeze %28 : memref<1x48x128xf32, #tpu.memory_space<vmem>> -> memref<48x128xf32, #tpu.memory_space<vmem>>
    %c0 = arith.constant 0 : index
    %c0_13 = arith.constant 0 : index
    %30 = vector.load %29[%c0, %c0_13] : memref<48x128xf32, #tpu.memory_space<vmem>>, vector<32x128xf32>
    %c0_14 = arith.constant 0 : index
    %c0_15 = arith.constant 0 : index
    %c0_16 = arith.constant 0 : index
    %31 = vector.load %arg3[%c0_14, %c0_15, %c0_16] : memref<5x128x128xf32, #tpu.memory_space<vmem>>, vector<1x128x128xf32>
    %32 = vector.shape_cast %31 : vector<1x128x128xf32> to vector<128x128xf32>
    %cst = arith.constant dense<0.000000e+00> : vector<32x128xf32>
    %33 = tpu.matmul %30, %32, %cst {dimension_numbers = #tpu.dot_dimension_numbers<[1], [0], [0], [1], [0, 0, 1, 1], [], []>} : vector<32x128xf32>, vector<128x128xf32>, vector<32x128xf32> -> vector<32x128xf32>
    %c0_i32_17 = arith.constant 0 : i32
    %c0_i32_18 = arith.constant 0 : i32
    %34 = tpu.memref_slice %arg14[%9, %c0_i32_17, %c0_i32_18] : memref<2x48x128xf32, #tpu.memory_space<vmem>> -> memref<1x48x128xf32, #tpu.memory_space<vmem>>
    %35 = tpu.memref_squeeze %34 : memref<1x48x128xf32, #tpu.memory_space<vmem>> -> memref<48x128xf32, #tpu.memory_space<vmem>>
    %c1 = arith.constant 1 : index
    %c0_19 = arith.constant 0 : index
    %36 = vector.load %35[%c1, %c0_19] : memref<48x128xf32, #tpu.memory_space<vmem>>, vector<32x128xf32>
    %c1_20 = arith.constant 1 : index
    %c0_21 = arith.constant 0 : index
    %c0_22 = arith.constant 0 : index
    %37 = vector.load %arg3[%c1_20, %c0_21, %c0_22] : memref<5x128x128xf32, #tpu.memory_space<vmem>>, vector<1x128x128xf32>
    %38 = vector.shape_cast %37 : vector<1x128x128xf32> to vector<128x128xf32>
    %cst_23 = arith.constant dense<0.000000e+00> : vector<32x128xf32>
    %39 = tpu.matmul %36, %38, %cst_23 {dimension_numbers = #tpu.dot_dimension_numbers<[1], [0], [0], [1], [0, 0, 1, 1], [], []>} : vector<32x128xf32>, vector<128x128xf32>, vector<32x128xf32> -> vector<32x128xf32>
    %40 = arith.addf %33, %39 : vector<32x128xf32>
    %c0_i32_24 = arith.constant 0 : i32
    %c0_i32_25 = arith.constant 0 : i32
    %41 = tpu.memref_slice %arg14[%9, %c0_i32_24, %c0_i32_25] : memref<2x48x128xf32, #tpu.memory_space<vmem>> -> memref<1x48x128xf32, #tpu.memory_space<vmem>>
    %42 = tpu.memref_squeeze %41 : memref<1x48x128xf32, #tpu.memory_space<vmem>> -> memref<48x128xf32, #tpu.memory_space<vmem>>
    %c2 = arith.constant 2 : index
    %c0_26 = arith.constant 0 : index
    %43 = vector.load %42[%c2, %c0_26] : memref<48x128xf32, #tpu.memory_space<vmem>>, vector<32x128xf32>
    %c2_27 = arith.constant 2 : index
    %c0_28 = arith.constant 0 : index
    %c0_29 = arith.constant 0 : index
    %44 = vector.load %arg3[%c2_27, %c0_28, %c0_29] : memref<5x128x128xf32, #tpu.memory_space<vmem>>, vector<1x128x128xf32>
    %45 = vector.shape_cast %44 : vector<1x128x128xf32> to vector<128x128xf32>
    %cst_30 = arith.constant dense<0.000000e+00> : vector<32x128xf32>
    %46 = tpu.matmul %43, %45, %cst_30 {dimension_numbers = #tpu.dot_dimension_numbers<[1], [0], [0], [1], [0, 0, 1, 1], [], []>} : vector<32x128xf32>, vector<128x128xf32>, vector<32x128xf32> -> vector<32x128xf32>
    %47 = arith.addf %40, %46 : vector<32x128xf32>
    %c0_i32_31 = arith.constant 0 : i32
    %c0_i32_32 = arith.constant 0 : i32
    %48 = tpu.memref_slice %arg14[%9, %c0_i32_31, %c0_i32_32] : memref<2x48x128xf32, #tpu.memory_space<vmem>> -> memref<1x48x128xf32, #tpu.memory_space<vmem>>
    %49 = tpu.memref_squeeze %48 : memref<1x48x128xf32, #tpu.memory_space<vmem>> -> memref<48x128xf32, #tpu.memory_space<vmem>>
    %c3 = arith.constant 3 : index
    %c0_33 = arith.constant 0 : index
    %50 = vector.load %49[%c3, %c0_33] : memref<48x128xf32, #tpu.memory_space<vmem>>, vector<32x128xf32>
    %c3_34 = arith.constant 3 : index
    %c0_35 = arith.constant 0 : index
    %c0_36 = arith.constant 0 : index
    %51 = vector.load %arg3[%c3_34, %c0_35, %c0_36] : memref<5x128x128xf32, #tpu.memory_space<vmem>>, vector<1x128x128xf32>
    %52 = vector.shape_cast %51 : vector<1x128x128xf32> to vector<128x128xf32>
    %cst_37 = arith.constant dense<0.000000e+00> : vector<32x128xf32>
    %53 = tpu.matmul %50, %52, %cst_37 {dimension_numbers = #tpu.dot_dimension_numbers<[1], [0], [0], [1], [0, 0, 1, 1], [], []>} : vector<32x128xf32>, vector<128x128xf32>, vector<32x128xf32> -> vector<32x128xf32>
    %54 = arith.addf %47, %53 : vector<32x128xf32>
    %c0_i32_38 = arith.constant 0 : i32
    %c0_i32_39 = arith.constant 0 : i32
    %55 = tpu.memref_slice %arg14[%9, %c0_i32_38, %c0_i32_39] : memref<2x48x128xf32, #tpu.memory_space<vmem>> -> memref<1x48x128xf32, #tpu.memory_space<vmem>>
    %56 = tpu.memref_squeeze %55 : memref<1x48x128xf32, #tpu.memory_space<vmem>> -> memref<48x128xf32, #tpu.memory_space<vmem>>
    %c4 = arith.constant 4 : index
    %c0_40 = arith.constant 0 : index
    %57 = vector.load %56[%c4, %c0_40] : memref<48x128xf32, #tpu.memory_space<vmem>>, vector<32x128xf32>
    %c4_41 = arith.constant 4 : index
    %c0_42 = arith.constant 0 : index
    %c0_43 = arith.constant 0 : index
    %58 = vector.load %arg3[%c4_41, %c0_42, %c0_43] : memref<5x128x128xf32, #tpu.memory_space<vmem>>, vector<1x128x128xf32>
    %59 = vector.shape_cast %58 : vector<1x128x128xf32> to vector<128x128xf32>
    %cst_44 = arith.constant dense<0.000000e+00> : vector<32x128xf32>
    %60 = tpu.matmul %57, %59, %cst_44 {dimension_numbers = #tpu.dot_dimension_numbers<[1], [0], [0], [1], [0, 0, 1, 1], [], []>} : vector<32x128xf32>, vector<128x128xf32>, vector<32x128xf32> -> vector<32x128xf32>
    %61 = arith.addf %54, %60 : vector<32x128xf32>
    %c0_45 = arith.constant 0 : index
    %c0_46 = arith.constant 0 : index
    %62 = vector.load %arg8[%c0_45, %c0_46] : memref<1x128xf32, #tpu.memory_space<vmem>>, vector<1x128xf32>
    %63 = vector.shape_cast %62 : vector<1x128xf32> to vector<128xf32>
    %64 = vector.shape_cast %63 : vector<128xf32> to vector<1x128xf32>
    %65 = vector.broadcast %64 : vector<1x128xf32> to vector<32x128xf32>
    %66 = arith.addf %61, %65 : vector<32x128xf32>
    %67 = math.tanh %66 : vector<32x128xf32>
    %c0_47 = arith.constant 0 : index
    %c0_48 = arith.constant 0 : index
    %68 = vector.load %arg15[%c0_47, %c0_48] : memref<48x128xf32, #tpu.memory_space<vmem>>, vector<32x128xf32>
    tpu.vector_store %arg15[%c0_47, %c0_48], %67 {strides = array<i32>} : memref<48x128xf32, #tpu.memory_space<vmem>>, vector<32x128xf32>,
    %c2_i32_49 = arith.constant 2 : i32
    %69 = arith.addi %27, %c2_i32_49 : i32
    %c0_i32_50 = arith.constant 0 : i32
    %70 = arith.cmpi slt, %69, %c0_i32_50 : i32
    %c32_i32 = arith.constant 32 : i32
    %71 = arith.addi %69, %c32_i32 : i32
    %c40_i32 = arith.constant 40 : i32
    %72 = arith.cmpi sgt, %71, %c40_i32 : i32
    %73 = arith.ori %70, %72 : i1
    %74 = arith.extui %73 : i1 to i32
    %c0_i32_51 = arith.constant 0 : i32
    %75 = arith.cmpi ne, %74, %c0_i32_51 : i32
    scf.if %75 {
      %222 = vector.broadcast %69 : i32 to vector<32x1xi32>
      %223 = arith.addi %25, %222 : vector<32x1xi32>
      %c0_i32_198 = arith.constant 0 : i32
      %224 = vector.broadcast %c0_i32_198 : i32 to vector<32x1xi32>
      %225 = arith.cmpi sge, %223, %224 : vector<32x1xi32>
      %c40_i32_199 = arith.constant 40 : i32
      %226 = vector.broadcast %c40_i32_199 : i32 to vector<32x1xi32>
      %227 = arith.cmpi slt, %223, %226 : vector<32x1xi32>
      %228 = arith.andi %225, %227 : vector<32x1xi1>
      %c0_200 = arith.constant 0 : index
      %c0_201 = arith.constant 0 : index
      %229 = vector.load %arg15[%c0_200, %c0_201] : memref<48x128xf32, #tpu.memory_space<vmem>>, vector<32x128xf32>
      %c0_i32_202 = arith.constant 0 : i32
      %230 = arith.sitofp %c0_i32_202 : i32 to f32
      %231 = vector.shape_cast %228 : vector<32x1xi1> to vector<32x1xi1>
      %232 = vector.broadcast %231 : vector<32x1xi1> to vector<32x128xi1>
      %233 = vector.broadcast %230 : f32 to vector<32x128xf32>
      %234 = arith.select %232, %229, %233 : vector<32x128xi1>, vector<32x128xf32>
      %c0_203 = arith.constant 0 : index
      %c0_204 = arith.constant 0 : index
      %235 = vector.load %arg15[%c0_203, %c0_204] : memref<48x128xf32, #tpu.memory_space<vmem>>, vector<32x128xf32>
      tpu.vector_store %arg15[%c0_203, %c0_204], %234 {strides = array<i32>} : memref<48x128xf32, #tpu.memory_space<vmem>>, vector<32x128xf32>,
    } else {
    }
    %c0_52 = arith.constant 0 : index
    %c0_53 = arith.constant 0 : index
    %76 = vector.load %arg15[%c0_52, %c0_53] : memref<48x128xf32, #tpu.memory_space<vmem>>, vector<32x128xf32>
    %c0_54 = arith.constant 0 : index
    %c0_55 = arith.constant 0 : index
    %c0_56 = arith.constant 0 : index
    %77 = vector.load %arg4[%c0_54, %c0_55, %c0_56] : memref<5x128x128xf32, #tpu.memory_space<vmem>>, vector<1x128x128xf32>
    %78 = vector.shape_cast %77 : vector<1x128x128xf32> to vector<128x128xf32>
    %cst_57 = arith.constant dense<0.000000e+00> : vector<32x128xf32>
    %79 = tpu.matmul %76, %78, %cst_57 {dimension_numbers = #tpu.dot_dimension_numbers<[1], [0], [0], [1], [0, 0, 1, 1], [], []>} : vector<32x128xf32>, vector<128x128xf32>, vector<32x128xf32> -> vector<32x128xf32>
    %c1_58 = arith.constant 1 : index
    %c0_59 = arith.constant 0 : index
    %80 = vector.load %arg15[%c1_58, %c0_59] : memref<48x128xf32, #tpu.memory_space<vmem>>, vector<32x128xf32>
    %c1_60 = arith.constant 1 : index
    %c0_61 = arith.constant 0 : index
    %c0_62 = arith.constant 0 : index
    %81 = vector.load %arg4[%c1_60, %c0_61, %c0_62] : memref<5x128x128xf32, #tpu.memory_space<vmem>>, vector<1x128x128xf32>
    %82 = vector.shape_cast %81 : vector<1x128x128xf32> to vector<128x128xf32>
    %cst_63 = arith.constant dense<0.000000e+00> : vector<32x128xf32>
    %83 = tpu.matmul %80, %82, %cst_63 {dimension_numbers = #tpu.dot_dimension_numbers<[1], [0], [0], [1], [0, 0, 1, 1], [], []>} : vector<32x128xf32>, vector<128x128xf32>, vector<32x128xf32> -> vector<32x128xf32>
    %84 = arith.addf %79, %83 : vector<32x128xf32>
    %c2_64 = arith.constant 2 : index
    %c0_65 = arith.constant 0 : index
    %85 = vector.load %arg15[%c2_64, %c0_65] : memref<48x128xf32, #tpu.memory_space<vmem>>, vector<32x128xf32>
    %c2_66 = arith.constant 2 : index
    %c0_67 = arith.constant 0 : index
    %c0_68 = arith.constant 0 : index
    %86 = vector.load %arg4[%c2_66, %c0_67, %c0_68] : memref<5x128x128xf32, #tpu.memory_space<vmem>>, vector<1x128x128xf32>
    %87 = vector.shape_cast %86 : vector<1x128x128xf32> to vector<128x128xf32>
    %cst_69 = arith.constant dense<0.000000e+00> : vector<32x128xf32>
    %88 = tpu.matmul %85, %87, %cst_69 {dimension_numbers = #tpu.dot_dimension_numbers<[1], [0], [0], [1], [0, 0, 1, 1], [], []>} : vector<32x128xf32>, vector<128x128xf32>, vector<32x128xf32> -> vector<32x128xf32>
    %89 = arith.addf %84, %88 : vector<32x128xf32>
    %c3_70 = arith.constant 3 : index
    %c0_71 = arith.constant 0 : index
    %90 = vector.load %arg15[%c3_70, %c0_71] : memref<48x128xf32, #tpu.memory_space<vmem>>, vector<32x128xf32>
    %c3_72 = arith.constant 3 : index
    %c0_73 = arith.constant 0 : index
    %c0_74 = arith.constant 0 : index
    %91 = vector.load %arg4[%c3_72, %c0_73, %c0_74] : memref<5x128x128xf32, #tpu.memory_space<vmem>>, vector<1x128x128xf32>
    %92 = vector.shape_cast %91 : vector<1x128x128xf32> to vector<128x128xf32>
    %cst_75 = arith.constant dense<0.000000e+00> : vector<32x128xf32>
    %93 = tpu.matmul %90, %92, %cst_75 {dimension_numbers = #tpu.dot_dimension_numbers<[1], [0], [0], [1], [0, 0, 1, 1], [], []>} : vector<32x128xf32>, vector<128x128xf32>, vector<32x128xf32> -> vector<32x128xf32>
    %94 = arith.addf %89, %93 : vector<32x128xf32>
    %c4_76 = arith.constant 4 : index
    %c0_77 = arith.constant 0 : index
    %95 = vector.load %arg15[%c4_76, %c0_77] : memref<48x128xf32, #tpu.memory_space<vmem>>, vector<32x128xf32>
    %c4_78 = arith.constant 4 : index
    %c0_79 = arith.constant 0 : index
    %c0_80 = arith.constant 0 : index
    %96 = vector.load %arg4[%c4_78, %c0_79, %c0_80] : memref<5x128x128xf32, #tpu.memory_space<vmem>>, vector<1x128x128xf32>
    %97 = vector.shape_cast %96 : vector<1x128x128xf32> to vector<128x128xf32>
    %cst_81 = arith.constant dense<0.000000e+00> : vector<32x128xf32>
    %98 = tpu.matmul %95, %97, %cst_81 {dimension_numbers = #tpu.dot_dimension_numbers<[1], [0], [0], [1], [0, 0, 1, 1], [], []>} : vector<32x128xf32>, vector<128x128xf32>, vector<32x128xf32> -> vector<32x128xf32>
    %99 = arith.addf %94, %98 : vector<32x128xf32>
    %c0_82 = arith.constant 0 : index
    %c0_83 = arith.constant 0 : index
    %100 = vector.load %arg9[%c0_82, %c0_83] : memref<1x128xf32, #tpu.memory_space<vmem>>, vector<1x128xf32>
    %101 = vector.shape_cast %100 : vector<1x128xf32> to vector<128xf32>
    %102 = vector.shape_cast %101 : vector<128xf32> to vector<1x128xf32>
    %103 = vector.broadcast %102 : vector<1x128xf32> to vector<32x128xf32>
    %104 = arith.addf %99, %103 : vector<32x128xf32>
    %105 = math.tanh %104 : vector<32x128xf32>
    %c0_84 = arith.constant 0 : index
    %c0_85 = arith.constant 0 : index
    %106 = vector.load %arg16[%c0_84, %c0_85] : memref<48x128xf32, #tpu.memory_space<vmem>>, vector<32x128xf32>
    tpu.vector_store %arg16[%c0_84, %c0_85], %105 {strides = array<i32>} : memref<48x128xf32, #tpu.memory_space<vmem>>, vector<32x128xf32>,
    %c4_i32 = arith.constant 4 : i32
    %107 = arith.addi %27, %c4_i32 : i32
    %c0_i32_86 = arith.constant 0 : i32
    %108 = arith.cmpi slt, %107, %c0_i32_86 : i32
    %c28_i32 = arith.constant 28 : i32
    %109 = arith.addi %107, %c28_i32 : i32
    %c40_i32_87 = arith.constant 40 : i32
    %110 = arith.cmpi sgt, %109, %c40_i32_87 : i32
    %111 = arith.ori %108, %110 : i1
    %112 = arith.extui %111 : i1 to i32
    %c0_i32_88 = arith.constant 0 : i32
    %113 = arith.cmpi ne, %112, %c0_i32_88 : i32
    scf.if %113 {
      %222 = vector.broadcast %107 : i32 to vector<32x1xi32>
      %223 = arith.addi %25, %222 : vector<32x1xi32>
      %c0_i32_198 = arith.constant 0 : i32
      %224 = vector.broadcast %c0_i32_198 : i32 to vector<32x1xi32>
      %225 = arith.cmpi sge, %223, %224 : vector<32x1xi32>
      %c40_i32_199 = arith.constant 40 : i32
      %226 = vector.broadcast %c40_i32_199 : i32 to vector<32x1xi32>
      %227 = arith.cmpi slt, %223, %226 : vector<32x1xi32>
      %228 = arith.andi %225, %227 : vector<32x1xi1>
      %c0_200 = arith.constant 0 : index
      %c0_201 = arith.constant 0 : index
      %229 = vector.load %arg16[%c0_200, %c0_201] : memref<48x128xf32, #tpu.memory_space<vmem>>, vector<32x128xf32>
      %c0_i32_202 = arith.constant 0 : i32
      %230 = arith.sitofp %c0_i32_202 : i32 to f32
      %231 = vector.shape_cast %228 : vector<32x1xi1> to vector<32x1xi1>
      %232 = vector.broadcast %231 : vector<32x1xi1> to vector<32x128xi1>
      %233 = vector.broadcast %230 : f32 to vector<32x128xf32>
      %234 = arith.select %232, %229, %233 : vector<32x128xi1>, vector<32x128xf32>
      %c0_203 = arith.constant 0 : index
      %c0_204 = arith.constant 0 : index
      %235 = vector.load %arg16[%c0_203, %c0_204] : memref<48x128xf32, #tpu.memory_space<vmem>>, vector<32x128xf32>
      tpu.vector_store %arg16[%c0_203, %c0_204], %234 {strides = array<i32>} : memref<48x128xf32, #tpu.memory_space<vmem>>, vector<32x128xf32>,
    } else {
    }
    %c0_89 = arith.constant 0 : index
    %c0_90 = arith.constant 0 : index
    %114 = vector.load %arg16[%c0_89, %c0_90] : memref<48x128xf32, #tpu.memory_space<vmem>>, vector<24x128xf32>
    %c0_91 = arith.constant 0 : index
    %c0_92 = arith.constant 0 : index
    %c0_93 = arith.constant 0 : index
    %115 = vector.load %arg5[%c0_91, %c0_92, %c0_93] : memref<5x128x128xf32, #tpu.memory_space<vmem>>, vector<1x128x128xf32>
    %116 = vector.shape_cast %115 : vector<1x128x128xf32> to vector<128x128xf32>
    %cst_94 = arith.constant dense<0.000000e+00> : vector<24x128xf32>
    %117 = tpu.matmul %114, %116, %cst_94 {dimension_numbers = #tpu.dot_dimension_numbers<[1], [0], [0], [1], [0, 0, 1, 1], [], []>} : vector<24x128xf32>, vector<128x128xf32>, vector<24x128xf32> -> vector<24x128xf32>
    %c1_95 = arith.constant 1 : index
    %c0_96 = arith.constant 0 : index
    %118 = vector.load %arg16[%c1_95, %c0_96] : memref<48x128xf32, #tpu.memory_space<vmem>>, vector<24x128xf32>
    %c1_97 = arith.constant 1 : index
    %c0_98 = arith.constant 0 : index
    %c0_99 = arith.constant 0 : index
    %119 = vector.load %arg5[%c1_97, %c0_98, %c0_99] : memref<5x128x128xf32, #tpu.memory_space<vmem>>, vector<1x128x128xf32>
    %120 = vector.shape_cast %119 : vector<1x128x128xf32> to vector<128x128xf32>
    %cst_100 = arith.constant dense<0.000000e+00> : vector<24x128xf32>
    %121 = tpu.matmul %118, %120, %cst_100 {dimension_numbers = #tpu.dot_dimension_numbers<[1], [0], [0], [1], [0, 0, 1, 1], [], []>} : vector<24x128xf32>, vector<128x128xf32>, vector<24x128xf32> -> vector<24x128xf32>
    %122 = arith.addf %117, %121 : vector<24x128xf32>
    %c2_101 = arith.constant 2 : index
    %c0_102 = arith.constant 0 : index
    %123 = vector.load %arg16[%c2_101, %c0_102] : memref<48x128xf32, #tpu.memory_space<vmem>>, vector<24x128xf32>
    %c2_103 = arith.constant 2 : index
    %c0_104 = arith.constant 0 : index
    %c0_105 = arith.constant 0 : index
    %124 = vector.load %arg5[%c2_103, %c0_104, %c0_105] : memref<5x128x128xf32, #tpu.memory_space<vmem>>, vector<1x128x128xf32>
    %125 = vector.shape_cast %124 : vector<1x128x128xf32> to vector<128x128xf32>
    %cst_106 = arith.constant dense<0.000000e+00> : vector<24x128xf32>
    %126 = tpu.matmul %123, %125, %cst_106 {dimension_numbers = #tpu.dot_dimension_numbers<[1], [0], [0], [1], [0, 0, 1, 1], [], []>} : vector<24x128xf32>, vector<128x128xf32>, vector<24x128xf32> -> vector<24x128xf32>
    %127 = arith.addf %122, %126 : vector<24x128xf32>
    %c3_107 = arith.constant 3 : index
    %c0_108 = arith.constant 0 : index
    %128 = vector.load %arg16[%c3_107, %c0_108] : memref<48x128xf32, #tpu.memory_space<vmem>>, vector<24x128xf32>
    %c3_109 = arith.constant 3 : index
    %c0_110 = arith.constant 0 : index
    %c0_111 = arith.constant 0 : index
    %129 = vector.load %arg5[%c3_109, %c0_110, %c0_111] : memref<5x128x128xf32, #tpu.memory_space<vmem>>, vector<1x128x128xf32>
    %130 = vector.shape_cast %129 : vector<1x128x128xf32> to vector<128x128xf32>
    %cst_112 = arith.constant dense<0.000000e+00> : vector<24x128xf32>
    %131 = tpu.matmul %128, %130, %cst_112 {dimension_numbers = #tpu.dot_dimension_numbers<[1], [0], [0], [1], [0, 0, 1, 1], [], []>} : vector<24x128xf32>, vector<128x128xf32>, vector<24x128xf32> -> vector<24x128xf32>
    %132 = arith.addf %127, %131 : vector<24x128xf32>
    %c4_113 = arith.constant 4 : index
    %c0_114 = arith.constant 0 : index
    %133 = vector.load %arg16[%c4_113, %c0_114] : memref<48x128xf32, #tpu.memory_space<vmem>>, vector<24x128xf32>
    %c4_115 = arith.constant 4 : index
    %c0_116 = arith.constant 0 : index
    %c0_117 = arith.constant 0 : index
    %134 = vector.load %arg5[%c4_115, %c0_116, %c0_117] : memref<5x128x128xf32, #tpu.memory_space<vmem>>, vector<1x128x128xf32>
    %135 = vector.shape_cast %134 : vector<1x128x128xf32> to vector<128x128xf32>
    %cst_118 = arith.constant dense<0.000000e+00> : vector<24x128xf32>
    %136 = tpu.matmul %133, %135, %cst_118 {dimension_numbers = #tpu.dot_dimension_numbers<[1], [0], [0], [1], [0, 0, 1, 1], [], []>} : vector<24x128xf32>, vector<128x128xf32>, vector<24x128xf32> -> vector<24x128xf32>
    %137 = arith.addf %132, %136 : vector<24x128xf32>
    %c0_119 = arith.constant 0 : index
    %c0_120 = arith.constant 0 : index
    %138 = vector.load %arg10[%c0_119, %c0_120] : memref<1x128xf32, #tpu.memory_space<vmem>>, vector<1x128xf32>
    %139 = vector.shape_cast %138 : vector<1x128xf32> to vector<128xf32>
    %140 = vector.shape_cast %139 : vector<128xf32> to vector<1x128xf32>
    %141 = vector.broadcast %140 : vector<1x128xf32> to vector<24x128xf32>
    %142 = arith.addf %137, %141 : vector<24x128xf32>
    %143 = math.tanh %142 : vector<24x128xf32>
    %c0_121 = arith.constant 0 : index
    %c0_122 = arith.constant 0 : index
    %144 = vector.load %arg15[%c0_121, %c0_122] : memref<48x128xf32, #tpu.memory_space<vmem>>, vector<24x128xf32>
    tpu.vector_store %arg15[%c0_121, %c0_122], %143 {strides = array<i32>} : memref<48x128xf32, #tpu.memory_space<vmem>>, vector<24x128xf32>,
    %c6_i32 = arith.constant 6 : i32
    %145 = arith.addi %27, %c6_i32 : i32
    %c0_i32_123 = arith.constant 0 : i32
    %146 = arith.cmpi slt, %145, %c0_i32_123 : i32
    %c24_i32 = arith.constant 24 : i32
    %147 = arith.addi %145, %c24_i32 : i32
    %c40_i32_124 = arith.constant 40 : i32
    %148 = arith.cmpi sgt, %147, %c40_i32_124 : i32
    %149 = arith.ori %146, %148 : i1
    %150 = arith.extui %149 : i1 to i32
    %c0_i32_125 = arith.constant 0 : i32
    %151 = arith.cmpi ne, %150, %c0_i32_125 : i32
    scf.if %151 {
      %222 = vector.extract_strided_slice %25 {offsets = [0, 0], sizes = [24, 1], strides = [1, 1]} : vector<32x1xi32> to vector<24x1xi32>
      %223 = vector.broadcast %145 : i32 to vector<24x1xi32>
      %224 = arith.addi %222, %223 : vector<24x1xi32>
      %c0_i32_198 = arith.constant 0 : i32
      %225 = vector.broadcast %c0_i32_198 : i32 to vector<24x1xi32>
      %226 = arith.cmpi sge, %224, %225 : vector<24x1xi32>
      %c40_i32_199 = arith.constant 40 : i32
      %227 = vector.broadcast %c40_i32_199 : i32 to vector<24x1xi32>
      %228 = arith.cmpi slt, %224, %227 : vector<24x1xi32>
      %229 = arith.andi %226, %228 : vector<24x1xi1>
      %c0_200 = arith.constant 0 : index
      %c0_201 = arith.constant 0 : index
      %230 = vector.load %arg15[%c0_200, %c0_201] : memref<48x128xf32, #tpu.memory_space<vmem>>, vector<24x128xf32>
      %c0_i32_202 = arith.constant 0 : i32
      %231 = arith.sitofp %c0_i32_202 : i32 to f32
      %232 = vector.shape_cast %229 : vector<24x1xi1> to vector<24x1xi1>
      %233 = vector.broadcast %232 : vector<24x1xi1> to vector<24x128xi1>
      %234 = vector.broadcast %231 : f32 to vector<24x128xf32>
      %235 = arith.select %233, %230, %234 : vector<24x128xi1>, vector<24x128xf32>
      %c0_203 = arith.constant 0 : index
      %c0_204 = arith.constant 0 : index
      %236 = vector.load %arg15[%c0_203, %c0_204] : memref<48x128xf32, #tpu.memory_space<vmem>>, vector<24x128xf32>
      tpu.vector_store %arg15[%c0_203, %c0_204], %235 {strides = array<i32>} : memref<48x128xf32, #tpu.memory_space<vmem>>, vector<24x128xf32>,
    } else {
    }
    %c0_126 = arith.constant 0 : index
    %c0_127 = arith.constant 0 : index
    %152 = vector.load %arg15[%c0_126, %c0_127] : memref<48x128xf32, #tpu.memory_space<vmem>>, vector<24x128xf32>
    %c0_128 = arith.constant 0 : index
    %c0_129 = arith.constant 0 : index
    %c0_130 = arith.constant 0 : index
    %153 = vector.load %arg6[%c0_128, %c0_129, %c0_130] : memref<5x128x128xf32, #tpu.memory_space<vmem>>, vector<1x128x128xf32>
    %154 = vector.shape_cast %153 : vector<1x128x128xf32> to vector<128x128xf32>
    %cst_131 = arith.constant dense<0.000000e+00> : vector<24x128xf32>
    %155 = tpu.matmul %152, %154, %cst_131 {dimension_numbers = #tpu.dot_dimension_numbers<[1], [0], [0], [1], [0, 0, 1, 1], [], []>} : vector<24x128xf32>, vector<128x128xf32>, vector<24x128xf32> -> vector<24x128xf32>
    %c1_132 = arith.constant 1 : index
    %c0_133 = arith.constant 0 : index
    %156 = vector.load %arg15[%c1_132, %c0_133] : memref<48x128xf32, #tpu.memory_space<vmem>>, vector<24x128xf32>
    %c1_134 = arith.constant 1 : index
    %c0_135 = arith.constant 0 : index
    %c0_136 = arith.constant 0 : index
    %157 = vector.load %arg6[%c1_134, %c0_135, %c0_136] : memref<5x128x128xf32, #tpu.memory_space<vmem>>, vector<1x128x128xf32>
    %158 = vector.shape_cast %157 : vector<1x128x128xf32> to vector<128x128xf32>
    %cst_137 = arith.constant dense<0.000000e+00> : vector<24x128xf32>
    %159 = tpu.matmul %156, %158, %cst_137 {dimension_numbers = #tpu.dot_dimension_numbers<[1], [0], [0], [1], [0, 0, 1, 1], [], []>} : vector<24x128xf32>, vector<128x128xf32>, vector<24x128xf32> -> vector<24x128xf32>
    %160 = arith.addf %155, %159 : vector<24x128xf32>
    %c2_138 = arith.constant 2 : index
    %c0_139 = arith.constant 0 : index
    %161 = vector.load %arg15[%c2_138, %c0_139] : memref<48x128xf32, #tpu.memory_space<vmem>>, vector<24x128xf32>
    %c2_140 = arith.constant 2 : index
    %c0_141 = arith.constant 0 : index
    %c0_142 = arith.constant 0 : index
    %162 = vector.load %arg6[%c2_140, %c0_141, %c0_142] : memref<5x128x128xf32, #tpu.memory_space<vmem>>, vector<1x128x128xf32>
    %163 = vector.shape_cast %162 : vector<1x128x128xf32> to vector<128x128xf32>
    %cst_143 = arith.constant dense<0.000000e+00> : vector<24x128xf32>
    %164 = tpu.matmul %161, %163, %cst_143 {dimension_numbers = #tpu.dot_dimension_numbers<[1], [0], [0], [1], [0, 0, 1, 1], [], []>} : vector<24x128xf32>, vector<128x128xf32>, vector<24x128xf32> -> vector<24x128xf32>
    %165 = arith.addf %160, %164 : vector<24x128xf32>
    %c3_144 = arith.constant 3 : index
    %c0_145 = arith.constant 0 : index
    %166 = vector.load %arg15[%c3_144, %c0_145] : memref<48x128xf32, #tpu.memory_space<vmem>>, vector<24x128xf32>
    %c3_146 = arith.constant 3 : index
    %c0_147 = arith.constant 0 : index
    %c0_148 = arith.constant 0 : index
    %167 = vector.load %arg6[%c3_146, %c0_147, %c0_148] : memref<5x128x128xf32, #tpu.memory_space<vmem>>, vector<1x128x128xf32>
    %168 = vector.shape_cast %167 : vector<1x128x128xf32> to vector<128x128xf32>
    %cst_149 = arith.constant dense<0.000000e+00> : vector<24x128xf32>
    %169 = tpu.matmul %166, %168, %cst_149 {dimension_numbers = #tpu.dot_dimension_numbers<[1], [0], [0], [1], [0, 0, 1, 1], [], []>} : vector<24x128xf32>, vector<128x128xf32>, vector<24x128xf32> -> vector<24x128xf32>
    %170 = arith.addf %165, %169 : vector<24x128xf32>
    %c4_150 = arith.constant 4 : index
    %c0_151 = arith.constant 0 : index
    %171 = vector.load %arg15[%c4_150, %c0_151] : memref<48x128xf32, #tpu.memory_space<vmem>>, vector<24x128xf32>
    %c4_152 = arith.constant 4 : index
    %c0_153 = arith.constant 0 : index
    %c0_154 = arith.constant 0 : index
    %172 = vector.load %arg6[%c4_152, %c0_153, %c0_154] : memref<5x128x128xf32, #tpu.memory_space<vmem>>, vector<1x128x128xf32>
    %173 = vector.shape_cast %172 : vector<1x128x128xf32> to vector<128x128xf32>
    %cst_155 = arith.constant dense<0.000000e+00> : vector<24x128xf32>
    %174 = tpu.matmul %171, %173, %cst_155 {dimension_numbers = #tpu.dot_dimension_numbers<[1], [0], [0], [1], [0, 0, 1, 1], [], []>} : vector<24x128xf32>, vector<128x128xf32>, vector<24x128xf32> -> vector<24x128xf32>
    %175 = arith.addf %170, %174 : vector<24x128xf32>
    %c0_156 = arith.constant 0 : index
    %c0_157 = arith.constant 0 : index
    %176 = vector.load %arg11[%c0_156, %c0_157] : memref<1x128xf32, #tpu.memory_space<vmem>>, vector<1x128xf32>
    %177 = vector.shape_cast %176 : vector<1x128xf32> to vector<128xf32>
    %178 = vector.shape_cast %177 : vector<128xf32> to vector<1x128xf32>
    %179 = vector.broadcast %178 : vector<1x128xf32> to vector<24x128xf32>
    %180 = arith.addf %175, %179 : vector<24x128xf32>
    %181 = math.tanh %180 : vector<24x128xf32>
    %c0_158 = arith.constant 0 : index
    %c0_159 = arith.constant 0 : index
    %182 = vector.load %arg16[%c0_158, %c0_159] : memref<48x128xf32, #tpu.memory_space<vmem>>, vector<24x128xf32>
    tpu.vector_store %arg16[%c0_158, %c0_159], %181 {strides = array<i32>} : memref<48x128xf32, #tpu.memory_space<vmem>>, vector<24x128xf32>,
    %c8_i32 = arith.constant 8 : i32
    %183 = arith.addi %27, %c8_i32 : i32
    %c0_i32_160 = arith.constant 0 : i32
    %184 = arith.cmpi slt, %183, %c0_i32_160 : i32
    %c20_i32 = arith.constant 20 : i32
    %185 = arith.addi %183, %c20_i32 : i32
    %c40_i32_161 = arith.constant 40 : i32
    %186 = arith.cmpi sgt, %185, %c40_i32_161 : i32
    %187 = arith.ori %184, %186 : i1
    %188 = arith.extui %187 : i1 to i32
    %c0_i32_162 = arith.constant 0 : i32
    %189 = arith.cmpi ne, %188, %c0_i32_162 : i32
    scf.if %189 {
      %222 = vector.extract_strided_slice %25 {offsets = [0, 0], sizes = [24, 1], strides = [1, 1]} : vector<32x1xi32> to vector<24x1xi32>
      %223 = vector.broadcast %183 : i32 to vector<24x1xi32>
      %224 = arith.addi %222, %223 : vector<24x1xi32>
      %c0_i32_198 = arith.constant 0 : i32
      %225 = vector.broadcast %c0_i32_198 : i32 to vector<24x1xi32>
      %226 = arith.cmpi sge, %224, %225 : vector<24x1xi32>
      %c40_i32_199 = arith.constant 40 : i32
      %227 = vector.broadcast %c40_i32_199 : i32 to vector<24x1xi32>
      %228 = arith.cmpi slt, %224, %227 : vector<24x1xi32>
      %229 = arith.andi %226, %228 : vector<24x1xi1>
      %c0_200 = arith.constant 0 : index
      %c0_201 = arith.constant 0 : index
      %230 = vector.load %arg16[%c0_200, %c0_201] : memref<48x128xf32, #tpu.memory_space<vmem>>, vector<24x128xf32>
      %c0_i32_202 = arith.constant 0 : i32
      %231 = arith.sitofp %c0_i32_202 : i32 to f32
      %232 = vector.shape_cast %229 : vector<24x1xi1> to vector<24x1xi1>
      %233 = vector.broadcast %232 : vector<24x1xi1> to vector<24x128xi1>
      %234 = vector.broadcast %231 : f32 to vector<24x128xf32>
      %235 = arith.select %233, %230, %234 : vector<24x128xi1>, vector<24x128xf32>
      %c0_203 = arith.constant 0 : index
      %c0_204 = arith.constant 0 : index
      %236 = vector.load %arg16[%c0_203, %c0_204] : memref<48x128xf32, #tpu.memory_space<vmem>>, vector<24x128xf32>
      tpu.vector_store %arg16[%c0_203, %c0_204], %235 {strides = array<i32>} : memref<48x128xf32, #tpu.memory_space<vmem>>, vector<24x128xf32>,
    } else {
    }
    %c0_163 = arith.constant 0 : index
    %c0_164 = arith.constant 0 : index
    %190 = vector.load %arg16[%c0_163, %c0_164] : memref<48x128xf32, #tpu.memory_space<vmem>>, vector<16x128xf32>
    %c0_165 = arith.constant 0 : index
    %c0_166 = arith.constant 0 : index
    %c0_167 = arith.constant 0 : index
    %191 = vector.load %arg7[%c0_165, %c0_166, %c0_167] : memref<5x128x128xf32, #tpu.memory_space<vmem>>, vector<1x128x128xf32>
    %192 = vector.shape_cast %191 : vector<1x128x128xf32> to vector<128x128xf32>
    %cst_168 = arith.constant dense<0.000000e+00> : vector<16x128xf32>
    %193 = tpu.matmul %190, %192, %cst_168 {dimension_numbers = #tpu.dot_dimension_numbers<[1], [0], [0], [1], [0, 0, 1, 1], [], []>} : vector<16x128xf32>, vector<128x128xf32>, vector<16x128xf32> -> vector<16x128xf32>
    %c1_169 = arith.constant 1 : index
    %c0_170 = arith.constant 0 : index
    %194 = vector.load %arg16[%c1_169, %c0_170] : memref<48x128xf32, #tpu.memory_space<vmem>>, vector<16x128xf32>
    %c1_171 = arith.constant 1 : index
    %c0_172 = arith.constant 0 : index
    %c0_173 = arith.constant 0 : index
    %195 = vector.load %arg7[%c1_171, %c0_172, %c0_173] : memref<5x128x128xf32, #tpu.memory_space<vmem>>, vector<1x128x128xf32>
    %196 = vector.shape_cast %195 : vector<1x128x128xf32> to vector<128x128xf32>
    %cst_174 = arith.constant dense<0.000000e+00> : vector<16x128xf32>
    %197 = tpu.matmul %194, %196, %cst_174 {dimension_numbers = #tpu.dot_dimension_numbers<[1], [0], [0], [1], [0, 0, 1, 1], [], []>} : vector<16x128xf32>, vector<128x128xf32>, vector<16x128xf32> -> vector<16x128xf32>
    %198 = arith.addf %193, %197 : vector<16x128xf32>
    %c2_175 = arith.constant 2 : index
    %c0_176 = arith.constant 0 : index
    %199 = vector.load %arg16[%c2_175, %c0_176] : memref<48x128xf32, #tpu.memory_space<vmem>>, vector<16x128xf32>
    %c2_177 = arith.constant 2 : index
    %c0_178 = arith.constant 0 : index
    %c0_179 = arith.constant 0 : index
    %200 = vector.load %arg7[%c2_177, %c0_178, %c0_179] : memref<5x128x128xf32, #tpu.memory_space<vmem>>, vector<1x128x128xf32>
    %201 = vector.shape_cast %200 : vector<1x128x128xf32> to vector<128x128xf32>
    %cst_180 = arith.constant dense<0.000000e+00> : vector<16x128xf32>
    %202 = tpu.matmul %199, %201, %cst_180 {dimension_numbers = #tpu.dot_dimension_numbers<[1], [0], [0], [1], [0, 0, 1, 1], [], []>} : vector<16x128xf32>, vector<128x128xf32>, vector<16x128xf32> -> vector<16x128xf32>
    %203 = arith.addf %198, %202 : vector<16x128xf32>
    %c3_181 = arith.constant 3 : index
    %c0_182 = arith.constant 0 : index
    %204 = vector.load %arg16[%c3_181, %c0_182] : memref<48x128xf32, #tpu.memory_space<vmem>>, vector<16x128xf32>
    %c3_183 = arith.constant 3 : index
    %c0_184 = arith.constant 0 : index
    %c0_185 = arith.constant 0 : index
    %205 = vector.load %arg7[%c3_183, %c0_184, %c0_185] : memref<5x128x128xf32, #tpu.memory_space<vmem>>, vector<1x128x128xf32>
    %206 = vector.shape_cast %205 : vector<1x128x128xf32> to vector<128x128xf32>
    %cst_186 = arith.constant dense<0.000000e+00> : vector<16x128xf32>
    %207 = tpu.matmul %204, %206, %cst_186 {dimension_numbers = #tpu.dot_dimension_numbers<[1], [0], [0], [1], [0, 0, 1, 1], [], []>} : vector<16x128xf32>, vector<128x128xf32>, vector<16x128xf32> -> vector<16x128xf32>
    %208 = arith.addf %203, %207 : vector<16x128xf32>
    %c4_187 = arith.constant 4 : index
    %c0_188 = arith.constant 0 : index
    %209 = vector.load %arg16[%c4_187, %c0_188] : memref<48x128xf32, #tpu.memory_space<vmem>>, vector<16x128xf32>
    %c4_189 = arith.constant 4 : index
    %c0_190 = arith.constant 0 : index
    %c0_191 = arith.constant 0 : index
    %210 = vector.load %arg7[%c4_189, %c0_190, %c0_191] : memref<5x128x128xf32, #tpu.memory_space<vmem>>, vector<1x128x128xf32>
    %211 = vector.shape_cast %210 : vector<1x128x128xf32> to vector<128x128xf32>
    %cst_192 = arith.constant dense<0.000000e+00> : vector<16x128xf32>
    %212 = tpu.matmul %209, %211, %cst_192 {dimension_numbers = #tpu.dot_dimension_numbers<[1], [0], [0], [1], [0, 0, 1, 1], [], []>} : vector<16x128xf32>, vector<128x128xf32>, vector<16x128xf32> -> vector<16x128xf32>
    %213 = arith.addf %208, %212 : vector<16x128xf32>
    %c0_193 = arith.constant 0 : index
    %c0_194 = arith.constant 0 : index
    %214 = vector.load %arg12[%c0_193, %c0_194] : memref<1x128xf32, #tpu.memory_space<vmem>>, vector<1x128xf32>
    %215 = vector.shape_cast %214 : vector<1x128xf32> to vector<128xf32>
    %216 = vector.shape_cast %215 : vector<128xf32> to vector<1x128xf32>
    %217 = vector.broadcast %216 : vector<1x128xf32> to vector<16x128xf32>
    %218 = arith.addf %213, %217 : vector<16x128xf32>
    %c0_195 = arith.constant 0 : index
    %c0_196 = arith.constant 0 : index
    %c0_197 = arith.constant 0 : index
    %219 = vector.load %arg13[%c0_195, %c0_196, %c0_197] : memref<1x16x128xf32, #tpu.memory_space<vmem>>, vector<1x16x128xf32>
    %220 = vector.shape_cast %219 : vector<1x16x128xf32> to vector<16x128xf32>
    %221 = vector.shape_cast %218 : vector<16x128xf32> to vector<1x16x128xf32>
    tpu.vector_store %arg13[%c0_195, %c0_196, %c0_197], %221 {strides = array<i32>} : memref<1x16x128xf32, #tpu.memory_space<vmem>>, vector<1x16x128xf32>,
    return
  }
  func.func @transform_1(%arg0: i32, %arg1: i32) -> (i32, i32, i32) {
    %c0_i32 = arith.constant 0 : i32
    %c0_i32_0 = arith.constant 0 : i32
    %c0_i32_1 = arith.constant 0 : i32
    %c0_i32_2 = arith.constant 0 : i32
    return %c0_i32, %c0_i32_0, %c0_i32_1 : i32, i32, i32
  }
  func.func @transform_2(%arg0: i32, %arg1: i32) -> (i32, i32, i32) {
    %c0_i32 = arith.constant 0 : i32
    %c0_i32_0 = arith.constant 0 : i32
    %c0_i32_1 = arith.constant 0 : i32
    %c0_i32_2 = arith.constant 0 : i32
    return %c0_i32, %c0_i32_0, %c0_i32_1 : i32, i32, i32
  }
  func.func @transform_3(%arg0: i32, %arg1: i32) -> (i32, i32, i32) {
    %c0_i32 = arith.constant 0 : i32
    %c0_i32_0 = arith.constant 0 : i32
    %c0_i32_1 = arith.constant 0 : i32
    %c0_i32_2 = arith.constant 0 : i32
    return %c0_i32, %c0_i32_0, %c0_i32_1 : i32, i32, i32
  }
  func.func @transform_4(%arg0: i32, %arg1: i32) -> (i32, i32, i32) {
    %c0_i32 = arith.constant 0 : i32
    %c0_i32_0 = arith.constant 0 : i32
    %c0_i32_1 = arith.constant 0 : i32
    %c0_i32_2 = arith.constant 0 : i32
    return %c0_i32, %c0_i32_0, %c0_i32_1 : i32, i32, i32
  }
  func.func @transform_5(%arg0: i32, %arg1: i32) -> (i32, i32, i32) {
    %c0_i32 = arith.constant 0 : i32
    %c0_i32_0 = arith.constant 0 : i32
    %c0_i32_1 = arith.constant 0 : i32
    %c0_i32_2 = arith.constant 0 : i32
    return %c0_i32, %c0_i32_0, %c0_i32_1 : i32, i32, i32
  }
  func.func @transform_6(%arg0: i32, %arg1: i32) -> (i32, i32) {
    %c0_i32 = arith.constant 0 : i32
    %c0_i32_0 = arith.constant 0 : i32
    %c0_i32_1 = arith.constant 0 : i32
    return %c0_i32, %c0_i32_0 : i32, i32
  }
  func.func @transform_7(%arg0: i32, %arg1: i32) -> (i32, i32) {
    %c0_i32 = arith.constant 0 : i32
    %c0_i32_0 = arith.constant 0 : i32
    %c0_i32_1 = arith.constant 0 : i32
    return %c0_i32, %c0_i32_0 : i32, i32
  }
  func.func @transform_8(%arg0: i32, %arg1: i32) -> (i32, i32) {
    %c0_i32 = arith.constant 0 : i32
    %c0_i32_0 = arith.constant 0 : i32
    %c0_i32_1 = arith.constant 0 : i32
    return %c0_i32, %c0_i32_0 : i32, i32
  }
  func.func @transform_9(%arg0: i32, %arg1: i32) -> (i32, i32) {
    %c0_i32 = arith.constant 0 : i32
    %c0_i32_0 = arith.constant 0 : i32
    %c0_i32_1 = arith.constant 0 : i32
    return %c0_i32, %c0_i32_0 : i32, i32
  }
  func.func @transform_10(%arg0: i32, %arg1: i32) -> (i32, i32) {
    %c0_i32 = arith.constant 0 : i32
    %c0_i32_0 = arith.constant 0 : i32
    %c0_i32_1 = arith.constant 0 : i32
    return %c0_i32, %c0_i32_0 : i32, i32
  }
  func.func @transform_11(%arg0: i32, %arg1: i32) -> (i32, i32, i32) {
    %c0_i32 = arith.constant 0 : i32
    %c0_i32_0 = arith.constant 0 : i32
    return %arg0, %arg1, %c0_i32 : i32, i32, i32
  }
}

</mosaic_0001>

<bundles_post_ra>
// kernel: postnet_forward.1
= control target key start
LH: loop header
LB: loop body
LE: loop exit
PB: predicated region body
PF: predicated region fallthrough
CT: control target
= control target key end

     0   :  { %s6727_s0 = inlined_call_operand.vmem [shape: f32[2,72,128], index: 0, kind: input, shape index: {}]   ;;  %s6728_s1 = inlined_call_operand.hbm [shape: f32[5,128,128], index: 1, kind: input, shape index: {}]   ;;  %s6729_s2 = inlined_call_operand.hbm [shape: f32[5,128,128], index: 2, kind: input, shape index: {}]   ;;  %s6730_s3 = inlined_call_operand.hbm [shape: f32[5,128,128], index: 3, kind: input, shape index: {}]   ;;  %s6731_s4 = inlined_call_operand.hbm [shape: f32[5,128,128], index: 4, kind: input, shape index: {}]   ;;  %s6732_s5 = inlined_call_operand.hbm [shape: f32[5,128,128], index: 5, kind: input, shape index: {}]   ;;  %s6733_s6 = inlined_call_operand.vmem [shape: f32[1,128], index: 6, kind: input, shape index: {}]   ;;  %s6734_s7 = inlined_call_operand.vmem [shape: f32[1,128], index: 7, kind: input, shape index: {}]   ;;  %s6735_s8 = inlined_call_operand.vmem [shape: f32[1,128], index: 8, kind: input, shape index: {}]   ;;  %s6736_s9 = inlined_call_operand.vmem [shape: f32[1,128], index: 9, kind: input, shape index: {}]   ;;  %s6737_s10 = inlined_call_operand.vmem [shape: f32[1,128], index: 10, kind: input, shape index: {}]   ;;  %s6738_s11 = inlined_call_operand.vmem [shape: f32[2,48,128], index: 11, kind: output, shape index: {}]  }
   0x1   :  { %6745 = sst [smem:[#allocation21_spill]] %s6728_s1 }
   0x2   :  { %6746 = sst [smem:[#allocation22_spill]] %s6729_s2 }
   0x3   :  { %6747 = sst [smem:[#allocation23_spill]] %s6731_s4 }
   0x4   :  { %6748 = sst [smem:[#allocation24_spill]] %s6736_s9 }
   0x5   :  { %6749 = sst [smem:[#allocation25_spill]] %s6737_s10 }
   0x6   :  { %16 = vsyncpa [#allocation7], 0 }
   0x7   :  { %17 = vsyncpa [#allocation9], 0 }
   0x8   :  { %18 = vsyncpa [#allocation12], 0  ;;  %s6203_s17 = smov 0   ;;  %s6205_s18 = smov 0  }
   0x9   :  { %s6207_s19 = smov 0   ;;  %s6209_s20 = smov 0  }
   0xa   :  { %s6211_s21 = smov 0  }
   0xb LB: > { %6750 = sst [smem:[#allocation20_spill]] %s6131_s21  ;;  %s3570_s22 = sadd.s32 4294967295, %s6131_s21   ;;  %s6131_s21 = sphi %s6211_s21, %s6777_s21   ;;  %s6127_s20 = sphi %s6209_s20, %s6776_s20   ;;  %s6123_s19 = sphi %s6207_s19, %s6775_s19   ;;  %s6119_s18 = sphi %s6205_s18, %s6774_s18   ;;  %s6115_s17 = sphi %s6203_s17, %s6773_s17  }
   0xc   : > { %p3572_p0 = scmp.ge.s32.totalorder %s6131_s21, 1  ;;  %p279_p1 = scmp.lt.s32.totalorder %s6131_s21, 7 }
   0xd   : > { %p6231_p2 = scmp.eq.s32.totalorder %s3570_s22, 0  ;;  %s6133_s25 = smov [#allocation8]  }
   0xe   : > { %p6235_p3 = pnand %p3572_p0, %p279_p1  ;;  %s304_s26 = sshll.u32 %s6133_s25, 4  ;;  %s305_s26 = int_to_ptr.vmem [resolvable:$true] %s304_s26 }
   0xf   : > { %s6751_s23 = scalar_select %p6231_p2, 1, 0 }
  0x10   : > { %s6752_s24 = scalar_select %p6235_p3, 1, 0 }
  0x11   : > { %p5835_p4 = pneg %p6235_p3  ;;  %s6134_s27 = smov [#allocation11]  }
  0x12   : > { %s330_s28 = sshll.u32 %s6134_s27, 4  ;;  %s6754_s2 = sld [smem:[#allocation22_spill]]  ;;  %s6241_s28 = int_to_ptr.vmem [resolvable:$true] %s330_s28 }
  0x13   : > { %p6245_p5 = pnand %p6231_p2, %p5835_p4 }
  0x15   : > { %p6257_p7 = pneg %p6245_p5 }
  0x18   : > { %s5939_s13 = scalar_lea.hbm %s6754_s2, 10240 }
  0x19   : > { %p5940_p6 = scmp.ne.s32.totalorder %s6754_s2, %s5939_s13  ;;  %p5946_p10 = scmp.lt.u32.totalorder %s5939_s13, %s6754_s2 }
  0x1b   : > { %p5942_p8 = pnand %p6257_p7, %p5940_p6 }
  0x1d   : > { %p5943_p9 = pneg %p5942_p8 }
  0x1f   : > { %p5948_p11 = pnand %p5946_p10, %p5943_p9 }
  0x21   : > { %5951 = shalt.err (!%p5948_p11)
}
  0x22   : > { %s5952_s27 = scalar_lea.vmem %s305_s26, 10240  ;;  %p5960_p1 = scmp.lt.s32.totalorder %s305_s26, %s305_s26 }
  0x23   : > { %p5953_p12 = scmp.ne.s32.totalorder %s305_s26, %s5952_s27  ;;  %p5961_p4 = scmp.lt.s32.totalorder %s5952_s27, %s5952_s27 }
  0x25   : > { %p5955_p13 = pnand %p5953_p12, %p6257_p7  ;;  %p5962_p2 = por %p5961_p4, %p5960_p1 }
  0x27   : > { %p5956_p0 = pneg %p5955_p13 }
  0x29   : > { %p5963_p3 = pnand %p5962_p2, %p5956_p0 }
  0x2b   : > { %5966 = shalt.err (!%p5963_p3)
}
  0x2c   : > { %s6743_s30 = smov 128   ;;  %s6136_s12 = smov 8  }
  0x2d   : > { %5841 = dma.hbm_to_vmem [thread:$0]  (!%p6245_p5), %s6754_s2, 10240, %s305_s26, [#allocation9], %s6743_s30, %s6743_s30, %s6136_s12  }
  0x2e   : > { %s6756_s4 = sld [smem:[#allocation23_spill]] }
  0x34   : > { %s5967_s25 = scalar_lea.hbm %s6756_s4, 10240 }
  0x35   : > { %p5968_p2 = scmp.ne.s32.totalorder %s6756_s4, %s5967_s25  ;;  %p5974_p8 = scmp.lt.u32.totalorder %s5967_s25, %s6756_s4 }
  0x37   : > { %p5970_p3 = pnand %p5968_p2, %p6257_p7 }
  0x39   : > { %p5971_p6 = pneg %p5970_p3 }
  0x3b   : > { %p5976_p9 = pnand %p5974_p8, %p5971_p6 }
  0x3d   : > { %5979 = shalt.err (!%p5976_p9)
}
  0x3e   : > { %s5980_s26 = scalar_lea.vmem %s6241_s28, 10240  ;;  %p5988_p13 = scmp.lt.s32.totalorder %s6241_s28, %s6241_s28 }
  0x3f   : > { %p5981_p10 = scmp.ne.s32.totalorder %s6241_s28, %s5980_s26  ;;  %p5989_p0 = scmp.lt.s32.totalorder %s5980_s26, %s5980_s26 }
  0x41   : > { %p5983_p11 = pnand %p5981_p10, %p6257_p7  ;;  %p5990_p1 = por %p5989_p0, %p5988_p13 }
  0x43   : > { %p5984_p12 = pneg %p5983_p11 }
  0x45   : > { %p5991_p4 = pnand %p5990_p1, %p5984_p12 }
  0x47   : > { %5994 = shalt.err (!%p5991_p4)
}
  0x48   : > { %5847 = dma.hbm_to_vmem [thread:$0]  (!%p6245_p5), %s6756_s4, 10240, %s6241_s28, [#allocation12], %s6743_s30, %s6743_s30, %s6136_s12  }
  0x49   : > { %s33_s21 = sadd.s32 1, %s6123_s19  ;;  %s36_s13 = sadd.s32 1, %s6127_s20 }
  0x4a   : > { %p34_p2 = scmp.ge.s32.totalorder %s33_s21, 3  ;;  %s6137_s14 = smov [#allocation6]  }
  0x4b   : > { %s291_s15 = sshll.u32 %s6137_s14, 4  ;;  %s6138_s22 = smov [#allocation10]   ;;  %s292_s15 = int_to_ptr.vmem [resolvable:$true] %s291_s15 }
  0x4c   : > { %s6779_s21 = smov (%p34_p2, %s33_s21), 0  ;;  %s6781_s13 = smov (!%p34_p2, %s36_s13), %s6127_s20 }
  0x4d   : > { %s317_s25 = sshll.u32 %s6138_s22, 4  ;;  %s6757_s1 = sld [smem:[#allocation21_spill]]  ;;  %s318_s25 = int_to_ptr.vmem [resolvable:$true] %s317_s25 }
  0x53   : > { %s5995_s9 = scalar_lea.hbm %s6757_s1, 10240 }
  0x54   : > { %p5996_p6 = scmp.ne.s32.totalorder %s6757_s1, %s5995_s9  ;;  %p6002_p10 = scmp.lt.u32.totalorder %s5995_s9, %s6757_s1 }
  0x56   : > { %p5998_p8 = pnand %p5996_p6, %p6257_p7 }
  0x58   : > { %p5999_p9 = pneg %p5998_p8 }
  0x5a   : > { %p6004_p11 = pnand %p6002_p10, %p5999_p9 }
  0x5c   : > { %6007 = shalt.err (!%p6004_p11)
}
  0x5d   : > { %s6008_s14 = scalar_lea.vmem %s292_s15, 10240  ;;  %p6016_p1 = scmp.lt.s32.totalorder %s292_s15, %s292_s15 }
  0x5e   : > { %p6009_p12 = scmp.ne.s32.totalorder %s292_s15, %s6008_s14  ;;  %p6017_p4 = scmp.lt.s32.totalorder %s6008_s14, %s6008_s14 }
  0x60   : > { %p6011_p13 = pnand %p6009_p12, %p6257_p7  ;;  %p6018_p2 = por %p6017_p4, %p6016_p1 }
  0x62   : > { %p6012_p0 = pneg %p6011_p13 }
  0x64   : > { %p6019_p3 = pnand %p6018_p2, %p6012_p0 }
  0x66   : > { %6022 = shalt.err (!%p6019_p3)
}
  0x67   : > { %s6758_s2 = smov 128   ;;  %p6759_p6 = scmp.ge.s32.totalorder %s6781_s13, 2 }
  0x68   : > { %5838 = dma.hbm_to_vmem [thread:$0]  (!%p6245_p5), %s6757_s1, 10240, %s292_s15, [#allocation7], %s6758_s2, %s6758_s2, %s6136_s12  }
  0x69   : > { %s6783_s13 = smov (%p6759_p6, %s6781_s13), 0  ;;  %s6023_s9 = scalar_lea.hbm %s6730_s3, 10240 }
  0x6a   : > { %p6024_p3 = scmp.ne.s32.totalorder %s6730_s3, %s6023_s9  ;;  %p6030_p10 = scmp.lt.u32.totalorder %s6023_s9, %s6730_s3 }
  0x6c   : > { %p6026_p8 = pnand %p6024_p3, %p6257_p7 }
  0x6e   : > { %p6027_p9 = pneg %p6026_p8 }
  0x70   : > { %p6032_p11 = pnand %p6030_p10, %p6027_p9 }
  0x72   : > { %6035 = shalt.err (!%p6032_p11)
}
  0x73   : > { %s6036_s15 = scalar_lea.vmem %s318_s25, 10240  ;;  %p6044_p1 = scmp.lt.s32.totalorder %s318_s25, %s318_s25 }
  0x74   : > { %p6037_p12 = scmp.ne.s32.totalorder %s318_s25, %s6036_s15  ;;  %p6045_p4 = scmp.lt.s32.totalorder %s6036_s15, %s6036_s15 }
  0x76   : > { %p6039_p13 = pnand %p6037_p12, %p6257_p7  ;;  %p6046_p2 = por %p6045_p4, %p6044_p1 }
  0x78   : > { %p6040_p0 = pneg %p6039_p13 }
  0x7a   : > { %p6047_p6 = pnand %p6046_p2, %p6040_p0 }
  0x7c   : > { %6050 = shalt.err (!%p6047_p6)
}
  0x7d   : > { %5844 = dma.hbm_to_vmem [thread:$0]  (!%p6245_p5), %s6730_s3, 10240, %s318_s25, [#allocation9], %s6758_s2, %s6758_s2, %s6136_s12  }
  0x7e   : > { %s6139_s22 = smov [#allocation13]   ;;  %s6051_s10 = scalar_lea.hbm %s6732_s5, 10240 }
  0x7f   : > { %s343_s27 = sshll.u32 %s6139_s22, 4  ;;  %p6052_p3 = scmp.ne.s32.totalorder %s6732_s5, %s6051_s10  ;;  %s344_s27 = int_to_ptr.vmem [resolvable:$true] %s343_s27 }
  0x80   : > { %p6058_p10 = scmp.lt.u32.totalorder %s6051_s10, %s6732_s5 }
  0x81   : > { %p6054_p8 = pnand %p6052_p3, %p6257_p7 }
  0x83   : > { %p6055_p9 = pneg %p6054_p8 }
  0x85   : > { %p6060_p11 = pnand %p6058_p10, %p6055_p9 }
  0x87   : > { %6063 = shalt.err (!%p6060_p11)
}
  0x88   : > { %s6064_s25 = scalar_lea.vmem %s344_s27, 10240  ;;  %p6072_p1 = scmp.lt.s32.totalorder %s344_s27, %s344_s27 }
  0x89   : > { %p6065_p12 = scmp.ne.s32.totalorder %s344_s27, %s6064_s25  ;;  %p6073_p4 = scmp.lt.s32.totalorder %s6064_s25, %s6064_s25 }
  0x8b   : > { %p6067_p13 = pnand %p6065_p12, %p6257_p7  ;;  %p6074_p2 = por %p6073_p4, %p6072_p1 }
  0x8d   : > { %p6068_p0 = pneg %p6067_p13 }
  0x8f   : > { %p6075_p6 = pnand %p6074_p2, %p6068_p0 }
  0x91   : > { %6078 = shalt.err (!%p6075_p6)
}
  0x92   : > { %5850 = dma.hbm_to_vmem [thread:$0]  (!%p6245_p5), %s6732_s5, 10240, %s344_s27, [#allocation12], %s6758_s2, %s6758_s2, %s6136_s12  }
  0x93   : > { %p6760_p3 = scmp.ne.s32.totalorder %s6752_s24, 0 }
  0x94   : > { %p6761_p7 = scmp.ne.s32.totalorder (!%p6760_p3), %s6751_s23, 0 }
  0x95   : > { %374 = sbr.rel (%p6760_p3) target bundleno = 2004 (0x7d4), region = 60 }
  0x9c   : > { %6100 = dma.done.wait (%p6761_p7), [#allocation7], 10240  }
  0x9d   : > { %6102 = vsyncadd (%p6761_p7), [#allocation7], 4294957056 }
  0x9e   : > { %6104 = dma.done.wait (%p6761_p7), [#allocation9], 20480  }
  0x9f   : > { %6106 = vsyncadd (%p6761_p7), [#allocation9], 4294946816 }
  0xa0   : > { %6108 = dma.done.wait (%p6761_p7), [#allocation12], 20480  }
  0xa1   : > { %6110 = vsyncadd (%p6761_p7), [#allocation12], 4294946816  ;;  %s3584_s24 = sshll.u32 %s6115_s17, 1  ;;  %p428_p5 = scmp.lt.s32.totalorder %s6119_s18, 1 }
  0xa2   : > { %p430_p8 = scmp.lt.s32.totalorder %s3584_s24, 5  ;;  %s438_s12 = ssub.s32 0, %s6115_s17 }
  0xa3   : > { %s429_s29 = scalar_select %p428_p5, %s6119_s18, 1 }
  0xa4   : > { %s6785_s24 = smov (!%p430_p8, %s3584_s24), 5  ;;  %p437_p9 = scmp.lt.s32.totalorder %s6115_s17, 0 }
  0xa5   : > { %s5814_s16 = smul.u32 6, %s429_s29  ;;  %s3586_s2 = smin.u32 %s6115_s17, %s438_s12 }
  0xa6   : > { %s440_s22 = sand.u32 1, %s3586_s2   ;;  %p3589_p11 = scmp.ne.s32.totalorder %s6115_s17, 0 }
  0xa7   : > { %s433_s30 = sadd.s32 %s5814_s16, %s6785_s24  ;;  %s441_s23 = ssub.s32 0, %s440_s22 }
  0xa8   : > { %s3585_s27 = sshll.u32 %s433_s30, 3  ;;  %s6787_s23 = smov (!%p437_p9, %s441_s23), %s440_s22 }
  0xa9   : > { %s6396_s10 = scalar_lea.vmem %s6738_s11, %s3585_s27  ;;  %p3588_p10 = scmp.lt.s32.totalorder %s6787_s23, 0 }
  0xaa   : > { %s447_s28 = sadd.s32 2, %s6787_s23  ;;  %452 = sbr.rel (%p3589_p11) target bundleno = 181 (0xb5), region = 84 }
  0xab   : > { %s6789_s28 = smov (!%p3588_p10, %s447_s28), %s6787_s23  ;;  %s3590_s14 = sshll.u32 (!%p3589_p11), %s6115_s17, 4 }
  0xac   : > { %s454_s15 = smul.u32 (!%p3589_p11), 72, %s6119_s18  ;;  %s459_s12 = scalar_lea.sflag (!%p3589_p11), [#allocation5], %s6789_s28 }
  0xad   : > { %s457_s25 = smul.u32 (!%p3589_p11), 48, %s6789_s28 }
  0xae   : > { %s455_s1 = sadd.s32 (!%p3589_p11), %s3590_s14, %s454_s15 }
  0xaf   : > { %s456_s29 = scalar_lea.vmem (!%p3589_p11), %s6727_s0, %s455_s1  ;;  %s458_s16 = scalar_lea.vmem (!%p3589_p11), [#allocation2], %s457_s25 }
  0xb0   : > { %v492_v0 = vld [vmem:[%s456_s29] sm:$0xff] (!%p3589_p11)  ;;  %v494_v1 = vld [vmem:[%s456_s29 + $0x8] sm:$0xff] (!%p3589_p11)  ;;  %v496_v2 = vld [vmem:[%s456_s29 + $0x10] sm:$0xff] (!%p3589_p11) }
  0xb1   : > { %493 = vst [vmem:[%s458_s16] sm:$0xff] %v492_v0  ;;  %495 = vst [vmem:[%s458_s16 + $0x8] sm:$0xff] %v494_v1  ;;  %v498_v3 = vld [vmem:[%s456_s29 + $0x18] sm:$0xff]  ;;  %v500_v4 = vld [vmem:[%s456_s29 + $0x20] sm:$0xff] }
  0xb2   : > { %497 = vst [vmem:[%s458_s16 + $0x10] sm:$0xff] %v496_v2  ;;  %499 = vst [vmem:[%s458_s16 + $0x18] sm:$0xff] %v498_v3 }
  0xb3   : > { %501 = vst [vmem:[%s458_s16 + $0x20] sm:$0xff] %v500_v4 }
  0xb4   : > { %509 = vsyncadd %s459_s12, 640 }
  0xb5 PF: > { %s6409_s2 = sshll.u32 %s6115_s17, 4  ;;  %s511_s30 = scalar_lea.sflag [#allocation5], %s6789_s28 }
  0xb6   : > { %6111 = dma.done.wait %s511_s30, 640 }
  0xb7   : > { %6112 = vsyncadd %s511_s30, 4294966656  ;;  %s515_s22 = sadd.s32 1, %s6115_s17 }
  0xb8   : > { %p3592_p12 = scmp.ge.s32.totalorder %s515_s22, 3 }
  0xb9   : > { %s520_s27 = ssub.s32 (!%p3592_p12), 1, %s6789_s28  ;;  %s3466_s23 = smul.u32 (!%p3592_p12), 72, %s6119_s18 }
  0xba   : > { %519 = sbr.rel (%p3592_p12) target bundleno = 194 (0xc2), region = 122  ;;  %s527_s17 = scalar_lea.sflag (!%p3592_p12), [#allocation5], %s520_s27 }
  0xbb   : > { %s525_s26 = smul.u32 (!%p3592_p12), 48, %s520_s27  ;;  %s3467_s9 = sadd.s32 (!%p3592_p12), %s6409_s2, %s3466_s23 }
  0xbc   : > { %s3468_s25 = scalar_lea.vmem (!%p3592_p12), %s6727_s0, %s3467_s9 }
  0xbd   : > { %v3594_v5 = vld [vmem:[%s3468_s25 + $0x10] sm:$0xff] (!%p3592_p12)  ;;  %v3595_v6 = vld [vmem:[%s3468_s25 + $0x18] sm:$0xff] (!%p3592_p12)  ;;  %v3596_v7 = vld [vmem:[%s3468_s25 + $0x20] sm:$0xff] (!%p3592_p12)  ;;  %s526_s1 = scalar_lea.vmem (!%p3592_p12), [#allocation2], %s525_s26 }
  0xbe   : > { %561 = vst [vmem:[%s526_s1] sm:$0xff] (!%p3592_p12), %v3594_v5  ;;  %563 = vst [vmem:[%s526_s1 + $0x8] sm:$0xff] (!%p3592_p12), %v3595_v6  ;;  %v3597_v8 = vld [vmem:[%s3468_s25 + $0x28] sm:$0xff] (!%p3592_p12)  ;;  %v3598_v9 = vld [vmem:[%s3468_s25 + $0x30] sm:$0xff] (!%p3592_p12) }
  0xbf   : > { %565 = vst [vmem:[%s526_s1 + $0x10] sm:$0xff] (!%p3592_p12), %v3596_v7  ;;  %567 = vst [vmem:[%s526_s1 + $0x18] sm:$0xff] (!%p3592_p12), %v3597_v8 }
  0xc0   : > { %569 = vst [vmem:[%s526_s1 + $0x20] sm:$0xff] (!%p3592_p12), %v3598_v9 }
  0xc1   : > { %577 = vsyncadd %s527_s17, 640 }
  0xc2 PF: > { %v578_v10 = vlaneseq  ;;  %v610_v11 = vld [vmem:[#allocation6 + $0x80] sm:$0xff]  ;;  %v611_v12 = vld [vmem:[#allocation6 + $0x88] sm:$0xff]  ;;  %v612_v16 = vld [vmem:[#allocation6 + $0x90] sm:$0xff]  ;;  %s583_s18 = smul.u32 48, %s6789_s28  ;;  %s1145_s4 = sadd.s32 4294967288, %s6409_s2 }
  0xc3   : > { %v801_v13 = vld [vmem:[#allocation6 + $0x100] sm:$0xff]  ;;  %v5054_v14 = vpack.c.bf16 %v611_v12, %v610_v11  ;;  %v802_v15 = vld [vmem:[#allocation6 + $0x108] sm:$0xff]  ;;  %v613_v17 = vld [vmem:[#allocation6 + $0x98] sm:$0xff]  ;;  %s1147_s24 = sadd.s32 24, %s6409_s2  ;;  %p6457_p13 = scmp.lt.s32.totalorder %s1145_s4, 0 }
  0xc4   : > { %v6419_v18 = vshrl.u32 %v578_v10, 7  ;;  %v5118_v19 = vpack.c.bf16 %v802_v15, %v801_v13  ;;  %v5058_v20 = vpack.c.bf16 %v613_v17, %v612_v16  ;;  %v803_v21 = vld [vmem:[#allocation6 + $0x110] sm:$0xff]  ;;  %v804_v22 = vld [vmem:[#allocation6 + $0x118] sm:$0xff]  ;;  %v614_v23 = vld [vmem:[#allocation6 + $0xa0] sm:$0xff]  ;;  %s6431_s28 = scalar_lea.vmem [#allocation2], %s583_s18  ;;  %p6461_p0 = scmp.gt.s32.totalorder %s1147_s24, 40 }
  0xc5   : > { %5055 = vmatprep.subr.bf16.mxu1 %v5054_v14  ;;  %v5122_v24 = vpack.c.bf16 %v804_v22, %v803_v21  ;;  %v615_v25 = vld [vmem:[#allocation6 + $0xa8] sm:$0xff]  ;;  %v805_v26 = vld [vmem:[#allocation6 + $0x120] sm:$0xff]  ;;  %v616_v33 = vld [vmem:[#allocation6 + $0xb0] sm:$0xff] }
  0xc6   : > { %v806_v27 = vld [vmem:[#allocation6 + $0x128] sm:$0xff]  ;;  %v6423_v28 = vadd.s32 8, %v6419_v18  ;;  %v6426_v29 = vadd.s32 16, %v6419_v18  ;;  %v6429_v30 = vadd.s32 24, %v6419_v18  ;;  %5119 = vmatprep.subr.bf16.mxu0 %v5118_v19  ;;  %5057 = vmatpush3.bf16.msra.mxu1 %v5054_v14  ;;  %v5062_v31 = vpack.c.bf16 %v615_v25, %v614_v23  ;;  %v617_v34 = vld [vmem:[#allocation6 + $0xb8] sm:$0xff]  ;;  %v807_v35 = vld [vmem:[#allocation6 + $0x130] sm:$0xff]  ;;  %p1149_p1 = por %p6461_p0, %p6457_p13 }
  0xc7   : > { %5121 = vmatpush3.bf16.msra.mxu0 %v5118_v19  ;;  %5059 = vmatprep.subr.bf16.mxu1 %v5058_v20  ;;  %v5126_v32 = vpack.c.bf16 %v806_v27, %v805_v26  ;;  %v808_v36 = vld [vmem:[#allocation6 + $0x138] sm:$0xff]  ;;  %v5066_v37 = vpack.c.bf16 %v617_v34, %v616_v33  ;;  %v618_v39 = vld [vmem:[#allocation6 + $0xc0] sm:$0xff]  ;;  %v619_v40 = vld [vmem:[#allocation6 + $0xc8] sm:$0xff] }
  0xc8   : > { %5123 = vmatprep.subr.bf16.mxu0 %v5122_v24  ;;  %v5130_v38 = vpack.c.bf16 %v808_v36, %v807_v35  ;;  %v605_v41 = vld [vmem:[%s6431_s28 + $0x1] sm:$0xff]  ;;  %v5070_v45 = vpack.c.bf16 %v619_v40, %v618_v39  ;;  %v606_v11 = vld [vmem:[%s6431_s28 + $0x9] sm:$0xff]  ;;  %v608_v21 = vld [vmem:[%s6431_s28 + $0x19] sm:$0xff] }
  0xc9   : > { %v809_v42 = vld [vmem:[#allocation6 + $0x140] sm:$0xff]  ;;  %v810_v43 = vld [vmem:[#allocation6 + $0x148] sm:$0xff]  ;;  %4121 = vmatprep.mubr.f32.mxu1 %v605_v41  ;;  %v620_v47 = vld [vmem:[#allocation6 + $0xd0] sm:$0xff] }
  0xca   : > { %5061 = vmatpush3.bf16.msra.mxu1 %v5058_v20  ;;  %v796_v44 = vld [vmem:[%s6431_s28 + $0x2] sm:$0xff]  ;;  %v5134_v46 = vpack.c.bf16 %v810_v43, %v809_v42  ;;  %v797_v12 = vld [vmem:[%s6431_s28 + $0xa] sm:$0xff]  ;;  %v798_v22 = vld [vmem:[%s6431_s28 + $0x12] sm:$0xff] }
  0xcb   : > { %5125 = vmatpush3.bf16.msra.mxu0 %v5122_v24  ;;  %5063 = vmatprep.subr.bf16.mxu1 %v5062_v31  ;;  %v621_v48 = vld [vmem:[#allocation6 + $0xd8] sm:$0xff]  ;;  %v811_v49 = vld [vmem:[#allocation6 + $0x150] sm:$0xff]  ;;  %v622_v53 = vld [vmem:[#allocation6 + $0xe0] sm:$0xff] }
  0xcc   : > { %5127 = vmatprep.subr.bf16.mxu0 %v5126_v32  ;;  %4197 = vmatprep.mubr.f32.mxu0 %v796_v44  ;;  %v812_v50 = vld [vmem:[#allocation6 + $0x158] sm:$0xff]  ;;  %v5074_v51 = vpack.c.bf16 %v621_v48, %v620_v47  ;;  %v623_v54 = vld [vmem:[#allocation6 + $0xe8] sm:$0xff]  ;;  %v813_v55 = vld [vmem:[#allocation6 + $0x160] sm:$0xff] }
  0xcd   : > { %v5138_v52 = vpack.c.bf16 %v812_v50, %v811_v49  ;;  %v814_v56 = vld [vmem:[#allocation6 + $0x168] sm:$0xff]  ;;  %v5078_v57 = vpack.c.bf16 %v623_v54, %v622_v53  ;;  %v624_v59 = vld [vmem:[#allocation6 + $0xf0] sm:$0xff]  ;;  %v625_v60 = vld [vmem:[#allocation6 + $0xf8] sm:$0xff] }
  0xce   : > { %5065 = vmatpush3.bf16.msra.mxu1 %v5062_v31  ;;  %v5142_v58 = vpack.c.bf16 %v814_v56, %v813_v55  ;;  %v815_v61 = vld [vmem:[#allocation6 + $0x170] sm:$0xff]  ;;  %v816_v62 = vld [vmem:[#allocation6 + $0x178] sm:$0xff]  ;;  %v5082_v63 = vpack.c.bf16 %v625_v60, %v624_v59  ;;  %v589_v1 = vld [vmem:[#allocation6] sm:$0xff] }
  0xcf   : > { %5129 = vmatpush3.bf16.msra.mxu0 %v5126_v32  ;;  %5067 = vmatprep.subr.bf16.mxu1 %v5066_v37  ;;  %v5146_v0 = vpack.c.bf16 %v816_v62, %v815_v61  ;;  %v590_v2 = vld [vmem:[#allocation6 + $0x8] sm:$0xff]  ;;  %v911_v3 = vld [vmem:[#allocation6 + $0x180] sm:$0xff]  ;;  %v591_v7 = vld [vmem:[#allocation6 + $0x10] sm:$0xff] }
  0xd0   : > { %5131 = vmatprep.subr.bf16.mxu0 %v5130_v38  ;;  %v912_v4 = vld [vmem:[#allocation6 + $0x188] sm:$0xff]  ;;  %v5086_v5 = vpack.c.bf16 %v590_v2, %v589_v1  ;;  %v592_v8 = vld [vmem:[#allocation6 + $0x18] sm:$0xff]  ;;  %v913_v9 = vld [vmem:[#allocation6 + $0x190] sm:$0xff] }
  0xd1   : > { %v5150_v6 = vpack.c.bf16 %v912_v4, %v911_v3  ;;  %v914_v10 = vld [vmem:[#allocation6 + $0x198] sm:$0xff]  ;;  %v5090_v13 = vpack.c.bf16 %v592_v8, %v591_v7  ;;  %v593_v15 = vld [vmem:[#allocation6 + $0x20] sm:$0xff]  ;;  %v594_v16 = vld [vmem:[#allocation6 + $0x28] sm:$0xff] }
  0xd2   : > { %5069 = vmatpush3.bf16.msra.mxu1 %v5066_v37  ;;  %v5154_v14 = vpack.c.bf16 %v914_v10, %v913_v9  ;;  %v915_v17 = vld [vmem:[#allocation6 + $0x1a0] sm:$0xff]  ;;  %v916_v19 = vld [vmem:[#allocation6 + $0x1a8] sm:$0xff]  ;;  %v5094_v23 = vpack.c.bf16 %v594_v16, %v593_v15  ;;  %v595_v26 = vld [vmem:[#allocation6 + $0x30] sm:$0xff] }
  0xd3   : > { %5133 = vmatpush3.bf16.msra.mxu0 %v5130_v38  ;;  %5071 = vmatprep.subr.bf16.mxu1 %v5070_v45  ;;  %v607_v20 = vld [vmem:[%s6431_s28 + $0x11] sm:$0xff]  ;;  %v799_v24 = vld [vmem:[%s6431_s28 + $0x1a] sm:$0xff]  ;;  %v5158_v25 = vpack.c.bf16 %v916_v19, %v915_v17  ;;  %v906_v34 = vld [vmem:[%s6431_s28 + $0x3] sm:$0xff] }
  0xd4   : > { %5135 = vmatprep.subr.bf16.mxu0 %v5134_v46  ;;  %v596_v27 = vld [vmem:[#allocation6 + $0x38] sm:$0xff]  ;;  %v917_v31 = vld [vmem:[#allocation6 + $0x1b0] sm:$0xff]  ;;  %v597_v37 = vld [vmem:[#allocation6 + $0x40] sm:$0xff] }
  0xd5   : > { %v918_v32 = vld [vmem:[#allocation6 + $0x1b8] sm:$0xff]  ;;  %v585_v33 = vld [vmem:[%s6431_s28] sm:$0xff]  ;;  %v5098_v35 = vpack.c.bf16 %v596_v27, %v595_v26  ;;  %v598_v38 = vld [vmem:[#allocation6 + $0x48] sm:$0xff] }
  0xd6   : > { %5073 = vmatpush3.bf16.msra.mxu1 %v5070_v45  ;;  %v5162_v36 = vpack.c.bf16 %v918_v32, %v917_v31  ;;  %v919_v39 = vld [vmem:[#allocation6 + $0x1c0] sm:$0xff]  ;;  %v920_v40 = vld [vmem:[#allocation6 + $0x1c8] sm:$0xff]  ;;  %v5102_v41 = vpack.c.bf16 %v598_v38, %v597_v37  ;;  %v599_v43 = vld [vmem:[#allocation6 + $0x50] sm:$0xff] }
  0xd7   : > { %5137 = vmatpush3.bf16.msra.mxu0 %v5134_v46  ;;  %5075 = vmatprep.subr.bf16.mxu1 %v5074_v51  ;;  %v5166_v42 = vpack.c.bf16 %v920_v40, %v919_v39  ;;  %v600_v44 = vld [vmem:[#allocation6 + $0x58] sm:$0xff]  ;;  %v921_v45 = vld [vmem:[#allocation6 + $0x1d0] sm:$0xff]  ;;  %v601_v49 = vld [vmem:[#allocation6 + $0x60] sm:$0xff] }
  0xd8   : > { %5139 = vmatprep.subr.bf16.mxu0 %v5138_v52  ;;  %v922_v46 = vld [vmem:[#allocation6 + $0x1d8] sm:$0xff]  ;;  %v5106_v47 = vpack.c.bf16 %v600_v44, %v599_v43  ;;  %v602_v50 = vld [vmem:[#allocation6 + $0x68] sm:$0xff]  ;;  %v603_v55 = vld [vmem:[#allocation6 + $0x70] sm:$0xff] }
  0xd9   : > { %v5170_v48 = vpack.c.bf16 %v922_v46, %v921_v45  ;;  %v5110_v53 = vpack.c.bf16 %v602_v50, %v601_v49  ;;  %v604_v56 = vld [vmem:[#allocation6 + $0x78] sm:$0xff]  ;;  %v1021_v61 = vld [vmem:[#allocation6 + $0x200] sm:$0xff]  ;;  %v1022_v62 = vld [vmem:[#allocation6 + $0x208] sm:$0xff] }
  0xda   : > { %5077 = vmatpush3.bf16.msra.mxu1 %v5074_v51  ;;  %v923_v51 = vld [vmem:[#allocation6 + $0x1e0] sm:$0xff]  ;;  %v5114_v59 = vpack.c.bf16 %v604_v56, %v603_v55  ;;  %v1024_v1 = vld [vmem:[#allocation6 + $0x218] sm:$0xff]  ;;  %v1026_v8 = vld [vmem:[#allocation6 + $0x228] sm:$0xff]  ;;  %v1153_v56 = vstv (%p1149_p1), %s1145_s4 }
  0xdb   : > { %5141 = vmatpush3.bf16.msra.mxu0 %v5138_v52  ;;  %5079 = vmatprep.subr.bf16.mxu1 %v5078_v57  ;;  %v924_v52 = vld [vmem:[#allocation6 + $0x1e8] sm:$0xff]  ;;  %v587_v4 = vld [vmem:[%s6431_s28 + $0x10] sm:$0xff]  ;;  %v1036_v27 = vld [vmem:[#allocation6 + $0x278] sm:$0xff] }
  0xdc   : > { %5143 = vmatprep.subr.bf16.mxu0 %v5142_v58  ;;  %v5174_v54 = vpack.c.bf16 %v924_v52, %v923_v51  ;;  %v586_v2 = vld [vmem:[%s6431_s28 + $0x8] sm:$0xff]  ;;  %v1025_v7 = vld [vmem:[#allocation6 + $0x220] sm:$0xff]  ;;  %v588_v9 = vld [vmem:[%s6431_s28 + $0x18] sm:$0xff] }
  0xdd   : > { %v907_v3 = vld [vmem:[%s6431_s28 + $0xb] sm:$0xff]  ;;  %v909_v10 = vld [vmem:[%s6431_s28 + $0x1b] sm:$0xff] }
  0xde   : > { %5081 = vmatpush3.bf16.msra.mxu1 %v5078_v57  ;;  %v925_v57 = vld [vmem:[#allocation6 + $0x1f0] sm:$0xff]  ;;  %v1029_v16 = vld [vmem:[#allocation6 + $0x240] sm:$0xff]  ;;  %v1030_v17 = vld [vmem:[#allocation6 + $0x248] sm:$0xff] }
  0xdf   : > { %5145 = vmatpush3.bf16.msra.mxu0 %v5142_v58  ;;  %5083 = vmatprep.subr.bf16.mxu1 %v5082_v63  ;;  %v926_v58 = vld [vmem:[#allocation6 + $0x1f8] sm:$0xff]  ;;  %v5198_v19 = vpack.c.bf16 %v1030_v17, %v1029_v16  ;;  %v1035_v26 = vld [vmem:[#allocation6 + $0x270] sm:$0xff]  ;;  %v3600_v40 = vld [vmem:[%s6733_s6] ss:$0 sm:$0xff] }
  0xe0   : > { %5147 = vmatprep.subr.bf16.mxu0 %v5146_v0  ;;  %v5178_v60 = vpack.c.bf16 %v926_v58, %v925_v57  ;;  %v5210_v31 = vpack.c.bf16 %v1036_v27, %v1035_v26  ;;  %v1017_v32 = vld [vmem:[%s6431_s28 + $0xc] sm:$0xff]  ;;  %v1154_v57 = vadd.s32 (%p1149_p1), %v1153_v56, %v6419_v18  ;;  %v1155_v58 = vadd.s32 (%p1149_p1), %v1153_v56, %v6423_v28 }
  0xe2   : > { %5085 = vmatpush3.bf16.msra.mxu1 %v5082_v63  ;;  %v5182_v63 = vpack.c.bf16 %v1022_v62, %v1021_v61  ;;  %vm1158_vm0 = vcmp.ge.s32.totalorder (%p1149_p1), %v1154_v57, 0  ;;  %vm1162_vm1 = vcmp.lt.s32.totalorder (%p1149_p1), %v1154_v57, 40  ;;  %vm1159_vm2 = vcmp.ge.s32.totalorder (%p1149_p1), %v1155_v58, 0 }
  0xe3   : > { %5149 = vmatpush3.bf16.msra.mxu0 %v5146_v0  ;;  %5087 = vmatprep.subr.bf16.mxu1 %v5086_v5  ;;  %v1023_v0 = vld [vmem:[#allocation6 + $0x210] sm:$0xff]  ;;  %vm1163_vm3 = vcmp.lt.s32.totalorder (%p1149_p1), %v1155_v58, 40  ;;  %vm1166_vm4 = vmand (%p1149_p1), %vm1158_vm0, %vm1162_vm1 }
  0xe4   : > { %5151 = vmatprep.subr.bf16.mxu0 %v5150_v6  ;;  %vm1167_vm9 = vmand (%p1149_p1), %vm1159_vm2, %vm1163_vm3 }
  0xe5   : > { %4122 = vmatmul.mubr.f32.vlgmr.msra.gmra.mrb[0].mxu1 %v606_v11  ;;  %v5190_v11 = vpack.c.bf16 %v1026_v8, %v1025_v7 }
  0xe6   : > { %5089 = vmatpush3.bf16.msra.mxu1 %v5086_v5  ;;  %4198 = vmatmul.mubr.f32.vlgmr.msra.gmra.mrb[0].mxu0 %v797_v12  ;;  %v5186_v5 = vpack.c.bf16 %v1024_v1, %v1023_v0  ;;  %v1016_v12 = vld [vmem:[%s6431_s28 + $0x4] sm:$0xff] }
  0xe7   : > { %5153 = vmatpush3.bf16.msra.mxu0 %v5150_v6  ;;  %5091 = vmatprep.subr.bf16.mxu1 %v5090_v13  ;;  %v908_v6 = vld [vmem:[%s6431_s28 + $0x13] sm:$0xff] }
  0xe8   : > { %5155 = vmatprep.subr.bf16.mxu0 %v5154_v14  ;;  %4124 = vmatprep.mubr.f32.mxu1 %v607_v20  ;;  %v1031_v20 = vld [vmem:[#allocation6 + $0x250] sm:$0xff] }
  0xe9   : > { %4125 = vmatmul.mubr.f32.gmra.mrb[2].mxu1 %v608_v21  ;;  %4200 = vmatprep.mubr.f32.mxu0 %v798_v22  ;;  %v1032_v21 = vld [vmem:[#allocation6 + $0x258] sm:$0xff] }
  0xea   : > { %5093 = vmatpush3.bf16.msra.mxu1 %v5090_v13  ;;  %4201 = vmatmul.mubr.f32.gmra.mrb[2].mxu0 %v799_v24  ;;  %v1027_v13 = vld [vmem:[#allocation6 + $0x230] sm:$0xff]  ;;  %v5202_v22 = vpack.c.bf16 %v1032_v21, %v1031_v20  ;;  %v1034_v24 = vld [vmem:[#allocation6 + $0x268] sm:$0xff] }
  0xeb   : > { %5157 = vmatpush3.bf16.msra.mxu0 %v5154_v14  ;;  %5095 = vmatprep.subr.bf16.mxu1 %v5094_v23  ;;  %v1028_v14 = vld [vmem:[#allocation6 + $0x238] sm:$0xff] }
  0xec   : > { %5159 = vmatprep.subr.bf16.mxu0 %v5158_v25  ;;  %4159 = vmatprep.mubr.f32.mxu1 %v585_v33  ;;  %v5194_v15 = vpack.c.bf16 %v1028_v14, %v1027_v13  ;;  %v1018_v33 = vld [vmem:[%s6431_s28 + $0x14] sm:$0xff] }
  0xed   : > { %4235 = vmatprep.mubr.f32.mxu0 %v906_v34  ;;  %v1019_v34 = vld [vmem:[%s6431_s28 + $0x1c] sm:$0xff] }
  0xee   : > { %5097 = vmatpush3.bf16.msra.mxu1 %v5094_v23  ;;  %v1033_v23 = vld [vmem:[#allocation6 + $0x260] sm:$0xff] }
  0xef   : > { %5161 = vmatpush3.bf16.msra.mxu0 %v5158_v25  ;;  %5099 = vmatprep.subr.bf16.mxu1 %v5098_v35  ;;  %v5206_v25 = vpack.c.bf16 %v1034_v24, %v1033_v23 }
  0xf0   : > { %5163 = vmatprep.subr.bf16.mxu0 %v5162_v36 }
  0xf2   : > { %5101 = vmatpush3.bf16.msra.mxu1 %v5098_v35 }
  0xf3   : > { %5165 = vmatpush3.bf16.msra.mxu0 %v5162_v36  ;;  %5103 = vmatprep.subr.bf16.mxu1 %v5102_v41 }
  0xf4   : > { %5167 = vmatprep.subr.bf16.mxu0 %v5166_v42 }
  0xf6   : > { %5105 = vmatpush3.bf16.msra.mxu1 %v5102_v41 }
  0xf7   : > { %5169 = vmatpush3.bf16.msra.mxu0 %v5166_v42  ;;  %5107 = vmatprep.subr.bf16.mxu1 %v5106_v47 }
  0xf8   : > { %5171 = vmatprep.subr.bf16.mxu0 %v5170_v48 }
  0xfa   : > { %5109 = vmatpush3.bf16.msra.mxu1 %v5106_v47 }
  0xfb   : > { %5173 = vmatpush3.bf16.msra.mxu0 %v5170_v48  ;;  %5111 = vmatprep.subr.bf16.mxu1 %v5110_v53 }
  0xfc   : > { %5175 = vmatprep.subr.bf16.mxu0 %v5174_v54 }
  0xfe   : > { %5113 = vmatpush3.bf16.msra.mxu1 %v5110_v53 }
  0xff   : > { %5177 = vmatpush3.bf16.msra.mxu0 %v5174_v54  ;;  %5115 = vmatprep.subr.bf16.mxu1 %v5114_v59 }
 0x100   : > { %5179 = vmatprep.subr.bf16.mxu0 %v5178_v60 }
 0x102   : > { %5117 = vmatpush3.bf16.msra.mxu1 %v5114_v59  ;;  %v1156_v59 = vadd.s32 (%p1149_p1), %v1153_v56, %v6426_v29 }
 0x103   : > { %5181 = vmatpush3.bf16.msra.mxu0 %v5178_v60  ;;  %v1157_v60 = vadd.s32 (%p1149_p1), %v1153_v56, %v6429_v30 }
 0x104   : > { %5183 = vmatprep.subr.bf16.mxu0 %v5182_v63  ;;  %vm1160_vm5 = vcmp.ge.s32.totalorder (%p1149_p1), %v1156_v59, 0  ;;  %vm1164_vm6 = vcmp.lt.s32.totalorder (%p1149_p1), %v1156_v59, 40 }
 0x105   : > { %4160 = vmatmul.mubr.f32.vlgmr.msra.gmra.mrb[0].mxu1 %v586_v2  ;;  %vm1161_vm7 = vcmp.ge.s32.totalorder (%p1149_p1), %v1157_v60, 0  ;;  %vm1165_vm8 = vcmp.lt.s32.totalorder (%p1149_p1), %v1157_v60, 40  ;;  %vm1168_vm10 = vmand (%p1149_p1), %vm1160_vm5, %vm1164_vm6 }
 0x106   : > { %4236 = vmatmul.mubr.f32.vlgmr.msra.gmra.mrb[0].mxu0 %v907_v3  ;;  %4162 = vmatprep.mubr.f32.mxu1 %v587_v4  ;;  %vm1169_vm11 = vmand (%p1149_p1), %vm1161_vm7, %vm1165_vm8 }
 0x107   : > { %5185 = vmatpush3.bf16.msra.mxu0 %v5182_v63  ;;  %4238 = vmatprep.mubr.f32.mxu0 %v908_v6 }
 0x108   : > { %5187 = vmatprep.subr.bf16.mxu0 %v5186_v5 }
 0x109   : > { %4163 = vmatmul.mubr.f32.gmra.mrb[2].mxu1 %v588_v9 }
 0x10a   : > { %4239 = vmatmul.mubr.f32.gmra.mrb[2].mxu0 %v909_v10 }
 0x10b   : > { %5189 = vmatpush3.bf16.msra.mxu0 %v5186_v5  ;;  %4273 = vmatprep.mubr.f32.mxu0 %v1016_v12 }
 0x10c   : > { %5191 = vmatprep.subr.bf16.mxu0 %v5190_v11 }
 0x10f   : > { %5193 = vmatpush3.bf16.msra.mxu0 %v5190_v11 }
 0x110   : > { %5195 = vmatprep.subr.bf16.mxu0 %v5194_v15 }
 0x113   : > { %5197 = vmatpush3.bf16.msra.mxu0 %v5194_v15 }
 0x114   : > { %5199 = vmatprep.subr.bf16.mxu0 %v5198_v19 }
 0x117   : > { %5201 = vmatpush3.bf16.msra.mxu0 %v5198_v19 }
 0x118   : > { %5203 = vmatprep.subr.bf16.mxu0 %v5202_v22 }
 0x11b   : > { %5205 = vmatpush3.bf16.msra.mxu0 %v5202_v22 }
 0x11c   : > { %5207 = vmatprep.subr.bf16.mxu0 %v5206_v25 }
 0x11f   : > { %5209 = vmatpush3.bf16.msra.mxu0 %v5206_v25 }
 0x120   : > { %5211 = vmatprep.subr.bf16.mxu0 %v5210_v31 }
 0x123   : > { %5213 = vmatpush3.bf16.msra.mxu0 %v5210_v31 }
 0x126   : > { %4274 = vmatmul.mubr.f32.vlgmr.msra.gmra.mrb[0].mxu0 %v1017_v32 }
 0x127   : > { %4276 = vmatprep.mubr.f32.mxu0 %v1018_v33 }
 0x12a   : > { %4277 = vmatmul.mubr.f32.gmra.mrb[2].mxu0 %v1019_v34 }
 0x1d8   : > { %v4161_v35 = vpop.f32.mrb[0].mxu1 }
 0x1d9   : > { %v777_v36 = vpop.f32.mrb[1].mxu1 }
 0x1dc   : > { %v4164_v37 = vpop.f32.mrb[2].mxu1 }
 0x1dd   : > { %v787_v38 = vpop.f32.mrb[3].mxu1 }
 0x1f9   : > { %v4275_v39 = vpop.f32.mrb[0].mxu0 }
 0x1fa   : > { %v5774_v41 = vadd.f32 %v4275_v39, %v4161_v35  ;;  %v1103_v42 = vpop.f32.mrb[1].mxu0 }
 0x1fb   : > { %v5775_v43 = vadd.f32 %v1103_v42, %v777_v36 }
 0x1fc   : > { %v1134_v44 = vadd.f32 %v5774_v41, %v3600_v40 }
 0x1fd   : > { %v1133_v45 = vadd.f32 %v5775_v43, %v3600_v40  ;;  %v4278_v46 = vpop.f32.mrb[2].mxu0 }
 0x1fe   : > { %5911 = vtanh.f32 %v1134_v44  ;;  %v5776_v47 = vadd.f32 %v4278_v46, %v4164_v37  ;;  %v1113_v48 = vpop.f32.mrb[3].mxu0 }
 0x1ff   : > { %5913 = vtanh.f32 %v1133_v45  ;;  %v5777_v49 = vadd.f32 %v1113_v48, %v787_v38 }
 0x200   : > { %v1136_v50 = vadd.f32 %v5776_v47, %v3600_v40 }
 0x201   : > { %v1135_v51 = vadd.f32 %v5777_v49, %v3600_v40 }
 0x202   : > { %5915 = vtanh.f32 %v1136_v50 }
 0x203   : > { %5917 = vtanh.f32 %v1135_v51 }
 0x208   : > { %v5912_v52 = vpop.eup %5911  ;;  %1152 = sbr.rel (!%p1149_p1) target bundleno = 536 (0x218), region = 160 }
 0x209   : > { %v5914_v53 = vpop.eup %5913  ;;  %1142 = vst [vmem:[#allocation3 + $0x8] sm:$0xff] %v5912_v52 }
 0x20a   : > { %1141 = vst [vmem:[#allocation3] sm:$0xff] %v5914_v53 }
 0x20c   : > { %v5916_v54 = vpop.eup %5915 }
 0x20d   : > { %v5918_v55 = vpop.eup %5917  ;;  %1144 = vst [vmem:[#allocation3 + $0x18] sm:$0xff] %v5916_v54 }
 0x20e   : > { %1143 = vst [vmem:[#allocation3 + $0x10] sm:$0xff] %v5918_v55 }
 0x210   : > { %v1171_v62 = vld [vmem:[#allocation3 + $0x8] sm:$0xff] }
 0x211   : > { %v1170_v61 = vld [vmem:[#allocation3] sm:$0xff]  ;;  %v1183_v2 = vsel %vm1167_vm9, %v1171_v62, 0.0 }
 0x212   : > { %v1182_v0 = vsel %vm1166_vm4, %v1170_v61, 0.0  ;;  %1187 = vst [vmem:[#allocation3 + $0x8] sm:$0xff] %v1183_v2 }
 0x213   : > { %1186 = vst [vmem:[#allocation3] sm:$0xff] %v1182_v0 }
 0x214   : > { %v1173_v1 = vld [vmem:[#allocation3 + $0x18] sm:$0xff] }
 0x215   : > { %v1172_v63 = vld [vmem:[#allocation3 + $0x10] sm:$0xff]  ;;  %v1185_v4 = vsel %vm1169_vm11, %v1173_v1, 0.0 }
 0x216   : > { %v1184_v3 = vsel %vm1168_vm10, %v1172_v63, 0.0  ;;  %1189 = vst [vmem:[#allocation3 + $0x18] sm:$0xff] %v1185_v4 }
 0x217   : > { %1188 = vst [vmem:[#allocation3 + $0x10] sm:$0xff] %v1184_v3 }
 0x218 PF: > { %v1215_v5 = vld [vmem:[#allocation8 + $0x80] sm:$0xff]  ;;  %v1216_v6 = vld [vmem:[#allocation8 + $0x88] sm:$0xff]  ;;  %v1217_v7 = vld [vmem:[#allocation8 + $0x90] sm:$0xff]  ;;  %s1750_s22 = sadd.s32 4294967290, %s6409_s2  ;;  %s1752_s27 = sadd.s32 22, %s6409_s2 }
 0x219   : > { %v5214_v8 = vpack.c.bf16 %v1216_v6, %v1215_v5  ;;  %v1218_v9 = vld [vmem:[#allocation8 + $0x98] sm:$0xff]  ;;  %v1219_v11 = vld [vmem:[#allocation8 + $0xa0] sm:$0xff]  ;;  %v1220_v12 = vld [vmem:[#allocation8 + $0xa8] sm:$0xff]  ;;  %p6485_p4 = scmp.lt.s32.totalorder %s1750_s22, 0  ;;  %p6489_p2 = scmp.gt.s32.totalorder %s1752_s27, 40 }
 0x21a   : > { %v5218_v10 = vpack.c.bf16 %v1218_v9, %v1217_v7  ;;  %v5222_v13 = vpack.c.bf16 %v1220_v12, %v1219_v11  ;;  %v1210_v14 = vld [vmem:[#allocation3 + $0x1] sm:$0xff]  ;;  %v1221_v15 = vld [vmem:[#allocation8 + $0xb0] sm:$0xff]  ;;  %v1222_v16 = vld [vmem:[#allocation8 + $0xb8] sm:$0xff] }
 0x21b   : > { %5215 = vmatprep.subr.bf16.mxu1 %v5214_v8  ;;  %4311 = vmatprep.mubr.f32.mxu1 %v1210_v14  ;;  %v5226_v17 = vpack.c.bf16 %v1222_v16, %v1221_v15  ;;  %v1223_v19 = vld [vmem:[#allocation8 + $0xc0] sm:$0xff]  ;;  %v1224_v20 = vld [vmem:[#allocation8 + $0xc8] sm:$0xff]  ;;  %v1225_v22 = vld [vmem:[#allocation8 + $0xd0] sm:$0xff]  ;;  %p1754_p6 = por %p6489_p2, %p6485_p4 }
 0x21c   : > { %5217 = vmatpush3.bf16.msra.mxu1 %v5214_v8  ;;  %v5230_v21 = vpack.c.bf16 %v1224_v20, %v1223_v19  ;;  %v1226_v23 = vld [vmem:[#allocation8 + $0xd8] sm:$0xff]  ;;  %v1227_v25 = vld [vmem:[#allocation8 + $0xe0] sm:$0xff]  ;;  %v1228_v26 = vld [vmem:[#allocation8 + $0xe8] sm:$0xff] }
 0x21d   : > { %5219 = vmatprep.subr.bf16.mxu1 %v5218_v10  ;;  %v5234_v24 = vpack.c.bf16 %v1226_v23, %v1225_v22  ;;  %v5238_v27 = vpack.c.bf16 %v1228_v26, %v1227_v25  ;;  %v1229_v31 = vld [vmem:[#allocation8 + $0xf0] sm:$0xff]  ;;  %v1230_v32 = vld [vmem:[#allocation8 + $0xf8] sm:$0xff]  ;;  %v1194_v34 = vld [vmem:[#allocation8] sm:$0xff] }
 0x21e   : > { %v5242_v33 = vpack.c.bf16 %v1230_v32, %v1229_v31  ;;  %v1195_v35 = vld [vmem:[#allocation8 + $0x8] sm:$0xff]  ;;  %v1196_v37 = vld [vmem:[#allocation8 + $0x10] sm:$0xff]  ;;  %v1197_v38 = vld [vmem:[#allocation8 + $0x18] sm:$0xff] }
 0x21f   : > { %v5246_v36 = vpack.c.bf16 %v1195_v35, %v1194_v34  ;;  %v1211_v39 = vld [vmem:[#allocation3 + $0x9] sm:$0xff]  ;;  %v5250_v40 = vpack.c.bf16 %v1197_v38, %v1196_v37  ;;  %v1212_v41 = vld [vmem:[#allocation3 + $0x11] sm:$0xff]  ;;  %v1198_v42 = vld [vmem:[#allocation8 + $0x20] sm:$0xff] }
 0x220   : > { %5221 = vmatpush3.bf16.msra.mxu1 %v5218_v10  ;;  %v1199_v43 = vld [vmem:[#allocation8 + $0x28] sm:$0xff]  ;;  %v1213_v44 = vld [vmem:[#allocation3 + $0x19] sm:$0xff]  ;;  %v1200_v47 = vld [vmem:[#allocation8 + $0x30] sm:$0xff] }
 0x221   : > { %5223 = vmatprep.subr.bf16.mxu1 %v5222_v13  ;;  %v5254_v45 = vpack.c.bf16 %v1199_v43, %v1198_v42  ;;  %v1190_v46 = vld [vmem:[#allocation3] sm:$0xff]  ;;  %v1201_v48 = vld [vmem:[#allocation8 + $0x38] sm:$0xff]  ;;  %v1203_v51 = vld [vmem:[#allocation8 + $0x48] sm:$0xff] }
 0x222   : > { %v5258_v49 = vpack.c.bf16 %v1201_v48, %v1200_v47  ;;  %v1202_v50 = vld [vmem:[#allocation8 + $0x40] sm:$0xff]  ;;  %v1204_v53 = vld [vmem:[#allocation8 + $0x50] sm:$0xff]  ;;  %v1205_v54 = vld [vmem:[#allocation8 + $0x58] sm:$0xff] }
 0x223   : > { %v5262_v52 = vpack.c.bf16 %v1203_v51, %v1202_v50  ;;  %v5266_v55 = vpack.c.bf16 %v1205_v54, %v1204_v53  ;;  %v1206_v56 = vld [vmem:[#allocation8 + $0x60] sm:$0xff]  ;;  %v1207_v57 = vld [vmem:[#allocation8 + $0x68] sm:$0xff]  ;;  %v1208_v59 = vld [vmem:[#allocation8 + $0x70] sm:$0xff] }
 0x224   : > { %5225 = vmatpush3.bf16.msra.mxu1 %v5222_v13  ;;  %v5270_v58 = vpack.c.bf16 %v1207_v57, %v1206_v56  ;;  %v1209_v60 = vld [vmem:[#allocation8 + $0x78] sm:$0xff]  ;;  %v1406_v62 = vld [vmem:[#allocation8 + $0x100] sm:$0xff]  ;;  %v1407_v63 = vld [vmem:[#allocation8 + $0x108] sm:$0xff] }
 0x225   : > { %5227 = vmatprep.subr.bf16.mxu1 %v5226_v17  ;;  %v5274_v61 = vpack.c.bf16 %v1209_v60, %v1208_v59  ;;  %v5278_v0 = vpack.c.bf16 %v1407_v63, %v1406_v62  ;;  %v1408_v1 = vld [vmem:[#allocation8 + $0x110] sm:$0xff]  ;;  %v1409_v2 = vld [vmem:[#allocation8 + $0x118] sm:$0xff]  ;;  %v1191_v3 = vld [vmem:[#allocation3 + $0x8] sm:$0xff] }
 0x226   : > { %v5282_v4 = vpack.c.bf16 %v1409_v2, %v1408_v1  ;;  %v1192_v5 = vld [vmem:[#allocation3 + $0x10] sm:$0xff]  ;;  %v1410_v6 = vld [vmem:[#allocation8 + $0x120] sm:$0xff]  ;;  %v1411_v7 = vld [vmem:[#allocation8 + $0x128] sm:$0xff] }
 0x227   : > { %v1193_v8 = vld [vmem:[#allocation3 + $0x18] sm:$0xff]  ;;  %v5286_v9 = vpack.c.bf16 %v1411_v7, %v1410_v6  ;;  %v1401_v10 = vld [vmem:[#allocation3 + $0x2] sm:$0xff]  ;;  %v1412_v11 = vld [vmem:[#allocation8 + $0x130] sm:$0xff] }
 0x228   : > { %5229 = vmatpush3.bf16.msra.mxu1 %v5226_v17  ;;  %v1413_v12 = vld [vmem:[#allocation8 + $0x138] sm:$0xff]  ;;  %v1414_v14 = vld [vmem:[#allocation8 + $0x140] sm:$0xff]  ;;  %v1415_v15 = vld [vmem:[#allocation8 + $0x148] sm:$0xff] }
 0x229   : > { %5231 = vmatprep.subr.bf16.mxu1 %v5230_v21  ;;  %v5290_v13 = vpack.c.bf16 %v1413_v12, %v1412_v11  ;;  %v5294_v16 = vpack.c.bf16 %v1415_v15, %v1414_v14  ;;  %v1416_v17 = vld [vmem:[#allocation8 + $0x150] sm:$0xff]  ;;  %v1417_v19 = vld [vmem:[#allocation8 + $0x158] sm:$0xff]  ;;  %v1419_v22 = vld [vmem:[#allocation8 + $0x168] sm:$0xff] }
 0x22a   : > { %v5298_v20 = vpack.c.bf16 %v1417_v19, %v1416_v17  ;;  %v1421_v25 = vld [vmem:[#allocation8 + $0x178] sm:$0xff]  ;;  %v1517_v31 = vld [vmem:[#allocation8 + $0x188] sm:$0xff]  ;;  %v1520_v38 = vld [vmem:[#allocation8 + $0x1a0] sm:$0xff] }
 0x22b   : > { %v1519_v34 = vld [vmem:[#allocation8 + $0x198] sm:$0xff]  ;;  %v1402_v35 = vld [vmem:[#allocation3 + $0xa] sm:$0xff]  ;;  %v1630_v2 = vld [vmem:[#allocation8 + $0x220] sm:$0xff] }
 0x22c   : > { %5233 = vmatpush3.bf16.msra.mxu1 %v5230_v21  ;;  %v1418_v21 = vld [vmem:[#allocation8 + $0x160] sm:$0xff]  ;;  %v1403_v37 = vld [vmem:[#allocation3 + $0x12] sm:$0xff]  ;;  %v1525_v47 = vld [vmem:[#allocation8 + $0x1c8] sm:$0xff] }
 0x22d   : > { %5235 = vmatprep.subr.bf16.mxu1 %v5234_v24  ;;  %v5302_v23 = vpack.c.bf16 %v1419_v22, %v1418_v21  ;;  %v1511_v42 = vld [vmem:[#allocation3 + $0x3] sm:$0xff]  ;;  %v1522_v43 = vld [vmem:[#allocation8 + $0x1b0] sm:$0xff]  ;;  %v1527_v50 = vld [vmem:[#allocation8 + $0x1d8] sm:$0xff] }
 0x22e   : > { %v1529_v53 = vld [vmem:[#allocation8 + $0x1e8] sm:$0xff]  ;;  %v1531_v56 = vld [vmem:[#allocation8 + $0x1f8] sm:$0xff]  ;;  %v1632_v7 = vld [vmem:[#allocation8 + $0x230] sm:$0xff] }
 0x22f   : > { %v1627_v59 = vld [vmem:[#allocation8 + $0x208] sm:$0xff]  ;;  %v1629_v62 = vld [vmem:[#allocation8 + $0x218] sm:$0xff] }
 0x230   : > { %5237 = vmatpush3.bf16.msra.mxu1 %v5234_v24  ;;  %v1420_v24 = vld [vmem:[#allocation8 + $0x170] sm:$0xff]  ;;  %v1621_v6 = vld [vmem:[#allocation3 + $0x4] sm:$0xff]  ;;  %v1637_v14 = vld [vmem:[#allocation8 + $0x258] sm:$0xff] }
 0x231   : > { %5239 = vmatprep.subr.bf16.mxu1 %v5238_v27  ;;  %v5306_v26 = vpack.c.bf16 %v1421_v25, %v1420_v24  ;;  %v1512_v63 = vld [vmem:[#allocation3 + $0xb] sm:$0xff]  ;;  %v1513_v1 = vld [vmem:[#allocation3 + $0x13] sm:$0xff]  ;;  %v1624_v25 = vld [vmem:[#allocation3 + $0x1c] sm:$0xff] }
 0x232   : > { %v1635_v11 = vld [vmem:[#allocation8 + $0x248] sm:$0xff]  ;;  %v1641_v21 = vld [vmem:[#allocation8 + $0x278] sm:$0xff] }
 0x233   : > { %v1639_v17 = vld [vmem:[#allocation8 + $0x268] sm:$0xff]  ;;  %v1623_v24 = vld [vmem:[#allocation3 + $0x14] sm:$0xff] }
 0x234   : > { %5241 = vmatpush3.bf16.msra.mxu1 %v5238_v27  ;;  %v1516_v27 = vld [vmem:[#allocation8 + $0x180] sm:$0xff] }
 0x235   : > { %5243 = vmatprep.subr.bf16.mxu1 %v5242_v33  ;;  %v5310_v32 = vpack.c.bf16 %v1517_v31, %v1516_v27 }
 0x238   : > { %5245 = vmatpush3.bf16.msra.mxu1 %v5242_v33  ;;  %v1518_v33 = vld [vmem:[#allocation8 + $0x190] sm:$0xff] }
 0x239   : > { %5247 = vmatprep.subr.bf16.mxu1 %v5246_v36 }
 0x23b   : > { %4312 = vmatmul.mubr.f32.vlgmr.msra.gmra.mrb[4].mxu1 %v1211_v39  ;;  %v1521_v39 = vld [vmem:[#allocation8 + $0x1a8] sm:$0xff] }
 0x23c   : > { %5249 = vmatpush3.bf16.msra.mxu1 %v5246_v36  ;;  %4314 = vmatprep.mubr.f32.mxu1 %v1212_v41  ;;  %v5314_v36 = vpack.c.bf16 %v1519_v34, %v1518_v33  ;;  %v5318_v41 = vpack.c.bf16 %v1521_v39, %v1520_v38 }
 0x23d   : > { %5251 = vmatprep.subr.bf16.mxu1 %v5250_v40 }
 0x23f   : > { %4315 = vmatmul.mubr.f32.gmra.mrb[6].mxu1 %v1213_v44  ;;  %v1523_v44 = vld [vmem:[#allocation8 + $0x1b8] sm:$0xff] }
 0x240   : > { %5253 = vmatpush3.bf16.msra.mxu1 %v5250_v40  ;;  %4349 = vmatprep.mubr.f32.mxu1 %v1190_v46  ;;  %v1404_v40 = vld [vmem:[#allocation3 + $0x1a] sm:$0xff] }
 0x241   : > { %5255 = vmatprep.subr.bf16.mxu1 %v5254_v45  ;;  %v1524_v46 = vld [vmem:[#allocation8 + $0x1c0] sm:$0xff] }
 0x242   : > { %v5326_v48 = vpack.c.bf16 %v1525_v47, %v1524_v46 }
 0x244   : > { %5257 = vmatpush3.bf16.msra.mxu1 %v5254_v45  ;;  %v5322_v45 = vpack.c.bf16 %v1523_v44, %v1522_v43 }
 0x245   : > { %5259 = vmatprep.subr.bf16.mxu1 %v5258_v49 }
 0x248   : > { %5261 = vmatpush3.bf16.msra.mxu1 %v5258_v49  ;;  %v1526_v49 = vld [vmem:[#allocation8 + $0x1d0] sm:$0xff] }
 0x249   : > { %5263 = vmatprep.subr.bf16.mxu1 %v5262_v52  ;;  %v5330_v51 = vpack.c.bf16 %v1527_v50, %v1526_v49 }
 0x24c   : > { %5265 = vmatpush3.bf16.msra.mxu1 %v5262_v52  ;;  %v1528_v52 = vld [vmem:[#allocation8 + $0x1e0] sm:$0xff] }
 0x24d   : > { %5267 = vmatprep.subr.bf16.mxu1 %v5266_v55  ;;  %v5334_v54 = vpack.c.bf16 %v1529_v53, %v1528_v52 }
 0x250   : > { %5269 = vmatpush3.bf16.msra.mxu1 %v5266_v55  ;;  %v1530_v55 = vld [vmem:[#allocation8 + $0x1f0] sm:$0xff] }
 0x251   : > { %5271 = vmatprep.subr.bf16.mxu1 %v5270_v58  ;;  %v5338_v57 = vpack.c.bf16 %v1531_v56, %v1530_v55 }
 0x254   : > { %5273 = vmatpush3.bf16.msra.mxu1 %v5270_v58  ;;  %v1626_v58 = vld [vmem:[#allocation8 + $0x200] sm:$0xff] }
 0x255   : > { %5275 = vmatprep.subr.bf16.mxu1 %v5274_v61  ;;  %v5342_v60 = vpack.c.bf16 %v1627_v59, %v1626_v58 }
 0x258   : > { %5277 = vmatpush3.bf16.msra.mxu1 %v5274_v61  ;;  %v1628_v61 = vld [vmem:[#allocation8 + $0x210] sm:$0xff] }
 0x259   : > { %5279 = vmatprep.subr.bf16.mxu1 %v5278_v0 }
 0x25b   : > { %4350 = vmatmul.mubr.f32.vlgmr.msra.gmra.mrb[4].mxu1 %v1191_v3  ;;  %v1631_v3 = vld [vmem:[#allocation8 + $0x228] sm:$0xff] }
 0x25c   : > { %5281 = vmatpush3.bf16.msra.mxu1 %v5278_v0  ;;  %4352 = vmatprep.mubr.f32.mxu1 %v1192_v5  ;;  %v5346_v0 = vpack.c.bf16 %v1629_v62, %v1628_v61  ;;  %v5350_v5 = vpack.c.bf16 %v1631_v3, %v1630_v2 }
 0x25d   : > { %5283 = vmatprep.subr.bf16.mxu1 %v5282_v4 }
 0x25f   : > { %4353 = vmatmul.mubr.f32.gmra.mrb[6].mxu1 %v1193_v8  ;;  %v1633_v8 = vld [vmem:[#allocation8 + $0x238] sm:$0xff] }
 0x260   : > { %5285 = vmatpush3.bf16.msra.mxu1 %v5282_v4  ;;  %4387 = vmatprep.mubr.f32.mxu1 %v1401_v10  ;;  %v1514_v4 = vld [vmem:[#allocation3 + $0x1b] sm:$0xff] }
 0x261   : > { %5287 = vmatprep.subr.bf16.mxu1 %v5286_v9  ;;  %v1634_v10 = vld [vmem:[#allocation8 + $0x240] sm:$0xff] }
 0x262   : > { %v5358_v12 = vpack.c.bf16 %v1635_v11, %v1634_v10 }
 0x264   : > { %5289 = vmatpush3.bf16.msra.mxu1 %v5286_v9  ;;  %v5354_v9 = vpack.c.bf16 %v1633_v8, %v1632_v7 }
 0x265   : > { %5291 = vmatprep.subr.bf16.mxu1 %v5290_v13 }
 0x268   : > { %5293 = vmatpush3.bf16.msra.mxu1 %v5290_v13  ;;  %v1636_v13 = vld [vmem:[#allocation8 + $0x250] sm:$0xff] }
 0x269   : > { %5295 = vmatprep.subr.bf16.mxu1 %v5294_v16  ;;  %v5362_v15 = vpack.c.bf16 %v1637_v14, %v1636_v13 }
 0x26c   : > { %5297 = vmatpush3.bf16.msra.mxu1 %v5294_v16  ;;  %v1638_v16 = vld [vmem:[#allocation8 + $0x260] sm:$0xff] }
 0x26d   : > { %5299 = vmatprep.subr.bf16.mxu1 %v5298_v20  ;;  %v5366_v19 = vpack.c.bf16 %v1639_v17, %v1638_v16 }
 0x270   : > { %5301 = vmatpush3.bf16.msra.mxu1 %v5298_v20  ;;  %v1640_v20 = vld [vmem:[#allocation8 + $0x270] sm:$0xff] }
 0x271   : > { %5303 = vmatprep.subr.bf16.mxu1 %v5302_v23  ;;  %v5370_v22 = vpack.c.bf16 %v1641_v21, %v1640_v20 }
 0x274   : > { %5305 = vmatpush3.bf16.msra.mxu1 %v5302_v23  ;;  %v1622_v23 = vld [vmem:[#allocation3 + $0xc] sm:$0xff] }
 0x275   : > { %5307 = vmatprep.subr.bf16.mxu1 %v5306_v26 }
 0x278   : > { %5309 = vmatpush3.bf16.msra.mxu1 %v5306_v26  ;;  %v3601_v26 = vld [vmem:[%s6734_s7] ss:$0 sm:$0xff] }
 0x279   : > { %5311 = vmatprep.subr.bf16.mxu1 %v5310_v32 }
 0x27b   : > { %4388 = vmatmul.mubr.f32.vlgmr.msra.gmra.mrb[4].mxu1 %v1402_v35 }
 0x27c   : > { %5313 = vmatpush3.bf16.msra.mxu1 %v5310_v32  ;;  %4390 = vmatprep.mubr.f32.mxu1 %v1403_v37 }
 0x27d   : > { %5315 = vmatprep.subr.bf16.mxu1 %v5314_v36 }
 0x27f   : > { %4391 = vmatmul.mubr.f32.gmra.mrb[6].mxu1 %v1404_v40 }
 0x280   : > { %5317 = vmatpush3.bf16.msra.mxu1 %v5314_v36  ;;  %4425 = vmatprep.mubr.f32.mxu1 %v1511_v42  ;;  %v1758_v42 = vstv (%p1754_p6), %s1750_s22 }
 0x281   : > { %5319 = vmatprep.subr.bf16.mxu1 %v5318_v41  ;;  %v1759_v43 = vadd.s32 (%p1754_p6), %v1758_v42, %v6419_v18  ;;  %v1760_v44 = vadd.s32 (%p1754_p6), %v1758_v42, %v6423_v28  ;;  %v1762_v46 = vadd.s32 (%p1754_p6), %v1758_v42, %v6429_v30 }
 0x283   : > { %vm1763_vm12 = vcmp.ge.s32.totalorder (%p1754_p6), %v1759_v43, 0  ;;  %vm1767_vm13 = vcmp.lt.s32.totalorder (%p1754_p6), %v1759_v43, 40  ;;  %vm1764_vm14 = vcmp.ge.s32.totalorder (%p1754_p6), %v1760_v44, 0  ;;  %vm1768_vm15 = vcmp.lt.s32.totalorder (%p1754_p6), %v1760_v44, 40 }
 0x284   : > { %5321 = vmatpush3.bf16.msra.mxu1 %v5318_v41  ;;  %vm1771_vm0 = vmand (%p1754_p6), %vm1763_vm12, %vm1767_vm13  ;;  %vm1766_vm3 = vcmp.ge.s32.totalorder (%p1754_p6), %v1762_v46, 0  ;;  %vm1770_vm4 = vcmp.lt.s32.totalorder (%p1754_p6), %v1762_v46, 40 }
 0x285   : > { %5323 = vmatprep.subr.bf16.mxu1 %v5322_v45  ;;  %vm1772_vm5 = vmand (%p1754_p6), %vm1764_vm14, %vm1768_vm15 }
 0x286   : > { %vm1774_vm7 = vmand (%p1754_p6), %vm1766_vm3, %vm1770_vm4 }
 0x288   : > { %5325 = vmatpush3.bf16.msra.mxu1 %v5322_v45  ;;  %v1761_v45 = vadd.s32 (%p1754_p6), %v1758_v42, %v6426_v29 }
 0x289   : > { %5327 = vmatprep.subr.bf16.mxu1 %v5326_v48 }
 0x28a   : > { %vm1765_vm1 = vcmp.ge.s32.totalorder (%p1754_p6), %v1761_v45, 0  ;;  %vm1769_vm2 = vcmp.lt.s32.totalorder (%p1754_p6), %v1761_v45, 40 }
 0x28b   : > { %vm1773_vm6 = vmand (%p1754_p6), %vm1765_vm1, %vm1769_vm2 }
 0x28c   : > { %5329 = vmatpush3.bf16.msra.mxu1 %v5326_v48 }
 0x28d   : > { %5331 = vmatprep.subr.bf16.mxu1 %v5330_v51 }
 0x290   : > { %5333 = vmatpush3.bf16.msra.mxu1 %v5330_v51 }
 0x291   : > { %5335 = vmatprep.subr.bf16.mxu1 %v5334_v54 }
 0x294   : > { %5337 = vmatpush3.bf16.msra.mxu1 %v5334_v54 }
 0x295   : > { %5339 = vmatprep.subr.bf16.mxu1 %v5338_v57 }
 0x298   : > { %5341 = vmatpush3.bf16.msra.mxu1 %v5338_v57 }
 0x299   : > { %5343 = vmatprep.subr.bf16.mxu1 %v5342_v60 }
 0x29b   : > { %4426 = vmatmul.mubr.f32.vlgmr.msra.gmra.mrb[4].mxu1 %v1512_v63 }
 0x29c   : > { %5345 = vmatpush3.bf16.msra.mxu1 %v5342_v60  ;;  %4428 = vmatprep.mubr.f32.mxu1 %v1513_v1 }
 0x29d   : > { %5347 = vmatprep.subr.bf16.mxu1 %v5346_v0 }
 0x29f   : > { %4429 = vmatmul.mubr.f32.gmra.mrb[6].mxu1 %v1514_v4 }
 0x2a0   : > { %5349 = vmatpush3.bf16.msra.mxu1 %v5346_v0  ;;  %4463 = vmatprep.mubr.f32.mxu1 %v1621_v6 }
 0x2a1   : > { %5351 = vmatprep.subr.bf16.mxu1 %v5350_v5 }
 0x2a4   : > { %5353 = vmatpush3.bf16.msra.mxu1 %v5350_v5 }
 0x2a5   : > { %5355 = vmatprep.subr.bf16.mxu1 %v5354_v9 }
 0x2a8   : > { %5357 = vmatpush3.bf16.msra.mxu1 %v5354_v9 }
 0x2a9   : > { %5359 = vmatprep.subr.bf16.mxu1 %v5358_v12 }
 0x2ac   : > { %5361 = vmatpush3.bf16.msra.mxu1 %v5358_v12 }
 0x2ad   : > { %5363 = vmatprep.subr.bf16.mxu1 %v5362_v15 }
 0x2b0   : > { %5365 = vmatpush3.bf16.msra.mxu1 %v5362_v15 }
 0x2b1   : > { %5367 = vmatprep.subr.bf16.mxu1 %v5366_v19 }
 0x2b4   : > { %5369 = vmatpush3.bf16.msra.mxu1 %v5366_v19 }
 0x2b5   : > { %5371 = vmatprep.subr.bf16.mxu1 %v5370_v22 }
 0x2b8   : > { %5373 = vmatpush3.bf16.msra.mxu1 %v5370_v22 }
 0x2bb   : > { %4464 = vmatmul.mubr.f32.vlgmr.msra.gmra.mrb[4].mxu1 %v1622_v23 }
 0x2bc   : > { %4466 = vmatprep.mubr.f32.mxu1 %v1623_v24 }
 0x2bf   : > { %4467 = vmatmul.mubr.f32.gmra.mrb[6].mxu1 %v1624_v25 }
 0x38e   : > { %v4465_v27 = vpop.f32.mrb[4].mxu1 }
 0x38f   : > { %v1739_v31 = vadd.f32 %v4465_v27, %v3601_v26  ;;  %v1708_v32 = vpop.f32.mrb[5].mxu1 }
 0x390   : > { %v1738_v33 = vadd.f32 %v3601_v26, %v1708_v32 }
 0x391   : > { %5919 = vtanh.f32 %v1739_v31 }
 0x392   : > { %5921 = vtanh.f32 %v1738_v33  ;;  %v4468_v34 = vpop.f32.mrb[6].mxu1 }
 0x393   : > { %v1741_v35 = vadd.f32 %v4468_v34, %v3601_v26  ;;  %v1718_v36 = vpop.f32.mrb[7].mxu1 }
 0x394   : > { %v1740_v37 = vadd.f32 %v3601_v26, %v1718_v36 }
 0x395   : > { %5923 = vtanh.f32 %v1741_v35 }
 0x396   : > { %5925 = vtanh.f32 %v1740_v37 }
 0x39b   : > { %v5920_v38 = vpop.eup %5919  ;;  %1757 = sbr.rel (!%p1754_p6) target bundleno = 939 (0x3ab), region = 164 }
 0x39c   : > { %v5922_v39 = vpop.eup %5921  ;;  %1747 = vst [vmem:[#allocation4 + $0x8] sm:$0xff] %v5920_v38 }
 0x39d   : > { %1746 = vst [vmem:[#allocation4] sm:$0xff] %v5922_v39 }
 0x39f   : > { %v5924_v40 = vpop.eup %5923 }
 0x3a0   : > { %v5926_v41 = vpop.eup %5925  ;;  %1749 = vst [vmem:[#allocation4 + $0x18] sm:$0xff] %v5924_v40 }
 0x3a1   : > { %1748 = vst [vmem:[#allocation4 + $0x10] sm:$0xff] %v5926_v41 }
 0x3a3   : > { %v1776_v48 = vld [vmem:[#allocation4 + $0x8] sm:$0xff] }
 0x3a4   : > { %v1775_v47 = vld [vmem:[#allocation4] sm:$0xff]  ;;  %v1788_v52 = vsel %vm1772_vm5, %v1776_v48, 0.0 }
 0x3a5   : > { %v1787_v50 = vsel %vm1771_vm0, %v1775_v47, 0.0  ;;  %1792 = vst [vmem:[#allocation4 + $0x8] sm:$0xff] %v1788_v52 }
 0x3a6   : > { %1791 = vst [vmem:[#allocation4] sm:$0xff] %v1787_v50 }
 0x3a7   : > { %v1778_v51 = vld [vmem:[#allocation4 + $0x18] sm:$0xff] }
 0x3a8   : > { %v1777_v49 = vld [vmem:[#allocation4 + $0x10] sm:$0xff]  ;;  %v1790_v53 = vsel %vm1774_vm7, %v1778_v51, 0.0 }
 0x3a9   : > { %v1789_v30 = vsel %vm1773_vm6, %v1777_v49, 0.0  ;;  %1794 = vst [vmem:[#allocation4 + $0x18] sm:$0xff] %v1790_v53 }
 0x3aa   : > { %1793 = vst [vmem:[#allocation4 + $0x10] sm:$0xff] %v1789_v30 }
 0x3ab PF: > { %v1818_v54 = vld [vmem:[#allocation10 + $0x80] sm:$0xff]  ;;  %v1819_v55 = vld [vmem:[#allocation10 + $0x88] sm:$0xff]  ;;  %v6140_v57 = vmov 0.0|0.0   ;;  %v1820_v60 = vld [vmem:[#allocation10 + $0x90] sm:$0xff]  ;;  %vm6141_vm8 = vmmov 0   ;;  %v6142_v1 = vmov 0.0  }
 0x3ac   : > { %v1798_v56 = vld [vmem:[#allocation10] sm:$0xff]  ;;  %5374 = vmatprep.subr.bf16.mxu0 %v6140_v57  ;;  %v5375_v58 = vpack.c.bf16 %v1819_v55, %v1818_v54  ;;  %5398 = vmatprep.subr.bf16.mxu1 %v6140_v57  ;;  %v1799_v59 = vld [vmem:[#allocation10 + $0x8] sm:$0xff]  ;;  %v1821_v61 = vld [vmem:[#allocation10 + $0x98] sm:$0xff]  ;;  %s2319_s15 = sadd.s32 4294967292, %s6409_s2  ;;  %s2321_s25 = sadd.s32 20, %s6409_s2 }
 0x3ad   : > { %v5399_v62 = vpack.c.bf16 %v1799_v59, %v1798_v56  ;;  %v1800_v63 = vld [vmem:[#allocation10 + $0x10] sm:$0xff]  ;;  %v1801_v0 = vld [vmem:[#allocation10 + $0x18] sm:$0xff]  ;;  %4501 = vmatprep.mubr.msk.f32.mxu0 %vm6141_vm8, %v6142_v1  ;;  %4542 = vmatprep.mubr.msk.f32.mxu1 %vm6141_vm8, %v6142_v1  ;;  %v5378_v2 = vpack.c.bf16 %v1821_v61, %v1820_v60  ;;  %v1822_v4 = vld [vmem:[#allocation10 + $0xa0] sm:$0xff]  ;;  %p6583_p3 = scmp.lt.s32.totalorder %s2319_s15, 0  ;;  %p6587_p7 = scmp.gt.s32.totalorder %s2321_s25, 40 }
 0x3ae   : > { %5376 = vmatpush3.bf16.msra.mxu0 %v5375_v58  ;;  %v5402_v3 = vpack.c.bf16 %v1801_v0, %v1800_v63  ;;  %v1823_v5 = vld [vmem:[#allocation10 + $0xa8] sm:$0xff]  ;;  %v1802_v6 = vld [vmem:[#allocation10 + $0x20] sm:$0xff]  ;;  %v1824_v10 = vld [vmem:[#allocation10 + $0xb0] sm:$0xff] }
 0x3af   : > { %5400 = vmatpush3.bf16.msra.mxu1 %v5399_v62  ;;  %5377 = vmatprep.subr.bf16.mxu0 %v6140_v57  ;;  %v1803_v7 = vld [vmem:[#allocation10 + $0x28] sm:$0xff]  ;;  %v5381_v8 = vpack.c.bf16 %v1823_v5, %v1822_v4  ;;  %v1825_v11 = vld [vmem:[#allocation10 + $0xb8] sm:$0xff]  ;;  %v1804_v12 = vld [vmem:[#allocation10 + $0x30] sm:$0xff]  ;;  %p2323_p5 = por %p6587_p7, %p6583_p3 }
 0x3b0   : > { %5401 = vmatprep.subr.bf16.mxu1 %v6140_v57  ;;  %v5405_v9 = vpack.c.bf16 %v1803_v7, %v1802_v6  ;;  %v1805_v13 = vld [vmem:[#allocation10 + $0x38] sm:$0xff]  ;;  %v5384_v14 = vpack.c.bf16 %v1825_v11, %v1824_v10  ;;  %v1826_v16 = vld [vmem:[#allocation10 + $0xc0] sm:$0xff]  ;;  %v1827_v17 = vld [vmem:[#allocation10 + $0xc8] sm:$0xff] }
 0x3b1   : > { %v5408_v15 = vpack.c.bf16 %v1805_v13, %v1804_v12  ;;  %v1806_v19 = vld [vmem:[#allocation10 + $0x40] sm:$0xff]  ;;  %v1807_v20 = vld [vmem:[#allocation10 + $0x48] sm:$0xff]  ;;  %v5387_v21 = vpack.c.bf16 %v1827_v17, %v1826_v16  ;;  %v1828_v23 = vld [vmem:[#allocation10 + $0xd0] sm:$0xff] }
 0x3b2   : > { %5379 = vmatpush3.bf16.msra.mxu0 %v5378_v2  ;;  %v5411_v22 = vpack.c.bf16 %v1807_v20, %v1806_v19  ;;  %v1829_v24 = vld [vmem:[#allocation10 + $0xd8] sm:$0xff]  ;;  %v1808_v25 = vld [vmem:[#allocation10 + $0x50] sm:$0xff]  ;;  %v1830_v32 = vld [vmem:[#allocation10 + $0xe0] sm:$0xff] }
 0x3b3   : > { %5403 = vmatpush3.bf16.msra.mxu1 %v5402_v3  ;;  %5380 = vmatprep.subr.bf16.mxu0 %v6140_v57  ;;  %v1809_v26 = vld [vmem:[#allocation10 + $0x58] sm:$0xff]  ;;  %v5390_v27 = vpack.c.bf16 %v1829_v24, %v1828_v23  ;;  %v1831_v33 = vld [vmem:[#allocation10 + $0xe8] sm:$0xff]  ;;  %v1810_v34 = vld [vmem:[#allocation10 + $0x60] sm:$0xff] }
 0x3b4   : > { %5404 = vmatprep.subr.bf16.mxu1 %v6140_v57  ;;  %v5414_v31 = vpack.c.bf16 %v1809_v26, %v1808_v25  ;;  %v1811_v35 = vld [vmem:[#allocation10 + $0x68] sm:$0xff]  ;;  %v5393_v36 = vpack.c.bf16 %v1831_v33, %v1830_v32  ;;  %v1832_v38 = vld [vmem:[#allocation10 + $0xf0] sm:$0xff]  ;;  %v1833_v39 = vld [vmem:[#allocation10 + $0xf8] sm:$0xff] }
 0x3b5   : > { %v5417_v37 = vpack.c.bf16 %v1811_v35, %v1810_v34  ;;  %v1812_v40 = vld [vmem:[#allocation10 + $0x70] sm:$0xff]  ;;  %v1813_v41 = vld [vmem:[#allocation10 + $0x78] sm:$0xff]  ;;  %v5396_v42 = vpack.c.bf16 %v1833_v39, %v1832_v38  ;;  %v1998_v44 = vld [vmem:[#allocation10 + $0x100] sm:$0xff] }
 0x3b6   : > { %5382 = vmatpush3.bf16.msra.mxu0 %v5381_v8  ;;  %v5420_v43 = vpack.c.bf16 %v1813_v41, %v1812_v40  ;;  %v1999_v45 = vld [vmem:[#allocation10 + $0x108] sm:$0xff]  ;;  %v2101_v46 = vld [vmem:[#allocation10 + $0x180] sm:$0xff]  ;;  %v1814_v48 = vld [vmem:[#allocation4 + $0x1] sm:$0xff] }
 0x3b7   : > { %5406 = vmatpush3.bf16.msra.mxu1 %v5405_v9  ;;  %5383 = vmatprep.subr.bf16.mxu0 %v6140_v57  ;;  %v2102_v47 = vld [vmem:[#allocation10 + $0x188] sm:$0xff]  ;;  %v5423_v49 = vpack.c.bf16 %v1999_v45, %v1998_v44  ;;  %v1795_v50 = vld [vmem:[#allocation4] sm:$0xff]  ;;  %v2001_v30 = vld [vmem:[#allocation10 + $0x118] sm:$0xff] }
 0x3b8   : > { %5407 = vmatprep.subr.bf16.mxu1 %v6140_v57  ;;  %v5447_v51 = vpack.c.bf16 %v2102_v47, %v2101_v46  ;;  %v2000_v52 = vld [vmem:[#allocation10 + $0x110] sm:$0xff]  ;;  %v2104_v54 = vld [vmem:[#allocation10 + $0x198] sm:$0xff]  ;;  %v2002_v59 = vld [vmem:[#allocation10 + $0x120] sm:$0xff] }
 0x3b9   : > { %v2103_v53 = vld [vmem:[#allocation10 + $0x190] sm:$0xff]  ;;  %v5426_v55 = vpack.c.bf16 %v2001_v30, %v2000_v52  ;;  %v1815_v56 = vld [vmem:[#allocation4 + $0x9] sm:$0xff]  ;;  %v2003_v60 = vld [vmem:[#allocation10 + $0x128] sm:$0xff] }
 0x3ba   : > { %5385 = vmatpush3.bf16.msra.mxu0 %v5384_v14  ;;  %v5450_v58 = vpack.c.bf16 %v2104_v54, %v2103_v53  ;;  %v1796_v61 = vld [vmem:[#allocation4 + $0x8] sm:$0xff]  ;;  %v2105_v62 = vld [vmem:[#allocation10 + $0x1a0] sm:$0xff]  ;;  %v2106_v63 = vld [vmem:[#allocation10 + $0x1a8] sm:$0xff]  ;;  %v5429_v0 = vpack.c.bf16 %v2003_v60, %v2002_v59 }
 0x3bb   : > { %5409 = vmatpush3.bf16.msra.mxu1 %v5408_v15  ;;  %5386 = vmatprep.subr.bf16.mxu0 %v6140_v57  ;;  %v1816_v2 = vld [vmem:[#allocation4 + $0x11] sm:$0xff]  ;;  %v5453_v3 = vpack.c.bf16 %v2106_v63, %v2105_v62  ;;  %v2004_v4 = vld [vmem:[#allocation10 + $0x130] sm:$0xff]  ;;  %v2005_v5 = vld [vmem:[#allocation10 + $0x138] sm:$0xff] }
 0x3bc   : > { %5410 = vmatprep.subr.bf16.mxu1 %v6140_v57  ;;  %v1797_v6 = vld [vmem:[#allocation4 + $0x10] sm:$0xff]  ;;  %v2107_v7 = vld [vmem:[#allocation10 + $0x1b0] sm:$0xff]  ;;  %v2108_v8 = vld [vmem:[#allocation10 + $0x1b8] sm:$0xff]  ;;  %v5432_v9 = vpack.c.bf16 %v2005_v5, %v2004_v4 }
 0x3bd   : > { %v5456_v10 = vpack.c.bf16 %v2108_v8, %v2107_v7  ;;  %v2006_v11 = vld [vmem:[#allocation10 + $0x140] sm:$0xff]  ;;  %v2007_v12 = vld [vmem:[#allocation10 + $0x148] sm:$0xff]  ;;  %v2008_v17 = vld [vmem:[#allocation10 + $0x150] sm:$0xff] }
 0x3be   : > { %5388 = vmatpush3.bf16.msra.mxu0 %v5387_v21  ;;  %v2109_v13 = vld [vmem:[#allocation10 + $0x1c0] sm:$0xff]  ;;  %v2110_v14 = vld [vmem:[#allocation10 + $0x1c8] sm:$0xff]  ;;  %v5435_v15 = vpack.c.bf16 %v2007_v12, %v2006_v11  ;;  %v2009_v19 = vld [vmem:[#allocation10 + $0x158] sm:$0xff] }
 0x3bf   : > { %5412 = vmatpush3.bf16.msra.mxu1 %v5411_v22  ;;  %5389 = vmatprep.subr.bf16.mxu0 %v6140_v57  ;;  %v5459_v16 = vpack.c.bf16 %v2110_v14, %v2109_v13  ;;  %v2111_v20 = vld [vmem:[#allocation10 + $0x1d0] sm:$0xff]  ;;  %v2112_v21 = vld [vmem:[#allocation10 + $0x1d8] sm:$0xff]  ;;  %v5438_v22 = vpack.c.bf16 %v2009_v19, %v2008_v17  ;;  %v2010_v24 = vld [vmem:[#allocation10 + $0x160] sm:$0xff] }
 0x3c0   : > { %5413 = vmatprep.subr.bf16.mxu1 %v6140_v57  ;;  %v5462_v23 = vpack.c.bf16 %v2112_v21, %v2111_v20  ;;  %v2011_v25 = vld [vmem:[#allocation10 + $0x168] sm:$0xff]  ;;  %v2113_v26 = vld [vmem:[#allocation10 + $0x1e0] sm:$0xff]  ;;  %v2012_v33 = vld [vmem:[#allocation10 + $0x170] sm:$0xff] }
 0x3c1   : > { %v2013_v34 = vld [vmem:[#allocation10 + $0x178] sm:$0xff]  ;;  %v2115_v35 = vld [vmem:[#allocation10 + $0x1f0] sm:$0xff]  ;;  %v2204_v39 = vld [vmem:[#allocation10 + $0x200] sm:$0xff] }
 0x3c2   : > { %5391 = vmatpush3.bf16.msra.mxu0 %v5390_v27  ;;  %v2114_v27 = vld [vmem:[#allocation10 + $0x1e8] sm:$0xff]  ;;  %v1994_v41 = vld [vmem:[#allocation4 + $0x2] sm:$0xff]  ;;  %v1995_v46 = vld [vmem:[#allocation4 + $0xa] sm:$0xff] }
 0x3c3   : > { %5415 = vmatpush3.bf16.msra.mxu1 %v5414_v31  ;;  %5392 = vmatprep.subr.bf16.mxu0 %v6140_v57  ;;  %v5441_v31 = vpack.c.bf16 %v2011_v25, %v2010_v24  ;;  %v5465_v32 = vpack.c.bf16 %v2114_v27, %v2113_v26  ;;  %v2205_v40 = vld [vmem:[#allocation10 + $0x208] sm:$0xff]  ;;  %v2206_v44 = vld [vmem:[#allocation10 + $0x210] sm:$0xff]  ;;  %v2207_v45 = vld [vmem:[#allocation10 + $0x218] sm:$0xff] }
 0x3c4   : > { %5416 = vmatprep.subr.bf16.mxu1 %v6140_v57  ;;  %v5474_v47 = vpack.c.bf16 %v2207_v45, %v2206_v44  ;;  %v2099_v30 = vld [vmem:[#allocation4 + $0x13] sm:$0xff]  ;;  %v2210_v53 = vld [vmem:[#allocation10 + $0x230] sm:$0xff]  ;;  %v2211_v54 = vld [vmem:[#allocation10 + $0x238] sm:$0xff] }
 0x3c5   : > { %v2214_v60 = vld [vmem:[#allocation10 + $0x250] sm:$0xff]  ;;  %v2216_v63 = vld [vmem:[#allocation10 + $0x260] sm:$0xff]  ;;  %v2219_v4 = vld [vmem:[#allocation10 + $0x278] sm:$0xff] }
 0x3c6   : > { %5394 = vmatpush3.bf16.msra.mxu0 %v5393_v36  ;;  %v2116_v36 = vld [vmem:[#allocation10 + $0x1f8] sm:$0xff]  ;;  %v2202_v8 = vld [vmem:[#allocation4 + $0x14] sm:$0xff] }
 0x3c7   : > { %5418 = vmatpush3.bf16.msra.mxu1 %v5417_v37  ;;  %5395 = vmatprep.subr.bf16.mxu0 %v6140_v57  ;;  %v5444_v37 = vpack.c.bf16 %v2013_v34, %v2012_v33  ;;  %v5468_v38 = vpack.c.bf16 %v2116_v36, %v2115_v35  ;;  %v2201_v7 = vld [vmem:[#allocation4 + $0xc] sm:$0xff] }
 0x3c8   : > { %5419 = vmatprep.subr.bf16.mxu1 %v6140_v57 }
 0x3ca   : > { %5397 = vmatpush3.bf16.msra.mxu0 %v5396_v42  ;;  %v5471_v42 = vpack.c.bf16 %v2205_v40, %v2204_v39 }
 0x3cb   : > { %5421 = vmatpush3.bf16.msra.mxu1 %v5420_v43  ;;  %5422 = vmatprep.subr.bf16.mxu0 %v6140_v57  ;;  %v2097_v43 = vld [vmem:[#allocation4 + $0x3] sm:$0xff] }
 0x3cc   : > { %5446 = vmatprep.subr.bf16.mxu1 %v6140_v57 }
 0x3cd   : > { %4502 = vmatmul.mubr.f32.vlgmr.msra.gmra.mrb[4].mxu0 %v1814_v48  ;;  %v2098_v48 = vld [vmem:[#allocation4 + $0xb] sm:$0xff] }
 0x3ce   : > { %4543 = vmatmul.mubr.f32.vlgmr.msra.gmra.mrb[8].mxu1 %v1795_v50  ;;  %5424 = vmatpush3.bf16.msra.mxu0 %v5423_v49  ;;  %v2208_v49 = vld [vmem:[#allocation10 + $0x220] sm:$0xff]  ;;  %v2209_v50 = vld [vmem:[#allocation10 + $0x228] sm:$0xff] }
 0x3cf   : > { %5448 = vmatpush3.bf16.msra.mxu1 %v5447_v51  ;;  %5425 = vmatprep.subr.bf16.mxu0 %v6140_v57  ;;  %v1996_v51 = vld [vmem:[#allocation4 + $0x12] sm:$0xff]  ;;  %v5477_v52 = vpack.c.bf16 %v2209_v50, %v2208_v49 }
 0x3d0   : > { %5449 = vmatprep.subr.bf16.mxu1 %v6140_v57  ;;  %4504 = vmatprep.mubr.msk.f32.mxu0 %vm6141_vm8, %v6142_v1 }
 0x3d1   : > { %4505 = vmatmul.mubr.f32.gmra.mrb[6].mxu0 %v1815_v56  ;;  %4545 = vmatprep.mubr.msk.f32.mxu1 %vm6141_vm8, %v6142_v1  ;;  %v2212_v56 = vld [vmem:[#allocation10 + $0x240] sm:$0xff] }
 0x3d2   : > { %5427 = vmatpush3.bf16.msra.mxu0 %v5426_v55  ;;  %4546 = vmatmul.mubr.f32.gmra.mrb[10].mxu1 %v1796_v61  ;;  %v5480_v55 = vpack.c.bf16 %v2211_v54, %v2210_v53  ;;  %v2215_v61 = vld [vmem:[#allocation10 + $0x258] sm:$0xff] }
 0x3d3   : > { %5451 = vmatpush3.bf16.msra.mxu1 %v5450_v58  ;;  %5428 = vmatprep.subr.bf16.mxu0 %v6140_v57  ;;  %v2213_v58 = vld [vmem:[#allocation10 + $0x248] sm:$0xff]  ;;  %v5486_v62 = vpack.c.bf16 %v2215_v61, %v2214_v60 }
 0x3d4   : > { %5452 = vmatprep.subr.bf16.mxu1 %v6140_v57  ;;  %4507 = vmatprep.mubr.msk.f32.mxu0 %vm6141_vm8, %v6142_v1  ;;  %v5483_v59 = vpack.c.bf16 %v2213_v58, %v2212_v56 }
 0x3d5   : > { %4508 = vmatmul.mubr.f32.gmra.mrb[8].mxu0 %v1816_v2  ;;  %4548 = vmatprep.mubr.msk.f32.mxu1 %vm6141_vm8, %v6142_v1 }
 0x3d6   : > { %5430 = vmatpush3.bf16.msra.mxu0 %v5429_v0  ;;  %4549 = vmatmul.mubr.f32.gmra.mrb[12].mxu1 %v1797_v6  ;;  %v2217_v0 = vld [vmem:[#allocation10 + $0x268] sm:$0xff]  ;;  %v2200_v6 = vld [vmem:[#allocation4 + $0x4] sm:$0xff] }
 0x3d7   : > { %5454 = vmatpush3.bf16.msra.mxu1 %v5453_v3  ;;  %5431 = vmatprep.subr.bf16.mxu0 %v6140_v57  ;;  %v5489_v2 = vpack.c.bf16 %v2217_v0, %v2216_v63  ;;  %v2218_v3 = vld [vmem:[#allocation10 + $0x270] sm:$0xff] }
 0x3d8   : > { %5455 = vmatprep.subr.bf16.mxu1 %v6140_v57  ;;  %4583 = vmatprep.mubr.msk.f32.mxu0 %vm6141_vm8, %v6142_v1  ;;  %v5492_v5 = vpack.c.bf16 %v2219_v4, %v2218_v3 }
 0x3d9   : > { %4624 = vmatprep.mubr.msk.f32.mxu1 %vm6141_vm8, %v6142_v1 }
 0x3da   : > { %5433 = vmatpush3.bf16.msra.mxu0 %v5432_v9 }
 0x3db   : > { %5457 = vmatpush3.bf16.msra.mxu1 %v5456_v10  ;;  %5434 = vmatprep.subr.bf16.mxu0 %v6140_v57 }
 0x3dc   : > { %5458 = vmatprep.subr.bf16.mxu1 %v6140_v57 }
 0x3de   : > { %5436 = vmatpush3.bf16.msra.mxu0 %v5435_v15 }
 0x3df   : > { %5460 = vmatpush3.bf16.msra.mxu1 %v5459_v16  ;;  %5437 = vmatprep.subr.bf16.mxu0 %v6140_v57 }
 0x3e0   : > { %5461 = vmatprep.subr.bf16.mxu1 %v6140_v57 }
 0x3e2   : > { %5439 = vmatpush3.bf16.msra.mxu0 %v5438_v22 }
 0x3e3   : > { %5463 = vmatpush3.bf16.msra.mxu1 %v5462_v23  ;;  %5440 = vmatprep.subr.bf16.mxu0 %v6140_v57 }
 0x3e4   : > { %5464 = vmatprep.subr.bf16.mxu1 %v6140_v57 }
 0x3e6   : > { %5442 = vmatpush3.bf16.msra.mxu0 %v5441_v31 }
 0x3e7   : > { %5466 = vmatpush3.bf16.msra.mxu1 %v5465_v32  ;;  %5443 = vmatprep.subr.bf16.mxu0 %v6140_v57 }
 0x3e8   : > { %5467 = vmatprep.subr.bf16.mxu1 %v6140_v57 }
 0x3ea   : > { %5445 = vmatpush3.bf16.msra.mxu0 %v5444_v37 }
 0x3eb   : > { %5469 = vmatpush3.bf16.msra.mxu1 %v5468_v38  ;;  %5470 = vmatprep.subr.bf16.mxu0 %v6140_v57 }
 0x3ed   : > { %4584 = vmatmul.mubr.f32.vlgmr.msra.gmra.mrb[10].mxu0 %v1994_v41 }
 0x3ee   : > { %5472 = vmatpush3.bf16.msra.mxu0 %v5471_v42  ;;  %4625 = vmatmul.mubr.f32.vlgmr.msra.gmra.mrb[14].mxu1 %v2097_v43 }
 0x3ef   : > { %4586 = vmatprep.mubr.msk.f32.mxu0 %vm6141_vm8, %v6142_v1  ;;  %5473 = vmatprep.subr.bf16.mxu0 %v6140_v57 }
 0x3f0   : > { %4627 = vmatprep.mubr.msk.f32.mxu1 %vm6141_vm8, %v6142_v1 }
 0x3f1   : > { %4587 = vmatmul.mubr.f32.gmra.mrb[12].mxu0 %v1995_v46 }
 0x3f2   : > { %5475 = vmatpush3.bf16.msra.mxu0 %v5474_v47  ;;  %4628 = vmatmul.mubr.f32.gmra.mrb[16].mxu1 %v2098_v48  ;;  %v3602_v47 = vld [vmem:[%s6735_s8] ss:$0 sm:$0xff] }
 0x3f3   : > { %4589 = vmatprep.mubr.msk.f32.mxu0 %vm6141_vm8, %v6142_v1  ;;  %5476 = vmatprep.subr.bf16.mxu0 %v6140_v57 }
 0x3f4   : > { %4630 = vmatprep.mubr.msk.f32.mxu1 %vm6141_vm8, %v6142_v1 }
 0x3f5   : > { %4590 = vmatmul.mubr.f32.gmra.mrb[14].mxu0 %v1996_v51 }
 0x3f6   : > { %5478 = vmatpush3.bf16.msra.mxu0 %v5477_v52  ;;  %4631 = vmatmul.mubr.f32.gmra.mrb[18].mxu1 %v2099_v30 }
 0x3f7   : > { %5479 = vmatprep.subr.bf16.mxu0 %v6140_v57  ;;  %4665 = vmatprep.mubr.msk.f32.mxu0 %vm6141_vm8, %v6142_v1 }
 0x3fa   : > { %5481 = vmatpush3.bf16.msra.mxu0 %v5480_v55 }
 0x3fb   : > { %5482 = vmatprep.subr.bf16.mxu0 %v6140_v57 }
 0x3fe   : > { %5484 = vmatpush3.bf16.msra.mxu0 %v5483_v59 }
 0x3ff   : > { %5485 = vmatprep.subr.bf16.mxu0 %v6140_v57 }
 0x402   : > { %5487 = vmatpush3.bf16.msra.mxu0 %v5486_v62  ;;  %v2327_v62 = vstv (%p2323_p5), %s2319_s15 }
 0x403   : > { %5488 = vmatprep.subr.bf16.mxu0 %v6140_v57  ;;  %v2328_v63 = vadd.s32 (%p2323_p5), %v2327_v62, %v6419_v18  ;;  %v2329_v0 = vadd.s32 (%p2323_p5), %v2327_v62, %v6423_v28 }
 0x405   : > { %vm2331_vm9 = vcmp.ge.s32.totalorder (%p2323_p5), %v2328_v63, 0  ;;  %vm2334_vm10 = vcmp.lt.s32.totalorder (%p2323_p5), %v2328_v63, 40  ;;  %vm2332_vm11 = vcmp.ge.s32.totalorder (%p2323_p5), %v2329_v0, 0  ;;  %vm2335_vm12 = vcmp.lt.s32.totalorder (%p2323_p5), %v2329_v0, 40 }
 0x406   : > { %5490 = vmatpush3.bf16.msra.mxu0 %v5489_v2  ;;  %v2330_v2 = vadd.s32 (%p2323_p5), %v2327_v62, %v6426_v29  ;;  %vm2337_vm13 = vmand (%p2323_p5), %vm2331_vm9, %vm2334_vm10 }
 0x407   : > { %5491 = vmatprep.subr.bf16.mxu0 %v6140_v57  ;;  %vm2338_vm0 = vmand (%p2323_p5), %vm2332_vm11, %vm2335_vm12 }
 0x408   : > { %vm2333_vm14 = vcmp.ge.s32.totalorder (%p2323_p5), %v2330_v2, 0  ;;  %vm2336_vm15 = vcmp.lt.s32.totalorder (%p2323_p5), %v2330_v2, 40 }
 0x409   : > { %vm2339_vm1 = vmand (%p2323_p5), %vm2333_vm14, %vm2336_vm15 }
 0x40a   : > { %5493 = vmatpush3.bf16.msra.mxu0 %v5492_v5 }
 0x40d   : > { %4666 = vmatmul.mubr.f32.vlgmr.msra.gmra.mrb[16].mxu0 %v2200_v6 }
 0x40e   : > { %4668 = vmatprep.mubr.msk.f32.mxu0 %vm6141_vm8, %v6142_v1 }
 0x411   : > { %4669 = vmatmul.mubr.f32.gmra.mrb[18].mxu0 %v2201_v7 }
 0x412   : > { %4671 = vmatprep.mubr.msk.f32.mxu0 %vm6141_vm8, %v6142_v1 }
 0x415   : > { %4672 = vmatmul.mubr.f32.gmra.mrb[20].mxu0 %v2202_v8 }
 0x4a0   : > { %v1900_v9 = vpop.f32.mrb[4].mxu0 }
 0x4a1   : > { %v4503_v10 = vpop.f32.mrb[5].mxu0  ;;  %v1980_v11 = vpop.f32.mrb[8].mxu1 }
 0x4a2   : > { %v1981_v12 = vadd.f32 %v1980_v11, %v1900_v9  ;;  %v4544_v13 = vpop.f32.mrb[9].mxu1 }
 0x4a4   : > { %v1905_v14 = vpop.f32.mrb[6].mxu0 }
 0x4a5   : > { %v4506_v15 = vpop.f32.mrb[7].mxu0  ;;  %v1985_v16 = vpop.f32.mrb[10].mxu1 }
 0x4a6   : > { %v1986_v17 = vadd.f32 %v1985_v16, %v1905_v14  ;;  %v4547_v19 = vpop.f32.mrb[11].mxu1 }
 0x4a8   : > { %v1910_v20 = vpop.f32.mrb[8].mxu0 }
 0x4a9   : > { %v4509_v21 = vpop.f32.mrb[9].mxu0  ;;  %v1990_v22 = vpop.f32.mrb[12].mxu1 }
 0x4aa   : > { %v1991_v23 = vadd.f32 %v1990_v22, %v1910_v20  ;;  %v4550_v24 = vpop.f32.mrb[13].mxu1 }
 0x4c0   : > { %v2080_v25 = vpop.f32.mrb[10].mxu0 }
 0x4c1   : > { %v2094_v26 = vadd.f32 %v2080_v25, %v1981_v12  ;;  %v4585_v27 = vpop.f32.mrb[11].mxu0  ;;  %v2183_v31 = vpop.f32.mrb[14].mxu1 }
 0x4c2   : > { %v4626_v32 = vpop.f32.mrb[15].mxu1 }
 0x4c3   : > { %v2197_v33 = vadd.f32 %v2183_v31, %v2094_v26 }
 0x4c4   : > { %v2085_v34 = vpop.f32.mrb[12].mxu0 }
 0x4c5   : > { %v2095_v35 = vadd.f32 %v2085_v34, %v1986_v17  ;;  %v2188_v36 = vpop.f32.mrb[16].mxu1  ;;  %v4588_v37 = vpop.f32.mrb[13].mxu0 }
 0x4c6   : > { %v4629_v38 = vpop.f32.mrb[17].mxu1 }
 0x4c7   : > { %v2198_v39 = vadd.f32 %v2188_v36, %v2095_v35 }
 0x4c8   : > { %v2090_v40 = vpop.f32.mrb[14].mxu0 }
 0x4c9   : > { %v2096_v41 = vadd.f32 %v2090_v40, %v1991_v23  ;;  %v2193_v42 = vpop.f32.mrb[18].mxu1  ;;  %v4591_v43 = vpop.f32.mrb[15].mxu0 }
 0x4ca   : > { %v4632_v44 = vpop.f32.mrb[19].mxu1 }
 0x4cb   : > { %v2199_v45 = vadd.f32 %v2193_v42, %v2096_v41 }
 0x4e0   : > { %v2286_v46 = vpop.f32.mrb[16].mxu0 }
 0x4e1   : > { %v2300_v48 = vadd.f32 %v2286_v46, %v2197_v33  ;;  %v4667_v49 = vpop.f32.mrb[17].mxu0 }
 0x4e3   : > { %v2310_v50 = vadd.f32 %v3602_v47, %v2300_v48 }
 0x4e4   : > { %v2291_v51 = vpop.f32.mrb[18].mxu0 }
 0x4e5   : > { %5927 = vtanh.f32 %v2310_v50  ;;  %v2301_v52 = vadd.f32 %v2291_v51, %v2198_v39  ;;  %v4670_v30 = vpop.f32.mrb[19].mxu0 }
 0x4e7   : > { %v2311_v53 = vadd.f32 %v3602_v47, %v2301_v52 }
 0x4e8   : > { %v2296_v54 = vpop.f32.mrb[20].mxu0 }
 0x4e9   : > { %5929 = vtanh.f32 %v2311_v53  ;;  %v2302_v55 = vadd.f32 %v2296_v54, %v2199_v45  ;;  %v4673_v56 = vpop.f32.mrb[21].mxu0 }
 0x4eb   : > { %v2312_v58 = vadd.f32 %v3602_v47, %v2302_v55 }
 0x4ed   : > { %5931 = vtanh.f32 %v2312_v58 }
 0x4ef   : > { %v5928_v59 = vpop.eup %5927 }
 0x4f0   : > { %2316 = vst [vmem:[#allocation3] sm:$0xff] %v5928_v59 }
 0x4f2   : > { %2326 = sbr.rel (!%p2323_p5) target bundleno = 1282 (0x502), region = 168 }
 0x4f3   : > { %v5930_v60 = vpop.eup %5929 }
 0x4f4   : > { %2317 = vst [vmem:[#allocation3 + $0x8] sm:$0xff] %v5930_v60 }
 0x4f7   : > { %v5932_v61 = vpop.eup %5931  ;;  %v2340_v3 = vld [vmem:[#allocation3] sm:$0xff] (%p2323_p5) }
 0x4f8   : > { %2318 = vst [vmem:[#allocation3 + $0x10] sm:$0xff] %v5932_v61  ;;  %v2349_v6 = vsel (%p2323_p5), %vm2337_vm13, %v2340_v3, 0.0 }
 0x4f9   : > { %2352 = vst [vmem:[#allocation3] sm:$0xff] %v2349_v6 }
 0x4fb   : > { %v2341_v4 = vld [vmem:[#allocation3 + $0x8] sm:$0xff] }
 0x4fc   : > { %v2350_v7 = vsel %vm2338_vm0, %v2341_v4, 0.0 }
 0x4fd   : > { %2353 = vst [vmem:[#allocation3 + $0x8] sm:$0xff] %v2350_v7 }
 0x4ff   : > { %v2342_v5 = vld [vmem:[#allocation3 + $0x10] sm:$0xff] }
 0x500   : > { %v2351_v8 = vsel %vm2339_vm1, %v2342_v5, 0.0 }
 0x501   : > { %2354 = vst [vmem:[#allocation3 + $0x10] sm:$0xff] %v2351_v8 }
 0x502 PF: > { %5494 = vmatprep.subr.bf16.mxu1 %v6140_v57  ;;  %v2378_v9 = vld [vmem:[#allocation11 + $0x80] sm:$0xff]  ;;  %v2379_v10 = vld [vmem:[#allocation11 + $0x88] sm:$0xff]  ;;  %5518 = vmatprep.subr.bf16.mxu0 %v6140_v57  ;;  %v2380_v14 = vld [vmem:[#allocation11 + $0x90] sm:$0xff]  ;;  %s2879_s4 = sadd.s32 4294967294, %s6409_s2  ;;  %s2881_s24 = sadd.s32 18, %s6409_s2 }
 0x503   : > { %v2358_v11 = vld [vmem:[#allocation11] sm:$0xff]  ;;  %v5495_v12 = vpack.c.bf16 %v2379_v10, %v2378_v9  ;;  %v2359_v13 = vld [vmem:[#allocation11 + $0x8] sm:$0xff]  ;;  %v2381_v15 = vld [vmem:[#allocation11 + $0x98] sm:$0xff]  ;;  %4706 = vmatprep.mubr.msk.f32.mxu1 %vm6141_vm8, %v6142_v1  ;;  %4747 = vmatprep.mubr.msk.f32.mxu0 %vm6141_vm8, %v6142_v1  ;;  %p6682_p8 = scmp.lt.s32.totalorder %s2879_s4, 0  ;;  %p6686_p9 = scmp.gt.s32.totalorder %s2881_s24, 40 }
 0x504   : > { %v5519_v16 = vpack.c.bf16 %v2359_v13, %v2358_v11  ;;  %v2360_v17 = vld [vmem:[#allocation11 + $0x10] sm:$0xff]  ;;  %v2361_v19 = vld [vmem:[#allocation11 + $0x18] sm:$0xff]  ;;  %v5498_v20 = vpack.c.bf16 %v2381_v15, %v2380_v14  ;;  %v2382_v22 = vld [vmem:[#allocation11 + $0xa0] sm:$0xff]  ;;  %s6770_s22 = sld [smem:[#allocation24_spill]] }
 0x505   : > { %5496 = vmatpush3.bf16.msra.mxu1 %v5495_v12  ;;  %v5522_v21 = vpack.c.bf16 %v2361_v19, %v2360_v17  ;;  %v2383_v23 = vld [vmem:[#allocation11 + $0xa8] sm:$0xff]  ;;  %v2362_v24 = vld [vmem:[#allocation11 + $0x20] sm:$0xff]  ;;  %v2384_v31 = vld [vmem:[#allocation11 + $0xb0] sm:$0xff]  ;;  %p2883_p10 = por %p6686_p9, %p6682_p8 }
 0x506   : > { %5520 = vmatpush3.bf16.msra.mxu0 %v5519_v16  ;;  %5497 = vmatprep.subr.bf16.mxu1 %v6140_v57  ;;  %v2363_v25 = vld [vmem:[#allocation11 + $0x28] sm:$0xff]  ;;  %v5501_v26 = vpack.c.bf16 %v2383_v23, %v2382_v22  ;;  %v2385_v32 = vld [vmem:[#allocation11 + $0xb8] sm:$0xff]  ;;  %v2364_v33 = vld [vmem:[#allocation11 + $0x30] sm:$0xff] }
 0x507   : > { %5521 = vmatprep.subr.bf16.mxu0 %v6140_v57  ;;  %v5525_v27 = vpack.c.bf16 %v2363_v25, %v2362_v24  ;;  %v2365_v34 = vld [vmem:[#allocation11 + $0x38] sm:$0xff]  ;;  %v5504_v35 = vpack.c.bf16 %v2385_v32, %v2384_v31  ;;  %v2386_v37 = vld [vmem:[#allocation11 + $0xc0] sm:$0xff]  ;;  %v2387_v38 = vld [vmem:[#allocation11 + $0xc8] sm:$0xff] }
 0x508   : > { %v5528_v36 = vpack.c.bf16 %v2365_v34, %v2364_v33  ;;  %v2366_v39 = vld [vmem:[#allocation11 + $0x40] sm:$0xff]  ;;  %v2367_v40 = vld [vmem:[#allocation11 + $0x48] sm:$0xff]  ;;  %v5507_v41 = vpack.c.bf16 %v2387_v38, %v2386_v37  ;;  %v2388_v43 = vld [vmem:[#allocation11 + $0xd0] sm:$0xff] }
 0x509   : > { %5499 = vmatpush3.bf16.msra.mxu1 %v5498_v20  ;;  %v5531_v42 = vpack.c.bf16 %v2367_v40, %v2366_v39  ;;  %v2389_v44 = vld [vmem:[#allocation11 + $0xd8] sm:$0xff]  ;;  %v2368_v45 = vld [vmem:[#allocation11 + $0x50] sm:$0xff]  ;;  %v2390_v49 = vld [vmem:[#allocation11 + $0xe0] sm:$0xff] }
 0x50a   : > { %5523 = vmatpush3.bf16.msra.mxu0 %v5522_v21  ;;  %5500 = vmatprep.subr.bf16.mxu1 %v6140_v57  ;;  %v2369_v46 = vld [vmem:[#allocation11 + $0x58] sm:$0xff]  ;;  %v5510_v47 = vpack.c.bf16 %v2389_v44, %v2388_v43  ;;  %v2391_v50 = vld [vmem:[#allocation11 + $0xe8] sm:$0xff]  ;;  %v2370_v51 = vld [vmem:[#allocation11 + $0x60] sm:$0xff] }
 0x50b   : > { %5524 = vmatprep.subr.bf16.mxu0 %v6140_v57  ;;  %v5534_v48 = vpack.c.bf16 %v2369_v46, %v2368_v45  ;;  %v2371_v52 = vld [vmem:[#allocation11 + $0x68] sm:$0xff]  ;;  %v5513_v30 = vpack.c.bf16 %v2391_v50, %v2390_v49  ;;  %v2392_v54 = vld [vmem:[#allocation11 + $0xf0] sm:$0xff]  ;;  %v2393_v55 = vld [vmem:[#allocation11 + $0xf8] sm:$0xff] }
 0x50c   : > { %v5537_v53 = vpack.c.bf16 %v2371_v52, %v2370_v51  ;;  %v2372_v56 = vld [vmem:[#allocation11 + $0x70] sm:$0xff]  ;;  %v2373_v58 = vld [vmem:[#allocation11 + $0x78] sm:$0xff]  ;;  %v5516_v59 = vpack.c.bf16 %v2393_v55, %v2392_v54  ;;  %v2558_v61 = vld [vmem:[#allocation11 + $0x100] sm:$0xff] }
 0x50d   : > { %5502 = vmatpush3.bf16.msra.mxu1 %v5501_v26  ;;  %v5540_v60 = vpack.c.bf16 %v2373_v58, %v2372_v56  ;;  %v2559_v62 = vld [vmem:[#allocation11 + $0x108] sm:$0xff]  ;;  %v2661_v63 = vld [vmem:[#allocation11 + $0x180] sm:$0xff]  ;;  %v2560_v6 = vld [vmem:[#allocation11 + $0x110] sm:$0xff] }
 0x50e   : > { %5526 = vmatpush3.bf16.msra.mxu0 %v5525_v27  ;;  %5503 = vmatprep.subr.bf16.mxu1 %v6140_v57  ;;  %v2662_v0 = vld [vmem:[#allocation11 + $0x188] sm:$0xff]  ;;  %v5543_v3 = vpack.c.bf16 %v2559_v62, %v2558_v61  ;;  %v2355_v4 = vld [vmem:[#allocation3] sm:$0xff]  ;;  %v2561_v7 = vld [vmem:[#allocation11 + $0x118] sm:$0xff] }
 0x50f   : > { %5527 = vmatprep.subr.bf16.mxu0 %v6140_v57  ;;  %v2374_v2 = vld [vmem:[#allocation3 + $0x1] sm:$0xff]  ;;  %v5567_v5 = vpack.c.bf16 %v2662_v0, %v2661_v63  ;;  %v2663_v8 = vld [vmem:[#allocation11 + $0x190] sm:$0xff]  ;;  %v2664_v9 = vld [vmem:[#allocation11 + $0x198] sm:$0xff]  ;;  %v5546_v10 = vpack.c.bf16 %v2561_v7, %v2560_v6 }
 0x510   : > { %v2375_v11 = vld [vmem:[#allocation3 + $0x9] sm:$0xff]  ;;  %v5570_v12 = vpack.c.bf16 %v2664_v9, %v2663_v8  ;;  %v2562_v13 = vld [vmem:[#allocation11 + $0x120] sm:$0xff]  ;;  %v2376_v20 = vld [vmem:[#allocation3 + $0x11] sm:$0xff] }
 0x511   : > { %5505 = vmatpush3.bf16.msra.mxu1 %v5504_v35  ;;  %v2563_v14 = vld [vmem:[#allocation11 + $0x128] sm:$0xff]  ;;  %v2665_v16 = vld [vmem:[#allocation11 + $0x1a0] sm:$0xff]  ;;  %v2564_v22 = vld [vmem:[#allocation11 + $0x130] sm:$0xff] }
 0x512   : > { %5529 = vmatpush3.bf16.msra.mxu0 %v5528_v36  ;;  %5506 = vmatprep.subr.bf16.mxu1 %v6140_v57  ;;  %v2356_v15 = vld [vmem:[#allocation3 + $0x8] sm:$0xff]  ;;  %v5549_v19 = vpack.c.bf16 %v2563_v14, %v2562_v13  ;;  %v2565_v23 = vld [vmem:[#allocation11 + $0x138] sm:$0xff]  ;;  %v2357_v24 = vld [vmem:[#allocation3 + $0x10] sm:$0xff] }
 0x513   : > { %5530 = vmatprep.subr.bf16.mxu0 %v6140_v57  ;;  %v2666_v17 = vld [vmem:[#allocation11 + $0x1a8] sm:$0xff]  ;;  %v2667_v25 = vld [vmem:[#allocation11 + $0x1b0] sm:$0xff]  ;;  %v2668_v26 = vld [vmem:[#allocation11 + $0x1b8] sm:$0xff]  ;;  %v5552_v27 = vpack.c.bf16 %v2565_v23, %v2564_v22 }
 0x514   : > { %v5573_v21 = vpack.c.bf16 %v2666_v17, %v2665_v16  ;;  %v5576_v31 = vpack.c.bf16 %v2668_v26, %v2667_v25  ;;  %v2566_v32 = vld [vmem:[#allocation11 + $0x140] sm:$0xff]  ;;  %v2567_v33 = vld [vmem:[#allocation11 + $0x148] sm:$0xff]  ;;  %v2568_v38 = vld [vmem:[#allocation11 + $0x150] sm:$0xff] }
 0x515   : > { %5508 = vmatpush3.bf16.msra.mxu1 %v5507_v41  ;;  %v2669_v34 = vld [vmem:[#allocation11 + $0x1c0] sm:$0xff]  ;;  %v2670_v35 = vld [vmem:[#allocation11 + $0x1c8] sm:$0xff]  ;;  %v5555_v36 = vpack.c.bf16 %v2567_v33, %v2566_v32  ;;  %v2569_v39 = vld [vmem:[#allocation11 + $0x158] sm:$0xff] }
 0x516   : > { %5532 = vmatpush3.bf16.msra.mxu0 %v5531_v42  ;;  %5509 = vmatprep.subr.bf16.mxu1 %v6140_v57  ;;  %v5579_v37 = vpack.c.bf16 %v2670_v35, %v2669_v34  ;;  %v2671_v40 = vld [vmem:[#allocation11 + $0x1d0] sm:$0xff]  ;;  %v2672_v41 = vld [vmem:[#allocation11 + $0x1d8] sm:$0xff]  ;;  %v5558_v42 = vpack.c.bf16 %v2569_v39, %v2568_v38  ;;  %v2570_v44 = vld [vmem:[#allocation11 + $0x160] sm:$0xff] }
 0x517   : > { %5533 = vmatprep.subr.bf16.mxu0 %v6140_v57  ;;  %v5582_v43 = vpack.c.bf16 %v2672_v41, %v2671_v40  ;;  %v2571_v45 = vld [vmem:[#allocation11 + $0x168] sm:$0xff]  ;;  %v2673_v46 = vld [vmem:[#allocation11 + $0x1e0] sm:$0xff]  ;;  %v2572_v50 = vld [vmem:[#allocation11 + $0x170] sm:$0xff] }
 0x518   : > { %v2573_v51 = vld [vmem:[#allocation11 + $0x178] sm:$0xff]  ;;  %v2675_v52 = vld [vmem:[#allocation11 + $0x1f0] sm:$0xff]  ;;  %v2764_v55 = vld [vmem:[#allocation11 + $0x200] sm:$0xff] }
 0x519   : > { %5511 = vmatpush3.bf16.msra.mxu1 %v5510_v47  ;;  %v2674_v47 = vld [vmem:[#allocation11 + $0x1e8] sm:$0xff]  ;;  %v2766_v61 = vld [vmem:[#allocation11 + $0x210] sm:$0xff]  ;;  %v2767_v62 = vld [vmem:[#allocation11 + $0x218] sm:$0xff] }
 0x51a   : > { %5535 = vmatpush3.bf16.msra.mxu0 %v5534_v48  ;;  %5512 = vmatprep.subr.bf16.mxu1 %v6140_v57  ;;  %v5561_v48 = vpack.c.bf16 %v2571_v45, %v2570_v44  ;;  %v5585_v49 = vpack.c.bf16 %v2674_v47, %v2673_v46  ;;  %v2765_v56 = vld [vmem:[#allocation11 + $0x208] sm:$0xff]  ;;  %v5594_v0 = vpack.c.bf16 %v2767_v62, %v2766_v61  ;;  %v2659_v7 = vld [vmem:[#allocation3 + $0x13] sm:$0xff]  ;;  %v2776_v17 = vld [vmem:[#allocation11 + $0x260] sm:$0xff] }
 0x51b   : > { %5536 = vmatprep.subr.bf16.mxu0 %v6140_v57  ;;  %v2554_v58 = vld [vmem:[#allocation3 + $0x2] sm:$0xff]  ;;  %v2555_v63 = vld [vmem:[#allocation3 + $0xa] sm:$0xff]  ;;  %v2771_v9 = vld [vmem:[#allocation11 + $0x238] sm:$0xff] }
 0x51c   : > { %v2770_v8 = vld [vmem:[#allocation11 + $0x230] sm:$0xff]  ;;  %v2779_v22 = vld [vmem:[#allocation11 + $0x278] sm:$0xff]  ;;  %v3603_v62 = vld [vmem:[%s6770_s22] ss:$0 sm:$0xff] }
 0x51d   : > { %5514 = vmatpush3.bf16.msra.mxu1 %v5513_v30  ;;  %v2676_v30 = vld [vmem:[#allocation11 + $0x1f8] sm:$0xff]  ;;  %v2774_v14 = vld [vmem:[#allocation11 + $0x250] sm:$0xff] }
 0x51e   : > { %5538 = vmatpush3.bf16.msra.mxu0 %v5537_v53  ;;  %5515 = vmatprep.subr.bf16.mxu1 %v6140_v57  ;;  %v5564_v53 = vpack.c.bf16 %v2573_v51, %v2572_v50  ;;  %v5588_v54 = vpack.c.bf16 %v2676_v30, %v2675_v52  ;;  %v2761_v25 = vld [vmem:[#allocation3 + $0xc] sm:$0xff]  ;;  %v2762_v26 = vld [vmem:[#allocation3 + $0x14] sm:$0xff] }
 0x51f   : > { %5539 = vmatprep.subr.bf16.mxu0 %v6140_v57 }
 0x521   : > { %5517 = vmatpush3.bf16.msra.mxu1 %v5516_v59  ;;  %v5591_v59 = vpack.c.bf16 %v2765_v56, %v2764_v55 }
 0x522   : > { %5541 = vmatpush3.bf16.msra.mxu0 %v5540_v60  ;;  %5542 = vmatprep.subr.bf16.mxu1 %v6140_v57  ;;  %v2657_v60 = vld [vmem:[#allocation3 + $0x3] sm:$0xff] }
 0x523   : > { %5566 = vmatprep.subr.bf16.mxu0 %v6140_v57 }
 0x524   : > { %4707 = vmatmul.mubr.f32.vlgmr.msra.gmra.mrb[20].mxu1 %v2374_v2  ;;  %v2658_v2 = vld [vmem:[#allocation3 + $0xb] sm:$0xff] }
 0x525   : > { %4748 = vmatmul.mubr.f32.vlgmr.msra.gmra.mrb[22].mxu0 %v2355_v4  ;;  %5544 = vmatpush3.bf16.msra.mxu1 %v5543_v3  ;;  %v2768_v3 = vld [vmem:[#allocation11 + $0x220] sm:$0xff]  ;;  %v2769_v4 = vld [vmem:[#allocation11 + $0x228] sm:$0xff] }
 0x526   : > { %5568 = vmatpush3.bf16.msra.mxu0 %v5567_v5  ;;  %5545 = vmatprep.subr.bf16.mxu1 %v6140_v57  ;;  %v2556_v5 = vld [vmem:[#allocation3 + $0x12] sm:$0xff]  ;;  %v5597_v6 = vpack.c.bf16 %v2769_v4, %v2768_v3 }
 0x527   : > { %5569 = vmatprep.subr.bf16.mxu0 %v6140_v57  ;;  %4709 = vmatprep.mubr.msk.f32.mxu1 %vm6141_vm8, %v6142_v1 }
 0x528   : > { %4710 = vmatmul.mubr.f32.gmra.mrb[22].mxu1 %v2375_v11  ;;  %4750 = vmatprep.mubr.msk.f32.mxu0 %vm6141_vm8, %v6142_v1  ;;  %v2772_v11 = vld [vmem:[#allocation11 + $0x240] sm:$0xff] }
 0x529   : > { %5547 = vmatpush3.bf16.msra.mxu1 %v5546_v10  ;;  %4751 = vmatmul.mubr.f32.gmra.mrb[24].mxu0 %v2356_v15  ;;  %v5600_v10 = vpack.c.bf16 %v2771_v9, %v2770_v8  ;;  %v2775_v15 = vld [vmem:[#allocation11 + $0x258] sm:$0xff] }
 0x52a   : > { %5571 = vmatpush3.bf16.msra.mxu0 %v5570_v12  ;;  %5548 = vmatprep.subr.bf16.mxu1 %v6140_v57  ;;  %v2773_v12 = vld [vmem:[#allocation11 + $0x248] sm:$0xff]  ;;  %v5606_v16 = vpack.c.bf16 %v2775_v15, %v2774_v14  ;;  %v2887_v14 = vstv (%p2883_p10), %s2879_s4 }
 0x52b   : > { %5572 = vmatprep.subr.bf16.mxu0 %v6140_v57  ;;  %4712 = vmatprep.mubr.msk.f32.mxu1 %vm6141_vm8, %v6142_v1  ;;  %v5603_v13 = vpack.c.bf16 %v2773_v12, %v2772_v11  ;;  %v2888_v15 = vadd.s32 (%p2883_p10), %v2887_v14, %v6419_v18 }
 0x52c   : > { %4713 = vmatmul.mubr.f32.gmra.mrb[24].mxu1 %v2376_v20  ;;  %4753 = vmatprep.mubr.msk.f32.mxu0 %vm6141_vm8, %v6142_v1 }
 0x52d   : > { %5550 = vmatpush3.bf16.msra.mxu1 %v5549_v19  ;;  %4754 = vmatmul.mubr.f32.gmra.mrb[26].mxu0 %v2357_v24  ;;  %v2777_v19 = vld [vmem:[#allocation11 + $0x268] sm:$0xff]  ;;  %vm2891_vm2 = vcmp.ge.s32.totalorder (%p2883_p10), %v2888_v15, 0  ;;  %vm2894_vm3 = vcmp.lt.s32.totalorder (%p2883_p10), %v2888_v15, 40 }
 0x52e   : > { %5574 = vmatpush3.bf16.msra.mxu0 %v5573_v21  ;;  %5551 = vmatprep.subr.bf16.mxu1 %v6140_v57  ;;  %v5609_v20 = vpack.c.bf16 %v2777_v19, %v2776_v17  ;;  %v2778_v21 = vld [vmem:[#allocation11 + $0x270] sm:$0xff]  ;;  %v2760_v24 = vld [vmem:[#allocation3 + $0x4] sm:$0xff]  ;;  %v2890_v17 = vadd.s32 (%p2883_p10), %v2887_v14, %v6426_v29  ;;  %vm2897_vm6 = vmand (%p2883_p10), %vm2891_vm2, %vm2894_vm3 }
 0x52f   : > { %5575 = vmatprep.subr.bf16.mxu0 %v6140_v57  ;;  %4788 = vmatprep.mubr.msk.f32.mxu1 %vm6141_vm8, %v6142_v1  ;;  %v5612_v23 = vpack.c.bf16 %v2779_v22, %v2778_v21 }
 0x530   : > { %4829 = vmatprep.mubr.msk.f32.mxu0 %vm6141_vm8, %v6142_v1  ;;  %vm2893_vm7 = vcmp.ge.s32.totalorder (%p2883_p10), %v2890_v17, 0 }
 0x531   : > { %5553 = vmatpush3.bf16.msra.mxu1 %v5552_v27 }
 0x532   : > { %5577 = vmatpush3.bf16.msra.mxu0 %v5576_v31  ;;  %5554 = vmatprep.subr.bf16.mxu1 %v6140_v57 }
 0x533   : > { %5578 = vmatprep.subr.bf16.mxu0 %v6140_v57 }
 0x535   : > { %5556 = vmatpush3.bf16.msra.mxu1 %v5555_v36 }
 0x536   : > { %5580 = vmatpush3.bf16.msra.mxu0 %v5579_v37  ;;  %5557 = vmatprep.subr.bf16.mxu1 %v6140_v57 }
 0x537   : > { %5581 = vmatprep.subr.bf16.mxu0 %v6140_v57 }
 0x539   : > { %5559 = vmatpush3.bf16.msra.mxu1 %v5558_v42 }
 0x53a   : > { %5583 = vmatpush3.bf16.msra.mxu0 %v5582_v43  ;;  %5560 = vmatprep.subr.bf16.mxu1 %v6140_v57 }
 0x53b   : > { %5584 = vmatprep.subr.bf16.mxu0 %v6140_v57 }
 0x53d   : > { %5562 = vmatpush3.bf16.msra.mxu1 %v5561_v48 }
 0x53e   : > { %5586 = vmatpush3.bf16.msra.mxu0 %v5585_v49  ;;  %5563 = vmatprep.subr.bf16.mxu1 %v6140_v57 }
 0x53f   : > { %5587 = vmatprep.subr.bf16.mxu0 %v6140_v57 }
 0x541   : > { %5565 = vmatpush3.bf16.msra.mxu1 %v5564_v53 }
 0x542   : > { %5589 = vmatpush3.bf16.msra.mxu0 %v5588_v54  ;;  %5590 = vmatprep.subr.bf16.mxu1 %v6140_v57 }
 0x544   : > { %4789 = vmatmul.mubr.f32.vlgmr.msra.gmra.mrb[26].mxu1 %v2554_v58 }
 0x545   : > { %5592 = vmatpush3.bf16.msra.mxu1 %v5591_v59  ;;  %4830 = vmatmul.mubr.f32.vlgmr.msra.gmra.mrb[28].mxu0 %v2657_v60 }
 0x546   : > { %4791 = vmatprep.mubr.msk.f32.mxu1 %vm6141_vm8, %v6142_v1  ;;  %5593 = vmatprep.subr.bf16.mxu1 %v6140_v57 }
 0x547   : > { %4832 = vmatprep.mubr.msk.f32.mxu0 %vm6141_vm8, %v6142_v1 }
 0x548   : > { %4792 = vmatmul.mubr.f32.gmra.mrb[28].mxu1 %v2555_v63 }
 0x549   : > { %5595 = vmatpush3.bf16.msra.mxu1 %v5594_v0  ;;  %4833 = vmatmul.mubr.f32.gmra.mrb[30].mxu0 %v2658_v2 }
 0x54a   : > { %4794 = vmatprep.mubr.msk.f32.mxu1 %vm6141_vm8, %v6142_v1  ;;  %5596 = vmatprep.subr.bf16.mxu1 %v6140_v57 }
 0x54b   : > { %4835 = vmatprep.mubr.msk.f32.mxu0 %vm6141_vm8, %v6142_v1 }
 0x54c   : > { %4795 = vmatmul.mubr.f32.gmra.mrb[30].mxu1 %v2556_v5 }
 0x54d   : > { %5598 = vmatpush3.bf16.msra.mxu1 %v5597_v6  ;;  %4836 = vmatmul.mubr.f32.gmra.mrb[32].mxu0 %v2659_v7 }
 0x54e   : > { %5599 = vmatprep.subr.bf16.mxu1 %v6140_v57  ;;  %4870 = vmatprep.mubr.msk.f32.mxu1 %vm6141_vm8, %v6142_v1 }
 0x551   : > { %5601 = vmatpush3.bf16.msra.mxu1 %v5600_v10 }
 0x552   : > { %5602 = vmatprep.subr.bf16.mxu1 %v6140_v57 }
 0x555   : > { %5604 = vmatpush3.bf16.msra.mxu1 %v5603_v13 }
 0x556   : > { %5605 = vmatprep.subr.bf16.mxu1 %v6140_v57 }
 0x559   : > { %5607 = vmatpush3.bf16.msra.mxu1 %v5606_v16  ;;  %v2889_v16 = vadd.s32 (%p2883_p10), %v2887_v14, %v6423_v28 }
 0x55a   : > { %5608 = vmatprep.subr.bf16.mxu1 %v6140_v57 }
 0x55b   : > { %vm2892_vm4 = vcmp.ge.s32.totalorder (%p2883_p10), %v2889_v16, 0  ;;  %vm2895_vm5 = vcmp.lt.s32.totalorder (%p2883_p10), %v2889_v16, 40 }
 0x55c   : > { %vm2898_vm9 = vmand (%p2883_p10), %vm2892_vm4, %vm2895_vm5 }
 0x55d   : > { %5610 = vmatpush3.bf16.msra.mxu1 %v5609_v20 }
 0x55e   : > { %5611 = vmatprep.subr.bf16.mxu1 %v6140_v57 }
 0x561   : > { %5613 = vmatpush3.bf16.msra.mxu1 %v5612_v23 }
 0x564   : > { %4871 = vmatmul.mubr.f32.vlgmr.msra.gmra.mrb[32].mxu1 %v2760_v24 }
 0x565   : > { %4873 = vmatprep.mubr.msk.f32.mxu1 %vm6141_vm8, %v6142_v1 }
 0x568   : > { %4874 = vmatmul.mubr.f32.gmra.mrb[34].mxu1 %v2761_v25 }
 0x569   : > { %4876 = vmatprep.mubr.msk.f32.mxu1 %vm6141_vm8, %v6142_v1  ;;  %vm2896_vm8 = vcmp.lt.s32.totalorder (%p2883_p10), %v2890_v17, 40 }
 0x56a   : > { %vm2899_vm10 = vmand (%p2883_p10), %vm2893_vm7, %vm2896_vm8 }
 0x56c   : > { %4877 = vmatmul.mubr.f32.gmra.mrb[36].mxu1 %v2762_v26 }
 0x5f7   : > { %v2460_v57 = vpop.f32.mrb[20].mxu1 }
 0x5f8   : > { %v4708_v1 = vpop.f32.mrb[21].mxu1  ;;  %v2540_v27 = vpop.f32.mrb[22].mxu0 }
 0x5f9   : > { %v2541_v31 = vadd.f32 %v2540_v27, %v2460_v57  ;;  %v4749_v32 = vpop.f32.mrb[23].mxu0 }
 0x5fb   : > { %v2465_v33 = vpop.f32.mrb[22].mxu1 }
 0x5fc   : > { %v4711_v34 = vpop.f32.mrb[23].mxu1  ;;  %v2545_v35 = vpop.f32.mrb[24].mxu0 }
 0x5fd   : > { %v2546_v36 = vadd.f32 %v2545_v35, %v2465_v33  ;;  %v4752_v37 = vpop.f32.mrb[25].mxu0 }
 0x5ff   : > { %v2470_v38 = vpop.f32.mrb[24].mxu1 }
 0x600   : > { %v4714_v39 = vpop.f32.mrb[25].mxu1  ;;  %v2550_v40 = vpop.f32.mrb[26].mxu0 }
 0x601   : > { %v2551_v41 = vadd.f32 %v2550_v40, %v2470_v38  ;;  %v4755_v42 = vpop.f32.mrb[27].mxu0 }
 0x617   : > { %v2640_v43 = vpop.f32.mrb[26].mxu1 }
 0x618   : > { %v2654_v44 = vadd.f32 %v2640_v43, %v2541_v31  ;;  %v4790_v45 = vpop.f32.mrb[27].mxu1  ;;  %v2743_v46 = vpop.f32.mrb[28].mxu0 }
 0x619   : > { %v4831_v47 = vpop.f32.mrb[29].mxu0 }
 0x61a   : > { %v2757_v48 = vadd.f32 %v2743_v46, %v2654_v44 }
 0x61b   : > { %v2645_v49 = vpop.f32.mrb[28].mxu1 }
 0x61c   : > { %v2655_v50 = vadd.f32 %v2645_v49, %v2546_v36  ;;  %v2748_v51 = vpop.f32.mrb[30].mxu0  ;;  %v4793_v52 = vpop.f32.mrb[29].mxu1 }
 0x61d   : > { %v4834_v30 = vpop.f32.mrb[31].mxu0 }
 0x61e   : > { %v2758_v53 = vadd.f32 %v2748_v51, %v2655_v50 }
 0x61f   : > { %v2650_v54 = vpop.f32.mrb[30].mxu1 }
 0x620   : > { %v2656_v55 = vadd.f32 %v2650_v54, %v2551_v41  ;;  %v2753_v56 = vpop.f32.mrb[32].mxu0  ;;  %v4796_v58 = vpop.f32.mrb[31].mxu1 }
 0x621   : > { %v4837_v59 = vpop.f32.mrb[33].mxu0 }
 0x622   : > { %v2759_v60 = vadd.f32 %v2753_v56, %v2656_v55 }
 0x637   : > { %v2846_v61 = vpop.f32.mrb[32].mxu1 }
 0x638   : > { %v2860_v63 = vadd.f32 %v2846_v61, %v2757_v48  ;;  %v4872_v0 = vpop.f32.mrb[33].mxu1 }
 0x63a   : > { %v2870_v2 = vadd.f32 %v3603_v62, %v2860_v63 }
 0x63b   : > { %v2851_v3 = vpop.f32.mrb[34].mxu1 }
 0x63c   : > { %5933 = vtanh.f32 %v2870_v2  ;;  %v2861_v4 = vadd.f32 %v2851_v3, %v2758_v53  ;;  %v4875_v5 = vpop.f32.mrb[35].mxu1 }
 0x63e   : > { %v2871_v6 = vadd.f32 %v3603_v62, %v2861_v4 }
 0x63f   : > { %v2856_v7 = vpop.f32.mrb[36].mxu1 }
 0x640   : > { %5935 = vtanh.f32 %v2871_v6  ;;  %v2862_v8 = vadd.f32 %v2856_v7, %v2759_v60  ;;  %v4878_v9 = vpop.f32.mrb[37].mxu1 }
 0x642   : > { %v2872_v10 = vadd.f32 %v3603_v62, %v2862_v8 }
 0x644   : > { %5937 = vtanh.f32 %v2872_v10 }
 0x646   : > { %v5934_v11 = vpop.eup %5933 }
 0x647   : > { %2876 = vst [vmem:[#allocation4] sm:$0xff] %v5934_v11 }
 0x649   : > { %2886 = sbr.rel (!%p2883_p10) target bundleno = 1625 (0x659), region = 172 }
 0x64a   : > { %v5936_v12 = vpop.eup %5935 }
 0x64b   : > { %2877 = vst [vmem:[#allocation4 + $0x8] sm:$0xff] %v5936_v12 }
 0x64e   : > { %v5938_v13 = vpop.eup %5937  ;;  %v2900_v19 = vld [vmem:[#allocation4] sm:$0xff] (%p2883_p10) }
 0x64f   : > { %2878 = vst [vmem:[#allocation4 + $0x10] sm:$0xff] %v5938_v13  ;;  %v2909_v22 = vsel (%p2883_p10), %vm2897_vm6, %v2900_v19, 0.0 }
 0x650   : > { %2912 = vst [vmem:[#allocation4] sm:$0xff] %v2909_v22 }
 0x652   : > { %v2901_v20 = vld [vmem:[#allocation4 + $0x8] sm:$0xff] }
 0x653   : > { %v2910_v23 = vsel %vm2898_vm9, %v2901_v20, 0.0 }
 0x654   : > { %2913 = vst [vmem:[#allocation4 + $0x8] sm:$0xff] %v2910_v23 }
 0x656   : > { %v2902_v21 = vld [vmem:[#allocation4 + $0x10] sm:$0xff] }
 0x657   : > { %v2911_v18 = vsel %vm2899_vm10, %v2902_v21, 0.0 }
 0x658   : > { %2914 = vst [vmem:[#allocation4 + $0x10] sm:$0xff] %v2911_v18 }
 0x659 PF: > { %v2936_v28 = vld [vmem:[#allocation13 + $0x80] sm:$0xff]  ;;  %v2937_v29 = vld [vmem:[#allocation13 + $0x88] sm:$0xff]  ;;  %v2938_v24 = vld [vmem:[#allocation13 + $0x90] sm:$0xff]  ;;  %s6771_s23 = sld [smem:[#allocation25_spill]] }
 0x65a   : > { %v5614_v25 = vpack.c.bf16 %v2937_v29, %v2936_v28  ;;  %v2939_v26 = vld [vmem:[#allocation13 + $0x98] sm:$0xff]  ;;  %v2940_v1 = vld [vmem:[#allocation13 + $0xa0] sm:$0xff]  ;;  %v2941_v27 = vld [vmem:[#allocation13 + $0xa8] sm:$0xff] }
 0x65b   : > { %v5618_v57 = vpack.c.bf16 %v2939_v26, %v2938_v24  ;;  %v5622_v31 = vpack.c.bf16 %v2941_v27, %v2940_v1  ;;  %v2942_v33 = vld [vmem:[#allocation13 + $0xb0] sm:$0xff]  ;;  %v2943_v34 = vld [vmem:[#allocation13 + $0xb8] sm:$0xff]  ;;  %v2944_v36 = vld [vmem:[#allocation13 + $0xc0] sm:$0xff] }
 0x65c   : > { %5615 = vmatprep.subr.bf16.mxu0 %v5614_v25  ;;  %v5626_v35 = vpack.c.bf16 %v2943_v34, %v2942_v33  ;;  %v2945_v37 = vld [vmem:[#allocation13 + $0xc8] sm:$0xff]  ;;  %v2946_v39 = vld [vmem:[#allocation13 + $0xd0] sm:$0xff]  ;;  %v2947_v40 = vld [vmem:[#allocation13 + $0xd8] sm:$0xff] }
 0x65d   : > { %5617 = vmatpush3.bf16.msra.mxu0 %v5614_v25  ;;  %v5630_v38 = vpack.c.bf16 %v2945_v37, %v2944_v36  ;;  %v5634_v41 = vpack.c.bf16 %v2947_v40, %v2946_v39  ;;  %v2948_v42 = vld [vmem:[#allocation13 + $0xe0] sm:$0xff]  ;;  %v2949_v43 = vld [vmem:[#allocation13 + $0xe8] sm:$0xff]  ;;  %v2950_v45 = vld [vmem:[#allocation13 + $0xf0] sm:$0xff] }
 0x65e   : > { %5619 = vmatprep.subr.bf16.mxu0 %v5618_v57  ;;  %v5638_v44 = vpack.c.bf16 %v2949_v43, %v2948_v42  ;;  %v2951_v46 = vld [vmem:[#allocation13 + $0xf8] sm:$0xff]  ;;  %v2917_v48 = vld [vmem:[#allocation13] sm:$0xff]  ;;  %v2918_v49 = vld [vmem:[#allocation13 + $0x8] sm:$0xff] }
 0x65f   : > { %v5642_v47 = vpack.c.bf16 %v2951_v46, %v2950_v45  ;;  %v5646_v50 = vpack.c.bf16 %v2918_v49, %v2917_v48  ;;  %v2919_v51 = vld [vmem:[#allocation13 + $0x10] sm:$0xff]  ;;  %v2920_v52 = vld [vmem:[#allocation13 + $0x18] sm:$0xff]  ;;  %v2921_v55 = vld [vmem:[#allocation13 + $0x20] sm:$0xff] }
 0x660   : > { %v2933_v32 = vld [vmem:[#allocation4 + $0x1] sm:$0xff]  ;;  %v2934_v30 = vld [vmem:[#allocation4 + $0x9] sm:$0xff]  ;;  %v5650_v53 = vpack.c.bf16 %v2920_v52, %v2919_v51  ;;  %v2922_v56 = vld [vmem:[#allocation13 + $0x28] sm:$0xff] }
 0x661   : > { %4911 = vmatprep.mubr.f32.mxu0 %v2933_v32  ;;  %5621 = vmatpush3.bf16.msra.mxu0 %v5618_v57  ;;  %v2915_v54 = vld [vmem:[#allocation4] sm:$0xff]  ;;  %v5654_v58 = vpack.c.bf16 %v2922_v56, %v2921_v55  ;;  %v2924_v60 = vld [vmem:[#allocation13 + $0x38] sm:$0xff]  ;;  %v2925_v62 = vld [vmem:[#allocation13 + $0x40] sm:$0xff] }
 0x662   : > { %5623 = vmatprep.subr.bf16.mxu0 %v5622_v31  ;;  %v2923_v59 = vld [vmem:[#allocation13 + $0x30] sm:$0xff]  ;;  %v2926_v63 = vld [vmem:[#allocation13 + $0x48] sm:$0xff]  ;;  %v2928_v3 = vld [vmem:[#allocation13 + $0x58] sm:$0xff] }
 0x663   : > { %v5658_v61 = vpack.c.bf16 %v2924_v60, %v2923_v59  ;;  %v5662_v0 = vpack.c.bf16 %v2926_v63, %v2925_v62  ;;  %v2927_v2 = vld [vmem:[#allocation13 + $0x50] sm:$0xff]  ;;  %v2929_v5 = vld [vmem:[#allocation13 + $0x60] sm:$0xff]  ;;  %v2930_v6 = vld [vmem:[#allocation13 + $0x68] sm:$0xff] }
 0x664   : > { %v5666_v4 = vpack.c.bf16 %v2928_v3, %v2927_v2  ;;  %v5670_v7 = vpack.c.bf16 %v2930_v6, %v2929_v5  ;;  %v2931_v8 = vld [vmem:[#allocation13 + $0x70] sm:$0xff]  ;;  %v2932_v9 = vld [vmem:[#allocation13 + $0x78] sm:$0xff]  ;;  %v3105_v11 = vld [vmem:[#allocation13 + $0x100] sm:$0xff] }
 0x665   : > { %5625 = vmatpush3.bf16.msra.mxu0 %v5622_v31  ;;  %v5674_v10 = vpack.c.bf16 %v2932_v9, %v2931_v8  ;;  %v3106_v12 = vld [vmem:[#allocation13 + $0x108] sm:$0xff]  ;;  %v3107_v14 = vld [vmem:[#allocation13 + $0x110] sm:$0xff]  ;;  %v3108_v15 = vld [vmem:[#allocation13 + $0x118] sm:$0xff] }
 0x666   : > { %5627 = vmatprep.subr.bf16.mxu0 %v5626_v35  ;;  %v5678_v13 = vpack.c.bf16 %v3106_v12, %v3105_v11  ;;  %v2916_v16 = vld [vmem:[#allocation4 + $0x8] sm:$0xff]  ;;  %v5682_v17 = vpack.c.bf16 %v3108_v15, %v3107_v14  ;;  %v3109_v20 = vld [vmem:[#allocation13 + $0x120] sm:$0xff]  ;;  %v3110_v21 = vld [vmem:[#allocation13 + $0x128] sm:$0xff] }
 0x667   : > { %v3102_v19 = vld [vmem:[#allocation4 + $0x2] sm:$0xff]  ;;  %v5686_v22 = vpack.c.bf16 %v3110_v21, %v3109_v20  ;;  %v3113_v29 = vld [vmem:[#allocation13 + $0x140] sm:$0xff]  ;;  %v3114_v24 = vld [vmem:[#allocation13 + $0x148] sm:$0xff] }
 0x668   : > { %v3111_v23 = vld [vmem:[#allocation13 + $0x130] sm:$0xff]  ;;  %v3112_v18 = vld [vmem:[#allocation13 + $0x138] sm:$0xff]  ;;  %v5694_v25 = vpack.c.bf16 %v3114_v24, %v3113_v29  ;;  %v3117_v27 = vld [vmem:[#allocation13 + $0x160] sm:$0xff] }
 0x669   : > { %5629 = vmatpush3.bf16.msra.mxu0 %v5626_v35  ;;  %v5690_v28 = vpack.c.bf16 %v3112_v18, %v3111_v23  ;;  %v3115_v26 = vld [vmem:[#allocation13 + $0x150] sm:$0xff]  ;;  %v3116_v57 = vld [vmem:[#allocation13 + $0x158] sm:$0xff]  ;;  %v3118_v31 = vld [vmem:[#allocation13 + $0x168] sm:$0xff] }
 0x66a   : > { %5631 = vmatprep.subr.bf16.mxu0 %v5630_v38  ;;  %v5698_v1 = vpack.c.bf16 %v3116_v57, %v3115_v26  ;;  %v5702_v32 = vpack.c.bf16 %v3118_v31, %v3117_v27  ;;  %v3119_v33 = vld [vmem:[#allocation13 + $0x170] sm:$0xff]  ;;  %v3120_v34 = vld [vmem:[#allocation13 + $0x178] sm:$0xff]  ;;  %v3201_v36 = vld [vmem:[#allocation13 + $0x180] sm:$0xff] }
 0x66b   : > { %v5706_v35 = vpack.c.bf16 %v3120_v34, %v3119_v33  ;;  %v3202_v37 = vld [vmem:[#allocation13 + $0x188] sm:$0xff]  ;;  %v3203_v39 = vld [vmem:[#allocation13 + $0x190] sm:$0xff]  ;;  %v3204_v40 = vld [vmem:[#allocation13 + $0x198] sm:$0xff] }
 0x66c   : > { %v5714_v42 = vpack.c.bf16 %v3204_v40, %v3203_v39  ;;  %v3198_v43 = vld [vmem:[#allocation4 + $0x3] sm:$0xff]  ;;  %v3206_v45 = vld [vmem:[#allocation13 + $0x1a8] sm:$0xff]  ;;  %v3213_v55 = vld [vmem:[#allocation13 + $0x1e0] sm:$0xff] }
 0x66d   : > { %5633 = vmatpush3.bf16.msra.mxu0 %v5630_v38  ;;  %v5710_v38 = vpack.c.bf16 %v3202_v37, %v3201_v36  ;;  %v3208_v48 = vld [vmem:[#allocation13 + $0x1b8] sm:$0xff]  ;;  %v3210_v51 = vld [vmem:[#allocation13 + $0x1c8] sm:$0xff]  ;;  %v3215_v59 = vld [vmem:[#allocation13 + $0x1f0] sm:$0xff] }
 0x66e   : > { %5635 = vmatprep.subr.bf16.mxu0 %v5634_v41  ;;  %v3214_v56 = vld [vmem:[#allocation13 + $0x1e8] sm:$0xff]  ;;  %v3216_v60 = vld [vmem:[#allocation13 + $0x1f8] sm:$0xff]  ;;  %v3297_v62 = vld [vmem:[#allocation13 + $0x200] sm:$0xff] }
 0x66f   : > { %v3298_v63 = vld [vmem:[#allocation13 + $0x208] sm:$0xff]  ;;  %v3299_v2 = vld [vmem:[#allocation13 + $0x210] sm:$0xff]  ;;  %v3300_v3 = vld [vmem:[#allocation13 + $0x218] sm:$0xff] }
 0x670   : > { %v5746_v5 = vpack.c.bf16 %v3300_v3, %v3299_v2  ;;  %v3294_v6 = vld [vmem:[#allocation4 + $0x4] sm:$0xff]  ;;  %v3302_v8 = vld [vmem:[#allocation13 + $0x228] sm:$0xff]  ;;  %v3309_v20 = vld [vmem:[#allocation13 + $0x260] sm:$0xff] }
 0x671   : > { %5637 = vmatpush3.bf16.msra.mxu0 %v5634_v41  ;;  %v3103_v41 = vld [vmem:[#allocation4 + $0xa] sm:$0xff]  ;;  %v3306_v14 = vld [vmem:[#allocation13 + $0x248] sm:$0xff]  ;;  %v3311_v23 = vld [vmem:[#allocation13 + $0x270] sm:$0xff] }
 0x672   : > { %5639 = vmatprep.subr.bf16.mxu0 %v5638_v44  ;;  %v3304_v11 = vld [vmem:[#allocation13 + $0x238] sm:$0xff]  ;;  %v3310_v21 = vld [vmem:[#allocation13 + $0x268] sm:$0xff]  ;;  %v3604_v24 = vld [vmem:[%s6771_s23] ss:$0 sm:$0xff] }
 0x673   : > { %v3312_v18 = vld [vmem:[#allocation13 + $0x278] sm:$0xff] }
 0x674   : > { %v3295_v29 = vld [vmem:[#allocation4 + $0xc] sm:$0xff] }
 0x675   : > { %5641 = vmatpush3.bf16.msra.mxu0 %v5638_v44  ;;  %v3205_v44 = vld [vmem:[#allocation13 + $0x1a0] sm:$0xff] }
 0x676   : > { %5643 = vmatprep.subr.bf16.mxu0 %v5642_v47  ;;  %v5718_v46 = vpack.c.bf16 %v3206_v45, %v3205_v44 }
 0x679   : > { %5645 = vmatpush3.bf16.msra.mxu0 %v5642_v47  ;;  %v3207_v47 = vld [vmem:[#allocation13 + $0x1b0] sm:$0xff] }
 0x67a   : > { %5647 = vmatprep.subr.bf16.mxu0 %v5646_v50  ;;  %v5722_v49 = vpack.c.bf16 %v3208_v48, %v3207_v47 }
 0x67c   : > { %4912 = vmatmul.mubr.f32.vlgmr.msra.gmra.mrb[34].mxu0 %v2934_v30  ;;  %v3211_v30 = vld [vmem:[#allocation13 + $0x1d0] sm:$0xff] }
 0x67d   : > { %5649 = vmatpush3.bf16.msra.mxu0 %v5646_v50  ;;  %4946 = vmatprep.mubr.f32.mxu0 %v2915_v54  ;;  %v3209_v50 = vld [vmem:[#allocation13 + $0x1c0] sm:$0xff] }
 0x67e   : > { %5651 = vmatprep.subr.bf16.mxu0 %v5650_v53  ;;  %v5726_v52 = vpack.c.bf16 %v3210_v51, %v3209_v50 }
 0x681   : > { %5653 = vmatpush3.bf16.msra.mxu0 %v5650_v53  ;;  %v3212_v53 = vld [vmem:[#allocation13 + $0x1d8] sm:$0xff] }
 0x682   : > { %5655 = vmatprep.subr.bf16.mxu0 %v5654_v58  ;;  %v5730_v54 = vpack.c.bf16 %v3212_v53, %v3211_v30 }
 0x685   : > { %5657 = vmatpush3.bf16.msra.mxu0 %v5654_v58  ;;  %v5734_v58 = vpack.c.bf16 %v3214_v56, %v3213_v55 }
 0x686   : > { %5659 = vmatprep.subr.bf16.mxu0 %v5658_v61 }
 0x689   : > { %5661 = vmatpush3.bf16.msra.mxu0 %v5658_v61  ;;  %v5738_v61 = vpack.c.bf16 %v3216_v60, %v3215_v59 }
 0x68a   : > { %5663 = vmatprep.subr.bf16.mxu0 %v5662_v0 }
 0x68d   : > { %5665 = vmatpush3.bf16.msra.mxu0 %v5662_v0  ;;  %v5742_v0 = vpack.c.bf16 %v3298_v63, %v3297_v62 }
 0x68e   : > { %5667 = vmatprep.subr.bf16.mxu0 %v5666_v4 }
 0x691   : > { %5669 = vmatpush3.bf16.msra.mxu0 %v5666_v4  ;;  %v3199_v4 = vld [vmem:[#allocation4 + $0xb] sm:$0xff] }
 0x692   : > { %5671 = vmatprep.subr.bf16.mxu0 %v5670_v7 }
 0x695   : > { %5673 = vmatpush3.bf16.msra.mxu0 %v5670_v7  ;;  %v3301_v7 = vld [vmem:[#allocation13 + $0x220] sm:$0xff] }
 0x696   : > { %5675 = vmatprep.subr.bf16.mxu0 %v5674_v10  ;;  %v5750_v9 = vpack.c.bf16 %v3302_v8, %v3301_v7 }
 0x699   : > { %5677 = vmatpush3.bf16.msra.mxu0 %v5674_v10  ;;  %v3303_v10 = vld [vmem:[#allocation13 + $0x230] sm:$0xff] }
 0x69a   : > { %5679 = vmatprep.subr.bf16.mxu0 %v5678_v13  ;;  %v5754_v12 = vpack.c.bf16 %v3304_v11, %v3303_v10 }
 0x69c   : > { %4947 = vmatmul.mubr.f32.vlgmr.msra.gmra.mrb[34].mxu0 %v2916_v16  ;;  %v3307_v16 = vld [vmem:[#allocation13 + $0x250] sm:$0xff] }
 0x69d   : > { %5681 = vmatpush3.bf16.msra.mxu0 %v5678_v13  ;;  %4981 = vmatprep.mubr.f32.mxu0 %v3102_v19  ;;  %v3305_v13 = vld [vmem:[#allocation13 + $0x240] sm:$0xff] }
 0x69e   : > { %5683 = vmatprep.subr.bf16.mxu0 %v5682_v17  ;;  %v5758_v15 = vpack.c.bf16 %v3306_v14, %v3305_v13 }
 0x6a1   : > { %5685 = vmatpush3.bf16.msra.mxu0 %v5682_v17  ;;  %v3308_v17 = vld [vmem:[#allocation13 + $0x258] sm:$0xff] }
 0x6a2   : > { %5687 = vmatprep.subr.bf16.mxu0 %v5686_v22  ;;  %v5762_v19 = vpack.c.bf16 %v3308_v17, %v3307_v16 }
 0x6a5   : > { %5689 = vmatpush3.bf16.msra.mxu0 %v5686_v22  ;;  %v5766_v22 = vpack.c.bf16 %v3310_v21, %v3309_v20 }
 0x6a6   : > { %5691 = vmatprep.subr.bf16.mxu0 %v5690_v28 }
 0x6a9   : > { %5693 = vmatpush3.bf16.msra.mxu0 %v5690_v28  ;;  %v5770_v28 = vpack.c.bf16 %v3312_v18, %v3311_v23 }
 0x6aa   : > { %5695 = vmatprep.subr.bf16.mxu0 %v5694_v25 }
 0x6ad   : > { %5697 = vmatpush3.bf16.msra.mxu0 %v5694_v25 }
 0x6ae   : > { %5699 = vmatprep.subr.bf16.mxu0 %v5698_v1 }
 0x6b1   : > { %5701 = vmatpush3.bf16.msra.mxu0 %v5698_v1 }
 0x6b2   : > { %5703 = vmatprep.subr.bf16.mxu0 %v5702_v32 }
 0x6b5   : > { %5705 = vmatpush3.bf16.msra.mxu0 %v5702_v32 }
 0x6b6   : > { %5707 = vmatprep.subr.bf16.mxu0 %v5706_v35 }
 0x6b9   : > { %5709 = vmatpush3.bf16.msra.mxu0 %v5706_v35 }
 0x6ba   : > { %5711 = vmatprep.subr.bf16.mxu0 %v5710_v38 }
 0x6bc   : > { %4982 = vmatmul.mubr.f32.vlgmr.msra.gmra.mrb[34].mxu0 %v3103_v41 }
 0x6bd   : > { %5713 = vmatpush3.bf16.msra.mxu0 %v5710_v38  ;;  %5016 = vmatprep.mubr.f32.mxu0 %v3198_v43 }
 0x6be   : > { %5715 = vmatprep.subr.bf16.mxu0 %v5714_v42 }
 0x6c1   : > { %5717 = vmatpush3.bf16.msra.mxu0 %v5714_v42 }
 0x6c2   : > { %5719 = vmatprep.subr.bf16.mxu0 %v5718_v46 }
 0x6c5   : > { %5721 = vmatpush3.bf16.msra.mxu0 %v5718_v46 }
 0x6c6   : > { %5723 = vmatprep.subr.bf16.mxu0 %v5722_v49 }
 0x6c9   : > { %5725 = vmatpush3.bf16.msra.mxu0 %v5722_v49 }
 0x6ca   : > { %5727 = vmatprep.subr.bf16.mxu0 %v5726_v52 }
 0x6cd   : > { %5729 = vmatpush3.bf16.msra.mxu0 %v5726_v52 }
 0x6ce   : > { %5731 = vmatprep.subr.bf16.mxu0 %v5730_v54 }
 0x6d1   : > { %5733 = vmatpush3.bf16.msra.mxu0 %v5730_v54 }
 0x6d2   : > { %5735 = vmatprep.subr.bf16.mxu0 %v5734_v58 }
 0x6d5   : > { %5737 = vmatpush3.bf16.msra.mxu0 %v5734_v58 }
 0x6d6   : > { %5739 = vmatprep.subr.bf16.mxu0 %v5738_v61 }
 0x6d9   : > { %5741 = vmatpush3.bf16.msra.mxu0 %v5738_v61 }
 0x6da   : > { %5743 = vmatprep.subr.bf16.mxu0 %v5742_v0 }
 0x6dc   : > { %5017 = vmatmul.mubr.f32.vlgmr.msra.gmra.mrb[34].mxu0 %v3199_v4 }
 0x6dd   : > { %5745 = vmatpush3.bf16.msra.mxu0 %v5742_v0  ;;  %5051 = vmatprep.mubr.f32.mxu0 %v3294_v6 }
 0x6de   : > { %5747 = vmatprep.subr.bf16.mxu0 %v5746_v5 }
 0x6e1   : > { %5749 = vmatpush3.bf16.msra.mxu0 %v5746_v5 }
 0x6e2   : > { %5751 = vmatprep.subr.bf16.mxu0 %v5750_v9 }
 0x6e5   : > { %5753 = vmatpush3.bf16.msra.mxu0 %v5750_v9 }
 0x6e6   : > { %5755 = vmatprep.subr.bf16.mxu0 %v5754_v12 }
 0x6e9   : > { %5757 = vmatpush3.bf16.msra.mxu0 %v5754_v12 }
 0x6ea   : > { %5759 = vmatprep.subr.bf16.mxu0 %v5758_v15 }
 0x6ed   : > { %5761 = vmatpush3.bf16.msra.mxu0 %v5758_v15 }
 0x6ee   : > { %5763 = vmatprep.subr.bf16.mxu0 %v5762_v19 }
 0x6f1   : > { %5765 = vmatpush3.bf16.msra.mxu0 %v5762_v19 }
 0x6f2   : > { %5767 = vmatprep.subr.bf16.mxu0 %v5766_v22 }
 0x6f5   : > { %5769 = vmatpush3.bf16.msra.mxu0 %v5766_v22 }
 0x6f6   : > { %5771 = vmatprep.subr.bf16.mxu0 %v5770_v28 }
 0x6f9   : > { %5773 = vmatpush3.bf16.msra.mxu0 %v5770_v28 }
 0x6fc   : > { %5052 = vmatmul.mubr.f32.vlgmr.msra.gmra.mrb[34].mxu0 %v3295_v29 }
 0x7cf   : > { %v5053_v25 = vpop.f32.mrb[34].mxu0 }
 0x7d0   : > { %v3398_v26 = vadd.f32 %v5053_v25, %v3604_v24  ;;  %v3379_v57 = vpop.f32.mrb[35].mxu0 }
 0x7d1   : > { %v3397_v1 = vadd.f32 %v3604_v24, %v3379_v57 }
 0x7d2   : > { %3400 = vst [vmem:[%s6396_s10 + $0x8] sm:$0xff] %v3398_v26 }
 0x7d3   : > { %3399 = vst [vmem:[%s6396_s10] sm:$0xff] %v3397_v1 }
 0x7d4 PF: > { %s6772_s26 = sld [smem:[#allocation20_spill]]  ;;  %s6773_s17 = smov %s6123_s19 }
 0x7d5   : > { %s6774_s18 = smov %s6127_s20  ;;  %s6775_s19 = smov %s6779_s21 }
 0x7d6   : > { %s6776_s20 = smov %s6783_s13 }
 0x7da   : > { %s24_s9 = sadd.s32 1, %s6772_s26  }
 0x7db   : > { %p21_p11 = scmp.ge.s32.totalorder %s24_s9, 8   ;;  %s6777_s21 = smov %s24_s9 }
 0x7dd   :  { %23 = sbr.rel (!%p21_p11) target bundleno = 11 (0xb), region = 245 }
 0x7e4   :  { %3431 = vsyncpa [#allocation7], 1 }
 0x7e5   :  { %3433 = vsyncpa [#allocation7 + $0x1], 1 }
 0x7e6   :  { %3434 = vsyncpa [#allocation9], 1 }
 0x7e7   :  { %3435 = vsyncpa [#allocation12], 1 }
 0x7e8   :  { %3436 = vsyncmov [#allocation5] }
 0x7eb   :  { %s3437_s10 = vpop.sfrf %3436 }
 0x7ec   :  { %p3607_p12 = scmp.ne.s32.totalorder %s3437_s10, 0 }
 0x7ee   :  { %3441 = shalt.err (%p3607_p12)  }
 0x7ef   :  { %3443 = vsyncmov [#allocation5 + $0x1] }
 0x7f2   :  { %s3444_s14 = vpop.sfrf %3443 }
 0x7f3   :  { %p3608_p13 = scmp.ne.s32.totalorder %s3444_s14, 0 }
 0x7f5   :  { %3448 = shalt.err (%p3608_p13)  }

// kernel: postnet_forward.1
= control target key start
LH: loop header
LB: loop body
LE: loop exit
PB: predicated region body
PF: predicated region fallthrough
CT: control target
= control target key end

     0   :  { %s6727_s0 = inlined_call_operand.vmem [shape: f32[2,72,128], index: 0, kind: input, shape index: {}]   ;;  %s6728_s1 = inlined_call_operand.hbm [shape: f32[5,128,128], index: 1, kind: input, shape index: {}]   ;;  %s6729_s2 = inlined_call_operand.hbm [shape: f32[5,128,128], index: 2, kind: input, shape index: {}]   ;;  %s6730_s3 = inlined_call_operand.hbm [shape: f32[5,128,128], index: 3, kind: input, shape index: {}]   ;;  %s6731_s4 = inlined_call_operand.hbm [shape: f32[5,128,128], index: 4, kind: input, shape index: {}]   ;;  %s6732_s5 = inlined_call_operand.hbm [shape: f32[5,128,128], index: 5, kind: input, shape index: {}]   ;;  %s6733_s6 = inlined_call_operand.vmem [shape: f32[1,128], index: 6, kind: input, shape index: {}]   ;;  %s6734_s7 = inlined_call_operand.vmem [shape: f32[1,128], index: 7, kind: input, shape index: {}]   ;;  %s6735_s8 = inlined_call_operand.vmem [shape: f32[1,128], index: 8, kind: input, shape index: {}]   ;;  %s6736_s9 = inlined_call_operand.vmem [shape: f32[1,128], index: 9, kind: input, shape index: {}]   ;;  %s6737_s10 = inlined_call_operand.vmem [shape: f32[1,128], index: 10, kind: input, shape index: {}]   ;;  %s6738_s11 = inlined_call_operand.vmem [shape: f32[2,48,128], index: 11, kind: output, shape index: {}]  }
   0x1   :  { %6745 = sst [smem:[#allocation21_spill]] %s6728_s1 }
   0x2   :  { %6746 = sst [smem:[#allocation22_spill]] %s6729_s2 }
   0x3   :  { %6747 = sst [smem:[#allocation23_spill]] %s6731_s4 }
   0x4   :  { %6748 = sst [smem:[#allocation24_spill]] %s6736_s9 }
   0x5   :  { %6749 = sst [smem:[#allocation25_spill]] %s6737_s10 }
   0x6   :  { %16 = vsyncpa [#allocation7], 0 }
   0x7   :  { %17 = vsyncpa [#allocation9], 0 }
   0x8   :  { %18 = vsyncpa [#allocation12], 0  ;;  %s6203_s17 = smov 0   ;;  %s6205_s18 = smov 0  }
   0x9   :  { %s6207_s19 = smov 0   ;;  %s6209_s20 = smov 0  }
   0xa   :  { %s6211_s21 = smov 0  }
   0xb LB: > { %6750 = sst [smem:[#allocation20_spill]] %s6131_s21  ;;  %s3570_s22 = sadd.s32 4294967295, %s6131_s21   ;;  %s6131_s21 = sphi %s6211_s21, %s6777_s21   ;;  %s6127_s20 = sphi %s6209_s20, %s6776_s20   ;;  %s6123_s19 = sphi %s6207_s19, %s6775_s19   ;;  %s6119_s18 = sphi %s6205_s18, %s6774_s18   ;;  %s6115_s17 = sphi %s6203_s17, %s6773_s17  }
   0xc   : > { %p3572_p0 = scmp.ge.s32.totalorder %s6131_s21, 1  ;;  %p279_p1 = scmp.lt.s32.totalorder %s6131_s21, 7 }
   0xd   : > { %p6231_p2 = scmp.eq.s32.totalorder %s3570_s22, 0  ;;  %s6133_s25 = smov [#allocation8]  }
   0xe   : > { %p6235_p3 = pnand %p3572_p0, %p279_p1  ;;  %s304_s26 = sshll.u32 %s6133_s25, 4  ;;  %s305_s26 = int_to_ptr.vmem [resolvable:$true] %s304_s26 }
   0xf   : > { %s6751_s23 = scalar_select %p6231_p2, 1, 0 }
  0x10   : > { %s6752_s24 = scalar_select %p6235_p3, 1, 0 }
  0x11   : > { %p5835_p4 = pneg %p6235_p3  ;;  %s6134_s27 = smov [#allocation11]  }
  0x12   : > { %s330_s28 = sshll.u32 %s6134_s27, 4  ;;  %s6754_s2 = sld [smem:[#allocation22_spill]]  ;;  %s6241_s28 = int_to_ptr.vmem [resolvable:$true] %s330_s28 }
  0x13   : > { %p6245_p5 = pnand %p6231_p2, %p5835_p4 }
  0x15   : > { %p6257_p7 = pneg %p6245_p5 }
  0x18   : > { %s5939_s13 = scalar_lea.hbm %s6754_s2, 10240 }
  0x19   : > { %p5940_p6 = scmp.ne.s32.totalorder %s6754_s2, %s5939_s13  ;;  %p5946_p10 = scmp.lt.u32.totalorder %s5939_s13, %s6754_s2 }
  0x1b   : > { %p5942_p8 = pnand %p6257_p7, %p5940_p6 }
  0x1d   : > { %p5943_p9 = pneg %p5942_p8 }
  0x1f   : > { %p5948_p11 = pnand %p5946_p10, %p5943_p9 }
  0x21   : > { %5951 = shalt.err (!%p5948_p11)
}
  0x22   : > { %s5952_s27 = scalar_lea.vmem %s305_s26, 10240  ;;  %p5960_p1 = scmp.lt.s32.totalorder %s305_s26, %s305_s26 }
  0x23   : > { %p5953_p12 = scmp.ne.s32.totalorder %s305_s26, %s5952_s27  ;;  %p5961_p4 = scmp.lt.s32.totalorder %s5952_s27, %s5952_s27 }
  0x25   : > { %p5955_p13 = pnand %p5953_p12, %p6257_p7  ;;  %p5962_p2 = por %p5961_p4, %p5960_p1 }
  0x27   : > { %p5956_p0 = pneg %p5955_p13 }
  0x29   : > { %p5963_p3 = pnand %p5962_p2, %p5956_p0 }
  0x2b   : > { %5966 = shalt.err (!%p5963_p3)
}
  0x2c   : > { %s6743_s30 = smov 128   ;;  %s6136_s12 = smov 8  }
  0x2d   : > { %5841 = dma.hbm_to_vmem [thread:$0]  (!%p6245_p5), %s6754_s2, 10240, %s305_s26, [#allocation9], %s6743_s30, %s6743_s30, %s6136_s12  }
  0x2e   : > { %s6756_s4 = sld [smem:[#allocation23_spill]] }
  0x34   : > { %s5967_s25 = scalar_lea.hbm %s6756_s4, 10240 }
  0x35   : > { %p5968_p2 = scmp.ne.s32.totalorder %s6756_s4, %s5967_s25  ;;  %p5974_p8 = scmp.lt.u32.totalorder %s5967_s25, %s6756_s4 }
  0x37   : > { %p5970_p3 = pnand %p5968_p2, %p6257_p7 }
  0x39   : > { %p5971_p6 = pneg %p5970_p3 }
  0x3b   : > { %p5976_p9 = pnand %p5974_p8, %p5971_p6 }
  0x3d   : > { %5979 = shalt.err (!%p5976_p9)
}
  0x3e   : > { %s5980_s26 = scalar_lea.vmem %s6241_s28, 10240  ;;  %p5988_p13 = scmp.lt.s32.totalorder %s6241_s28, %s6241_s28 }
  0x3f   : > { %p5981_p10 = scmp.ne.s32.totalorder %s6241_s28, %s5980_s26  ;;  %p5989_p0 = scmp.lt.s32.totalorder %s5980_s26, %s5980_s26 }
  0x41   : > { %p5983_p11 = pnand %p5981_p10, %p6257_p7  ;;  %p5990_p1 = por %p5989_p0, %p5988_p13 }
  0x43   : > { %p5984_p12 = pneg %p5983_p11 }
  0x45   : > { %p5991_p4 = pnand %p5990_p1, %p5984_p12 }
  0x47   : > { %5994 = shalt.err (!%p5991_p4)
}
  0x48   : > { %5847 = dma.hbm_to_vmem [thread:$0]  (!%p6245_p5), %s6756_s4, 10240, %s6241_s28, [#allocation12], %s6743_s30, %s6743_s30, %s6136_s12  }
  0x49   : > { %s33_s21 = sadd.s32 1, %s6123_s19  ;;  %s36_s13 = sadd.s32 1, %s6127_s20 }
  0x4a   : > { %p34_p2 = scmp.ge.s32.totalorder %s33_s21, 3  ;;  %s6137_s14 = smov [#allocation6]  }
  0x4b   : > { %s291_s15 = sshll.u32 %s6137_s14, 4  ;;  %s6138_s22 = smov [#allocation10]   ;;  %s292_s15 = int_to_ptr.vmem [resolvable:$true] %s291_s15 }
  0x4c   : > { %s6779_s21 = smov (%p34_p2, %s33_s21), 0  ;;  %s6781_s13 = smov (!%p34_p2, %s36_s13), %s6127_s20 }
  0x4d   : > { %s317_s25 = sshll.u32 %s6138_s22, 4  ;;  %s6757_s1 = sld [smem:[#allocation21_spill]]  ;;  %s318_s25 = int_to_ptr.vmem [resolvable:$true] %s317_s25 }
  0x53   : > { %s5995_s9 = scalar_lea.hbm %s6757_s1, 10240 }
  0x54   : > { %p5996_p6 = scmp.ne.s32.totalorder %s6757_s1, %s5995_s9  ;;  %p6002_p10 = scmp.lt.u32.totalorder %s5995_s9, %s6757_s1 }
  0x56   : > { %p5998_p8 = pnand %p5996_p6, %p6257_p7 }
  0x58   : > { %p5999_p9 = pneg %p5998_p8 }
  0x5a   : > { %p6004_p11 = pnand %p6002_p10, %p5999_p9 }
  0x5c   : > { %6007 = shalt.err (!%p6004_p11)
}
  0x5d   : > { %s6008_s14 = scalar_lea.vmem %s292_s15, 10240  ;;  %p6016_p1 = scmp.lt.s32.totalorder %s292_s15, %s292_s15 }
  0x5e   : > { %p6009_p12 = scmp.ne.s32.totalorder %s292_s15, %s6008_s14  ;;  %p6017_p4 = scmp.lt.s32.totalorder %s6008_s14, %s6008_s14 }
  0x60   : > { %p6011_p13 = pnand %p6009_p12, %p6257_p7  ;;  %p6018_p2 = por %p6017_p4, %p6016_p1 }
  0x62   : > { %p6012_p0 = pneg %p6011_p13 }
  0x64   : > { %p6019_p3 = pnand %p6018_p2, %p6012_p0 }
  0x66   : > { %6022 = shalt.err (!%p6019_p3)
}
  0x67   : > { %s6758_s2 = smov 128   ;;  %p6759_p6 = scmp.ge.s32.totalorder %s6781_s13, 2 }
  0x68   : > { %5838 = dma.hbm_to_vmem [thread:$0]  (!%p6245_p5), %s6757_s1, 10240, %s292_s15, [#allocation7], %s6758_s2, %s6758_s2, %s6136_s12  }
  0x69   : > { %s6783_s13 = smov (%p6759_p6, %s6781_s13), 0  ;;  %s6023_s9 = scalar_lea.hbm %s6730_s3, 10240 }
  0x6a   : > { %p6024_p3 = scmp.ne.s32.totalorder %s6730_s3, %s6023_s9  ;;  %p6030_p10 = scmp.lt.u32.totalorder %s6023_s9, %s6730_s3 }
  0x6c   : > { %p6026_p8 = pnand %p6024_p3, %p6257_p7 }
  0x6e   : > { %p6027_p9 = pneg %p6026_p8 }
  0x70   : > { %p6032_p11 = pnand %p6030_p10, %p6027_p9 }
  0x72   : > { %6035 = shalt.err (!%p6032_p11)
}
  0x73   : > { %s6036_s15 = scalar_lea.vmem %s318_s25, 10240  ;;  %p6044_p1 = scmp.lt.s32.totalorder %s318_s25, %s318_s25 }
  0x74   : > { %p6037_p12 = scmp.ne.s32.totalorder %s318_s25, %s6036_s15  ;;  %p6045_p4 = scmp.lt.s32.totalorder %s6036_s15, %s6036_s15 }
  0x76   : > { %p6039_p13 = pnand %p6037_p12, %p6257_p7  ;;  %p6046_p2 = por %p6045_p4, %p6044_p1 }
  0x78   : > { %p6040_p0 = pneg %p6039_p13 }
  0x7a   : > { %p6047_p6 = pnand %p6046_p2, %p6040_p0 }
  0x7c   : > { %6050 = shalt.err (!%p6047_p6)
}
  0x7d   : > { %5844 = dma.hbm_to_vmem [thread:$0]  (!%p6245_p5), %s6730_s3, 10240, %s318_s25, [#allocation9], %s6758_s2, %s6758_s2, %s6136_s12  }
  0x7e   : > { %s6139_s22 = smov [#allocation13]   ;;  %s6051_s10 = scalar_lea.hbm %s6732_s5, 10240 }
  0x7f   : > { %s343_s27 = sshll.u32 %s6139_s22, 4  ;;  %p6052_p3 = scmp.ne.s32.totalorder %s6732_s5, %s6051_s10  ;;  %s344_s27 = int_to_ptr.vmem [resolvable:$true] %s343_s27 }
  0x80   : > { %p6058_p10 = scmp.lt.u32.totalorder %s6051_s10, %s6732_s5 }
  0x81   : > { %p6054_p8 = pnand %p6052_p3, %p6257_p7 }
  0x83   : > { %p6055_p9 = pneg %p6054_p8 }
  0x85   : > { %p6060_p11 = pnand %p6058_p10, %p6055_p9 }
  0x87   : > { %6063 = shalt.err (!%p6060_p11)
}
  0x88   : > { %s6064_s25 = scalar_lea.vmem %s344_s27, 10240  ;;  %p6072_p1 = scmp.lt.s32.totalorder %s344_s27, %s344_s27 }
  0x89   : > { %p6065_p12 = scmp.ne.s32.totalorder %s344_s27, %s6064_s25  ;;  %p6073_p4 = scmp.lt.s32.totalorder %s6064_s25, %s6064_s25 }
  0x8b   : > { %p6067_p13 = pnand %p6065_p12, %p6257_p7  ;;  %p6074_p2 = por %p6073_p4, %p6072_p1 }
  0x8d   : > { %p6068_p0 = pneg %p6067_p13 }
  0x8f   : > { %p6075_p6 = pnand %p6074_p2, %p6068_p0 }
  0x91   : > { %6078 = shalt.err (!%p6075_p6)
}
  0x92   : > { %5850 = dma.hbm_to_vmem [thread:$0]  (!%p6245_p5), %s6732_s5, 10240, %s344_s27, [#allocation12], %s6758_s2, %s6758_s2, %s6136_s12  }
  0x93   : > { %p6760_p3 = scmp.ne.s32.totalorder %s6752_s24, 0 }
  0x94   : > { %p6761_p7 = scmp.ne.s32.totalorder (!%p6760_p3), %s6751_s23, 0 }
  0x95   : > { %374 = sbr.rel (%p6760_p3) target bundleno = 2004 (0x7d4), region = 60 }
  0x9c   : > { %6100 = dma.done.wait (%p6761_p7), [#allocation7], 10240  }
  0x9d   : > { %6102 = vsyncadd (%p6761_p7), [#allocation7], 4294957056 }
  0x9e   : > { %6104 = dma.done.wait (%p6761_p7), [#allocation9], 20480  }
  0x9f   : > { %6106 = vsyncadd (%p6761_p7), [#allocation9], 4294946816 }
  0xa0   : > { %6108 = dma.done.wait (%p6761_p7), [#allocation12], 20480  }
  0xa1   : > { %6110 = vsyncadd (%p6761_p7), [#allocation12], 4294946816  ;;  %s3584_s24 = sshll.u32 %s6115_s17, 1  ;;  %p428_p5 = scmp.lt.s32.totalorder %s6119_s18, 1 }
  0xa2   : > { %p430_p8 = scmp.lt.s32.totalorder %s3584_s24, 5  ;;  %s438_s12 = ssub.s32 0, %s6115_s17 }
  0xa3   : > { %s429_s29 = scalar_select %p428_p5, %s6119_s18, 1 }
  0xa4   : > { %s6785_s24 = smov (!%p430_p8, %s3584_s24), 5  ;;  %p437_p9 = scmp.lt.s32.totalorder %s6115_s17, 0 }
  0xa5   : > { %s5814_s16 = smul.u32 6, %s429_s29  ;;  %s3586_s2 = smin.u32 %s6115_s17, %s438_s12 }
  0xa6   : > { %s440_s22 = sand.u32 1, %s3586_s2   ;;  %p3589_p11 = scmp.ne.s32.totalorder %s6115_s17, 0 }
  0xa7   : > { %s433_s30 = sadd.s32 %s5814_s16, %s6785_s24  ;;  %s441_s23 = ssub.s32 0, %s440_s22 }
  0xa8   : > { %s3585_s27 = sshll.u32 %s433_s30, 3  ;;  %s6787_s23 = smov (!%p437_p9, %s441_s23), %s440_s22 }
  0xa9   : > { %s6396_s10 = scalar_lea.vmem %s6738_s11, %s3585_s27  ;;  %p3588_p10 = scmp.lt.s32.totalorder %s6787_s23, 0 }
  0xaa   : > { %s447_s28 = sadd.s32 2, %s6787_s23  ;;  %452 = sbr.rel (%p3589_p11) target bundleno = 181 (0xb5), region = 84 }
  0xab   : > { %s6789_s28 = smov (!%p3588_p10, %s447_s28), %s6787_s23  ;;  %s3590_s14 = sshll.u32 (!%p3589_p11), %s6115_s17, 4 }
  0xac   : > { %s454_s15 = smul.u32 (!%p3589_p11), 72, %s6119_s18  ;;  %s459_s12 = scalar_lea.sflag (!%p3589_p11), [#allocation5], %s6789_s28 }
  0xad   : > { %s457_s25 = smul.u32 (!%p3589_p11), 48, %s6789_s28 }
  0xae   : > { %s455_s1 = sadd.s32 (!%p3589_p11), %s3590_s14, %s454_s15 }
  0xaf   : > { %s456_s29 = scalar_lea.vmem (!%p3589_p11), %s6727_s0, %s455_s1  ;;  %s458_s16 = scalar_lea.vmem (!%p3589_p11), [#allocation2], %s457_s25 }
  0xb0   : > { %v492_v0 = vld [vmem:[%s456_s29] sm:$0xff] (!%p3589_p11)  ;;  %v494_v1 = vld [vmem:[%s456_s29 + $0x8] sm:$0xff] (!%p3589_p11)  ;;  %v496_v2 = vld [vmem:[%s456_s29 + $0x10] sm:$0xff] (!%p3589_p11) }
  0xb1   : > { %493 = vst [vmem:[%s458_s16] sm:$0xff] %v492_v0  ;;  %495 = vst [vmem:[%s458_s16 + $0x8] sm:$0xff] %v494_v1  ;;  %v498_v3 = vld [vmem:[%s456_s29 + $0x18] sm:$0xff]  ;;  %v500_v4 = vld [vmem:[%s456_s29 + $0x20] sm:$0xff] }
  0xb2   : > { %497 = vst [vmem:[%s458_s16 + $0x10] sm:$0xff] %v496_v2  ;;  %499 = vst [vmem:[%s458_s16 + $0x18] sm:$0xff] %v498_v3 }
  0xb3   : > { %501 = vst [vmem:[%s458_s16 + $0x20] sm:$0xff] %v500_v4 }
  0xb4   : > { %509 = vsyncadd %s459_s12, 640 }
  0xb5 PF: > { %s6409_s2 = sshll.u32 %s6115_s17, 4  ;;  %s511_s30 = scalar_lea.sflag [#allocation5], %s6789_s28 }
  0xb6   : > { %6111 = dma.done.wait %s511_s30, 640 }
  0xb7   : > { %6112 = vsyncadd %s511_s30, 4294966656  ;;  %s515_s22 = sadd.s32 1, %s6115_s17 }
  0xb8   : > { %p3592_p12 = scmp.ge.s32.totalorder %s515_s22, 3 }
  0xb9   : > { %s520_s27 = ssub.s32 (!%p3592_p12), 1, %s6789_s28  ;;  %s3466_s23 = smul.u32 (!%p3592_p12), 72, %s6119_s18 }
  0xba   : > { %519 = sbr.rel (%p3592_p12) target bundleno = 194 (0xc2), region = 122  ;;  %s527_s17 = scalar_lea.sflag (!%p3592_p12), [#allocation5], %s520_s27 }
  0xbb   : > { %s525_s26 = smul.u32 (!%p3592_p12), 48, %s520_s27  ;;  %s3467_s9 = sadd.s32 (!%p3592_p12), %s6409_s2, %s3466_s23 }
  0xbc   : > { %s3468_s25 = scalar_lea.vmem (!%p3592_p12), %s6727_s0, %s3467_s9 }
  0xbd   : > { %v3594_v5 = vld [vmem:[%s3468_s25 + $0x10] sm:$0xff] (!%p3592_p12)  ;;  %v3595_v6 = vld [vmem:[%s3468_s25 + $0x18] sm:$0xff] (!%p3592_p12)  ;;  %v3596_v7 = vld [vmem:[%s3468_s25 + $0x20] sm:$0xff] (!%p3592_p12)  ;;  %s526_s1 = scalar_lea.vmem (!%p3592_p12), [#allocation2], %s525_s26 }
  0xbe   : > { %561 = vst [vmem:[%s526_s1] sm:$0xff] (!%p3592_p12), %v3594_v5  ;;  %563 = vst [vmem:[%s526_s1 + $0x8] sm:$0xff] (!%p3592_p12), %v3595_v6  ;;  %v3597_v8 = vld [vmem:[%s3468_s25 + $0x28] sm:$0xff] (!%p3592_p12)  ;;  %v3598_v9 = vld [vmem:[%s3468_s25 + $0x30] sm:$0xff] (!%p3592_p12) }
  0xbf   : > { %565 = vst [vmem:[%s526_s1 + $0x10] sm:$0xff] (!%p3592_p12), %v3596_v7  ;;  %567 = vst [vmem:[%s526_s1 + $0x18] sm:$0xff] (!%p3592_p12), %v3597_v8 }
  0xc0   : > { %569 = vst [vmem:[%s526_s1 + $0x20] sm:$0xff] (!%p3592_p12), %v3598_v9 }
  0xc1   : > { %577 = vsyncadd %s527_s17, 640 }
  0xc2 PF: > { %v578_v10 = vlaneseq  ;;  %v610_v11 = vld [vmem:[#allocation6 + $0x80] sm:$0xff]  ;;  %v611_v12 = vld [vmem:[#allocation6 + $0x88] sm:$0xff]  ;;  %v612_v16 = vld [vmem:[#allocation6 + $0x90] sm:$0xff]  ;;  %s583_s18 = smul.u32 48, %s6789_s28  ;;  %s1145_s4 = sadd.s32 4294967288, %s6409_s2 }
  0xc3   : > { %v801_v13 = vld [vmem:[#allocation6 + $0x100] sm:$0xff]  ;;  %v5054_v14 = vpack.c.bf16 %v611_v12, %v610_v11  ;;  %v802_v15 = vld [vmem:[#allocation6 + $0x108] sm:$0xff]  ;;  %v613_v17 = vld [vmem:[#allocation6 + $0x98] sm:$0xff]  ;;  %s1147_s24 = sadd.s32 24, %s6409_s2  ;;  %p6457_p13 = scmp.lt.s32.totalorder %s1145_s4, 0 }
  0xc4   : > { %v6419_v18 = vshrl.u32 %v578_v10, 7  ;;  %v5118_v19 = vpack.c.bf16 %v802_v15, %v801_v13  ;;  %v5058_v20 = vpack.c.bf16 %v613_v17, %v612_v16  ;;  %v803_v21 = vld [vmem:[#allocation6 + $0x110] sm:$0xff]  ;;  %v804_v22 = vld [vmem:[#allocation6 + $0x118] sm:$0xff]  ;;  %v614_v23 = vld [vmem:[#allocation6 + $0xa0] sm:$0xff]  ;;  %s6431_s28 = scalar_lea.vmem [#allocation2], %s583_s18  ;;  %p6461_p0 = scmp.gt.s32.totalorder %s1147_s24, 40 }
  0xc5   : > { %5055 = vmatprep.subr.bf16.mxu1 %v5054_v14  ;;  %v5122_v24 = vpack.c.bf16 %v804_v22, %v803_v21  ;;  %v615_v25 = vld [vmem:[#allocation6 + $0xa8] sm:$0xff]  ;;  %v805_v26 = vld [vmem:[#allocation6 + $0x120] sm:$0xff]  ;;  %v616_v33 = vld [vmem:[#allocation6 + $0xb0] sm:$0xff] }
  0xc6   : > { %v806_v27 = vld [vmem:[#allocation6 + $0x128] sm:$0xff]  ;;  %v6423_v28 = vadd.s32 8, %v6419_v18  ;;  %v6426_v29 = vadd.s32 16, %v6419_v18  ;;  %v6429_v30 = vadd.s32 24, %v6419_v18  ;;  %5119 = vmatprep.subr.bf16.mxu0 %v5118_v19  ;;  %5057 = vmatpush3.bf16.msra.mxu1 %v5054_v14  ;;  %v5062_v31 = vpack.c.bf16 %v615_v25, %v614_v23  ;;  %v617_v34 = vld [vmem:[#allocation6 + $0xb8] sm:$0xff]  ;;  %v807_v35 = vld [vmem:[#allocation6 + $0x130] sm:$0xff]  ;;  %p1149_p1 = por %p6461_p0, %p6457_p13 }
  0xc7   : > { %5121 = vmatpush3.bf16.msra.mxu0 %v5118_v19  ;;  %5059 = vmatprep.subr.bf16.mxu1 %v5058_v20  ;;  %v5126_v32 = vpack.c.bf16 %v806_v27, %v805_v26  ;;  %v808_v36 = vld [vmem:[#allocation6 + $0x138] sm:$0xff]  ;;  %v5066_v37 = vpack.c.bf16 %v617_v34, %v616_v33  ;;  %v618_v39 = vld [vmem:[#allocation6 + $0xc0] sm:$0xff]  ;;  %v619_v40 = vld [vmem:[#allocation6 + $0xc8] sm:$0xff] }
  0xc8   : > { %5123 = vmatprep.subr.bf16.mxu0 %v5122_v24  ;;  %v5130_v38 = vpack.c.bf16 %v808_v36, %v807_v35  ;;  %v605_v41 = vld [vmem:[%s6431_s28 + $0x1] sm:$0xff]  ;;  %v5070_v45 = vpack.c.bf16 %v619_v40, %v618_v39  ;;  %v606_v11 = vld [vmem:[%s6431_s28 + $0x9] sm:$0xff]  ;;  %v608_v21 = vld [vmem:[%s6431_s28 + $0x19] sm:$0xff] }
  0xc9   : > { %v809_v42 = vld [vmem:[#allocation6 + $0x140] sm:$0xff]  ;;  %v810_v43 = vld [vmem:[#allocation6 + $0x148] sm:$0xff]  ;;  %4121 = vmatprep.mubr.f32.mxu1 %v605_v41  ;;  %v620_v47 = vld [vmem:[#allocation6 + $0xd0] sm:$0xff] }
  0xca   : > { %5061 = vmatpush3.bf16.msra.mxu1 %v5058_v20  ;;  %v796_v44 = vld [vmem:[%s6431_s28 + $0x2] sm:$0xff]  ;;  %v5134_v46 = vpack.c.bf16 %v810_v43, %v809_v42  ;;  %v797_v12 = vld [vmem:[%s6431_s28 + $0xa] sm:$0xff]  ;;  %v798_v22 = vld [vmem:[%s6431_s28 + $0x12] sm:$0xff] }
  0xcb   : > { %5125 = vmatpush3.bf16.msra.mxu0 %v5122_v24  ;;  %5063 = vmatprep.subr.bf16.mxu1 %v5062_v31  ;;  %v621_v48 = vld [vmem:[#allocation6 + $0xd8] sm:$0xff]  ;;  %v811_v49 = vld [vmem:[#allocation6 + $0x150] sm:$0xff]  ;;  %v622_v53 = vld [vmem:[#allocation6 + $0xe0] sm:$0xff] }
  0xcc   : > { %5127 = vmatprep.subr.bf16.mxu0 %v5126_v32  ;;  %4197 = vmatprep.mubr.f32.mxu0 %v796_v44  ;;  %v812_v50 = vld [vmem:[#allocation6 + $0x158] sm:$0xff]  ;;  %v5074_v51 = vpack.c.bf16 %v621_v48, %v620_v47  ;;  %v623_v54 = vld [vmem:[#allocation6 + $0xe8] sm:$0xff]  ;;  %v813_v55 = vld [vmem:[#allocation6 + $0x160] sm:$0xff] }
  0xcd   : > { %v5138_v52 = vpack.c.bf16 %v812_v50, %v811_v49  ;;  %v814_v56 = vld [vmem:[#allocation6 + $0x168] sm:$0xff]  ;;  %v5078_v57 = vpack.c.bf16 %v623_v54, %v622_v53  ;;  %v624_v59 = vld [vmem:[#allocation6 + $0xf0] sm:$0xff]  ;;  %v625_v60 = vld [vmem:[#allocation6 + $0xf8] sm:$0xff] }
  0xce   : > { %5065 = vmatpush3.bf16.msra.mxu1 %v5062_v31  ;;  %v5142_v58 = vpack.c.bf16 %v814_v56, %v813_v55  ;;  %v815_v61 = vld [vmem:[#allocation6 + $0x170] sm:$0xff]  ;;  %v816_v62 = vld [vmem:[#allocation6 + $0x178] sm:$0xff]  ;;  %v5082_v63 = vpack.c.bf16 %v625_v60, %v624_v59  ;;  %v589_v1 = vld [vmem:[#allocation6] sm:$0xff] }
  0xcf   : > { %5129 = vmatpush3.bf16.msra.mxu0 %v5126_v32  ;;  %5067 = vmatprep.subr.bf16.mxu1 %v5066_v37  ;;  %v5146_v0 = vpack.c.bf16 %v816_v62, %v815_v61  ;;  %v590_v2 = vld [vmem:[#allocation6 + $0x8] sm:$0xff]  ;;  %v911_v3 = vld [vmem:[#allocation6 + $0x180] sm:$0xff]  ;;  %v591_v7 = vld [vmem:[#allocation6 + $0x10] sm:$0xff] }
  0xd0   : > { %5131 = vmatprep.subr.bf16.mxu0 %v5130_v38  ;;  %v912_v4 = vld [vmem:[#allocation6 + $0x188] sm:$0xff]  ;;  %v5086_v5 = vpack.c.bf16 %v590_v2, %v589_v1  ;;  %v592_v8 = vld [vmem:[#allocation6 + $0x18] sm:$0xff]  ;;  %v913_v9 = vld [vmem:[#allocation6 + $0x190] sm:$0xff] }
  0xd1   : > { %v5150_v6 = vpack.c.bf16 %v912_v4, %v911_v3  ;;  %v914_v10 = vld [vmem:[#allocation6 + $0x198] sm:$0xff]  ;;  %v5090_v13 = vpack.c.bf16 %v592_v8, %v591_v7  ;;  %v593_v15 = vld [vmem:[#allocation6 + $0x20] sm:$0xff]  ;;  %v594_v16 = vld [vmem:[#allocation6 + $0x28] sm:$0xff] }
  0xd2   : > { %5069 = vmatpush3.bf16.msra.mxu1 %v5066_v37  ;;  %v5154_v14 = vpack.c.bf16 %v914_v10, %v913_v9  ;;  %v915_v17 = vld [vmem:[#allocation6 + $0x1a0] sm:$0xff]  ;;  %v916_v19 = vld [vmem:[#allocation6 + $0x1a8] sm:$0xff]  ;;  %v5094_v23 = vpack.c.bf16 %v594_v16, %v593_v15  ;;  %v595_v26 = vld [vmem:[#allocation6 + $0x30] sm:$0xff] }
  0xd3   : > { %5133 = vmatpush3.bf16.msra.mxu0 %v5130_v38  ;;  %5071 = vmatprep.subr.bf16.mxu1 %v5070_v45  ;;  %v607_v20 = vld [vmem:[%s6431_s28 + $0x11] sm:$0xff]  ;;  %v799_v24 = vld [vmem:[%s6431_s28 + $0x1a] sm:$0xff]  ;;  %v5158_v25 = vpack.c.bf16 %v916_v19, %v915_v17  ;;  %v906_v34 = vld [vmem:[%s6431_s28 + $0x3] sm:$0xff] }
  0xd4   : > { %5135 = vmatprep.subr.bf16.mxu0 %v5134_v46  ;;  %v596_v27 = vld [vmem:[#allocation6 + $0x38] sm:$0xff]  ;;  %v917_v31 = vld [vmem:[#allocation6 + $0x1b0] sm:$0xff]  ;;  %v597_v37 = vld [vmem:[#allocation6 + $0x40] sm:$0xff] }
  0xd5   : > { %v918_v32 = vld [vmem:[#allocation6 + $0x1b8] sm:$0xff]  ;;  %v585_v33 = vld [vmem:[%s6431_s28] sm:$0xff]  ;;  %v5098_v35 = vpack.c.bf16 %v596_v27, %v595_v26  ;;  %v598_v38 = vld [vmem:[#allocation6 + $0x48] sm:$0xff] }
  0xd6   : > { %5073 = vmatpush3.bf16.msra.mxu1 %v5070_v45  ;;  %v5162_v36 = vpack.c.bf16 %v918_v32, %v917_v31  ;;  %v919_v39 = vld [vmem:[#allocation6 + $0x1c0] sm:$0xff]  ;;  %v920_v40 = vld [vmem:[#allocation6 + $0x1c8] sm:$0xff]  ;;  %v5102_v41 = vpack.c.bf16 %v598_v38, %v597_v37  ;;  %v599_v43 = vld [vmem:[#allocation6 + $0x50] sm:$0xff] }
  0xd7   : > { %5137 = vmatpush3.bf16.msra.mxu0 %v5134_v46  ;;  %5075 = vmatprep.subr.bf16.mxu1 %v5074_v51  ;;  %v5166_v42 = vpack.c.bf16 %v920_v40, %v919_v39  ;;  %v600_v44 = vld [vmem:[#allocation6 + $0x58] sm:$0xff]  ;;  %v921_v45 = vld [vmem:[#allocation6 + $0x1d0] sm:$0xff]  ;;  %v601_v49 = vld [vmem:[#allocation6 + $0x60] sm:$0xff] }
  0xd8   : > { %5139 = vmatprep.subr.bf16.mxu0 %v5138_v52  ;;  %v922_v46 = vld [vmem:[#allocation6 + $0x1d8] sm:$0xff]  ;;  %v5106_v47 = vpack.c.bf16 %v600_v44, %v599_v43  ;;  %v602_v50 = vld [vmem:[#allocation6 + $0x68] sm:$0xff]  ;;  %v603_v55 = vld [vmem:[#allocation6 + $0x70] sm:$0xff] }
  0xd9   : > { %v5170_v48 = vpack.c.bf16 %v922_v46, %v921_v45  ;;  %v5110_v53 = vpack.c.bf16 %v602_v50, %v601_v49  ;;  %v604_v56 = vld [vmem:[#allocation6 + $0x78] sm:$0xff]  ;;  %v1021_v61 = vld [vmem:[#allocation6 + $0x200] sm:$0xff]  ;;  %v1022_v62 = vld [vmem:[#allocation6 + $0x208] sm:$0xff] }
  0xda   : > { %5077 = vmatpush3.bf16.msra.mxu1 %v5074_v51  ;;  %v923_v51 = vld [vmem:[#allocation6 + $0x1e0] sm:$0xff]  ;;  %v5114_v59 = vpack.c.bf16 %v604_v56, %v603_v55  ;;  %v1024_v1 = vld [vmem:[#allocation6 + $0x218] sm:$0xff]  ;;  %v1026_v8 = vld [vmem:[#allocation6 + $0x228] sm:$0xff]  ;;  %v1153_v56 = vstv (%p1149_p1), %s1145_s4 }
  0xdb   : > { %5141 = vmatpush3.bf16.msra.mxu0 %v5138_v52  ;;  %5079 = vmatprep.subr.bf16.mxu1 %v5078_v57  ;;  %v924_v52 = vld [vmem:[#allocation6 + $0x1e8] sm:$0xff]  ;;  %v587_v4 = vld [vmem:[%s6431_s28 + $0x10] sm:$0xff]  ;;  %v1036_v27 = vld [vmem:[#allocation6 + $0x278] sm:$0xff] }
  0xdc   : > { %5143 = vmatprep.subr.bf16.mxu0 %v5142_v58  ;;  %v5174_v54 = vpack.c.bf16 %v924_v52, %v923_v51  ;;  %v586_v2 = vld [vmem:[%s6431_s28 + $0x8] sm:$0xff]  ;;  %v1025_v7 = vld [vmem:[#allocation6 + $0x220] sm:$0xff]  ;;  %v588_v9 = vld [vmem:[%s6431_s28 + $0x18] sm:$0xff] }
  0xdd   : > { %v907_v3 = vld [vmem:[%s6431_s28 + $0xb] sm:$0xff]  ;;  %v909_v10 = vld [vmem:[%s6431_s28 + $0x1b] sm:$0xff] }
  0xde   : > { %5081 = vmatpush3.bf16.msra.mxu1 %v5078_v57  ;;  %v925_v57 = vld [vmem:[#allocation6 + $0x1f0] sm:$0xff]  ;;  %v1029_v16 = vld [vmem:[#allocation6 + $0x240] sm:$0xff]  ;;  %v1030_v17 = vld [vmem:[#allocation6 + $0x248] sm:$0xff] }
  0xdf   : > { %5145 = vmatpush3.bf16.msra.mxu0 %v5142_v58  ;;  %5083 = vmatprep.subr.bf16.mxu1 %v5082_v63  ;;  %v926_v58 = vld [vmem:[#allocation6 + $0x1f8] sm:$0xff]  ;;  %v5198_v19 = vpack.c.bf16 %v1030_v17, %v1029_v16  ;;  %v1035_v26 = vld [vmem:[#allocation6 + $0x270] sm:$0xff]  ;;  %v3600_v40 = vld [vmem:[%s6733_s6] ss:$0 sm:$0xff] }
  0xe0   : > { %5147 = vmatprep.subr.bf16.mxu0 %v5146_v0  ;;  %v5178_v60 = vpack.c.bf16 %v926_v58, %v925_v57  ;;  %v5210_v31 = vpack.c.bf16 %v1036_v27, %v1035_v26  ;;  %v1017_v32 = vld [vmem:[%s6431_s28 + $0xc] sm:$0xff]  ;;  %v1154_v57 = vadd.s32 (%p1149_p1), %v1153_v56, %v6419_v18  ;;  %v1155_v58 = vadd.s32 (%p1149_p1), %v1153_v56, %v6423_v28 }
  0xe2   : > { %5085 = vmatpush3.bf16.msra.mxu1 %v5082_v63  ;;  %v5182_v63 = vpack.c.bf16 %v1022_v62, %v1021_v61  ;;  %vm1158_vm0 = vcmp.ge.s32.totalorder (%p1149_p1), %v1154_v57, 0  ;;  %vm1162_vm1 = vcmp.lt.s32.totalorder (%p1149_p1), %v1154_v57, 40  ;;  %vm1159_vm2 = vcmp.ge.s32.totalorder (%p1149_p1), %v1155_v58, 0 }
  0xe3   : > { %5149 = vmatpush3.bf16.msra.mxu0 %v5146_v0  ;;  %5087 = vmatprep.subr.bf16.mxu1 %v5086_v5  ;;  %v1023_v0 = vld [vmem:[#allocation6 + $0x210] sm:$0xff]  ;;  %vm1163_vm3 = vcmp.lt.s32.totalorder (%p1149_p1), %v1155_v58, 40  ;;  %vm1166_vm4 = vmand (%p1149_p1), %vm1158_vm0, %vm1162_vm1 }
  0xe4   : > { %5151 = vmatprep.subr.bf16.mxu0 %v5150_v6  ;;  %vm1167_vm9 = vmand (%p1149_p1), %vm1159_vm2, %vm1163_vm3 }
  0xe5   : > { %4122 = vmatmul.mubr.f32.vlgmr.msra.gmra.mrb[0].mxu1 %v606_v11  ;;  %v5190_v11 = vpack.c.bf16 %v1026_v8, %v1025_v7 }
  0xe6   : > { %5089 = vmatpush3.bf16.msra.mxu1 %v5086_v5  ;;  %4198 = vmatmul.mubr.f32.vlgmr.msra.gmra.mrb[0].mxu0 %v797_v12  ;;  %v5186_v5 = vpack.c.bf16 %v1024_v1, %v1023_v0  ;;  %v1016_v12 = vld [vmem:[%s6431_s28 + $0x4] sm:$0xff] }
  0xe7   : > { %5153 = vmatpush3.bf16.msra.mxu0 %v5150_v6  ;;  %5091 = vmatprep.subr.bf16.mxu1 %v5090_v13  ;;  %v908_v6 = vld [vmem:[%s6431_s28 + $0x13] sm:$0xff] }
  0xe8   : > { %5155 = vmatprep.subr.bf16.mxu0 %v5154_v14  ;;  %4124 = vmatprep.mubr.f32.mxu1 %v607_v20  ;;  %v1031_v20 = vld [vmem:[#allocation6 + $0x250] sm:$0xff] }
  0xe9   : > { %4125 = vmatmul.mubr.f32.gmra.mrb[2].mxu1 %v608_v21  ;;  %4200 = vmatprep.mubr.f32.mxu0 %v798_v22  ;;  %v1032_v21 = vld [vmem:[#allocation6 + $0x258] sm:$0xff] }
  0xea   : > { %5093 = vmatpush3.bf16.msra.mxu1 %v5090_v13  ;;  %4201 = vmatmul.mubr.f32.gmra.mrb[2].mxu0 %v799_v24  ;;  %v1027_v13 = vld [vmem:[#allocation6 + $0x230] sm:$0xff]  ;;  %v5202_v22 = vpack.c.bf16 %v1032_v21, %v1031_v20  ;;  %v1034_v24 = vld [vmem:[#allocation6 + $0x268] sm:$0xff] }
  0xeb   : > { %5157 = vmatpush3.bf16.msra.mxu0 %v5154_v14  ;;  %5095 = vmatprep.subr.bf16.mxu1 %v5094_v23  ;;  %v1028_v14 = vld [vmem:[#allocation6 + $0x238] sm:$0xff] }
  0xec   : > { %5159 = vmatprep.subr.bf16.mxu0 %v5158_v25  ;;  %4159 = vmatprep.mubr.f32.mxu1 %v585_v33  ;;  %v5194_v15 = vpack.c.bf16 %v1028_v14, %v1027_v13  ;;  %v1018_v33 = vld [vmem:[%s6431_s28 + $0x14] sm:$0xff] }
  0xed   : > { %4235 = vmatprep.mubr.f32.mxu0 %v906_v34  ;;  %v1019_v34 = vld [vmem:[%s6431_s28 + $0x1c] sm:$0xff] }
  0xee   : > { %5097 = vmatpush3.bf16.msra.mxu1 %v5094_v23  ;;  %v1033_v23 = vld [vmem:[#allocation6 + $0x260] sm:$0xff] }
  0xef   : > { %5161 = vmatpush3.bf16.msra.mxu0 %v5158_v25  ;;  %5099 = vmatprep.subr.bf16.mxu1 %v5098_v35  ;;  %v5206_v25 = vpack.c.bf16 %v1034_v24, %v1033_v23 }
  0xf0   : > { %5163 = vmatprep.subr.bf16.mxu0 %v5162_v36 }
  0xf2   : > { %5101 = vmatpush3.bf16.msra.mxu1 %v5098_v35 }
  0xf3   : > { %5165 = vmatpush3.bf16.msra.mxu0 %v5162_v36  ;;  %5103 = vmatprep.subr.bf16.mxu1 %v5102_v41 }
  0xf4   : > { %5167 = vmatprep.subr.bf16.mxu0 %v5166_v42 }
  0xf6   : > { %5105 = vmatpush3.bf16.msra.mxu1 %v5102_v41 }
  0xf7   : > { %5169 = vmatpush3.bf16.msra.mxu0 %v5166_v42  ;;  %5107 = vmatprep.subr.bf16.mxu1 %v5106_v47 }
  0xf8   : > { %5171 = vmatprep.subr.bf16.mxu0 %v5170_v48 }
  0xfa   : > { %5109 = vmatpush3.bf16.msra.mxu1 %v5106_v47 }
  0xfb   : > { %5173 = vmatpush3.bf16.msra.mxu0 %v5170_v48  ;;  %5111 = vmatprep.subr.bf16.mxu1 %v5110_v53 }
  0xfc   : > { %5175 = vmatprep.subr.bf16.mxu0 %v5174_v54 }
  0xfe   : > { %5113 = vmatpush3.bf16.msra.mxu1 %v5110_v53 }
  0xff   : > { %5177 = vmatpush3.bf16.msra.mxu0 %v5174_v54  ;;  %5115 = vmatprep.subr.bf16.mxu1 %v5114_v59 }
 0x100   : > { %5179 = vmatprep.subr.bf16.mxu0 %v5178_v60 }
 0x102   : > { %5117 = vmatpush3.bf16.msra.mxu1 %v5114_v59  ;;  %v1156_v59 = vadd.s32 (%p1149_p1), %v1153_v56, %v6426_v29 }
 0x103   : > { %5181 = vmatpush3.bf16.msra.mxu0 %v5178_v60  ;;  %v1157_v60 = vadd.s32 (%p1149_p1), %v1153_v56, %v6429_v30 }
 0x104   : > { %5183 = vmatprep.subr.bf16.mxu0 %v5182_v63  ;;  %vm1160_vm5 = vcmp.ge.s32.totalorder (%p1149_p1), %v1156_v59, 0  ;;  %vm1164_vm6 = vcmp.lt.s32.totalorder (%p1149_p1), %v1156_v59, 40 }
 0x105   : > { %4160 = vmatmul.mubr.f32.vlgmr.msra.gmra.mrb[0].mxu1 %v586_v2  ;;  %vm1161_vm7 = vcmp.ge.s32.totalorder (%p1149_p1), %v1157_v60, 0  ;;  %vm1165_vm8 = vcmp.lt.s32.totalorder (%p1149_p1), %v1157_v60, 40  ;;  %vm1168_vm10 = vmand (%p1149_p1), %vm1160_vm5, %vm1164_vm6 }
 0x106   : > { %4236 = vmatmul.mubr.f32.vlgmr.msra.gmra.mrb[0].mxu0 %v907_v3  ;;  %4162 = vmatprep.mubr.f32.mxu1 %v587_v4  ;;  %vm1169_vm11 = vmand (%p1149_p1), %vm1161_vm7, %vm1165_vm8 }
 0x107   : > { %5185 = vmatpush3.bf16.msra.mxu0 %v5182_v63  ;;  %4238 = vmatprep.mubr.f32.mxu0 %v908_v6 }
 0x108   : > { %5187 = vmatprep.subr.bf16.mxu0 %v5186_v5 }
 0x109   : > { %4163 = vmatmul.mubr.f32.gmra.mrb[2].mxu1 %v588_v9 }
 0x10a   : > { %4239 = vmatmul.mubr.f32.gmra.mrb[2].mxu0 %v909_v10 }
 0x10b   : > { %5189 = vmatpush3.bf16.msra.mxu0 %v5186_v5  ;;  %4273 = vmatprep.mubr.f32.mxu0 %v1016_v12 }
 0x10c   : > { %5191 = vmatprep.subr.bf16.mxu0 %v5190_v11 }
 0x10f   : > { %5193 = vmatpush3.bf16.msra.mxu0 %v5190_v11 }
 0x110   : > { %5195 = vmatprep.subr.bf16.mxu0 %v5194_v15 }
 0x113   : > { %5197 = vmatpush3.bf16.msra.mxu0 %v5194_v15 }
 0x114   : > { %5199 = vmatprep.subr.bf16.mxu0 %v5198_v19 }
 0x117   : > { %5201 = vmatpush3.bf16.msra.mxu0 %v5198_v19 }
 0x118   : > { %5203 = vmatprep.subr.bf16.mxu0 %v5202_v22 }
 0x11b   : > { %5205 = vmatpush3.bf16.msra.mxu0 %v5202_v22 }
 0x11c   : > { %5207 = vmatprep.subr.bf16.mxu0 %v5206_v25 }
 0x11f   : > { %5209 = vmatpush3.bf16.msra.mxu0 %v5206_v25 }
 0x120   : > { %5211 = vmatprep.subr.bf16.mxu0 %v5210_v31 }
 0x123   : > { %5213 = vmatpush3.bf16.msra.mxu0 %v5210_v31 }
 0x126   : > { %4274 = vmatmul.mubr.f32.vlgmr.msra.gmra.mrb[0].mxu0 %v1017_v32 }
 0x127   : > { %4276 = vmatprep.mubr.f32.mxu0 %v1018_v33 }
 0x12a   : > { %4277 = vmatmul.mubr.f32.gmra.mrb[2].mxu0 %v1019_v34 }
 0x1d8   : > { %v4161_v35 = vpop.f32.mrb[0].mxu1 }
 0x1d9   : > { %v777_v36 = vpop.f32.mrb[1].mxu1 }
 0x1dc   : > { %v4164_v37 = vpop.f32.mrb[2].mxu1 }
 0x1dd   : > { %v787_v38 = vpop.f32.mrb[3].mxu1 }
 0x1f9   : > { %v4275_v39 = vpop.f32.mrb[0].mxu0 }
 0x1fa   : > { %v5774_v41 = vadd.f32 %v4275_v39, %v4161_v35  ;;  %v1103_v42 = vpop.f32.mrb[1].mxu0 }
 0x1fb   : > { %v5775_v43 = vadd.f32 %v1103_v42, %v777_v36 }
 0x1fc   : > { %v1134_v44 = vadd.f32 %v5774_v41, %v3600_v40 }
 0x1fd   : > { %v1133_v45 = vadd.f32 %v5775_v43, %v3600_v40  ;;  %v4278_v46 = vpop.f32.mrb[2].mxu0 }
 0x1fe   : > { %5911 = vtanh.f32 %v1134_v44  ;;  %v5776_v47 = vadd.f32 %v4278_v46, %v4164_v37  ;;  %v1113_v48 = vpop.f32.mrb[3].mxu0 }
 0x1ff   : > { %5913 = vtanh.f32 %v1133_v45  ;;  %v5777_v49 = vadd.f32 %v1113_v48, %v787_v38 }
 0x200   : > { %v1136_v50 = vadd.f32 %v5776_v47, %v3600_v40 }
 0x201   : > { %v1135_v51 = vadd.f32 %v5777_v49, %v3600_v40 }
 0x202   : > { %5915 = vtanh.f32 %v1136_v50 }
 0x203   : > { %5917 = vtanh.f32 %v1135_v51 }
 0x208   : > { %v5912_v52 = vpop.eup %5911  ;;  %1152 = sbr.rel (!%p1149_p1) target bundleno = 536 (0x218), region = 160 }
 0x209   : > { %v5914_v53 = vpop.eup %5913  ;;  %1142 = vst [vmem:[#allocation3 + $0x8] sm:$0xff] %v5912_v52 }
 0x20a   : > { %1141 = vst [vmem:[#allocation3] sm:$0xff] %v5914_v53 }
 0x20c   : > { %v5916_v54 = vpop.eup %5915 }
 0x20d   : > { %v5918_v55 = vpop.eup %5917  ;;  %1144 = vst [vmem:[#allocation3 + $0x18] sm:$0xff] %v5916_v54 }
 0x20e   : > { %1143 = vst [vmem:[#allocation3 + $0x10] sm:$0xff] %v5918_v55 }
 0x210   : > { %v1171_v62 = vld [vmem:[#allocation3 + $0x8] sm:$0xff] }
 0x211   : > { %v1170_v61 = vld [vmem:[#allocation3] sm:$0xff]  ;;  %v1183_v2 = vsel %vm1167_vm9, %v1171_v62, 0.0 }
 0x212   : > { %v1182_v0 = vsel %vm1166_vm4, %v1170_v61, 0.0  ;;  %1187 = vst [vmem:[#allocation3 + $0x8] sm:$0xff] %v1183_v2 }
 0x213   : > { %1186 = vst [vmem:[#allocation3] sm:$0xff] %v1182_v0 }
 0x214   : > { %v1173_v1 = vld [vmem:[#allocation3 + $0x18] sm:$0xff] }
 0x215   : > { %v1172_v63 = vld [vmem:[#allocation3 + $0x10] sm:$0xff]  ;;  %v1185_v4 = vsel %vm1169_vm11, %v1173_v1, 0.0 }
 0x216   : > { %v1184_v3 = vsel %vm1168_vm10, %v1172_v63, 0.0  ;;  %1189 = vst [vmem:[#allocation3 + $0x18] sm:$0xff] %v1185_v4 }
 0x217   : > { %1188 = vst [vmem:[#allocation3 + $0x10] sm:$0xff] %v1184_v3 }
 0x218 PF: > { %v1215_v5 = vld [vmem:[#allocation8 + $0x80] sm:$0xff]  ;;  %v1216_v6 = vld [vmem:[#allocation8 + $0x88] sm:$0xff]  ;;  %v1217_v7 = vld [vmem:[#allocation8 + $0x90] sm:$0xff]  ;;  %s1750_s22 = sadd.s32 4294967290, %s6409_s2  ;;  %s1752_s27 = sadd.s32 22, %s6409_s2 }
 0x219   : > { %v5214_v8 = vpack.c.bf16 %v1216_v6, %v1215_v5  ;;  %v1218_v9 = vld [vmem:[#allocation8 + $0x98] sm:$0xff]  ;;  %v1219_v11 = vld [vmem:[#allocation8 + $0xa0] sm:$0xff]  ;;  %v1220_v12 = vld [vmem:[#allocation8 + $0xa8] sm:$0xff]  ;;  %p6485_p4 = scmp.lt.s32.totalorder %s1750_s22, 0  ;;  %p6489_p2 = scmp.gt.s32.totalorder %s1752_s27, 40 }
 0x21a   : > { %v5218_v10 = vpack.c.bf16 %v1218_v9, %v1217_v7  ;;  %v5222_v13 = vpack.c.bf16 %v1220_v12, %v1219_v11  ;;  %v1210_v14 = vld [vmem:[#allocation3 + $0x1] sm:$0xff]  ;;  %v1221_v15 = vld [vmem:[#allocation8 + $0xb0] sm:$0xff]  ;;  %v1222_v16 = vld [vmem:[#allocation8 + $0xb8] sm:$0xff] }
 0x21b   : > { %5215 = vmatprep.subr.bf16.mxu1 %v5214_v8  ;;  %4311 = vmatprep.mubr.f32.mxu1 %v1210_v14  ;;  %v5226_v17 = vpack.c.bf16 %v1222_v16, %v1221_v15  ;;  %v1223_v19 = vld [vmem:[#allocation8 + $0xc0] sm:$0xff]  ;;  %v1224_v20 = vld [vmem:[#allocation8 + $0xc8] sm:$0xff]  ;;  %v1225_v22 = vld [vmem:[#allocation8 + $0xd0] sm:$0xff]  ;;  %p1754_p6 = por %p6489_p2, %p6485_p4 }
 0x21c   : > { %5217 = vmatpush3.bf16.msra.mxu1 %v5214_v8  ;;  %v5230_v21 = vpack.c.bf16 %v1224_v20, %v1223_v19  ;;  %v1226_v23 = vld [vmem:[#allocation8 + $0xd8] sm:$0xff]  ;;  %v1227_v25 = vld [vmem:[#allocation8 + $0xe0] sm:$0xff]  ;;  %v1228_v26 = vld [vmem:[#allocation8 + $0xe8] sm:$0xff] }
 0x21d   : > { %5219 = vmatprep.subr.bf16.mxu1 %v5218_v10  ;;  %v5234_v24 = vpack.c.bf16 %v1226_v23, %v1225_v22  ;;  %v5238_v27 = vpack.c.bf16 %v1228_v26, %v1227_v25  ;;  %v1229_v31 = vld [vmem:[#allocation8 + $0xf0] sm:$0xff]  ;;  %v1230_v32 = vld [vmem:[#allocation8 + $0xf8] sm:$0xff]  ;;  %v1194_v34 = vld [vmem:[#allocation8] sm:$0xff] }
 0x21e   : > { %v5242_v33 = vpack.c.bf16 %v1230_v32, %v1229_v31  ;;  %v1195_v35 = vld [vmem:[#allocation8 + $0x8] sm:$0xff]  ;;  %v1196_v37 = vld [vmem:[#allocation8 + $0x10] sm:$0xff]  ;;  %v1197_v38 = vld [vmem:[#allocation8 + $0x18] sm:$0xff] }
 0x21f   : > { %v5246_v36 = vpack.c.bf16 %v1195_v35, %v1194_v34  ;;  %v1211_v39 = vld [vmem:[#allocation3 + $0x9] sm:$0xff]  ;;  %v5250_v40 = vpack.c.bf16 %v1197_v38, %v1196_v37  ;;  %v1212_v41 = vld [vmem:[#allocation3 + $0x11] sm:$0xff]  ;;  %v1198_v42 = vld [vmem:[#allocation8 + $0x20] sm:$0xff] }
 0x220   : > { %5221 = vmatpush3.bf16.msra.mxu1 %v5218_v10  ;;  %v1199_v43 = vld [vmem:[#allocation8 + $0x28] sm:$0xff]  ;;  %v1213_v44 = vld [vmem:[#allocation3 + $0x19] sm:$0xff]  ;;  %v1200_v47 = vld [vmem:[#allocation8 + $0x30] sm:$0xff] }
 0x221   : > { %5223 = vmatprep.subr.bf16.mxu1 %v5222_v13  ;;  %v5254_v45 = vpack.c.bf16 %v1199_v43, %v1198_v42  ;;  %v1190_v46 = vld [vmem:[#allocation3] sm:$0xff]  ;;  %v1201_v48 = vld [vmem:[#allocation8 + $0x38] sm:$0xff]  ;;  %v1203_v51 = vld [vmem:[#allocation8 + $0x48] sm:$0xff] }
 0x222   : > { %v5258_v49 = vpack.c.bf16 %v1201_v48, %v1200_v47  ;;  %v1202_v50 = vld [vmem:[#allocation8 + $0x40] sm:$0xff]  ;;  %v1204_v53 = vld [vmem:[#allocation8 + $0x50] sm:$0xff]  ;;  %v1205_v54 = vld [vmem:[#allocation8 + $0x58] sm:$0xff] }
 0x223   : > { %v5262_v52 = vpack.c.bf16 %v1203_v51, %v1202_v50  ;;  %v5266_v55 = vpack.c.bf16 %v1205_v54, %v1204_v53  ;;  %v1206_v56 = vld [vmem:[#allocation8 + $0x60] sm:$0xff]  ;;  %v1207_v57 = vld [vmem:[#allocation8 + $0x68] sm:$0xff]  ;;  %v1208_v59 = vld [vmem:[#allocation8 + $0x70] sm:$0xff] }
 0x224   : > { %5225 = vmatpush3.bf16.msra.mxu1 %v5222_v13  ;;  %v5270_v58 = vpack.c.bf16 %v1207_v57, %v1206_v56  ;;  %v1209_v60 = vld [vmem:[#allocation8 + $0x78] sm:$0xff]  ;;  %v1406_v62 = vld [vmem:[#allocation8 + $0x100] sm:$0xff]  ;;  %v1407_v63 = vld [vmem:[#allocation8 + $0x108] sm:$0xff] }
 0x225   : > { %5227 = vmatprep.subr.bf16.mxu1 %v5226_v17  ;;  %v5274_v61 = vpack.c.bf16 %v1209_v60, %v1208_v59  ;;  %v5278_v0 = vpack.c.bf16 %v1407_v63, %v1406_v62  ;;  %v1408_v1 = vld [vmem:[#allocation8 + $0x110] sm:$0xff]  ;;  %v1409_v2 = vld [vmem:[#allocation8 + $0x118] sm:$0xff]  ;;  %v1191_v3 = vld [vmem:[#allocation3 + $0x8] sm:$0xff] }
 0x226   : > { %v5282_v4 = vpack.c.bf16 %v1409_v2, %v1408_v1  ;;  %v1192_v5 = vld [vmem:[#allocation3 + $0x10] sm:$0xff]  ;;  %v1410_v6 = vld [vmem:[#allocation8 + $0x120] sm:$0xff]  ;;  %v1411_v7 = vld [vmem:[#allocation8 + $0x128] sm:$0xff] }
 0x227   : > { %v1193_v8 = vld [vmem:[#allocation3 + $0x18] sm:$0xff]  ;;  %v5286_v9 = vpack.c.bf16 %v1411_v7, %v1410_v6  ;;  %v1401_v10 = vld [vmem:[#allocation3 + $0x2] sm:$0xff]  ;;  %v1412_v11 = vld [vmem:[#allocation8 + $0x130] sm:$0xff] }
 0x228   : > { %5229 = vmatpush3.bf16.msra.mxu1 %v5226_v17  ;;  %v1413_v12 = vld [vmem:[#allocation8 + $0x138] sm:$0xff]  ;;  %v1414_v14 = vld [vmem:[#allocation8 + $0x140] sm:$0xff]  ;;  %v1415_v15 = vld [vmem:[#allocation8 + $0x148] sm:$0xff] }
 0x229   : > { %5231 = vmatprep.subr.bf16.mxu1 %v5230_v21  ;;  %v5290_v13 = vpack.c.bf16 %v1413_v12, %v1412_v11  ;;  %v5294_v16 = vpack.c.bf16 %v1415_v15, %v1414_v14  ;;  %v1416_v17 = vld [vmem:[#allocation8 + $0x150] sm:$0xff]  ;;  %v1417_v19 = vld [vmem:[#allocation8 + $0x158] sm:$0xff]  ;;  %v1419_v22 = vld [vmem:[#allocation8 + $0x168] sm:$0xff] }
 0x22a   : > { %v5298_v20 = vpack.c.bf16 %v1417_v19, %v1416_v17  ;;  %v1421_v25 = vld [vmem:[#allocation8 + $0x178] sm:$0xff]  ;;  %v1517_v31 = vld [vmem:[#allocation8 + $0x188] sm:$0xff]  ;;  %v1520_v38 = vld [vmem:[#allocation8 + $0x1a0] sm:$0xff] }
 0x22b   : > { %v1519_v34 = vld [vmem:[#allocation8 + $0x198] sm:$0xff]  ;;  %v1402_v35 = vld [vmem:[#allocation3 + $0xa] sm:$0xff]  ;;  %v1630_v2 = vld [vmem:[#allocation8 + $0x220] sm:$0xff] }
 0x22c   : > { %5233 = vmatpush3.bf16.msra.mxu1 %v5230_v21  ;;  %v1418_v21 = vld [vmem:[#allocation8 + $0x160] sm:$0xff]  ;;  %v1403_v37 = vld [vmem:[#allocation3 + $0x12] sm:$0xff]  ;;  %v1525_v47 = vld [vmem:[#allocation8 + $0x1c8] sm:$0xff] }
 0x22d   : > { %5235 = vmatprep.subr.bf16.mxu1 %v5234_v24  ;;  %v5302_v23 = vpack.c.bf16 %v1419_v22, %v1418_v21  ;;  %v1511_v42 = vld [vmem:[#allocation3 + $0x3] sm:$0xff]  ;;  %v1522_v43 = vld [vmem:[#allocation8 + $0x1b0] sm:$0xff]  ;;  %v1527_v50 = vld [vmem:[#allocation8 + $0x1d8] sm:$0xff] }
 0x22e   : > { %v1529_v53 = vld [vmem:[#allocation8 + $0x1e8] sm:$0xff]  ;;  %v1531_v56 = vld [vmem:[#allocation8 + $0x1f8] sm:$0xff]  ;;  %v1632_v7 = vld [vmem:[#allocation8 + $0x230] sm:$0xff] }
 0x22f   : > { %v1627_v59 = vld [vmem:[#allocation8 + $0x208] sm:$0xff]  ;;  %v1629_v62 = vld [vmem:[#allocation8 + $0x218] sm:$0xff] }
 0x230   : > { %5237 = vmatpush3.bf16.msra.mxu1 %v5234_v24  ;;  %v1420_v24 = vld [vmem:[#allocation8 + $0x170] sm:$0xff]  ;;  %v1621_v6 = vld [vmem:[#allocation3 + $0x4] sm:$0xff]  ;;  %v1637_v14 = vld [vmem:[#allocation8 + $0x258] sm:$0xff] }
 0x231   : > { %5239 = vmatprep.subr.bf16.mxu1 %v5238_v27  ;;  %v5306_v26 = vpack.c.bf16 %v1421_v25, %v1420_v24  ;;  %v1512_v63 = vld [vmem:[#allocation3 + $0xb] sm:$0xff]  ;;  %v1513_v1 = vld [vmem:[#allocation3 + $0x13] sm:$0xff]  ;;  %v1624_v25 = vld [vmem:[#allocation3 + $0x1c] sm:$0xff] }
 0x232   : > { %v1635_v11 = vld [vmem:[#allocation8 + $0x248] sm:$0xff]  ;;  %v1641_v21 = vld [vmem:[#allocation8 + $0x278] sm:$0xff] }
 0x233   : > { %v1639_v17 = vld [vmem:[#allocation8 + $0x268] sm:$0xff]  ;;  %v1623_v24 = vld [vmem:[#allocation3 + $0x14] sm:$0xff] }
 0x234   : > { %5241 = vmatpush3.bf16.msra.mxu1 %v5238_v27  ;;  %v1516_v27 = vld [vmem:[#allocation8 + $0x180] sm:$0xff] }
 0x235   : > { %5243 = vmatprep.subr.bf16.mxu1 %v5242_v33  ;;  %v5310_v32 = vpack.c.bf16 %v1517_v31, %v1516_v27 }
 0x238   : > { %5245 = vmatpush3.bf16.msra.mxu1 %v5242_v33  ;;  %v1518_v33 = vld [vmem:[#allocation8 + $0x190] sm:$0xff] }
 0x239   : > { %5247 = vmatprep.subr.bf16.mxu1 %v5246_v36 }
 0x23b   : > { %4312 = vmatmul.mubr.f32.vlgmr.msra.gmra.mrb[4].mxu1 %v1211_v39  ;;  %v1521_v39 = vld [vmem:[#allocation8 + $0x1a8] sm:$0xff] }
 0x23c   : > { %5249 = vmatpush3.bf16.msra.mxu1 %v5246_v36  ;;  %4314 = vmatprep.mubr.f32.mxu1 %v1212_v41  ;;  %v5314_v36 = vpack.c.bf16 %v1519_v34, %v1518_v33  ;;  %v5318_v41 = vpack.c.bf16 %v1521_v39, %v1520_v38 }
 0x23d   : > { %5251 = vmatprep.subr.bf16.mxu1 %v5250_v40 }
 0x23f   : > { %4315 = vmatmul.mubr.f32.gmra.mrb[6].mxu1 %v1213_v44  ;;  %v1523_v44 = vld [vmem:[#allocation8 + $0x1b8] sm:$0xff] }
 0x240   : > { %5253 = vmatpush3.bf16.msra.mxu1 %v5250_v40  ;;  %4349 = vmatprep.mubr.f32.mxu1 %v1190_v46  ;;  %v1404_v40 = vld [vmem:[#allocation3 + $0x1a] sm:$0xff] }
 0x241   : > { %5255 = vmatprep.subr.bf16.mxu1 %v5254_v45  ;;  %v1524_v46 = vld [vmem:[#allocation8 + $0x1c0] sm:$0xff] }
 0x242   : > { %v5326_v48 = vpack.c.bf16 %v1525_v47, %v1524_v46 }
 0x244   : > { %5257 = vmatpush3.bf16.msra.mxu1 %v5254_v45  ;;  %v5322_v45 = vpack.c.bf16 %v1523_v44, %v1522_v43 }
 0x245   : > { %5259 = vmatprep.subr.bf16.mxu1 %v5258_v49 }
 0x248   : > { %5261 = vmatpush3.bf16.msra.mxu1 %v5258_v49  ;;  %v1526_v49 = vld [vmem:[#allocation8 + $0x1d0] sm:$0xff] }
 0x249   : > { %5263 = vmatprep.subr.bf16.mxu1 %v5262_v52  ;;  %v5330_v51 = vpack.c.bf16 %v1527_v50, %v1526_v49 }
 0x24c   : > { %5265 = vmatpush3.bf16.msra.mxu1 %v5262_v52  ;;  %v1528_v52 = vld [vmem:[#allocation8 + $0x1e0] sm:$0xff] }
 0x24d   : > { %5267 = vmatprep.subr.bf16.mxu1 %v5266_v55  ;;  %v5334_v54 = vpack.c.bf16 %v1529_v53, %v1528_v52 }
 0x250   : > { %5269 = vmatpush3.bf16.msra.mxu1 %v5266_v55  ;;  %v1530_v55 = vld [vmem:[#allocation8 + $0x1f0] sm:$0xff] }
 0x251   : > { %5271 = vmatprep.subr.bf16.mxu1 %v5270_v58  ;;  %v5338_v57 = vpack.c.bf16 %v1531_v56, %v1530_v55 }
 0x254   : > { %5273 = vmatpush3.bf16.msra.mxu1 %v5270_v58  ;;  %v1626_v58 = vld [vmem:[#allocation8 + $0x200] sm:$0xff] }
 0x255   : > { %5275 = vmatprep.subr.bf16.mxu1 %v5274_v61  ;;  %v5342_v60 = vpack.c.bf16 %v1627_v59, %v1626_v58 }
 0x258   : > { %5277 = vmatpush3.bf16.msra.mxu1 %v5274_v61  ;;  %v1628_v61 = vld [vmem:[#allocation8 + $0x210] sm:$0xff] }
 0x259   : > { %5279 = vmatprep.subr.bf16.mxu1 %v5278_v0 }
 0x25b   : > { %4350 = vmatmul.mubr.f32.vlgmr.msra.gmra.mrb[4].mxu1 %v1191_v3  ;;  %v1631_v3 = vld [vmem:[#allocation8 + $0x228] sm:$0xff] }
 0x25c   : > { %5281 = vmatpush3.bf16.msra.mxu1 %v5278_v0  ;;  %4352 = vmatprep.mubr.f32.mxu1 %v1192_v5  ;;  %v5346_v0 = vpack.c.bf16 %v1629_v62, %v1628_v61  ;;  %v5350_v5 = vpack.c.bf16 %v1631_v3, %v1630_v2 }
 0x25d   : > { %5283 = vmatprep.subr.bf16.mxu1 %v5282_v4 }
 0x25f   : > { %4353 = vmatmul.mubr.f32.gmra.mrb[6].mxu1 %v1193_v8  ;;  %v1633_v8 = vld [vmem:[#allocation8 + $0x238] sm:$0xff] }
 0x260   : > { %5285 = vmatpush3.bf16.msra.mxu1 %v5282_v4  ;;  %4387 = vmatprep.mubr.f32.mxu1 %v1401_v10  ;;  %v1514_v4 = vld [vmem:[#allocation3 + $0x1b] sm:$0xff] }
 0x261   : > { %5287 = vmatprep.subr.bf16.mxu1 %v5286_v9  ;;  %v1634_v10 = vld [vmem:[#allocation8 + $0x240] sm:$0xff] }
 0x262   : > { %v5358_v12 = vpack.c.bf16 %v1635_v11, %v1634_v10 }
 0x264   : > { %5289 = vmatpush3.bf16.msra.mxu1 %v5286_v9  ;;  %v5354_v9 = vpack.c.bf16 %v1633_v8, %v1632_v7 }
 0x265   : > { %5291 = vmatprep.subr.bf16.mxu1 %v5290_v13 }
 0x268   : > { %5293 = vmatpush3.bf16.msra.mxu1 %v5290_v13  ;;  %v1636_v13 = vld [vmem:[#allocation8 + $0x250] sm:$0xff] }
 0x269   : > { %5295 = vmatprep.subr.bf16.mxu1 %v5294_v16  ;;  %v5362_v15 = vpack.c.bf16 %v1637_v14, %v1636_v13 }
 0x26c   : > { %5297 = vmatpush3.bf16.msra.mxu1 %v5294_v16  ;;  %v1638_v16 = vld [vmem:[#allocation8 + $0x260] sm:$0xff] }
 0x26d   : > { %5299 = vmatprep.subr.bf16.mxu1 %v5298_v20  ;;  %v5366_v19 = vpack.c.bf16 %v1639_v17, %v1638_v16 }
 0x270   : > { %5301 = vmatpush3.bf16.msra.mxu1 %v5298_v20  ;;  %v1640_v20 = vld [vmem:[#allocation8 + $0x270] sm:$0xff] }
 0x271   : > { %5303 = vmatprep.subr.bf16.mxu1 %v5302_v23  ;;  %v5370_v22 = vpack.c.bf16 %v1641_v21, %v1640_v20 }
 0x274   : > { %5305 = vmatpush3.bf16.msra.mxu1 %v5302_v23  ;;  %v1622_v23 = vld [vmem:[#allocation3 + $0xc] sm:$0xff] }
 0x275   : > { %5307 = vmatprep.subr.bf16.mxu1 %v5306_v26 }
 0x278   : > { %5309 = vmatpush3.bf16.msra.mxu1 %v5306_v26  ;;  %v3601_v26 = vld [vmem:[%s6734_s7] ss:$0 sm:$0xff] }
 0x279   : > { %5311 = vmatprep.subr.bf16.mxu1 %v5310_v32 }
 0x27b   : > { %4388 = vmatmul.mubr.f32.vlgmr.msra.gmra.mrb[4].mxu1 %v1402_v35 }
 0x27c   : > { %5313 = vmatpush3.bf16.msra.mxu1 %v5310_v32  ;;  %4390 = vmatprep.mubr.f32.mxu1 %v1403_v37 }
 0x27d   : > { %5315 = vmatprep.subr.bf16.mxu1 %v5314_v36 }
 0x27f   : > { %4391 = vmatmul.mubr.f32.gmra.mrb[6].mxu1 %v1404_v40 }
 0x280   : > { %5317 = vmatpush3.bf16.msra.mxu1 %v5314_v36  ;;  %4425 = vmatprep.mubr.f32.mxu1 %v1511_v42  ;;  %v1758_v42 = vstv (%p1754_p6), %s1750_s22 }
 0x281   : > { %5319 = vmatprep.subr.bf16.mxu1 %v5318_v41  ;;  %v1759_v43 = vadd.s32 (%p1754_p6), %v1758_v42, %v6419_v18  ;;  %v1760_v44 = vadd.s32 (%p1754_p6), %v1758_v42, %v6423_v28  ;;  %v1762_v46 = vadd.s32 (%p1754_p6), %v1758_v42, %v6429_v30 }
 0x283   : > { %vm1763_vm12 = vcmp.ge.s32.totalorder (%p1754_p6), %v1759_v43, 0  ;;  %vm1767_vm13 = vcmp.lt.s32.totalorder (%p1754_p6), %v1759_v43, 40  ;;  %vm1764_vm14 = vcmp.ge.s32.totalorder (%p1754_p6), %v1760_v44, 0  ;;  %vm1768_vm15 = vcmp.lt.s32.totalorder (%p1754_p6), %v1760_v44, 40 }
 0x284   : > { %5321 = vmatpush3.bf16.msra.mxu1 %v5318_v41  ;;  %vm1771_vm0 = vmand (%p1754_p6), %vm1763_vm12, %vm1767_vm13  ;;  %vm1766_vm3 = vcmp.ge.s32.totalorder (%p1754_p6), %v1762_v46, 0  ;;  %vm1770_vm4 = vcmp.lt.s32.totalorder (%p1754_p6), %v1762_v46, 40 }
 0x285   : > { %5323 = vmatprep.subr.bf16.mxu1 %v5322_v45  ;;  %vm1772_vm5 = vmand (%p1754_p6), %vm1764_vm14, %vm1768_vm15 }
 0x286   : > { %vm1774_vm7 = vmand (%p1754_p6), %vm1766_vm3, %vm1770_vm4 }
 0x288   : > { %5325 = vmatpush3.bf16.msra.mxu1 %v5322_v45  ;;  %v1761_v45 = vadd.s32 (%p1754_p6), %v1758_v42, %v6426_v29 }
 0x289   : > { %5327 = vmatprep.subr.bf16.mxu1 %v5326_v48 }
 0x28a   : > { %vm1765_vm1 = vcmp.ge.s32.totalorder (%p1754_p6), %v1761_v45, 0  ;;  %vm1769_vm2 = vcmp.lt.s32.totalorder (%p1754_p6), %v1761_v45, 40 }
 0x28b   : > { %vm1773_vm6 = vmand (%p1754_p6), %vm1765_vm1, %vm1769_vm2 }
 0x28c   : > { %5329 = vmatpush3.bf16.msra.mxu1 %v5326_v48 }
 0x28d   : > { %5331 = vmatprep.subr.bf16.mxu1 %v5330_v51 }
 0x290   : > { %5333 = vmatpush3.bf16.msra.mxu1 %v5330_v51 }
 0x291   : > { %5335 = vmatprep.subr.bf16.mxu1 %v5334_v54 }
 0x294   : > { %5337 = vmatpush3.bf16.msra.mxu1 %v5334_v54 }
 0x295   : > { %5339 = vmatprep.subr.bf16.mxu1 %v5338_v57 }
 0x298   : > { %5341 = vmatpush3.bf16.msra.mxu1 %v5338_v57 }
 0x299   : > { %5343 = vmatprep.subr.bf16.mxu1 %v5342_v60 }
 0x29b   : > { %4426 = vmatmul.mubr.f32.vlgmr.msra.gmra.mrb[4].mxu1 %v1512_v63 }
 0x29c   : > { %5345 = vmatpush3.bf16.msra.mxu1 %v5342_v60  ;;  %4428 = vmatprep.mubr.f32.mxu1 %v1513_v1 }
 0x29d   : > { %5347 = vmatprep.subr.bf16.mxu1 %v5346_v0 }
 0x29f   : > { %4429 = vmatmul.mubr.f32.gmra.mrb[6].mxu1 %v1514_v4 }
 0x2a0   : > { %5349 = vmatpush3.bf16.msra.mxu1 %v5346_v0  ;;  %4463 = vmatprep.mubr.f32.mxu1 %v1621_v6 }
 0x2a1   : > { %5351 = vmatprep.subr.bf16.mxu1 %v5350_v5 }
 0x2a4   : > { %5353 = vmatpush3.bf16.msra.mxu1 %v5350_v5 }
 0x2a5   : > { %5355 = vmatprep.subr.bf16.mxu1 %v5354_v9 }
 0x2a8   : > { %5357 = vmatpush3.bf16.msra.mxu1 %v5354_v9 }
 0x2a9   : > { %5359 = vmatprep.subr.bf16.mxu1 %v5358_v12 }
 0x2ac   : > { %5361 = vmatpush3.bf16.msra.mxu1 %v5358_v12 }
 0x2ad   : > { %5363 = vmatprep.subr.bf16.mxu1 %v5362_v15 }
 0x2b0   : > { %5365 = vmatpush3.bf16.msra.mxu1 %v5362_v15 }
 0x2b1   : > { %5367 = vmatprep.subr.bf16.mxu1 %v5366_v19 }
 0x2b4   : > { %5369 = vmatpush3.bf16.msra.mxu1 %v5366_v19 }
 0x2b5   : > { %5371 = vmatprep.subr.bf16.mxu1 %v5370_v22 }
 0x2b8   : > { %5373 = vmatpush3.bf16.msra.mxu1 %v5370_v22 }
 0x2bb   : > { %4464 = vmatmul.mubr.f32.vlgmr.msra.gmra.mrb[4].mxu1 %v1622_v23 }
 0x2bc   : > { %4466 = vmatprep.mubr.f32.mxu1 %v1623_v24 }
 0x2bf   : > { %4467 = vmatmul.mubr.f32.gmra.mrb[6].mxu1 %v1624_v25 }
 0x38e   : > { %v4465_v27 = vpop.f32.mrb[4].mxu1 }
 0x38f   : > { %v1739_v31 = vadd.f32 %v4465_v27, %v3601_v26  ;;  %v1708_v32 = vpop.f32.mrb[5].mxu1 }
 0x390   : > { %v1738_v33 = vadd.f32 %v3601_v26, %v1708_v32 }
 0x391   : > { %5919 = vtanh.f32 %v1739_v31 }
 0x392   : > { %5921 = vtanh.f32 %v1738_v33  ;;  %v4468_v34 = vpop.f32.mrb[6].mxu1 }
 0x393   : > { %v1741_v35 = vadd.f32 %v4468_v34, %v3601_v26  ;;  %v1718_v36 = vpop.f32.mrb[7].mxu1 }
 0x394   : > { %v1740_v37 = vadd.f32 %v3601_v26, %v1718_v36 }
 0x395   : > { %5923 = vtanh.f32 %v1741_v35 }
 0x396   : > { %5925 = vtanh.f32 %v1740_v37 }
 0x39b   : > { %v5920_v38 = vpop.eup %5919  ;;  %1757 = sbr.rel (!%p1754_p6) target bundleno = 939 (0x3ab), region = 164 }
 0x39c   : > { %v5922_v39 = vpop.eup %5921  ;;  %1747 = vst [vmem:[#allocation4 + $0x8] sm:$0xff] %v5920_v38 }
 0x39d   : > { %1746 = vst [vmem:[#allocation4] sm:$0xff] %v5922_v39 }
 0x39f   : > { %v5924_v40 = vpop.eup %5923 }
 0x3a0   : > { %v5926_v41 = vpop.eup %5925  ;;  %1749 = vst [vmem:[#allocation4 + $0x18] sm:$0xff] %v5924_v40 }
 0x3a1   : > { %1748 = vst [vmem:[#allocation4 + $0x10] sm:$0xff] %v5926_v41 }
 0x3a3   : > { %v1776_v48 = vld [vmem:[#allocation4 + $0x8] sm:$0xff] }
 0x3a4   : > { %v1775_v47 = vld [vmem:[#allocation4] sm:$0xff]  ;;  %v1788_v52 = vsel %vm1772_vm5, %v1776_v48, 0.0 }
 0x3a5   : > { %v1787_v50 = vsel %vm1771_vm0, %v1775_v47, 0.0  ;;  %1792 = vst [vmem:[#allocation4 + $0x8] sm:$0xff] %v1788_v52 }
 0x3a6   : > { %1791 = vst [vmem:[#allocation4] sm:$0xff] %v1787_v50 }
 0x3a7   : > { %v1778_v51 = vld [vmem:[#allocation4 + $0x18] sm:$0xff] }
 0x3a8   : > { %v1777_v49 = vld [vmem:[#allocation4 + $0x10] sm:$0xff]  ;;  %v1790_v53 = vsel %vm1774_vm7, %v1778_v51, 0.0 }
 0x3a9   : > { %v1789_v30 = vsel %vm1773_vm6, %v1777_v49, 0.0  ;;  %1794 = vst [vmem:[#allocation4 + $0x18] sm:$0xff] %v1790_v53 }
 0x3aa   : > { %1793 = vst [vmem:[#allocation4 + $0x10] sm:$0xff] %v1789_v30 }
 0x3ab PF: > { %v1818_v54 = vld [vmem:[#allocation10 + $0x80] sm:$0xff]  ;;  %v1819_v55 = vld [vmem:[#allocation10 + $0x88] sm:$0xff]  ;;  %v6140_v57 = vmov 0.0|0.0   ;;  %v1820_v60 = vld [vmem:[#allocation10 + $0x90] sm:$0xff]  ;;  %vm6141_vm8 = vmmov 0   ;;  %v6142_v1 = vmov 0.0  }
 0x3ac   : > { %v1798_v56 = vld [vmem:[#allocation10] sm:$0xff]  ;;  %5374 = vmatprep.subr.bf16.mxu0 %v6140_v57  ;;  %v5375_v58 = vpack.c.bf16 %v1819_v55, %v1818_v54  ;;  %5398 = vmatprep.subr.bf16.mxu1 %v6140_v57  ;;  %v1799_v59 = vld [vmem:[#allocation10 + $0x8] sm:$0xff]  ;;  %v1821_v61 = vld [vmem:[#allocation10 + $0x98] sm:$0xff]  ;;  %s2319_s15 = sadd.s32 4294967292, %s6409_s2  ;;  %s2321_s25 = sadd.s32 20, %s6409_s2 }
 0x3ad   : > { %v5399_v62 = vpack.c.bf16 %v1799_v59, %v1798_v56  ;;  %v1800_v63 = vld [vmem:[#allocation10 + $0x10] sm:$0xff]  ;;  %v1801_v0 = vld [vmem:[#allocation10 + $0x18] sm:$0xff]  ;;  %4501 = vmatprep.mubr.msk.f32.mxu0 %vm6141_vm8, %v6142_v1  ;;  %4542 = vmatprep.mubr.msk.f32.mxu1 %vm6141_vm8, %v6142_v1  ;;  %v5378_v2 = vpack.c.bf16 %v1821_v61, %v1820_v60  ;;  %v1822_v4 = vld [vmem:[#allocation10 + $0xa0] sm:$0xff]  ;;  %p6583_p3 = scmp.lt.s32.totalorder %s2319_s15, 0  ;;  %p6587_p7 = scmp.gt.s32.totalorder %s2321_s25, 40 }
 0x3ae   : > { %5376 = vmatpush3.bf16.msra.mxu0 %v5375_v58  ;;  %v5402_v3 = vpack.c.bf16 %v1801_v0, %v1800_v63  ;;  %v1823_v5 = vld [vmem:[#allocation10 + $0xa8] sm:$0xff]  ;;  %v1802_v6 = vld [vmem:[#allocation10 + $0x20] sm:$0xff]  ;;  %v1824_v10 = vld [vmem:[#allocation10 + $0xb0] sm:$0xff] }
 0x3af   : > { %5400 = vmatpush3.bf16.msra.mxu1 %v5399_v62  ;;  %5377 = vmatprep.subr.bf16.mxu0 %v6140_v57  ;;  %v1803_v7 = vld [vmem:[#allocation10 + $0x28] sm:$0xff]  ;;  %v5381_v8 = vpack.c.bf16 %v1823_v5, %v1822_v4  ;;  %v1825_v11 = vld [vmem:[#allocation10 + $0xb8] sm:$0xff]  ;;  %v1804_v12 = vld [vmem:[#allocation10 + $0x30] sm:$0xff]  ;;  %p2323_p5 = por %p6587_p7, %p6583_p3 }
 0x3b0   : > { %5401 = vmatprep.subr.bf16.mxu1 %v6140_v57  ;;  %v5405_v9 = vpack.c.bf16 %v1803_v7, %v1802_v6  ;;  %v1805_v13 = vld [vmem:[#allocation10 + $0x38] sm:$0xff]  ;;  %v5384_v14 = vpack.c.bf16 %v1825_v11, %v1824_v10  ;;  %v1826_v16 = vld [vmem:[#allocation10 + $0xc0] sm:$0xff]  ;;  %v1827_v17 = vld [vmem:[#allocation10 + $0xc8] sm:$0xff] }
 0x3b1   : > { %v5408_v15 = vpack.c.bf16 %v1805_v13, %v1804_v12  ;;  %v1806_v19 = vld [vmem:[#allocation10 + $0x40] sm:$0xff]  ;;  %v1807_v20 = vld [vmem:[#allocation10 + $0x48] sm:$0xff]  ;;  %v5387_v21 = vpack.c.bf16 %v1827_v17, %v1826_v16  ;;  %v1828_v23 = vld [vmem:[#allocation10 + $0xd0] sm:$0xff] }
 0x3b2   : > { %5379 = vmatpush3.bf16.msra.mxu0 %v5378_v2  ;;  %v5411_v22 = vpack.c.bf16 %v1807_v20, %v1806_v19  ;;  %v1829_v24 = vld [vmem:[#allocation10 + $0xd8] sm:$0xff]  ;;  %v1808_v25 = vld [vmem:[#allocation10 + $0x50] sm:$0xff]  ;;  %v1830_v32 = vld [vmem:[#allocation10 + $0xe0] sm:$0xff] }
 0x3b3   : > { %5403 = vmatpush3.bf16.msra.mxu1 %v5402_v3  ;;  %5380 = vmatprep.subr.bf16.mxu0 %v6140_v57  ;;  %v1809_v26 = vld [vmem:[#allocation10 + $0x58] sm:$0xff]  ;;  %v5390_v27 = vpack.c.bf16 %v1829_v24, %v1828_v23  ;;  %v1831_v33 = vld [vmem:[#allocation10 + $0xe8] sm:$0xff]  ;;  %v1810_v34 = vld [vmem:[#allocation10 + $0x60] sm:$0xff] }
 0x3b4   : > { %5404 = vmatprep.subr.bf16.mxu1 %v6140_v57  ;;  %v5414_v31 = vpack.c.bf16 %v1809_v26, %v1808_v25  ;;  %v1811_v35 = vld [vmem:[#allocation10 + $0x68] sm:$0xff]  ;;  %v5393_v36 = vpack.c.bf16 %v1831_v33, %v1830_v32  ;;  %v1832_v38 = vld [vmem:[#allocation10 + $0xf0] sm:$0xff]  ;;  %v1833_v39 = vld [vmem:[#allocation10 + $0xf8] sm:$0xff] }
 0x3b5   : > { %v5417_v37 = vpack.c.bf16 %v1811_v35, %v1810_v34  ;;  %v1812_v40 = vld [vmem:[#allocation10 + $0x70] sm:$0xff]  ;;  %v1813_v41 = vld [vmem:[#allocation10 + $0x78] sm:$0xff]  ;;  %v5396_v42 = vpack.c.bf16 %v1833_v39, %v1832_v38  ;;  %v1998_v44 = vld [vmem:[#allocation10 + $0x100] sm:$0xff] }
 0x3b6   : > { %5382 = vmatpush3.bf16.msra.mxu0 %v5381_v8  ;;  %v5420_v43 = vpack.c.bf16 %v1813_v41, %v1812_v40  ;;  %v1999_v45 = vld [vmem:[#allocation10 + $0x108] sm:$0xff]  ;;  %v2101_v46 = vld [vmem:[#allocation10 + $0x180] sm:$0xff]  ;;  %v1814_v48 = vld [vmem:[#allocation4 + $0x1] sm:$0xff] }
 0x3b7   : > { %5406 = vmatpush3.bf16.msra.mxu1 %v5405_v9  ;;  %5383 = vmatprep.subr.bf16.mxu0 %v6140_v57  ;;  %v2102_v47 = vld [vmem:[#allocation10 + $0x188] sm:$0xff]  ;;  %v5423_v49 = vpack.c.bf16 %v1999_v45, %v1998_v44  ;;  %v1795_v50 = vld [vmem:[#allocation4] sm:$0xff]  ;;  %v2001_v30 = vld [vmem:[#allocation10 + $0x118] sm:$0xff] }
 0x3b8   : > { %5407 = vmatprep.subr.bf16.mxu1 %v6140_v57  ;;  %v5447_v51 = vpack.c.bf16 %v2102_v47, %v2101_v46  ;;  %v2000_v52 = vld [vmem:[#allocation10 + $0x110] sm:$0xff]  ;;  %v2104_v54 = vld [vmem:[#allocation10 + $0x198] sm:$0xff]  ;;  %v2002_v59 = vld [vmem:[#allocation10 + $0x120] sm:$0xff] }
 0x3b9   : > { %v2103_v53 = vld [vmem:[#allocation10 + $0x190] sm:$0xff]  ;;  %v5426_v55 = vpack.c.bf16 %v2001_v30, %v2000_v52  ;;  %v1815_v56 = vld [vmem:[#allocation4 + $0x9] sm:$0xff]  ;;  %v2003_v60 = vld [vmem:[#allocation10 + $0x128] sm:$0xff] }
 0x3ba   : > { %5385 = vmatpush3.bf16.msra.mxu0 %v5384_v14  ;;  %v5450_v58 = vpack.c.bf16 %v2104_v54, %v2103_v53  ;;  %v1796_v61 = vld [vmem:[#allocation4 + $0x8] sm:$0xff]  ;;  %v2105_v62 = vld [vmem:[#allocation10 + $0x1a0] sm:$0xff]  ;;  %v2106_v63 = vld [vmem:[#allocation10 + $0x1a8] sm:$0xff]  ;;  %v5429_v0 = vpack.c.bf16 %v2003_v60, %v2002_v59 }
 0x3bb   : > { %5409 = vmatpush3.bf16.msra.mxu1 %v5408_v15  ;;  %5386 = vmatprep.subr.bf16.mxu0 %v6140_v57  ;;  %v1816_v2 = vld [vmem:[#allocation4 + $0x11] sm:$0xff]  ;;  %v5453_v3 = vpack.c.bf16 %v2106_v63, %v2105_v62  ;;  %v2004_v4 = vld [vmem:[#allocation10 + $0x130] sm:$0xff]  ;;  %v2005_v5 = vld [vmem:[#allocation10 + $0x138] sm:$0xff] }
 0x3bc   : > { %5410 = vmatprep.subr.bf16.mxu1 %v6140_v57  ;;  %v1797_v6 = vld [vmem:[#allocation4 + $0x10] sm:$0xff]  ;;  %v2107_v7 = vld [vmem:[#allocation10 + $0x1b0] sm:$0xff]  ;;  %v2108_v8 = vld [vmem:[#allocation10 + $0x1b8] sm:$0xff]  ;;  %v5432_v9 = vpack.c.bf16 %v2005_v5, %v2004_v4 }
 0x3bd   : > { %v5456_v10 = vpack.c.bf16 %v2108_v8, %v2107_v7  ;;  %v2006_v11 = vld [vmem:[#allocation10 + $0x140] sm:$0xff]  ;;  %v2007_v12 = vld [vmem:[#allocation10 + $0x148] sm:$0xff]  ;;  %v2008_v17 = vld [vmem:[#allocation10 + $0x150] sm:$0xff] }
 0x3be   : > { %5388 = vmatpush3.bf16.msra.mxu0 %v5387_v21  ;;  %v2109_v13 = vld [vmem:[#allocation10 + $0x1c0] sm:$0xff]  ;;  %v2110_v14 = vld [vmem:[#allocation10 + $0x1c8] sm:$0xff]  ;;  %v5435_v15 = vpack.c.bf16 %v2007_v12, %v2006_v11  ;;  %v2009_v19 = vld [vmem:[#allocation10 + $0x158] sm:$0xff] }
 0x3bf   : > { %5412 = vmatpush3.bf16.msra.mxu1 %v5411_v22  ;;  %5389 = vmatprep.subr.bf16.mxu0 %v6140_v57  ;;  %v5459_v16 = vpack.c.bf16 %v2110_v14, %v2109_v13  ;;  %v2111_v20 = vld [vmem:[#allocation10 + $0x1d0] sm:$0xff]  ;;  %v2112_v21 = vld [vmem:[#allocation10 + $0x1d8] sm:$0xff]  ;;  %v5438_v22 = vpack.c.bf16 %v2009_v19, %v2008_v17  ;;  %v2010_v24 = vld [vmem:[#allocation10 + $0x160] sm:$0xff] }
 0x3c0   : > { %5413 = vmatprep.subr.bf16.mxu1 %v6140_v57  ;;  %v5462_v23 = vpack.c.bf16 %v2112_v21, %v2111_v20  ;;  %v2011_v25 = vld [vmem:[#allocation10 + $0x168] sm:$0xff]  ;;  %v2113_v26 = vld [vmem:[#allocation10 + $0x1e0] sm:$0xff]  ;;  %v2012_v33 = vld [vmem:[#allocation10 + $0x170] sm:$0xff] }
 0x3c1   : > { %v2013_v34 = vld [vmem:[#allocation10 + $0x178] sm:$0xff]  ;;  %v2115_v35 = vld [vmem:[#allocation10 + $0x1f0] sm:$0xff]  ;;  %v2204_v39 = vld [vmem:[#allocation10 + $0x200] sm:$0xff] }
 0x3c2   : > { %5391 = vmatpush3.bf16.msra.mxu0 %v5390_v27  ;;  %v2114_v27 = vld [vmem:[#allocation10 + $0x1e8] sm:$0xff]  ;;  %v1994_v41 = vld [vmem:[#allocation4 + $0x2] sm:$0xff]  ;;  %v1995_v46 = vld [vmem:[#allocation4 + $0xa] sm:$0xff] }
 0x3c3   : > { %5415 = vmatpush3.bf16.msra.mxu1 %v5414_v31  ;;  %5392 = vmatprep.subr.bf16.mxu0 %v6140_v57  ;;  %v5441_v31 = vpack.c.bf16 %v2011_v25, %v2010_v24  ;;  %v5465_v32 = vpack.c.bf16 %v2114_v27, %v2113_v26  ;;  %v2205_v40 = vld [vmem:[#allocation10 + $0x208] sm:$0xff]  ;;  %v2206_v44 = vld [vmem:[#allocation10 + $0x210] sm:$0xff]  ;;  %v2207_v45 = vld [vmem:[#allocation10 + $0x218] sm:$0xff] }
 0x3c4   : > { %5416 = vmatprep.subr.bf16.mxu1 %v6140_v57  ;;  %v5474_v47 = vpack.c.bf16 %v2207_v45, %v2206_v44  ;;  %v2099_v30 = vld [vmem:[#allocation4 + $0x13] sm:$0xff]  ;;  %v2210_v53 = vld [vmem:[#allocation10 + $0x230] sm:$0xff]  ;;  %v2211_v54 = vld [vmem:[#allocation10 + $0x238] sm:$0xff] }
 0x3c5   : > { %v2214_v60 = vld [vmem:[#allocation10 + $0x250] sm:$0xff]  ;;  %v2216_v63 = vld [vmem:[#allocation10 + $0x260] sm:$0xff]  ;;  %v2219_v4 = vld [vmem:[#allocation10 + $0x278] sm:$0xff] }
 0x3c6   : > { %5394 = vmatpush3.bf16.msra.mxu0 %v5393_v36  ;;  %v2116_v36 = vld [vmem:[#allocation10 + $0x1f8] sm:$0xff]  ;;  %v2202_v8 = vld [vmem:[#allocation4 + $0x14] sm:$0xff] }
 0x3c7   : > { %5418 = vmatpush3.bf16.msra.mxu1 %v5417_v37  ;;  %5395 = vmatprep.subr.bf16.mxu0 %v6140_v57  ;;  %v5444_v37 = vpack.c.bf16 %v2013_v34, %v2012_v33  ;;  %v5468_v38 = vpack.c.bf16 %v2116_v36, %v2115_v35  ;;  %v2201_v7 = vld [vmem:[#allocation4 + $0xc] sm:$0xff] }
 0x3c8   : > { %5419 = vmatprep.subr.bf16.mxu1 %v6140_v57 }
 0x3ca   : > { %5397 = vmatpush3.bf16.msra.mxu0 %v5396_v42  ;;  %v5471_v42 = vpack.c.bf16 %v2205_v40, %v2204_v39 }
 0x3cb   : > { %5421 = vmatpush3.bf16.msra.mxu1 %v5420_v43  ;;  %5422 = vmatprep.subr.bf16.mxu0 %v6140_v57  ;;  %v2097_v43 = vld [vmem:[#allocation4 + $0x3] sm:$0xff] }
 0x3cc   : > { %5446 = vmatprep.subr.bf16.mxu1 %v6140_v57 }
 0x3cd   : > { %4502 = vmatmul.mubr.f32.vlgmr.msra.gmra.mrb[4].mxu0 %v1814_v48  ;;  %v2098_v48 = vld [vmem:[#allocation4 + $0xb] sm:$0xff] }
 0x3ce   : > { %4543 = vmatmul.mubr.f32.vlgmr.msra.gmra.mrb[8].mxu1 %v1795_v50  ;;  %5424 = vmatpush3.bf16.msra.mxu0 %v5423_v49  ;;  %v2208_v49 = vld [vmem:[#allocation10 + $0x220] sm:$0xff]  ;;  %v2209_v50 = vld [vmem:[#allocation10 + $0x228] sm:$0xff] }
 0x3cf   : > { %5448 = vmatpush3.bf16.msra.mxu1 %v5447_v51  ;;  %5425 = vmatprep.subr.bf16.mxu0 %v6140_v57  ;;  %v1996_v51 = vld [vmem:[#allocation4 + $0x12] sm:$0xff]  ;;  %v5477_v52 = vpack.c.bf16 %v2209_v50, %v2208_v49 }
 0x3d0   : > { %5449 = vmatprep.subr.bf16.mxu1 %v6140_v57  ;;  %4504 = vmatprep.mubr.msk.f32.mxu0 %vm6141_vm8, %v6142_v1 }
 0x3d1   : > { %4505 = vmatmul.mubr.f32.gmra.mrb[6].mxu0 %v1815_v56  ;;  %4545 = vmatprep.mubr.msk.f32.mxu1 %vm6141_vm8, %v6142_v1  ;;  %v2212_v56 = vld [vmem:[#allocation10 + $0x240] sm:$0xff] }
 0x3d2   : > { %5427 = vmatpush3.bf16.msra.mxu0 %v5426_v55  ;;  %4546 = vmatmul.mubr.f32.gmra.mrb[10].mxu1 %v1796_v61  ;;  %v5480_v55 = vpack.c.bf16 %v2211_v54, %v2210_v53  ;;  %v2215_v61 = vld [vmem:[#allocation10 + $0x258] sm:$0xff] }
 0x3d3   : > { %5451 = vmatpush3.bf16.msra.mxu1 %v5450_v58  ;;  %5428 = vmatprep.subr.bf16.mxu0 %v6140_v57  ;;  %v2213_v58 = vld [vmem:[#allocation10 + $0x248] sm:$0xff]  ;;  %v5486_v62 = vpack.c.bf16 %v2215_v61, %v2214_v60 }
 0x3d4   : > { %5452 = vmatprep.subr.bf16.mxu1 %v6140_v57  ;;  %4507 = vmatprep.mubr.msk.f32.mxu0 %vm6141_vm8, %v6142_v1  ;;  %v5483_v59 = vpack.c.bf16 %v2213_v58, %v2212_v56 }
 0x3d5   : > { %4508 = vmatmul.mubr.f32.gmra.mrb[8].mxu0 %v1816_v2  ;;  %4548 = vmatprep.mubr.msk.f32.mxu1 %vm6141_vm8, %v6142_v1 }
 0x3d6   : > { %5430 = vmatpush3.bf16.msra.mxu0 %v5429_v0  ;;  %4549 = vmatmul.mubr.f32.gmra.mrb[12].mxu1 %v1797_v6  ;;  %v2217_v0 = vld [vmem:[#allocation10 + $0x268] sm:$0xff]  ;;  %v2200_v6 = vld [vmem:[#allocation4 + $0x4] sm:$0xff] }
 0x3d7   : > { %5454 = vmatpush3.bf16.msra.mxu1 %v5453_v3  ;;  %5431 = vmatprep.subr.bf16.mxu0 %v6140_v57  ;;  %v5489_v2 = vpack.c.bf16 %v2217_v0, %v2216_v63  ;;  %v2218_v3 = vld [vmem:[#allocation10 + $0x270] sm:$0xff] }
 0x3d8   : > { %5455 = vmatprep.subr.bf16.mxu1 %v6140_v57  ;;  %4583 = vmatprep.mubr.msk.f32.mxu0 %vm6141_vm8, %v6142_v1  ;;  %v5492_v5 = vpack.c.bf16 %v2219_v4, %v2218_v3 }
 0x3d9   : > { %4624 = vmatprep.mubr.msk.f32.mxu1 %vm6141_vm8, %v6142_v1 }
 0x3da   : > { %5433 = vmatpush3.bf16.msra.mxu0 %v5432_v9 }
 0x3db   : > { %5457 = vmatpush3.bf16.msra.mxu1 %v5456_v10  ;;  %5434 = vmatprep.subr.bf16.mxu0 %v6140_v57 }
 0x3dc   : > { %5458 = vmatprep.subr.bf16.mxu1 %v6140_v57 }
 0x3de   : > { %5436 = vmatpush3.bf16.msra.mxu0 %v5435_v15 }
 0x3df   : > { %5460 = vmatpush3.bf16.msra.mxu1 %v5459_v16  ;;  %5437 = vmatprep.subr.bf16.mxu0 %v6140_v57 }
 0x3e0   : > { %5461 = vmatprep.subr.bf16.mxu1 %v6140_v57 }
 0x3e2   : > { %5439 = vmatpush3.bf16.msra.mxu0 %v5438_v22 }
 0x3e3   : > { %5463 = vmatpush3.bf16.msra.mxu1 %v5462_v23  ;;  %5440 = vmatprep.subr.bf16.mxu0 %v6140_v57 }
 0x3e4   : > { %5464 = vmatprep.subr.bf16.mxu1 %v6140_v57 }
 0x3e6   : > { %5442 = vmatpush3.bf16.msra.mxu0 %v5441_v31 }
 0x3e7   : > { %5466 = vmatpush3.bf16.msra.mxu1 %v5465_v32  ;;  %5443 = vmatprep.subr.bf16.mxu0 %v6140_v57 }
 0x3e8   : > { %5467 = vmatprep.subr.bf16.mxu1 %v6140_v57 }
 0x3ea   : > { %5445 = vmatpush3.bf16.msra.mxu0 %v5444_v37 }
 0x3eb   : > { %5469 = vmatpush3.bf16.msra.mxu1 %v5468_v38  ;;  %5470 = vmatprep.subr.bf16.mxu0 %v6140_v57 }
 0x3ed   : > { %4584 = vmatmul.mubr.f32.vlgmr.msra.gmra.mrb[10].mxu0 %v1994_v41 }
 0x3ee   : > { %5472 = vmatpush3.bf16.msra.mxu0 %v5471_v42  ;;  %4625 = vmatmul.mubr.f32.vlgmr.msra.gmra.mrb[14].mxu1 %v2097_v43 }
 0x3ef   : > { %4586 = vmatprep.mubr.msk.f32.mxu0 %vm6141_vm8, %v6142_v1  ;;  %5473 = vmatprep.subr.bf16.mxu0 %v6140_v57 }
 0x3f0   : > { %4627 = vmatprep.mubr.msk.f32.mxu1 %vm6141_vm8, %v6142_v1 }
 0x3f1   : > { %4587 = vmatmul.mubr.f32.gmra.mrb[12].mxu0 %v1995_v46 }
 0x3f2   : > { %5475 = vmatpush3.bf16.msra.mxu0 %v5474_v47  ;;  %4628 = vmatmul.mubr.f32.gmra.mrb[16].mxu1 %v2098_v48  ;;  %v3602_v47 = vld [vmem:[%s6735_s8] ss:$0 sm:$0xff] }
 0x3f3   : > { %4589 = vmatprep.mubr.msk.f32.mxu0 %vm6141_vm8, %v6142_v1  ;;  %5476 = vmatprep.subr.bf16.mxu0 %v6140_v57 }
 0x3f4   : > { %4630 = vmatprep.mubr.msk.f32.mxu1 %vm6141_vm8, %v6142_v1 }
 0x3f5   : > { %4590 = vmatmul.mubr.f32.gmra.mrb[14].mxu0 %v1996_v51 }
 0x3f6   : > { %5478 = vmatpush3.bf16.msra.mxu0 %v5477_v52  ;;  %4631 = vmatmul.mubr.f32.gmra.mrb[18].mxu1 %v2099_v30 }
 0x3f7   : > { %5479 = vmatprep.subr.bf16.mxu0 %v6140_v57  ;;  %4665 = vmatprep.mubr.msk.f32.mxu0 %vm6141_vm8, %v6142_v1 }
 0x3fa   : > { %5481 = vmatpush3.bf16.msra.mxu0 %v5480_v55 }
 0x3fb   : > { %5482 = vmatprep.subr.bf16.mxu0 %v6140_v57 }
 0x3fe   : > { %5484 = vmatpush3.bf16.msra.mxu0 %v5483_v59 }
 0x3ff   : > { %5485 = vmatprep.subr.bf16.mxu0 %v6140_v57 }
 0x402   : > { %5487 = vmatpush3.bf16.msra.mxu0 %v5486_v62  ;;  %v2327_v62 = vstv (%p2323_p5), %s2319_s15 }
 0x403   : > { %5488 = vmatprep.subr.bf16.mxu0 %v6140_v57  ;;  %v2328_v63 = vadd.s32 (%p2323_p5), %v2327_v62, %v6419_v18  ;;  %v2329_v0 = vadd.s32 (%p2323_p5), %v2327_v62, %v6423_v28 }
 0x405   : > { %vm2331_vm9 = vcmp.ge.s32.totalorder (%p2323_p5), %v2328_v63, 0  ;;  %vm2334_vm10 = vcmp.lt.s32.totalorder (%p2323_p5), %v2328_v63, 40  ;;  %vm2332_vm11 = vcmp.ge.s32.totalorder (%p2323_p5), %v2329_v0, 0  ;;  %vm2335_vm12 = vcmp.lt.s32.totalorder (%p2323_p5), %v2329_v0, 40 }
 0x406   : > { %5490 = vmatpush3.bf16.msra.mxu0 %v5489_v2  ;;  %v2330_v2 = vadd.s32 (%p2323_p5), %v2327_v62, %v6426_v29  ;;  %vm2337_vm13 = vmand (%p2323_p5), %vm2331_vm9, %vm2334_vm10 }
 0x407   : > { %5491 = vmatprep.subr.bf16.mxu0 %v6140_v57  ;;  %vm2338_vm0 = vmand (%p2323_p5), %vm2332_vm11, %vm2335_vm12 }
 0x408   : > { %vm2333_vm14 = vcmp.ge.s32.totalorder (%p2323_p5), %v2330_v2, 0  ;;  %vm2336_vm15 = vcmp.lt.s32.totalorder (%p2323_p5), %v2330_v2, 40 }
 0x409   : > { %vm2339_vm1 = vmand (%p2323_p5), %vm2333_vm14, %vm2336_vm15 }
 0x40a   : > { %5493 = vmatpush3.bf16.msra.mxu0 %v5492_v5 }
 0x40d   : > { %4666 = vmatmul.mubr.f32.vlgmr.msra.gmra.mrb[16].mxu0 %v2200_v6 }
 0x40e   : > { %4668 = vmatprep.mubr.msk.f32.mxu0 %vm6141_vm8, %v6142_v1 }
 0x411   : > { %4669 = vmatmul.mubr.f32.gmra.mrb[18].mxu0 %v2201_v7 }
 0x412   : > { %4671 = vmatprep.mubr.msk.f32.mxu0 %vm6141_vm8, %v6142_v1 }
 0x415   : > { %4672 = vmatmul.mubr.f32.gmra.mrb[20].mxu0 %v2202_v8 }
 0x4a0   : > { %v1900_v9 = vpop.f32.mrb[4].mxu0 }
 0x4a1   : > { %v4503_v10 = vpop.f32.mrb[5].mxu0  ;;  %v1980_v11 = vpop.f32.mrb[8].mxu1 }
 0x4a2   : > { %v1981_v12 = vadd.f32 %v1980_v11, %v1900_v9  ;;  %v4544_v13 = vpop.f32.mrb[9].mxu1 }
 0x4a4   : > { %v1905_v14 = vpop.f32.mrb[6].mxu0 }
 0x4a5   : > { %v4506_v15 = vpop.f32.mrb[7].mxu0  ;;  %v1985_v16 = vpop.f32.mrb[10].mxu1 }
 0x4a6   : > { %v1986_v17 = vadd.f32 %v1985_v16, %v1905_v14  ;;  %v4547_v19 = vpop.f32.mrb[11].mxu1 }
 0x4a8   : > { %v1910_v20 = vpop.f32.mrb[8].mxu0 }
 0x4a9   : > { %v4509_v21 = vpop.f32.mrb[9].mxu0  ;;  %v1990_v22 = vpop.f32.mrb[12].mxu1 }
 0x4aa   : > { %v1991_v23 = vadd.f32 %v1990_v22, %v1910_v20  ;;  %v4550_v24 = vpop.f32.mrb[13].mxu1 }
 0x4c0   : > { %v2080_v25 = vpop.f32.mrb[10].mxu0 }
 0x4c1   : > { %v2094_v26 = vadd.f32 %v2080_v25, %v1981_v12  ;;  %v4585_v27 = vpop.f32.mrb[11].mxu0  ;;  %v2183_v31 = vpop.f32.mrb[14].mxu1 }
 0x4c2   : > { %v4626_v32 = vpop.f32.mrb[15].mxu1 }
 0x4c3   : > { %v2197_v33 = vadd.f32 %v2183_v31, %v2094_v26 }
 0x4c4   : > { %v2085_v34 = vpop.f32.mrb[12].mxu0 }
 0x4c5   : > { %v2095_v35 = vadd.f32 %v2085_v34, %v1986_v17  ;;  %v2188_v36 = vpop.f32.mrb[16].mxu1  ;;  %v4588_v37 = vpop.f32.mrb[13].mxu0 }
 0x4c6   : > { %v4629_v38 = vpop.f32.mrb[17].mxu1 }
 0x4c7   : > { %v2198_v39 = vadd.f32 %v2188_v36, %v2095_v35 }
 0x4c8   : > { %v2090_v40 = vpop.f32.mrb[14].mxu0 }
 0x4c9   : > { %v2096_v41 = vadd.f32 %v2090_v40, %v1991_v23  ;;  %v2193_v42 = vpop.f32.mrb[18].mxu1  ;;  %v4591_v43 = vpop.f32.mrb[15].mxu0 }
 0x4ca   : > { %v4632_v44 = vpop.f32.mrb[19].mxu1 }
 0x4cb   : > { %v2199_v45 = vadd.f32 %v2193_v42, %v2096_v41 }
 0x4e0   : > { %v2286_v46 = vpop.f32.mrb[16].mxu0 }
 0x4e1   : > { %v2300_v48 = vadd.f32 %v2286_v46, %v2197_v33  ;;  %v4667_v49 = vpop.f32.mrb[17].mxu0 }
 0x4e3   : > { %v2310_v50 = vadd.f32 %v3602_v47, %v2300_v48 }
 0x4e4   : > { %v2291_v51 = vpop.f32.mrb[18].mxu0 }
 0x4e5   : > { %5927 = vtanh.f32 %v2310_v50  ;;  %v2301_v52 = vadd.f32 %v2291_v51, %v2198_v39  ;;  %v4670_v30 = vpop.f32.mrb[19].mxu0 }
 0x4e7   : > { %v2311_v53 = vadd.f32 %v3602_v47, %v2301_v52 }
 0x4e8   : > { %v2296_v54 = vpop.f32.mrb[20].mxu0 }
 0x4e9   : > { %5929 = vtanh.f32 %v2311_v53  ;;  %v2302_v55 = vadd.f32 %v2296_v54, %v2199_v45  ;;  %v4673_v56 = vpop.f32.mrb[21].mxu0 }
 0x4eb   : > { %v2312_v58 = vadd.f32 %v3602_v47, %v2302_v55 }
 0x4ed   : > { %5931 = vtanh.f32 %v2312_v58 }
 0x4ef   : > { %v5928_v59 = vpop.eup %5927 }
 0x4f0   : > { %2316 = vst [vmem:[#allocation3] sm:$0xff] %v5928_v59 }
 0x4f2   : > { %2326 = sbr.rel (!%p2323_p5) target bundleno = 1282 (0x502), region = 168 }
 0x4f3   : > { %v5930_v60 = vpop.eup %5929 }
 0x4f4   : > { %2317 = vst [vmem:[#allocation3 + $0x8] sm:$0xff] %v5930_v60 }
 0x4f7   : > { %v5932_v61 = vpop.eup %5931  ;;  %v2340_v3 = vld [vmem:[#allocation3] sm:$0xff] (%p2323_p5) }
 0x4f8   : > { %2318 = vst [vmem:[#allocation3 + $0x10] sm:$0xff] %v5932_v61  ;;  %v2349_v6 = vsel (%p2323_p5), %vm2337_vm13, %v2340_v3, 0.0 }
 0x4f9   : > { %2352 = vst [vmem:[#allocation3] sm:$0xff] %v2349_v6 }
 0x4fb   : > { %v2341_v4 = vld [vmem:[#allocation3 + $0x8] sm:$0xff] }
 0x4fc   : > { %v2350_v7 = vsel %vm2338_vm0, %v2341_v4, 0.0 }
 0x4fd   : > { %2353 = vst [vmem:[#allocation3 + $0x8] sm:$0xff] %v2350_v7 }
 0x4ff   : > { %v2342_v5 = vld [vmem:[#allocation3 + $0x10] sm:$0xff] }
 0x500   : > { %v2351_v8 = vsel %vm2339_vm1, %v2342_v5, 0.0 }
 0x501   : > { %2354 = vst [vmem:[#allocation3 + $0x10] sm:$0xff] %v2351_v8 }
 0x502 PF: > { %5494 = vmatprep.subr.bf16.mxu1 %v6140_v57  ;;  %v2378_v9 = vld [vmem:[#allocation11 + $0x80] sm:$0xff]  ;;  %v2379_v10 = vld [vmem:[#allocation11 + $0x88] sm:$0xff]  ;;  %5518 = vmatprep.subr.bf16.mxu0 %v6140_v57  ;;  %v2380_v14 = vld [vmem:[#allocation11 + $0x90] sm:$0xff]  ;;  %s2879_s4 = sadd.s32 4294967294, %s6409_s2  ;;  %s2881_s24 = sadd.s32 18, %s6409_s2 }
 0x503   : > { %v2358_v11 = vld [vmem:[#allocation11] sm:$0xff]  ;;  %v5495_v12 = vpack.c.bf16 %v2379_v10, %v2378_v9  ;;  %v2359_v13 = vld [vmem:[#allocation11 + $0x8] sm:$0xff]  ;;  %v2381_v15 = vld [vmem:[#allocation11 + $0x98] sm:$0xff]  ;;  %4706 = vmatprep.mubr.msk.f32.mxu1 %vm6141_vm8, %v6142_v1  ;;  %4747 = vmatprep.mubr.msk.f32.mxu0 %vm6141_vm8, %v6142_v1  ;;  %p6682_p8 = scmp.lt.s32.totalorder %s2879_s4, 0  ;;  %p6686_p9 = scmp.gt.s32.totalorder %s2881_s24, 40 }
 0x504   : > { %v5519_v16 = vpack.c.bf16 %v2359_v13, %v2358_v11  ;;  %v2360_v17 = vld [vmem:[#allocation11 + $0x10] sm:$0xff]  ;;  %v2361_v19 = vld [vmem:[#allocation11 + $0x18] sm:$0xff]  ;;  %v5498_v20 = vpack.c.bf16 %v2381_v15, %v2380_v14  ;;  %v2382_v22 = vld [vmem:[#allocation11 + $0xa0] sm:$0xff]  ;;  %s6770_s22 = sld [smem:[#allocation24_spill]] }
 0x505   : > { %5496 = vmatpush3.bf16.msra.mxu1 %v5495_v12  ;;  %v5522_v21 = vpack.c.bf16 %v2361_v19, %v2360_v17  ;;  %v2383_v23 = vld [vmem:[#allocation11 + $0xa8] sm:$0xff]  ;;  %v2362_v24 = vld [vmem:[#allocation11 + $0x20] sm:$0xff]  ;;  %v2384_v31 = vld [vmem:[#allocation11 + $0xb0] sm:$0xff]  ;;  %p2883_p10 = por %p6686_p9, %p6682_p8 }
 0x506   : > { %5520 = vmatpush3.bf16.msra.mxu0 %v5519_v16  ;;  %5497 = vmatprep.subr.bf16.mxu1 %v6140_v57  ;;  %v2363_v25 = vld [vmem:[#allocation11 + $0x28] sm:$0xff]  ;;  %v5501_v26 = vpack.c.bf16 %v2383_v23, %v2382_v22  ;;  %v2385_v32 = vld [vmem:[#allocation11 + $0xb8] sm:$0xff]  ;;  %v2364_v33 = vld [vmem:[#allocation11 + $0x30] sm:$0xff] }
 0x507   : > { %5521 = vmatprep.subr.bf16.mxu0 %v6140_v57  ;;  %v5525_v27 = vpack.c.bf16 %v2363_v25, %v2362_v24  ;;  %v2365_v34 = vld [vmem:[#allocation11 + $0x38] sm:$0xff]  ;;  %v5504_v35 = vpack.c.bf16 %v2385_v32, %v2384_v31  ;;  %v2386_v37 = vld [vmem:[#allocation11 + $0xc0] sm:$0xff]  ;;  %v2387_v38 = vld [vmem:[#allocation11 + $0xc8] sm:$0xff] }
 0x508   : > { %v5528_v36 = vpack.c.bf16 %v2365_v34, %v2364_v33  ;;  %v2366_v39 = vld [vmem:[#allocation11 + $0x40] sm:$0xff]  ;;  %v2367_v40 = vld [vmem:[#allocation11 + $0x48] sm:$0xff]  ;;  %v5507_v41 = vpack.c.bf16 %v2387_v38, %v2386_v37  ;;  %v2388_v43 = vld [vmem:[#allocation11 + $0xd0] sm:$0xff] }
 0x509   : > { %5499 = vmatpush3.bf16.msra.mxu1 %v5498_v20  ;;  %v5531_v42 = vpack.c.bf16 %v2367_v40, %v2366_v39  ;;  %v2389_v44 = vld [vmem:[#allocation11 + $0xd8] sm:$0xff]  ;;  %v2368_v45 = vld [vmem:[#allocation11 + $0x50] sm:$0xff]  ;;  %v2390_v49 = vld [vmem:[#allocation11 + $0xe0] sm:$0xff] }
 0x50a   : > { %5523 = vmatpush3.bf16.msra.mxu0 %v5522_v21  ;;  %5500 = vmatprep.subr.bf16.mxu1 %v6140_v57  ;;  %v2369_v46 = vld [vmem:[#allocation11 + $0x58] sm:$0xff]  ;;  %v5510_v47 = vpack.c.bf16 %v2389_v44, %v2388_v43  ;;  %v2391_v50 = vld [vmem:[#allocation11 + $0xe8] sm:$0xff]  ;;  %v2370_v51 = vld [vmem:[#allocation11 + $0x60] sm:$0xff] }
 0x50b   : > { %5524 = vmatprep.subr.bf16.mxu0 %v6140_v57  ;;  %v5534_v48 = vpack.c.bf16 %v2369_v46, %v2368_v45  ;;  %v2371_v52 = vld [vmem:[#allocation11 + $0x68] sm:$0xff]  ;;  %v5513_v30 = vpack.c.bf16 %v2391_v50, %v2390_v49  ;;  %v2392_v54 = vld [vmem:[#allocation11 + $0xf0] sm:$0xff]  ;;  %v2393_v55 = vld [vmem:[#allocation11 + $0xf8] sm:$0xff] }
 0x50c   : > { %v5537_v53 = vpack.c.bf16 %v2371_v52, %v2370_v51  ;;  %v2372_v56 = vld [vmem:[#allocation11 + $0x70] sm:$0xff]  ;;  %v2373_v58 = vld [vmem:[#allocation11 + $0x78] sm:$0xff]  ;;  %v5516_v59 = vpack.c.bf16 %v2393_v55, %v2392_v54  ;;  %v2558_v61 = vld [vmem:[#allocation11 + $0x100] sm:$0xff] }
 0x50d   : > { %5502 = vmatpush3.bf16.msra.mxu1 %v5501_v26  ;;  %v5540_v60 = vpack.c.bf16 %v2373_v58, %v2372_v56  ;;  %v2559_v62 = vld [vmem:[#allocation11 + $0x108] sm:$0xff]  ;;  %v2661_v63 = vld [vmem:[#allocation11 + $0x180] sm:$0xff]  ;;  %v2560_v6 = vld [vmem:[#allocation11 + $0x110] sm:$0xff] }
 0x50e   : > { %5526 = vmatpush3.bf16.msra.mxu0 %v5525_v27  ;;  %5503 = vmatprep.subr.bf16.mxu1 %v6140_v57  ;;  %v2662_v0 = vld [vmem:[#allocation11 + $0x188] sm:$0xff]  ;;  %v5543_v3 = vpack.c.bf16 %v2559_v62, %v2558_v61  ;;  %v2355_v4 = vld [vmem:[#allocation3] sm:$0xff]  ;;  %v2561_v7 = vld [vmem:[#allocation11 + $0x118] sm:$0xff] }
 0x50f   : > { %5527 = vmatprep.subr.bf16.mxu0 %v6140_v57  ;;  %v2374_v2 = vld [vmem:[#allocation3 + $0x1] sm:$0xff]  ;;  %v5567_v5 = vpack.c.bf16 %v2662_v0, %v2661_v63  ;;  %v2663_v8 = vld [vmem:[#allocation11 + $0x190] sm:$0xff]  ;;  %v2664_v9 = vld [vmem:[#allocation11 + $0x198] sm:$0xff]  ;;  %v5546_v10 = vpack.c.bf16 %v2561_v7, %v2560_v6 }
 0x510   : > { %v2375_v11 = vld [vmem:[#allocation3 + $0x9] sm:$0xff]  ;;  %v5570_v12 = vpack.c.bf16 %v2664_v9, %v2663_v8  ;;  %v2562_v13 = vld [vmem:[#allocation11 + $0x120] sm:$0xff]  ;;  %v2376_v20 = vld [vmem:[#allocation3 + $0x11] sm:$0xff] }
 0x511   : > { %5505 = vmatpush3.bf16.msra.mxu1 %v5504_v35  ;;  %v2563_v14 = vld [vmem:[#allocation11 + $0x128] sm:$0xff]  ;;  %v2665_v16 = vld [vmem:[#allocation11 + $0x1a0] sm:$0xff]  ;;  %v2564_v22 = vld [vmem:[#allocation11 + $0x130] sm:$0xff] }
 0x512   : > { %5529 = vmatpush3.bf16.msra.mxu0 %v5528_v36  ;;  %5506 = vmatprep.subr.bf16.mxu1 %v6140_v57  ;;  %v2356_v15 = vld [vmem:[#allocation3 + $0x8] sm:$0xff]  ;;  %v5549_v19 = vpack.c.bf16 %v2563_v14, %v2562_v13  ;;  %v2565_v23 = vld [vmem:[#allocation11 + $0x138] sm:$0xff]  ;;  %v2357_v24 = vld [vmem:[#allocation3 + $0x10] sm:$0xff] }
 0x513   : > { %5530 = vmatprep.subr.bf16.mxu0 %v6140_v57  ;;  %v2666_v17 = vld [vmem:[#allocation11 + $0x1a8] sm:$0xff]  ;;  %v2667_v25 = vld [vmem:[#allocation11 + $0x1b0] sm:$0xff]  ;;  %v2668_v26 = vld [vmem:[#allocation11 + $0x1b8] sm:$0xff]  ;;  %v5552_v27 = vpack.c.bf16 %v2565_v23, %v2564_v22 }
 0x514   : > { %v5573_v21 = vpack.c.bf16 %v2666_v17, %v2665_v16  ;;  %v5576_v31 = vpack.c.bf16 %v2668_v26, %v2667_v25  ;;  %v2566_v32 = vld [vmem:[#allocation11 + $0x140] sm:$0xff]  ;;  %v2567_v33 = vld [vmem:[#allocation11 + $0x148] sm:$0xff]  ;;  %v2568_v38 = vld [vmem:[#allocation11 + $0x150] sm:$0xff] }
 0x515   : > { %5508 = vmatpush3.bf16.msra.mxu1 %v5507_v41  ;;  %v2669_v34 = vld [vmem:[#allocation11 + $0x1c0] sm:$0xff]  ;;  %v2670_v35 = vld [vmem:[#allocation11 + $0x1c8] sm:$0xff]  ;;  %v5555_v36 = vpack.c.bf16 %v2567_v33, %v2566_v32  ;;  %v2569_v39 = vld [vmem:[#allocation11 + $0x158] sm:$0xff] }
 0x516   : > { %5532 = vmatpush3.bf16.msra.mxu0 %v5531_v42  ;;  %5509 = vmatprep.subr.bf16.mxu1 %v6140_v57  ;;  %v5579_v37 = vpack.c.bf16 %v2670_v35, %v2669_v34  ;;  %v2671_v40 = vld [vmem:[#allocation11 + $0x1d0] sm:$0xff]  ;;  %v2672_v41 = vld [vmem:[#allocation11 + $0x1d8] sm:$0xff]  ;;  %v5558_v42 = vpack.c.bf16 %v2569_v39, %v2568_v38  ;;  %v2570_v44 = vld [vmem:[#allocation11 + $0x160] sm:$0xff] }
 0x517   : > { %5533 = vmatprep.subr.bf16.mxu0 %v6140_v57  ;;  %v5582_v43 = vpack.c.bf16 %v2672_v41, %v2671_v40  ;;  %v2571_v45 = vld [vmem:[#allocation11 + $0x168] sm:$0xff]  ;;  %v2673_v46 = vld [vmem:[#allocation11 + $0x1e0] sm:$0xff]  ;;  %v2572_v50 = vld [vmem:[#allocation11 + $0x170] sm:$0xff] }
 0x518   : > { %v2573_v51 = vld [vmem:[#allocation11 + $0x178] sm:$0xff]  ;;  %v2675_v52 = vld [vmem:[#allocation11 + $0x1f0] sm:$0xff]  ;;  %v2764_v55 = vld [vmem:[#allocation11 + $0x200] sm:$0xff] }
 0x519   : > { %5511 = vmatpush3.bf16.msra.mxu1 %v5510_v47  ;;  %v2674_v47 = vld [vmem:[#allocation11 + $0x1e8] sm:$0xff]  ;;  %v2766_v61 = vld [vmem:[#allocation11 + $0x210] sm:$0xff]  ;;  %v2767_v62 = vld [vmem:[#allocation11 + $0x218] sm:$0xff] }
 0x51a   : > { %5535 = vmatpush3.bf16.msra.mxu0 %v5534_v48  ;;  %5512 = vmatprep.subr.bf16.mxu1 %v6140_v57  ;;  %v5561_v48 = vpack.c.bf16 %v2571_v45, %v2570_v44  ;;  %v5585_v49 = vpack.c.bf16 %v2674_v47, %v2673_v46  ;;  %v2765_v56 = vld [vmem:[#allocation11 + $0x208] sm:$0xff]  ;;  %v5594_v0 = vpack.c.bf16 %v2767_v62, %v2766_v61  ;;  %v2659_v7 = vld [vmem:[#allocation3 + $0x13] sm:$0xff]  ;;  %v2776_v17 = vld [vmem:[#allocation11 + $0x260] sm:$0xff] }
 0x51b   : > { %5536 = vmatprep.subr.bf16.mxu0 %v6140_v57  ;;  %v2554_v58 = vld [vmem:[#allocation3 + $0x2] sm:$0xff]  ;;  %v2555_v63 = vld [vmem:[#allocation3 + $0xa] sm:$0xff]  ;;  %v2771_v9 = vld [vmem:[#allocation11 + $0x238] sm:$0xff] }
 0x51c   : > { %v2770_v8 = vld [vmem:[#allocation11 + $0x230] sm:$0xff]  ;;  %v2779_v22 = vld [vmem:[#allocation11 + $0x278] sm:$0xff]  ;;  %v3603_v62 = vld [vmem:[%s6770_s22] ss:$0 sm:$0xff] }
 0x51d   : > { %5514 = vmatpush3.bf16.msra.mxu1 %v5513_v30  ;;  %v2676_v30 = vld [vmem:[#allocation11 + $0x1f8] sm:$0xff]  ;;  %v2774_v14 = vld [vmem:[#allocation11 + $0x250] sm:$0xff] }
 0x51e   : > { %5538 = vmatpush3.bf16.msra.mxu0 %v5537_v53  ;;  %5515 = vmatprep.subr.bf16.mxu1 %v6140_v57  ;;  %v5564_v53 = vpack.c.bf16 %v2573_v51, %v2572_v50  ;;  %v5588_v54 = vpack.c.bf16 %v2676_v30, %v2675_v52  ;;  %v2761_v25 = vld [vmem:[#allocation3 + $0xc] sm:$0xff]  ;;  %v2762_v26 = vld [vmem:[#allocation3 + $0x14] sm:$0xff] }
 0x51f   : > { %5539 = vmatprep.subr.bf16.mxu0 %v6140_v57 }
 0x521   : > { %5517 = vmatpush3.bf16.msra.mxu1 %v5516_v59  ;;  %v5591_v59 = vpack.c.bf16 %v2765_v56, %v2764_v55 }
 0x522   : > { %5541 = vmatpush3.bf16.msra.mxu0 %v5540_v60  ;;  %5542 = vmatprep.subr.bf16.mxu1 %v6140_v57  ;;  %v2657_v60 = vld [vmem:[#allocation3 + $0x3] sm:$0xff] }
 0x523   : > { %5566 = vmatprep.subr.bf16.mxu0 %v6140_v57 }
 0x524   : > { %4707 = vmatmul.mubr.f32.vlgmr.msra.gmra.mrb[20].mxu1 %v2374_v2  ;;  %v2658_v2 = vld [vmem:[#allocation3 + $0xb] sm:$0xff] }
 0x525   : > { %4748 = vmatmul.mubr.f32.vlgmr.msra.gmra.mrb[22].mxu0 %v2355_v4  ;;  %5544 = vmatpush3.bf16.msra.mxu1 %v5543_v3  ;;  %v2768_v3 = vld [vmem:[#allocation11 + $0x220] sm:$0xff]  ;;  %v2769_v4 = vld [vmem:[#allocation11 + $0x228] sm:$0xff] }
 0x526   : > { %5568 = vmatpush3.bf16.msra.mxu0 %v5567_v5  ;;  %5545 = vmatprep.subr.bf16.mxu1 %v6140_v57  ;;  %v2556_v5 = vld [vmem:[#allocation3 + $0x12] sm:$0xff]  ;;  %v5597_v6 = vpack.c.bf16 %v2769_v4, %v2768_v3 }
 0x527   : > { %5569 = vmatprep.subr.bf16.mxu0 %v6140_v57  ;;  %4709 = vmatprep.mubr.msk.f32.mxu1 %vm6141_vm8, %v6142_v1 }
 0x528   : > { %4710 = vmatmul.mubr.f32.gmra.mrb[22].mxu1 %v2375_v11  ;;  %4750 = vmatprep.mubr.msk.f32.mxu0 %vm6141_vm8, %v6142_v1  ;;  %v2772_v11 = vld [vmem:[#allocation11 + $0x240] sm:$0xff] }
 0x529   : > { %5547 = vmatpush3.bf16.msra.mxu1 %v5546_v10  ;;  %4751 = vmatmul.mubr.f32.gmra.mrb[24].mxu0 %v2356_v15  ;;  %v5600_v10 = vpack.c.bf16 %v2771_v9, %v2770_v8  ;;  %v2775_v15 = vld [vmem:[#allocation11 + $0x258] sm:$0xff] }
 0x52a   : > { %5571 = vmatpush3.bf16.msra.mxu0 %v5570_v12  ;;  %5548 = vmatprep.subr.bf16.mxu1 %v6140_v57  ;;  %v2773_v12 = vld [vmem:[#allocation11 + $0x248] sm:$0xff]  ;;  %v5606_v16 = vpack.c.bf16 %v2775_v15, %v2774_v14  ;;  %v2887_v14 = vstv (%p2883_p10), %s2879_s4 }
 0x52b   : > { %5572 = vmatprep.subr.bf16.mxu0 %v6140_v57  ;;  %4712 = vmatprep.mubr.msk.f32.mxu1 %vm6141_vm8, %v6142_v1  ;;  %v5603_v13 = vpack.c.bf16 %v2773_v12, %v2772_v11  ;;  %v2888_v15 = vadd.s32 (%p2883_p10), %v2887_v14, %v6419_v18 }
 0x52c   : > { %4713 = vmatmul.mubr.f32.gmra.mrb[24].mxu1 %v2376_v20  ;;  %4753 = vmatprep.mubr.msk.f32.mxu0 %vm6141_vm8, %v6142_v1 }
 0x52d   : > { %5550 = vmatpush3.bf16.msra.mxu1 %v5549_v19  ;;  %4754 = vmatmul.mubr.f32.gmra.mrb[26].mxu0 %v2357_v24  ;;  %v2777_v19 = vld [vmem:[#allocation11 + $0x268] sm:$0xff]  ;;  %vm2891_vm2 = vcmp.ge.s32.totalorder (%p2883_p10), %v2888_v15, 0  ;;  %vm2894_vm3 = vcmp.lt.s32.totalorder (%p2883_p10), %v2888_v15, 40 }
 0x52e   : > { %5574 = vmatpush3.bf16.msra.mxu0 %v5573_v21  ;;  %5551 = vmatprep.subr.bf16.mxu1 %v6140_v57  ;;  %v5609_v20 = vpack.c.bf16 %v2777_v19, %v2776_v17  ;;  %v2778_v21 = vld [vmem:[#allocation11 + $0x270] sm:$0xff]  ;;  %v2760_v24 = vld [vmem:[#allocation3 + $0x4] sm:$0xff]  ;;  %v2890_v17 = vadd.s32 (%p2883_p10), %v2887_v14, %v6426_v29  ;;  %vm2897_vm6 = vmand (%p2883_p10), %vm2891_vm2, %vm2894_vm3 }
 0x52f   : > { %5575 = vmatprep.subr.bf16.mxu0 %v6140_v57  ;;  %4788 = vmatprep.mubr.msk.f32.mxu1 %vm6141_vm8, %v6142_v1  ;;  %v5612_v23 = vpack.c.bf16 %v2779_v22, %v2778_v21 }
 0x530   : > { %4829 = vmatprep.mubr.msk.f32.mxu0 %vm6141_vm8, %v6142_v1  ;;  %vm2893_vm7 = vcmp.ge.s32.totalorder (%p2883_p10), %v2890_v17, 0 }
 0x531   : > { %5553 = vmatpush3.bf16.msra.mxu1 %v5552_v27 }
 0x532   : > { %5577 = vmatpush3.bf16.msra.mxu0 %v5576_v31  ;;  %5554 = vmatprep.subr.bf16.mxu1 %v6140_v57 }
 0x533   : > { %5578 = vmatprep.subr.bf16.mxu0 %v6140_v57 }
 0x535   : > { %5556 = vmatpush3.bf16.msra.mxu1 %v5555_v36 }
 0x536   : > { %5580 = vmatpush3.bf16.msra.mxu0 %v5579_v37  ;;  %5557 = vmatprep.subr.bf16.mxu1 %v6140_v57 }
 0x537   : > { %5581 = vmatprep.subr.bf16.mxu0 %v6140_v57 }
 0x539   : > { %5559 = vmatpush3.bf16.msra.mxu1 %v5558_v42 }
 0x53a   : > { %5583 = vmatpush3.bf16.msra.mxu0 %v5582_v43  ;;  %5560 = vmatprep.subr.bf16.mxu1 %v6140_v57 }
 0x53b   : > { %5584 = vmatprep.subr.bf16.mxu0 %v6140_v57 }
 0x53d   : > { %5562 = vmatpush3.bf16.msra.mxu1 %v5561_v48 }
 0x53e   : > { %5586 = vmatpush3.bf16.msra.mxu0 %v5585_v49  ;;  %5563 = vmatprep.subr.bf16.mxu1 %v6140_v57 }
 0x53f   : > { %5587 = vmatprep.subr.bf16.mxu0 %v6140_v57 }
 0x541   : > { %5565 = vmatpush3.bf16.msra.mxu1 %v5564_v53 }
 0x542   : > { %5589 = vmatpush3.bf16.msra.mxu0 %v5588_v54  ;;  %5590 = vmatprep.subr.bf16.mxu1 %v6140_v57 }
 0x544   : > { %4789 = vmatmul.mubr.f32.vlgmr.msra.gmra.mrb[26].mxu1 %v2554_v58 }
 0x545   : > { %5592 = vmatpush3.bf16.msra.mxu1 %v5591_v59  ;;  %4830 = vmatmul.mubr.f32.vlgmr.msra.gmra.mrb[28].mxu0 %v2657_v60 }
 0x546   : > { %4791 = vmatprep.mubr.msk.f32.mxu1 %vm6141_vm8, %v6142_v1  ;;  %5593 = vmatprep.subr.bf16.mxu1 %v6140_v57 }
 0x547   : > { %4832 = vmatprep.mubr.msk.f32.mxu0 %vm6141_vm8, %v6142_v1 }
 0x548   : > { %4792 = vmatmul.mubr.f32.gmra.mrb[28].mxu1 %v2555_v63 }
 0x549   : > { %5595 = vmatpush3.bf16.msra.mxu1 %v5594_v0  ;;  %4833 = vmatmul.mubr.f32.gmra.mrb[30].mxu0 %v2658_v2 }
 0x54a   : > { %4794 = vmatprep.mubr.msk.f32.mxu1 %vm6141_vm8, %v6142_v1  ;;  %5596 = vmatprep.subr.bf16.mxu1 %v6140_v57 }
 0x54b   : > { %4835 = vmatprep.mubr.msk.f32.mxu0 %vm6141_vm8, %v6142_v1 }
 0x54c   : > { %4795 = vmatmul.mubr.f32.gmra.mrb[30].mxu1 %v2556_v5 }
 0x54d   : > { %5598 = vmatpush3.bf16.msra.mxu1 %v5597_v6  ;;  %4836 = vmatmul.mubr.f32.gmra.mrb[32].mxu0 %v2659_v7 }
 0x54e   : > { %5599 = vmatprep.subr.bf16.mxu1 %v6140_v57  ;;  %4870 = vmatprep.mubr.msk.f32.mxu1 %vm6141_vm8, %v6142_v1 }
 0x551   : > { %5601 = vmatpush3.bf16.msra.mxu1 %v5600_v10 }
 0x552   : > { %5602 = vmatprep.subr.bf16.mxu1 %v6140_v57 }
 0x555   : > { %5604 = vmatpush3.bf16.msra.mxu1 %v5603_v13 }
 0x556   : > { %5605 = vmatprep.subr.bf16.mxu1 %v6140_v57 }
 0x559   : > { %5607 = vmatpush3.bf16.msra.mxu1 %v5606_v16  ;;  %v2889_v16 = vadd.s32 (%p2883_p10), %v2887_v14, %v6423_v28 }
 0x55a   : > { %5608 = vmatprep.subr.bf16.mxu1 %v6140_v57 }
 0x55b   : > { %vm2892_vm4 = vcmp.ge.s32.totalorder (%p2883_p10), %v2889_v16, 0  ;;  %vm2895_vm5 = vcmp.lt.s32.totalorder (%p2883_p10), %v2889_v16, 40 }
 0x55c   : > { %vm2898_vm9 = vmand (%p2883_p10), %vm2892_vm4, %vm2895_vm5 }
 0x55d   : > { %5610 = vmatpush3.bf16.msra.mxu1 %v5609_v20 }
 0x55e   : > { %5611 = vmatprep.subr.bf16.mxu1 %v6140_v57 }
 0x561   : > { %5613 = vmatpush3.bf16.msra.mxu1 %v5612_v23 }
 0x564   : > { %4871 = vmatmul.mubr.f32.vlgmr.msra.gmra.mrb[32].mxu1 %v2760_v24 }
 0x565   : > { %4873 = vmatprep.mubr.msk.f32.mxu1 %vm6141_vm8, %v6142_v1 }
 0x568   : > { %4874 = vmatmul.mubr.f32.gmra.mrb[34].mxu1 %v2761_v25 }
 0x569   : > { %4876 = vmatprep.mubr.msk.f32.mxu1 %vm6141_vm8, %v6142_v1  ;;  %vm2896_vm8 = vcmp.lt.s32.totalorder (%p2883_p10), %v2890_v17, 40 }
 0x56a   : > { %vm2899_vm10 = vmand (%p2883_p10), %vm2893_vm7, %vm2896_vm8 }
 0x56c   : > { %4877 = vmatmul.mubr.f32.gmra.mrb[36].mxu1 %v2762_v26 }
 0x5f7   : > { %v2460_v57 = vpop.f32.mrb[20].mxu1 }
 0x5f8   : > { %v4708_v1 = vpop.f32.mrb[21].mxu1  ;;  %v2540_v27 = vpop.f32.mrb[22].mxu0 }
 0x5f9   : > { %v2541_v31 = vadd.f32 %v2540_v27, %v2460_v57  ;;  %v4749_v32 = vpop.f32.mrb[23].mxu0 }
 0x5fb   : > { %v2465_v33 = vpop.f32.mrb[22].mxu1 }
 0x5fc   : > { %v4711_v34 = vpop.f32.mrb[23].mxu1  ;;  %v2545_v35 = vpop.f32.mrb[24].mxu0 }
 0x5fd   : > { %v2546_v36 = vadd.f32 %v2545_v35, %v2465_v33  ;;  %v4752_v37 = vpop.f32.mrb[25].mxu0 }
 0x5ff   : > { %v2470_v38 = vpop.f32.mrb[24].mxu1 }
 0x600   : > { %v4714_v39 = vpop.f32.mrb[25].mxu1  ;;  %v2550_v40 = vpop.f32.mrb[26].mxu0 }
 0x601   : > { %v2551_v41 = vadd.f32 %v2550_v40, %v2470_v38  ;;  %v4755_v42 = vpop.f32.mrb[27].mxu0 }
 0x617   : > { %v2640_v43 = vpop.f32.mrb[26].mxu1 }
 0x618   : > { %v2654_v44 = vadd.f32 %v2640_v43, %v2541_v31  ;;  %v4790_v45 = vpop.f32.mrb[27].mxu1  ;;  %v2743_v46 = vpop.f32.mrb[28].mxu0 }
 0x619   : > { %v4831_v47 = vpop.f32.mrb[29].mxu0 }
 0x61a   : > { %v2757_v48 = vadd.f32 %v2743_v46, %v2654_v44 }
 0x61b   : > { %v2645_v49 = vpop.f32.mrb[28].mxu1 }
 0x61c   : > { %v2655_v50 = vadd.f32 %v2645_v49, %v2546_v36  ;;  %v2748_v51 = vpop.f32.mrb[30].mxu0  ;;  %v4793_v52 = vpop.f32.mrb[29].mxu1 }
 0x61d   : > { %v4834_v30 = vpop.f32.mrb[31].mxu0 }
 0x61e   : > { %v2758_v53 = vadd.f32 %v2748_v51, %v2655_v50 }
 0x61f   : > { %v2650_v54 = vpop.f32.mrb[30].mxu1 }
 0x620   : > { %v2656_v55 = vadd.f32 %v2650_v54, %v2551_v41  ;;  %v2753_v56 = vpop.f32.mrb[32].mxu0  ;;  %v4796_v58 = vpop.f32.mrb[31].mxu1 }
 0x621   : > { %v4837_v59 = vpop.f32.mrb[33].mxu0 }
 0x622   : > { %v2759_v60 = vadd.f32 %v2753_v56, %v2656_v55 }
 0x637   : > { %v2846_v61 = vpop.f32.mrb[32].mxu1 }
 0x638   : > { %v2860_v63 = vadd.f32 %v2846_v61, %v2757_v48  ;;  %v4872_v0 = vpop.f32.mrb[33].mxu1 }
 0x63a   : > { %v2870_v2 = vadd.f32 %v3603_v62, %v2860_v63 }
 0x63b   : > { %v2851_v3 = vpop.f32.mrb[34].mxu1 }
 0x63c   : > { %5933 = vtanh.f32 %v2870_v2  ;;  %v2861_v4 = vadd.f32 %v2851_v3, %v2758_v53  ;;  %v4875_v5 = vpop.f32.mrb[35].mxu1 }
 0x63e   : > { %v2871_v6 = vadd.f32 %v3603_v62, %v2861_v4 }
 0x63f   : > { %v2856_v7 = vpop.f32.mrb[36].mxu1 }
 0x640   : > { %5935 = vtanh.f32 %v2871_v6  ;;  %v2862_v8 = vadd.f32 %v2856_v7, %v2759_v60  ;;  %v4878_v9 = vpop.f32.mrb[37].mxu1 }
 0x642   : > { %v2872_v10 = vadd.f32 %v3603_v62, %v2862_v8 }
 0x644   : > { %5937 = vtanh.f32 %v2872_v10 }
 0x646   : > { %v5934_v11 = vpop.eup %5933 }
 0x647   : > { %2876 = vst [vmem:[#allocation4] sm:$0xff] %v5934_v11 }
 0x649   : > { %2886 = sbr.rel (!%p2883_p10) target bundleno = 1625 (0x659), region = 172 }
 0x64a   : > { %v5936_v12 = vpop.eup %5935 }
 0x64b   : > { %2877 = vst [vmem:[#allocation4 + $0x8] sm:$0xff] %v5936_v12 }
 0x64e   : > { %v5938_v13 = vpop.eup %5937  ;;  %v2900_v19 = vld [vmem:[#allocation4] sm:$0xff] (%p2883_p10) }
 0x64f   : > { %2878 = vst [vmem:[#allocation4 + $0x10] sm:$0xff] %v5938_v13  ;;  %v2909_v22 = vsel (%p2883_p10), %vm2897_vm6, %v2900_v19, 0.0 }
 0x650   : > { %2912 = vst [vmem:[#allocation4] sm:$0xff] %v2909_v22 }
 0x652   : > { %v2901_v20 = vld [vmem:[#allocation4 + $0x8] sm:$0xff] }
 0x653   : > { %v2910_v23 = vsel %vm2898_vm9, %v2901_v20, 0.0 }
 0x654   : > { %2913 = vst [vmem:[#allocation4 + $0x8] sm:$0xff] %v2910_v23 }
 0x656   : > { %v2902_v21 = vld [vmem:[#allocation4 + $0x10] sm:$0xff] }
 0x657   : > { %v2911_v18 = vsel %vm2899_vm10, %v2902_v21, 0.0 }
 0x658   : > { %2914 = vst [vmem:[#allocation4 + $0x10] sm:$0xff] %v2911_v18 }
 0x659 PF: > { %v2936_v28 = vld [vmem:[#allocation13 + $0x80] sm:$0xff]  ;;  %v2937_v29 = vld [vmem:[#allocation13 + $0x88] sm:$0xff]  ;;  %v2938_v24 = vld [vmem:[#allocation13 + $0x90] sm:$0xff]  ;;  %s6771_s23 = sld [smem:[#allocation25_spill]] }
 0x65a   : > { %v5614_v25 = vpack.c.bf16 %v2937_v29, %v2936_v28  ;;  %v2939_v26 = vld [vmem:[#allocation13 + $0x98] sm:$0xff]  ;;  %v2940_v1 = vld [vmem:[#allocation13 + $0xa0] sm:$0xff]  ;;  %v2941_v27 = vld [vmem:[#allocation13 + $0xa8] sm:$0xff] }
 0x65b   : > { %v5618_v57 = vpack.c.bf16 %v2939_v26, %v2938_v24  ;;  %v5622_v31 = vpack.c.bf16 %v2941_v27, %v2940_v1  ;;  %v2942_v33 = vld [vmem:[#allocation13 + $0xb0] sm:$0xff]  ;;  %v2943_v34 = vld [vmem:[#allocation13 + $0xb8] sm:$0xff]  ;;  %v2944_v36 = vld [vmem:[#allocation13 + $0xc0] sm:$0xff] }
 0x65c   : > { %5615 = vmatprep.subr.bf16.mxu0 %v5614_v25  ;;  %v5626_v35 = vpack.c.bf16 %v2943_v34, %v2942_v33  ;;  %v2945_v37 = vld [vmem:[#allocation13 + $0xc8] sm:$0xff]  ;;  %v2946_v39 = vld [vmem:[#allocation13 + $0xd0] sm:$0xff]  ;;  %v2947_v40 = vld [vmem:[#allocation13 + $0xd8] sm:$0xff] }
 0x65d   : > { %5617 = vmatpush3.bf16.msra.mxu0 %v5614_v25  ;;  %v5630_v38 = vpack.c.bf16 %v2945_v37, %v2944_v36  ;;  %v5634_v41 = vpack.c.bf16 %v2947_v40, %v2946_v39  ;;  %v2948_v42 = vld [vmem:[#allocation13 + $0xe0] sm:$0xff]  ;;  %v2949_v43 = vld [vmem:[#allocation13 + $0xe8] sm:$0xff]  ;;  %v2950_v45 = vld [vmem:[#allocation13 + $0xf0] sm:$0xff] }
 0x65e   : > { %5619 = vmatprep.subr.bf16.mxu0 %v5618_v57  ;;  %v5638_v44 = vpack.c.bf16 %v2949_v43, %v2948_v42  ;;  %v2951_v46 = vld [vmem:[#allocation13 + $0xf8] sm:$0xff]  ;;  %v2917_v48 = vld [vmem:[#allocation13] sm:$0xff]  ;;  %v2918_v49 = vld [vmem:[#allocation13 + $0x8] sm:$0xff] }
 0x65f   : > { %v5642_v47 = vpack.c.bf16 %v2951_v46, %v2950_v45  ;;  %v5646_v50 = vpack.c.bf16 %v2918_v49, %v2917_v48  ;;  %v2919_v51 = vld [vmem:[#allocation13 + $0x10] sm:$0xff]  ;;  %v2920_v52 = vld [vmem:[#allocation13 + $0x18] sm:$0xff]  ;;  %v2921_v55 = vld [vmem:[#allocation13 + $0x20] sm:$0xff] }
 0x660   : > { %v2933_v32 = vld [vmem:[#allocation4 + $0x1] sm:$0xff]  ;;  %v2934_v30 = vld [vmem:[#allocation4 + $0x9] sm:$0xff]  ;;  %v5650_v53 = vpack.c.bf16 %v2920_v52, %v2919_v51  ;;  %v2922_v56 = vld [vmem:[#allocation13 + $0x28] sm:$0xff] }
 0x661   : > { %4911 = vmatprep.mubr.f32.mxu0 %v2933_v32  ;;  %5621 = vmatpush3.bf16.msra.mxu0 %v5618_v57  ;;  %v2915_v54 = vld [vmem:[#allocation4] sm:$0xff]  ;;  %v5654_v58 = vpack.c.bf16 %v2922_v56, %v2921_v55  ;;  %v2924_v60 = vld [vmem:[#allocation13 + $0x38] sm:$0xff]  ;;  %v2925_v62 = vld [vmem:[#allocation13 + $0x40] sm:$0xff] }
 0x662   : > { %5623 = vmatprep.subr.bf16.mxu0 %v5622_v31  ;;  %v2923_v59 = vld [vmem:[#allocation13 + $0x30] sm:$0xff]  ;;  %v2926_v63 = vld [vmem:[#allocation13 + $0x48] sm:$0xff]  ;;  %v2928_v3 = vld [vmem:[#allocation13 + $0x58] sm:$0xff] }
 0x663   : > { %v5658_v61 = vpack.c.bf16 %v2924_v60, %v2923_v59  ;;  %v5662_v0 = vpack.c.bf16 %v2926_v63, %v2925_v62  ;;  %v2927_v2 = vld [vmem:[#allocation13 + $0x50] sm:$0xff]  ;;  %v2929_v5 = vld [vmem:[#allocation13 + $0x60] sm:$0xff]  ;;  %v2930_v6 = vld [vmem:[#allocation13 + $0x68] sm:$0xff] }
 0x664   : > { %v5666_v4 = vpack.c.bf16 %v2928_v3, %v2927_v2  ;;  %v5670_v7 = vpack.c.bf16 %v2930_v6, %v2929_v5  ;;  %v2931_v8 = vld [vmem:[#allocation13 + $0x70] sm:$0xff]  ;;  %v2932_v9 = vld [vmem:[#allocation13 + $0x78] sm:$0xff]  ;;  %v3105_v11 = vld [vmem:[#allocation13 + $0x100] sm:$0xff] }
 0x665   : > { %5625 = vmatpush3.bf16.msra.mxu0 %v5622_v31  ;;  %v5674_v10 = vpack.c.bf16 %v2932_v9, %v2931_v8  ;;  %v3106_v12 = vld [vmem:[#allocation13 + $0x108] sm:$0xff]  ;;  %v3107_v14 = vld [vmem:[#allocation13 + $0x110] sm:$0xff]  ;;  %v3108_v15 = vld [vmem:[#allocation13 + $0x118] sm:$0xff] }
 0x666   : > { %5627 = vmatprep.subr.bf16.mxu0 %v5626_v35  ;;  %v5678_v13 = vpack.c.bf16 %v3106_v12, %v3105_v11  ;;  %v2916_v16 = vld [vmem:[#allocation4 + $0x8] sm:$0xff]  ;;  %v5682_v17 = vpack.c.bf16 %v3108_v15, %v3107_v14  ;;  %v3109_v20 = vld [vmem:[#allocation13 + $0x120] sm:$0xff]  ;;  %v3110_v21 = vld [vmem:[#allocation13 + $0x128] sm:$0xff] }
 0x667   : > { %v3102_v19 = vld [vmem:[#allocation4 + $0x2] sm:$0xff]  ;;  %v5686_v22 = vpack.c.bf16 %v3110_v21, %v3109_v20  ;;  %v3113_v29 = vld [vmem:[#allocation13 + $0x140] sm:$0xff]  ;;  %v3114_v24 = vld [vmem:[#allocation13 + $0x148] sm:$0xff] }
 0x668   : > { %v3111_v23 = vld [vmem:[#allocation13 + $0x130] sm:$0xff]  ;;  %v3112_v18 = vld [vmem:[#allocation13 + $0x138] sm:$0xff]  ;;  %v5694_v25 = vpack.c.bf16 %v3114_v24, %v3113_v29  ;;  %v3117_v27 = vld [vmem:[#allocation13 + $0x160] sm:$0xff] }
 0x669   : > { %5629 = vmatpush3.bf16.msra.mxu0 %v5626_v35  ;;  %v5690_v28 = vpack.c.bf16 %v3112_v18, %v3111_v23  ;;  %v3115_v26 = vld [vmem:[#allocation13 + $0x150] sm:$0xff]  ;;  %v3116_v57 = vld [vmem:[#allocation13 + $0x158] sm:$0xff]  ;;  %v3118_v31 = vld [vmem:[#allocation13 + $0x168] sm:$0xff] }
 0x66a   : > { %5631 = vmatprep.subr.bf16.mxu0 %v5630_v38  ;;  %v5698_v1 = vpack.c.bf16 %v3116_v57, %v3115_v26  ;;  %v5702_v32 = vpack.c.bf16 %v3118_v31, %v3117_v27  ;;  %v3119_v33 = vld [vmem:[#allocation13 + $0x170] sm:$0xff]  ;;  %v3120_v34 = vld [vmem:[#allocation13 + $0x178] sm:$0xff]  ;;  %v3201_v36 = vld [vmem:[#allocation13 + $0x180] sm:$0xff] }
 0x66b   : > { %v5706_v35 = vpack.c.bf16 %v3120_v34, %v3119_v33  ;;  %v3202_v37 = vld [vmem:[#allocation13 + $0x188] sm:$0xff]  ;;  %v3203_v39 = vld [vmem:[#allocation13 + $0x190] sm:$0xff]  ;;  %v3204_v40 = vld [vmem:[#allocation13 + $0x198] sm:$0xff] }
 0x66c   : > { %v5714_v42 = vpack.c.bf16 %v3204_v40, %v3203_v39  ;;  %v3198_v43 = vld [vmem:[#allocation4 + $0x3] sm:$0xff]  ;;  %v3206_v45 = vld [vmem:[#allocation13 + $0x1a8] sm:$0xff]  ;;  %v3213_v55 = vld [vmem:[#allocation13 + $0x1e0] sm:$0xff] }
 0x66d   : > { %5633 = vmatpush3.bf16.msra.mxu0 %v5630_v38  ;;  %v5710_v38 = vpack.c.bf16 %v3202_v37, %v3201_v36  ;;  %v3208_v48 = vld [vmem:[#allocation13 + $0x1b8] sm:$0xff]  ;;  %v3210_v51 = vld [vmem:[#allocation13 + $0x1c8] sm:$0xff]  ;;  %v3215_v59 = vld [vmem:[#allocation13 + $0x1f0] sm:$0xff] }
 0x66e   : > { %5635 = vmatprep.subr.bf16.mxu0 %v5634_v41  ;;  %v3214_v56 = vld [vmem:[#allocation13 + $0x1e8] sm:$0xff]  ;;  %v3216_v60 = vld [vmem:[#allocation13 + $0x1f8] sm:$0xff]  ;;  %v3297_v62 = vld [vmem:[#allocation13 + $0x200] sm:$0xff] }
 0x66f   : > { %v3298_v63 = vld [vmem:[#allocation13 + $0x208] sm:$0xff]  ;;  %v3299_v2 = vld [vmem:[#allocation13 + $0x210] sm:$0xff]  ;;  %v3300_v3 = vld [vmem:[#allocation13 + $0x218] sm:$0xff] }
 0x670   : > { %v5746_v5 = vpack.c.bf16 %v3300_v3, %v3299_v2  ;;  %v3294_v6 = vld [vmem:[#allocation4 + $0x4] sm:$0xff]  ;;  %v3302_v8 = vld [vmem:[#allocation13 + $0x228] sm:$0xff]  ;;  %v3309_v20 = vld [vmem:[#allocation13 + $0x260] sm:$0xff] }
 0x671   : > { %5637 = vmatpush3.bf16.msra.mxu0 %v5634_v41  ;;  %v3103_v41 = vld [vmem:[#allocation4 + $0xa] sm:$0xff]  ;;  %v3306_v14 = vld [vmem:[#allocation13 + $0x248] sm:$0xff]  ;;  %v3311_v23 = vld [vmem:[#allocation13 + $0x270] sm:$0xff] }
 0x672   : > { %5639 = vmatprep.subr.bf16.mxu0 %v5638_v44  ;;  %v3304_v11 = vld [vmem:[#allocation13 + $0x238] sm:$0xff]  ;;  %v3310_v21 = vld [vmem:[#allocation13 + $0x268] sm:$0xff]  ;;  %v3604_v24 = vld [vmem:[%s6771_s23] ss:$0 sm:$0xff] }
 0x673   : > { %v3312_v18 = vld [vmem:[#allocation13 + $0x278] sm:$0xff] }
 0x674   : > { %v3295_v29 = vld [vmem:[#allocation4 + $0xc] sm:$0xff] }
 0x675   : > { %5641 = vmatpush3.bf16.msra.mxu0 %v5638_v44  ;;  %v3205_v44 = vld [vmem:[#allocation13 + $0x1a0] sm:$0xff] }
 0x676   : > { %5643 = vmatprep.subr.bf16.mxu0 %v5642_v47  ;;  %v5718_v46 = vpack.c.bf16 %v3206_v45, %v3205_v44 }
 0x679   : > { %5645 = vmatpush3.bf16.msra.mxu0 %v5642_v47  ;;  %v3207_v47 = vld [vmem:[#allocation13 + $0x1b0] sm:$0xff] }
 0x67a   : > { %5647 = vmatprep.subr.bf16.mxu0 %v5646_v50  ;;  %v5722_v49 = vpack.c.bf16 %v3208_v48, %v3207_v47 }
 0x67c   : > { %4912 = vmatmul.mubr.f32.vlgmr.msra.gmra.mrb[34].mxu0 %v2934_v30  ;;  %v3211_v30 = vld [vmem:[#allocation13 + $0x1d0] sm:$0xff] }
 0x67d   : > { %5649 = vmatpush3.bf16.msra.mxu0 %v5646_v50  ;;  %4946 = vmatprep.mubr.f32.mxu0 %v2915_v54  ;;  %v3209_v50 = vld [vmem:[#allocation13 + $0x1c0] sm:$0xff] }
 0x67e   : > { %5651 = vmatprep.subr.bf16.mxu0 %v5650_v53  ;;  %v5726_v52 = vpack.c.bf16 %v3210_v51, %v3209_v50 }
 0x681   : > { %5653 = vmatpush3.bf16.msra.mxu0 %v5650_v53  ;;  %v3212_v53 = vld [vmem:[#allocation13 + $0x1d8] sm:$0xff] }
 0x682   : > { %5655 = vmatprep.subr.bf16.mxu0 %v5654_v58  ;;  %v5730_v54 = vpack.c.bf16 %v3212_v53, %v3211_v30 }
 0x685   : > { %5657 = vmatpush3.bf16.msra.mxu0 %v5654_v58  ;;  %v5734_v58 = vpack.c.bf16 %v3214_v56, %v3213_v55 }
 0x686   : > { %5659 = vmatprep.subr.bf16.mxu0 %v5658_v61 }
 0x689   : > { %5661 = vmatpush3.bf16.msra.mxu0 %v5658_v61  ;;  %v5738_v61 = vpack.c.bf16 %v3216_v60, %v3215_v59 }
 0x68a   : > { %5663 = vmatprep.subr.bf16.mxu0 %v5662_v0 }
 0x68d   : > { %5665 = vmatpush3.bf16.msra.mxu0 %v5662_v0  ;;  %v5742_v0 = vpack.c.bf16 %v3298_v63, %v3297_v62 }
 0x68e   : > { %5667 = vmatprep.subr.bf16.mxu0 %v5666_v4 }
 0x691   : > { %5669 = vmatpush3.bf16.msra.mxu0 %v5666_v4  ;;  %v3199_v4 = vld [vmem:[#allocation4 + $0xb] sm:$0xff] }
 0x692   : > { %5671 = vmatprep.subr.bf16.mxu0 %v5670_v7 }
 0x695   : > { %5673 = vmatpush3.bf16.msra.mxu0 %v5670_v7  ;;  %v3301_v7 = vld [vmem:[#allocation13 + $0x220] sm:$0xff] }
 0x696   : > { %5675 = vmatprep.subr.bf16.mxu0 %v5674_v10  ;;  %v5750_v9 = vpack.c.bf16 %v3302_v8, %v3301_v7 }
 0x699   : > { %5677 = vmatpush3.bf16.msra.mxu0 %v5674_v10  ;;  %v3303_v10 = vld [vmem:[#allocation13 + $0x230] sm:$0xff] }
 0x69a   : > { %5679 = vmatprep.subr.bf16.mxu0 %v5678_v13  ;;  %v5754_v12 = vpack.c.bf16 %v3304_v11, %v3303_v10 }
 0x69c   : > { %4947 = vmatmul.mubr.f32.vlgmr.msra.gmra.mrb[34].mxu0 %v2916_v16  ;;  %v3307_v16 = vld [vmem:[#allocation13 + $0x250] sm:$0xff] }
 0x69d   : > { %5681 = vmatpush3.bf16.msra.mxu0 %v5678_v13  ;;  %4981 = vmatprep.mubr.f32.mxu0 %v3102_v19  ;;  %v3305_v13 = vld [vmem:[#allocation13 + $0x240] sm:$0xff] }
 0x69e   : > { %5683 = vmatprep.subr.bf16.mxu0 %v5682_v17  ;;  %v5758_v15 = vpack.c.bf16 %v3306_v14, %v3305_v13 }
 0x6a1   : > { %5685 = vmatpush3.bf16.msra.mxu0 %v5682_v17  ;;  %v3308_v17 = vld [vmem:[#allocation13 + $0x258] sm:$0xff] }
 0x6a2   : > { %5687 = vmatprep.subr.bf16.mxu0 %v5686_v22  ;;  %v5762_v19 = vpack.c.bf16 %v3308_v17, %v3307_v16 }
 0x6a5   : > { %5689 = vmatpush3.bf16.msra.mxu0 %v5686_v22  ;;  %v5766_v22 = vpack.c.bf16 %v3310_v21, %v3309_v20 }
 0x6a6   : > { %5691 = vmatprep.subr.bf16.mxu0 %v5690_v28 }
 0x6a9   : > { %5693 = vmatpush3.bf16.msra.mxu0 %v5690_v28  ;;  %v5770_v28 = vpack.c.bf16 %v3312_v18, %v3311_v23 }
 0x6aa   : > { %5695 = vmatprep.subr.bf16.mxu0 %v5694_v25 }
 0x6ad   : > { %5697 = vmatpush3.bf16.msra.mxu0 %v5694_v25 }
 0x6ae   : > { %5699 = vmatprep.subr.bf16.mxu0 %v5698_v1 }
 0x6b1   : > { %5701 = vmatpush3.bf16.msra.mxu0 %v5698_v1 }
 0x6b2   : > { %5703 = vmatprep.subr.bf16.mxu0 %v5702_v32 }
 0x6b5   : > { %5705 = vmatpush3.bf16.msra.mxu0 %v5702_v32 }
 0x6b6   : > { %5707 = vmatprep.subr.bf16.mxu0 %v5706_v35 }
 0x6b9   : > { %5709 = vmatpush3.bf16.msra.mxu0 %v5706_v35 }
 0x6ba   : > { %5711 = vmatprep.subr.bf16.mxu0 %v5710_v38 }
 0x6bc   : > { %4982 = vmatmul.mubr.f32.vlgmr.msra.gmra.mrb[34].mxu0 %v3103_v41 }
 0x6bd   : > { %5713 = vmatpush3.bf16.msra.mxu0 %v5710_v38  ;;  %5016 = vmatprep.mubr.f32.mxu0 %v3198_v43 }
 0x6be   : > { %5715 = vmatprep.subr.bf16.mxu0 %v5714_v42 }
 0x6c1   : > { %5717 = vmatpush3.bf16.msra.mxu0 %v5714_v42 }
 0x6c2   : > { %5719 = vmatprep.subr.bf16.mxu0 %v5718_v46 }
 0x6c5   : > { %5721 = vmatpush3.bf16.msra.mxu0 %v5718_v46 }
 0x6c6   : > { %5723 = vmatprep.subr.bf16.mxu0 %v5722_v49 }
 0x6c9   : > { %5725 = vmatpush3.bf16.msra.mxu0 %v5722_v49 }
 0x6ca   : > { %5727 = vmatprep.subr.bf16.mxu0 %v5726_v52 }
 0x6cd   : > { %5729 = vmatpush3.bf16.msra.mxu0 %v5726_v52 }
 0x6ce   : > { %5731 = vmatprep.subr.bf16.mxu0 %v5730_v54 }
 0x6d1   : > { %5733 = vmatpush3.bf16.msra.mxu0 %v5730_v54 }
 0x6d2   : > { %5735 = vmatprep.subr.bf16.mxu0 %v5734_v58 }
 0x6d5   : > { %5737 = vmatpush3.bf16.msra.mxu0 %v5734_v58 }
 0x6d6   : > { %5739 = vmatprep.subr.bf16.mxu0 %v5738_v61 }
 0x6d9   : > { %5741 = vmatpush3.bf16.msra.mxu0 %v5738_v61 }
 0x6da   : > { %5743 = vmatprep.subr.bf16.mxu0 %v5742_v0 }
 0x6dc   : > { %5017 = vmatmul.mubr.f32.vlgmr.msra.gmra.mrb[34].mxu0 %v3199_v4 }
 0x6dd   : > { %5745 = vmatpush3.bf16.msra.mxu0 %v5742_v0  ;;  %5051 = vmatprep.mubr.f32.mxu0 %v3294_v6 }
 0x6de   : > { %5747 = vmatprep.subr.bf16.mxu0 %v5746_v5 }
 0x6e1   : > { %5749 = vmatpush3.bf16.msra.mxu0 %v5746_v5 }
 0x6e2   : > { %5751 = vmatprep.subr.bf16.mxu0 %v5750_v9 }
 0x6e5   : > { %5753 = vmatpush3.bf16.msra.mxu0 %v5750_v9 }
 0x6e6   : > { %5755 = vmatprep.subr.bf16.mxu0 %v5754_v12 }
 0x6e9   : > { %5757 = vmatpush3.bf16.msra.mxu0 %v5754_v12 }
 0x6ea   : > { %5759 = vmatprep.subr.bf16.mxu0 %v5758_v15 }
 0x6ed   : > { %5761 = vmatpush3.bf16.msra.mxu0 %v5758_v15 }
 0x6ee   : > { %5763 = vmatprep.subr.bf16.mxu0 %v5762_v19 }
 0x6f1   : > { %5765 = vmatpush3.bf16.msra.mxu0 %v5762_v19 }
 0x6f2   : > { %5767 = vmatprep.subr.bf16.mxu0 %v5766_v22 }
 0x6f5   : > { %5769 = vmatpush3.bf16.msra.mxu0 %v5766_v22 }
 0x6f6   : > { %5771 = vmatprep.subr.bf16.mxu0 %v5770_v28 }
 0x6f9   : > { %5773 = vmatpush3.bf16.msra.mxu0 %v5770_v28 }
 0x6fc   : > { %5052 = vmatmul.mubr.f32.vlgmr.msra.gmra.mrb[34].mxu0 %v3295_v29 }
 0x7cf   : > { %v5053_v25 = vpop.f32.mrb[34].mxu0 }
 0x7d0   : > { %v3398_v26 = vadd.f32 %v5053_v25, %v3604_v24  ;;  %v3379_v57 = vpop.f32.mrb[35].mxu0 }
 0x7d1   : > { %v3397_v1 = vadd.f32 %v3604_v24, %v3379_v57 }
 0x7d2   : > { %3400 = vst [vmem:[%s6396_s10 + $0x8] sm:$0xff] %v3398_v26 }
 0x7d3   : > { %3399 = vst [vmem:[%s6396_s10] sm:$0xff] %v3397_v1 }
 0x7d4 PF: > { %s6772_s26 = sld [smem:[#allocation20_spill]]  ;;  %s6773_s17 = smov %s6123_s19 }
 0x7d5   : > { %s6774_s18 = smov %s6127_s20  ;;  %s6775_s19 = smov %s6779_s21 }
 0x7d6   : > { %s6776_s20 = smov %s6783_s13 }
 0x7da   : > { %s24_s9 = sadd.s32 1, %s6772_s26  }
 0x7db   : > { %p21_p11 = scmp.ge.s32.totalorder %s24_s9, 8   ;;  %s6777_s21 = smov %s24_s9 }
 0x7dd   :  { %23 = sbr.rel (!%p21_p11) target bundleno = 11 (0xb), region = 245 }
 0x7e4   :  { %3431 = vsyncpa [#allocation7], 1 }
 0x7e5   :  { %3433 = vsyncpa [#allocation7 + $0x1], 1 }
 0x7e6   :  { %3434 = vsyncpa [#allocation9], 1 }
 0x7e7   :  { %3435 = vsyncpa [#allocation12], 1 }
 0x7e8   :  { %3436 = vsyncmov [#allocation5] }
 0x7eb   :  { %s3437_s10 = vpop.sfrf %3436 }
 0x7ec   :  { %p3607_p12 = scmp.ne.s32.totalorder %s3437_s10, 0 }
 0x7ee   :  { %3441 = shalt.err (%p3607_p12)  }
 0x7ef   :  { %3443 = vsyncmov [#allocation5 + $0x1] }
 0x7f2   :  { %s3444_s14 = vpop.sfrf %3443 }
 0x7f3   :  { %p3608_p13 = scmp.ne.s32.totalorder %s3444_s14, 0 }
 0x7f5   :  { %3448 = shalt.err (%p3608_p13)  }

</bundles_post_ra>
